<compile_context>
chip_gen: v5e
topology: v5e:2x2
jax: 0.10.0
libtpu: 0.0.40
codegen_flags: <defaults>
</compile_context>

<pallas_src>
import functools

import jax
import jax.numpy as jnp
from jax.experimental import pallas as pl
from jax.experimental.pallas import tpu as pltpu

NEG_SLOPE = 0.2
BN_EPS = 1e-5


# ----------------------------- tiling helpers -----------------------------

def _round_up(x, m):
    return ((x + m - 1) // m) * m


def _m_tile(m, target=512):
    # Row tile: multiple of 16 (bf16 sublane packing), capped at `target`.
    return min(target, _round_up(m, 16))


def _k_tile(k, target=1024):
    # Largest lane-dense (multiple of 128) divisor of k that is <= target.
    if k <= target:
        return k
    for t in range(target - target % 128, 127, -128):
        if k % t == 0:
            return t
    return k


def _pad_rows(x, m_pad):
    m = x.shape[0]
    if m_pad == m:
        return x
    return jnp.pad(x, ((0, m_pad - m), (0, 0)))


# ------------------- conv1: matmul + bias + LeakyReLU ---------------------

def _conv_bias_lrelu_kernel(x_ref, w_ref, b_ref, o_ref):
    # bf16 operands on the MXU, f32 accumulate + epilogue, bf16 store.
    y = jnp.dot(x_ref[...], w_ref[...], preferred_element_type=jnp.float32)
    y = y + b_ref[...]
    o_ref[...] = jnp.where(y > 0, y, NEG_SLOPE * y).astype(o_ref.dtype)


def conv_bias_lrelu(x, w, b, tm):
    mp, k = x.shape
    _, n = w.shape
    return pl.pallas_call(
        _conv_bias_lrelu_kernel,
        out_shape=jax.ShapeDtypeStruct((mp, n), jnp.bfloat16),
        grid_spec=pltpu.PrefetchScalarGridSpec(
            num_scalar_prefetch=0,
            grid=(mp // tm,),
            in_specs=[pl.BlockSpec((tm, k), lambda i: (i, 0)),
                      pl.BlockSpec((k, n), lambda i: (0, 0)),
                      pl.BlockSpec((1, n), lambda i: (0, 0))],
            out_specs=pl.BlockSpec((tm, n), lambda i: (i, 0))),
        compiler_params=pltpu.CompilerParams(
            dimension_semantics=("parallel",)),
    )(x, w, b)


# ---- conv2: matmul + bias + BatchNorm2d (batch stats) + LeakyReLU (fused) ----

def _conv_bn_lrelu_kernel(x_ref, w_ref, b_ref, g_ref, beta_ref, o_ref,
                          y_scr, sum_scr, sq_scr, *, m_real, tm):
    i = pl.program_id(0)

    @pl.when(i == 0)
    def _():
        sum_scr[...] = jnp.zeros_like(sum_scr)
        sq_scr[...] = jnp.zeros_like(sq_scr)

    y = jnp.dot(x_ref[...], w_ref[...], preferred_element_type=jnp.float32)
    y = y + b_ref[...]

    # Mask zero-padded rows out of the batch statistics.
    row = i * tm + jax.lax.broadcasted_iota(jnp.int32, y.shape, 0)
    ym = jnp.where(row < m_real, y, 0.0)
    sum_scr[...] += jnp.sum(ym, axis=0, keepdims=True)
    sq_scr[...] += jnp.sum(ym * ym, axis=0, keepdims=True)

    # Stash the pre-BN f32 tile in the full-size VMEM scratch (no HBM round trip).
    off = pl.multiple_of(i * tm, tm)
    y_scr[pl.ds(off, tm), :] = y

    @pl.when(i == pl.num_programs(0) - 1)
    def _():
        inv_m = 1.0 / m_real
        mean = sum_scr[...] * inv_m
        var = jnp.maximum(sq_scr[...] * inv_m - mean * mean, 0.0)
        yn = (y_scr[...] - mean) * jax.lax.rsqrt(var + BN_EPS)
        yn = yn * g_ref[...] + beta_ref[...]
        o_ref[...] = jnp.where(yn > 0, yn, NEG_SLOPE * yn).astype(o_ref.dtype)


def conv_bn_lrelu(x, w, b, g, beta, tm, m_real):
    mp, k = x.shape
    _, n = w.shape
    kern = functools.partial(_conv_bn_lrelu_kernel, m_real=m_real, tm=tm)
    return pl.pallas_call(
        kern,
        out_shape=jax.ShapeDtypeStruct((mp, n), jnp.bfloat16),
        grid_spec=pltpu.PrefetchScalarGridSpec(
            num_scalar_prefetch=0,
            grid=(mp // tm,),
            in_specs=[pl.BlockSpec((tm, k), lambda i: (i, 0)),
                      pl.BlockSpec((k, n), lambda i: (0, 0)),
                      pl.BlockSpec((1, n), lambda i: (0, 0)),
                      pl.BlockSpec((1, n), lambda i: (0, 0)),
                      pl.BlockSpec((1, n), lambda i: (0, 0))],
            out_specs=pl.BlockSpec((mp, n), lambda i: (0, 0)),   # resident output
            scratch_shapes=[pltpu.VMEM((mp, n), jnp.float32),
                            pltpu.VMEM((1, n), jnp.float32),
                            pltpu.VMEM((1, n), jnp.float32)]),
        compiler_params=pltpu.CompilerParams(
            dimension_semantics=("arbitrary",)),   # resident accumulators / output
    )(x, w, b, g, beta)


# ---- fc: Linear(6272,1024) + BatchNorm1d + LeakyReLU + Linear(1024,out) ----

def _fc_bn_lrelu_final_kernel(x_ref, w1_ref, b1_ref, g_ref, beta_ref,
                              w2_ref, b2_ref, o_ref, acc_ref):
    # K-tiled Linear(fc_in->1024) with resident f32 accumulator; the epilogue fuses
    # BatchNorm1d + LeakyReLU + the final Linear(1024->out_dim).
    k = pl.program_id(0)

    @pl.when(k == 0)
    def _():
        acc_ref[...] = jnp.zeros_like(acc_ref)

    acc_ref[...] += jnp.dot(x_ref[...], w1_ref[...],
                            preferred_element_type=jnp.float32)

    @pl.when(k == pl.num_programs(0) - 1)
    def _():
        y = acc_ref[...] + b1_ref[...]
        nrows = y.shape[0]
        inv_m = 1.0 / nrows
        s = jnp.sum(y, axis=0, keepdims=True)
        sq = jnp.sum(y * y, axis=0, keepdims=True)
        mean = s * inv_m
        var = jnp.maximum(sq * inv_m - mean * mean, 0.0)
        yn = (y - mean) * jax.lax.rsqrt(var + BN_EPS)
        yn = yn * g_ref[...] + beta_ref[...]
        h = jnp.where(yn > 0, yn, NEG_SLOPE * yn)
        o_ref[...] = (jnp.dot(h.astype(jnp.bfloat16), w2_ref[...],
                              preferred_element_type=jnp.float32)
                      + b2_ref[...])


def fc_bn_lrelu_final(x, w1, b1, g, beta, w2, b2):
    m, k = x.shape
    _, n1 = w1.shape
    _, n2 = w2.shape
    tk = _k_tile(k)
    assert k % tk == 0
    return pl.pallas_call(
        _fc_bn_lrelu_final_kernel,
        out_shape=jax.ShapeDtypeStruct((m, n2), jnp.float32),
        grid_spec=pltpu.PrefetchScalarGridSpec(
            num_scalar_prefetch=0,
            grid=(k // tk,),
            in_specs=[pl.BlockSpec((m, tk), lambda i: (0, i)),
                      pl.BlockSpec((tk, n1), lambda i: (i, 0)),
                      pl.BlockSpec((1, n1), lambda i: (0, 0)),
                      pl.BlockSpec((1, n1), lambda i: (0, 0)),
                      pl.BlockSpec((1, n1), lambda i: (0, 0)),
                      pl.BlockSpec((n1, n2), lambda i: (0, 0)),
                      pl.BlockSpec((1, n2), lambda i: (0, 0))],
            out_specs=pl.BlockSpec((m, n2), lambda i: (0, 0)),
            scratch_shapes=[pltpu.VMEM((m, n1), jnp.float32)]),
        compiler_params=pltpu.CompilerParams(
            dimension_semantics=("arbitrary",)),
    )(x, w1, b1, g, beta, w2, b2)


# ----------------------------- glue (plain JAX) -----------------------------

def im2col(x_nhwc, k, s, p):
    """Extract k*k patches with stride s and zero-pad p from an NHWC input.

    Returns (B*Ho*Wo, k*k*C) with column ordering (kh, kw, c), plus (Ho, Wo).
    """
    # TODO(synk): fuse im2col into the conv kernels (strided reads from the padded
    # NHWC activation inside the kernel) to avoid the 4x-inflated patch round trip.
    B, H, W, C = x_nhwc.shape
    xp = jnp.pad(x_nhwc, ((0, 0), (p, p), (p, p), (0, 0)))
    Ho = (H + 2 * p - k) // s + 1
    Wo = (W + 2 * p - k) // s + 1
    cols = []
    for kh in range(k):
        for kw in range(k):
            cols.append(xp[:, kh:kh + s * Ho:s, kw:kw + s * Wo:s, :])
    patches = jnp.concatenate(cols, axis=-1)            # (B, Ho, Wo, k*k*C)
    return patches.reshape(B * Ho * Wo, k * k * C), Ho, Wo


def _conv_w_to_mat(w):
    # torch Conv2d weight (O, C, kh, kw) -> (kh*kw*C, O), matching im2col order.
    O, C, kh, kw = w.shape
    return jnp.transpose(w, (2, 3, 1, 0)).reshape(kh * kw * C, O)


def init_params(key, input_dim, y_dim, input_h, input_w, output_dim):
    # Deterministic synthetic init (DCGAN-style: N(0, 0.02) weights, zero bias,
    # BatchNorm gamma ~ N(1, 0.02), beta = 0), mimicking util.initialize_weights.
    # Matmul weights are laid out for the kernels and cast to bf16 ONCE here.
    ks = jax.random.split(key, 6)
    c_in = input_dim + y_dim
    fh, fw = input_h // 4, input_w // 4
    hw_sz = fh * fw
    fc_in = 128 * hw_sz

    conv1_w = 0.02 * jax.random.normal(ks[0], (64, c_in, 4, 4), jnp.float32)
    conv2_w = 0.02 * jax.random.normal(ks[1], (128, 64, 4, 4), jnp.float32)
    fc1_w = 0.02 * jax.random.normal(ks[3], (1024, fc_in), jnp.float32)
    final_w = 0.02 * jax.random.normal(ks[5], (output_dim, 1024), jnp.float32)

    # Fold torch's channel-major flatten (x.view(-1, 128*7*7) on NCHW) into fc1's
    # weight: permute its columns to NHWC order once, so forward() can flatten the
    # NHWC conv2 output directly without a per-call transpose.
    j = jnp.arange(fc_in)
    perm = (j % 128) * hw_sz + (j // 128)        # NHWC col j -> torch col
    fc1_w_nhwc = fc1_w[:, perm]

    return {
        "conv1_wm": _conv_w_to_mat(conv1_w).astype(jnp.bfloat16),   # (176, 64)
        "conv1_b": jnp.zeros((1, 64), jnp.float32),
        "conv2_wm": _conv_w_to_mat(conv2_w).astype(jnp.bfloat16),   # (1024, 128)
        "conv2_b": jnp.zeros((1, 128), jnp.float32),
        "bn2_g": (1.0 + 0.02 * jax.random.normal(ks[2], (128,), jnp.float32)
                  ).reshape(1, -1),
        "bn2_b": jnp.zeros((1, 128), jnp.float32),
        "fc1_w": jnp.transpose(fc1_w_nhwc).astype(jnp.bfloat16),    # (fc_in, 1024)
        "fc1_b": jnp.zeros((1, 1024), jnp.float32),
        "bn1d_g": (1.0 + 0.02 * jax.random.normal(ks[4], (1024,), jnp.float32)
                   ).reshape(1, -1),
        "bn1d_b": jnp.zeros((1, 1024), jnp.float32),
        "final_w": jnp.transpose(final_w).astype(jnp.bfloat16),     # (1024, out_dim)
        "final_b": jnp.zeros((1, output_dim), jnp.float32),
    }


def discriminator_forward(params, x_nchw, y):
    bs = x_nchw.shape[0]
    y_dim = y.shape[1]

    # y.unsqueeze(2).unsqueeze(3).expand(bs, y_dim, 28, 28) -- 28 hardcoded in torch.
    y_spatial = jnp.broadcast_to(y[:, :, None, None], (bs, y_dim, 28, 28))
    x = jnp.concatenate([x_nchw, y_spatial], axis=1)     # NCHW
    x = jnp.transpose(x, (0, 2, 3, 1)).astype(jnp.bfloat16)  # -> NHWC, bf16 MXU input

    # Conv2d(c_in, 64, 4, 2, 1) + LeakyReLU(0.2)
    p1, ho1, wo1 = im2col(x, 4, 2, 1)
    m1 = bs * ho1 * wo1
    tm1 = _m_tile(m1)
    p1 = _pad_rows(p1, _round_up(m1, tm1))
    h1 = conv_bias_lrelu(p1, params["conv1_wm"], params["conv1_b"], tm1)
    h1 = h1[:m1].reshape(bs, ho1, wo1, 64)

    # Conv2d(64, 128, 4, 2, 1) + BatchNorm2d(128) + LeakyReLU(0.2), fused one-pass.
    p2, ho2, wo2 = im2col(h1, 4, 2, 1)
    m2 = bs * ho2 * wo2
    tm2 = _m_tile(m2)
    p2 = _pad_rows(p2, _round_up(m2, tm2))
    h2 = conv_bn_lrelu(p2, params["conv2_wm"], params["conv2_b"],
                       params["bn2_g"], params["bn2_b"], tm2, m2)

    # NHWC flatten (fc1_w columns were permuted at init to match torch's NCHW view).
    h2 = h2[:m2].reshape(bs, ho2 * wo2 * 128)

    # Linear(6272, 1024) + BatchNorm1d(1024) + LeakyReLU(0.2) + Linear(1024, out_dim)
    # fused in one K-tiled kernel; out_nonlinearity=None -> no sigmoid.
    out = fc_bn_lrelu_final(h2, params["fc1_w"], params["fc1_b"],
                            params["bn1d_g"], params["bn1d_b"],
                            params["final_w"], params["final_b"])
    return out


if __name__ == "__main__":
    key = jax.random.PRNGKey(0)
    k_in, k_y, k_p = jax.random.split(key, 3)

    bs, input_dim, y_dim, output_dim = 2, 1, 10, 1
    H = W = 28  # forward() hardcodes the 28x28 spatial expand

    x = jax.random.normal(k_in, (bs, input_dim, H, W), jnp.float32)
    y = jax.random.normal(k_y, (bs, y_dim), jnp.float32)
    params = init_params(k_p, input_dim, y_dim, H, W, output_dim)

    fwd = jax.jit(discriminator_forward)
    out = jax.block_until_ready(fwd(params, x, y))
    assert out.shape == (bs, output_dim) and out.dtype == jnp.float32
    print("KERNEL_OK")
</pallas_src>

<mosaic_0001>
module attributes {stable_mosaic.version = 11 : i64} {
  func.func @_conv_bias_lrelu_kernel(%arg0: i32, %arg1: memref<400x176xbf16, #tpu.memory_space<vmem>>, %arg2: memref<176x64xbf16, #tpu.memory_space<vmem>>, %arg3: memref<1x64xf32, #tpu.memory_space<vmem>>, %arg4: memref<400x64xbf16, #tpu.memory_space<vmem>>) attributes {dimension_semantics = [#tpu.dimension_semantics<parallel>], iteration_bounds = array<i64: 1>, scalar_prefetch = 0 : i64, scratch_operands = 0 : i64, tpu.core_type = #tpu.core_type<tc>, window_params = [{transform_indices = @transform_0, window_bounds = array<i64: 400, 176>}, {pipeline_mode = #tpu.pipeline_mode<synchronous>, transform_indices = @transform_1, window_bounds = array<i64: 176, 64>}, {pipeline_mode = #tpu.pipeline_mode<synchronous>, transform_indices = @transform_2, window_bounds = array<i64: 1, 64>}, {transform_indices = @transform_3, window_bounds = array<i64: 400, 64>}]} {
    %c0 = arith.constant 0 : index
    %c0_0 = arith.constant 0 : index
    %0 = vector.load %arg1[%c0, %c0_0] : memref<400x176xbf16, #tpu.memory_space<vmem>>, vector<400x176xbf16>
    %c0_1 = arith.constant 0 : index
    %c0_2 = arith.constant 0 : index
    %1 = vector.load %arg2[%c0_1, %c0_2] : memref<176x64xbf16, #tpu.memory_space<vmem>>, vector<176x64xbf16>
    %cst = arith.constant dense<0.000000e+00> : vector<400x64xf32>
    %2 = tpu.matmul %0, %1, %cst {dimension_numbers = #tpu.dot_dimension_numbers<[1], [0], [0], [1], [0, 0, 1, 1], [], []>} : vector<400x176xbf16>, vector<176x64xbf16>, vector<400x64xf32> -> vector<400x64xf32>
    %c0_3 = arith.constant 0 : index
    %c0_4 = arith.constant 0 : index
    %3 = vector.load %arg3[%c0_3, %c0_4] : memref<1x64xf32, #tpu.memory_space<vmem>>, vector<1x64xf32>
    %4 = vector.broadcast %3 : vector<1x64xf32> to vector<400x64xf32>
    %5 = arith.addf %2, %4 : vector<400x64xf32>
    %cst_5 = arith.constant 0.000000e+00 : f32
    %6 = vector.broadcast %cst_5 : f32 to vector<400x64xf32>
    %7 = arith.cmpf ogt, %5, %6 : vector<400x64xf32>
    %cst_6 = arith.constant 2.000000e-01 : f32
    %8 = vector.broadcast %cst_6 : f32 to vector<400x64xf32>
    %9 = arith.mulf %8, %5 : vector<400x64xf32>
    %10 = arith.select %7, %5, %9 : vector<400x64xi1>, vector<400x64xf32>
    %11 = arith.truncf %10 : vector<400x64xf32> to vector<400x64xbf16>
    %c0_7 = arith.constant 0 : index
    %c0_8 = arith.constant 0 : index
    %12 = vector.load %arg4[%c0_7, %c0_8] : memref<400x64xbf16, #tpu.memory_space<vmem>>, vector<400x64xbf16>
    tpu.vector_store %arg4[%c0_7, %c0_8], %11 {strides = array<i32>} : memref<400x64xbf16, #tpu.memory_space<vmem>>, vector<400x64xbf16>,
    return
  }
  func.func @transform_0(%arg0: i32) -> (i32, i32) {
    %c0_i32 = arith.constant 0 : i32
    %c0_i32_0 = arith.constant 0 : i32
    return %arg0, %c0_i32 : i32, i32
  }
  func.func @transform_1(%arg0: i32) -> (i32, i32) {
    %c0_i32 = arith.constant 0 : i32
    %c0_i32_0 = arith.constant 0 : i32
    %c0_i32_1 = arith.constant 0 : i32
    return %c0_i32, %c0_i32_0 : i32, i32
  }
  func.func @transform_2(%arg0: i32) -> (i32, i32) {
    %c0_i32 = arith.constant 0 : i32
    %c0_i32_0 = arith.constant 0 : i32
    %c0_i32_1 = arith.constant 0 : i32
    return %c0_i32, %c0_i32_0 : i32, i32
  }
  func.func @transform_3(%arg0: i32) -> (i32, i32) {
    %c0_i32 = arith.constant 0 : i32
    %c0_i32_0 = arith.constant 0 : i32
    return %arg0, %c0_i32 : i32, i32
  }
}

module attributes {stable_mosaic.version = 11 : i64} {
  func.func @_conv_bn_lrelu_kernel(%arg0: i32, %arg1: memref<112x1024xbf16, #tpu.memory_space<vmem>>, %arg2: memref<1024x128xbf16, #tpu.memory_space<vmem>>, %arg3: memref<1x128xf32, #tpu.memory_space<vmem>>, %arg4: memref<1x128xf32, #tpu.memory_space<vmem>>, %arg5: memref<1x128xf32, #tpu.memory_space<vmem>>, %arg6: memref<112x128xbf16, #tpu.memory_space<vmem>>, %arg7: memref<112x128xf32, #tpu.memory_space<vmem>>, %arg8: memref<1x128xf32, #tpu.memory_space<vmem>>, %arg9: memref<1x128xf32, #tpu.memory_space<vmem>>) attributes {dimension_semantics = [#tpu.dimension_semantics<arbitrary>], iteration_bounds = array<i64: 1>, scalar_prefetch = 0 : i64, scratch_operands = 3 : i64, tpu.core_type = #tpu.core_type<tc>, window_params = [{transform_indices = @transform_0, window_bounds = array<i64: 112, 1024>}, {pipeline_mode = #tpu.pipeline_mode<synchronous>, transform_indices = @transform_1, window_bounds = array<i64: 1024, 128>}, {pipeline_mode = #tpu.pipeline_mode<synchronous>, transform_indices = @transform_2, window_bounds = array<i64: 1, 128>}, {pipeline_mode = #tpu.pipeline_mode<synchronous>, transform_indices = @transform_3, window_bounds = array<i64: 1, 128>}, {pipeline_mode = #tpu.pipeline_mode<synchronous>, transform_indices = @transform_4, window_bounds = array<i64: 1, 128>}, {pipeline_mode = #tpu.pipeline_mode<synchronous>, transform_indices = @transform_5, window_bounds = array<i64: 112, 128>}]} {
    %c0_i32 = arith.constant 0 : i32
    %0 = arith.cmpi eq, %arg0, %c0_i32 : i32
    %1 = arith.extui %0 : i1 to i32
    %c0_i32_0 = arith.constant 0 : i32
    %2 = arith.cmpi ne, %1, %c0_i32_0 : i32
    scf.if %2 {
      %cst_21 = arith.constant 0.000000e+00 : f32
      %35 = vector.broadcast %cst_21 : f32 to vector<1x128xf32>
      %c0_22 = arith.constant 0 : index
      %c0_23 = arith.constant 0 : index
      %36 = vector.load %arg8[%c0_22, %c0_23] : memref<1x128xf32, #tpu.memory_space<vmem>>, vector<1x128xf32>
      tpu.vector_store %arg8[%c0_22, %c0_23], %35 {strides = array<i32>} : memref<1x128xf32, #tpu.memory_space<vmem>>, vector<1x128xf32>,
      %cst_24 = arith.constant 0.000000e+00 : f32
      %37 = vector.broadcast %cst_24 : f32 to vector<1x128xf32>
      %c0_25 = arith.constant 0 : index
      %c0_26 = arith.constant 0 : index
      %38 = vector.load %arg9[%c0_25, %c0_26] : memref<1x128xf32, #tpu.memory_space<vmem>>, vector<1x128xf32>
      tpu.vector_store %arg9[%c0_25, %c0_26], %37 {strides = array<i32>} : memref<1x128xf32, #tpu.memory_space<vmem>>, vector<1x128xf32>,
    } else {
    }
    %c0 = arith.constant 0 : index
    %c0_1 = arith.constant 0 : index
    %3 = vector.load %arg1[%c0, %c0_1] : memref<112x1024xbf16, #tpu.memory_space<vmem>>, vector<112x1024xbf16>
    %c0_2 = arith.constant 0 : index
    %c0_3 = arith.constant 0 : index
    %4 = vector.load %arg2[%c0_2, %c0_3] : memref<1024x128xbf16, #tpu.memory_space<vmem>>, vector<1024x128xbf16>
    %cst = arith.constant dense<0.000000e+00> : vector<112x128xf32>
    %5 = tpu.matmul %3, %4, %cst {dimension_numbers = #tpu.dot_dimension_numbers<[1], [0], [0], [1], [0, 0, 1, 1], [], []>} : vector<112x1024xbf16>, vector<1024x128xbf16>, vector<112x128xf32> -> vector<112x128xf32>
    %c0_4 = arith.constant 0 : index
    %c0_5 = arith.constant 0 : index
    %6 = vector.load %arg3[%c0_4, %c0_5] : memref<1x128xf32, #tpu.memory_space<vmem>>, vector<1x128xf32>
    %7 = vector.broadcast %6 : vector<1x128xf32> to vector<112x128xf32>
    %8 = arith.addf %5, %7 : vector<112x128xf32>
    %c112_i32 = arith.constant 112 : i32
    %9 = arith.muli %arg0, %c112_i32 : i32
    %10 = tpu.iota {dimensions = array<i32: 0>} : vector<112x128xi32>
    %11 = vector.broadcast %9 : i32 to vector<112x128xi32>
    %12 = arith.addi %11, %10 : vector<112x128xi32>
    %c98_i32 = arith.constant 98 : i32
    %13 = vector.broadcast %c98_i32 : i32 to vector<112x128xi32>
    %14 = arith.cmpi slt, %12, %13 : vector<112x128xi32>
    %cst_6 = arith.constant 0.000000e+00 : f32
    %15 = vector.broadcast %cst_6 : f32 to vector<112x128xf32>
    %16 = arith.select %14, %8, %15 : vector<112x128xi1>, vector<112x128xf32>
    %c0_7 = arith.constant 0 : index
    %c0_8 = arith.constant 0 : index
    %17 = vector.load %arg8[%c0_7, %c0_8] : memref<1x128xf32, #tpu.memory_space<vmem>>, vector<1x128xf32>
    %cst_9 = arith.constant dense<0.000000e+00> : vector<128xf32>
    %18 = vector.multi_reduction <add>, %16, %cst_9 [0] : vector<112x128xf32> to vector<128xf32>
    %19 = vector.shape_cast %18 : vector<128xf32> to vector<1x128xf32>
    %20 = arith.addf %17, %19 : vector<1x128xf32>
    %c0_10 = arith.constant 0 : index
    %c0_11 = arith.constant 0 : index
    %21 = vector.load %arg8[%c0_10, %c0_11] : memref<1x128xf32, #tpu.memory_space<vmem>>, vector<1x128xf32>
    tpu.vector_store %arg8[%c0_10, %c0_11], %20 {strides = array<i32>} : memref<1x128xf32, #tpu.memory_space<vmem>>, vector<1x128xf32>,
    %c0_12 = arith.constant 0 : index
    %c0_13 = arith.constant 0 : index
    %22 = vector.load %arg9[%c0_12, %c0_13] : memref<1x128xf32, #tpu.memory_space<vmem>>, vector<1x128xf32>
    %23 = arith.mulf %16, %16 : vector<112x128xf32>
    %cst_14 = arith.constant dense<0.000000e+00> : vector<128xf32>
    %24 = vector.multi_reduction <add>, %23, %cst_14 [0] : vector<112x128xf32> to vector<128xf32>
    %25 = vector.shape_cast %24 : vector<128xf32> to vector<1x128xf32>
    %26 = arith.addf %22, %25 : vector<1x128xf32>
    %c0_15 = arith.constant 0 : index
    %c0_16 = arith.constant 0 : index
    %27 = vector.load %arg9[%c0_15, %c0_16] : memref<1x128xf32, #tpu.memory_space<vmem>>, vector<1x128xf32>
    tpu.vector_store %arg9[%c0_15, %c0_16], %26 {strides = array<i32>} : memref<1x128xf32, #tpu.memory_space<vmem>>, vector<1x128xf32>,
    %c112_i32_17 = arith.constant 112 : i32
    %28 = arith.muli %arg0, %c112_i32_17 : i32
    %29 = tpu.assume_multiple %28, 112 : i32
    %30 = arith.index_cast %29 : i32 to index
    %c0_18 = arith.constant 0 : index
    %31 = vector.load %arg7[%30, %c0_18] : memref<112x128xf32, #tpu.memory_space<vmem>>, vector<112x128xf32>
    tpu.vector_store %arg7[%30, %c0_18], %8 {strides = array<i32>} : memref<112x128xf32, #tpu.memory_space<vmem>>, vector<112x128xf32>,
    %c0_i32_19 = arith.constant 0 : i32
    %32 = arith.cmpi eq, %arg0, %c0_i32_19 : i32
    %33 = arith.extui %32 : i1 to i32
    %c0_i32_20 = arith.constant 0 : i32
    %34 = arith.cmpi ne, %33, %c0_i32_20 : i32
    scf.if %34 {
      %c0_21 = arith.constant 0 : index
      %c0_22 = arith.constant 0 : index
      %35 = vector.load %arg8[%c0_21, %c0_22] : memref<1x128xf32, #tpu.memory_space<vmem>>, vector<1x128xf32>
      %cst_23 = arith.constant 0.0102040814 : f32
      %36 = vector.broadcast %cst_23 : f32 to vector<1x128xf32>
      %37 = arith.mulf %35, %36 : vector<1x128xf32>
      %c0_24 = arith.constant 0 : index
      %c0_25 = arith.constant 0 : index
      %38 = vector.load %arg9[%c0_24, %c0_25] : memref<1x128xf32, #tpu.memory_space<vmem>>, vector<1x128xf32>
      %cst_26 = arith.constant 0.0102040814 : f32
      %39 = vector.broadcast %cst_26 : f32 to vector<1x128xf32>
      %40 = arith.mulf %38, %39 : vector<1x128xf32>
      %41 = arith.mulf %37, %37 : vector<1x128xf32>
      %42 = arith.subf %40, %41 : vector<1x128xf32>
      %cst_27 = arith.constant 0.000000e+00 : f32
      %43 = vector.broadcast %cst_27 : f32 to vector<1x128xf32>
      %44 = arith.maximumf %42, %43 : vector<1x128xf32>
      %c0_28 = arith.constant 0 : index
      %c0_29 = arith.constant 0 : index
      %45 = vector.load %arg7[%c0_28, %c0_29] : memref<112x128xf32, #tpu.memory_space<vmem>>, vector<112x128xf32>
      %46 = vector.broadcast %37 : vector<1x128xf32> to vector<112x128xf32>
      %47 = arith.subf %45, %46 : vector<112x128xf32>
      %cst_30 = arith.constant 9.99999974E-6 : f32
      %48 = vector.broadcast %cst_30 : f32 to vector<1x128xf32>
      %49 = arith.addf %44, %48 : vector<1x128xf32>
      %50 = math.rsqrt %49 : vector<1x128xf32>
      %51 = vector.broadcast %50 : vector<1x128xf32> to vector<112x128xf32>
      %52 = arith.mulf %47, %51 : vector<112x128xf32>
      %c0_31 = arith.constant 0 : index
      %c0_32 = arith.constant 0 : index
      %53 = vector.load %arg4[%c0_31, %c0_32] : memref<1x128xf32, #tpu.memory_space<vmem>>, vector<1x128xf32>
      %54 = vector.broadcast %53 : vector<1x128xf32> to vector<112x128xf32>
      %55 = arith.mulf %52, %54 : vector<112x128xf32>
      %c0_33 = arith.constant 0 : index
      %c0_34 = arith.constant 0 : index
      %56 = vector.load %arg5[%c0_33, %c0_34] : memref<1x128xf32, #tpu.memory_space<vmem>>, vector<1x128xf32>
      %57 = vector.broadcast %56 : vector<1x128xf32> to vector<112x128xf32>
      %58 = arith.addf %55, %57 : vector<112x128xf32>
      %cst_35 = arith.constant 0.000000e+00 : f32
      %59 = vector.broadcast %cst_35 : f32 to vector<112x128xf32>
      %60 = arith.cmpf ogt, %58, %59 : vector<112x128xf32>
      %cst_36 = arith.constant 2.000000e-01 : f32
      %61 = vector.broadcast %cst_36 : f32 to vector<112x128xf32>
      %62 = arith.mulf %61, %58 : vector<112x128xf32>
      %63 = arith.select %60, %58, %62 : vector<112x128xi1>, vector<112x128xf32>
      %64 = arith.truncf %63 : vector<112x128xf32> to vector<112x128xbf16>
      %c0_37 = arith.constant 0 : index
      %c0_38 = arith.constant 0 : index
      %65 = vector.load %arg6[%c0_37, %c0_38] : memref<112x128xbf16, #tpu.memory_space<vmem>>, vector<112x128xbf16>
      tpu.vector_store %arg6[%c0_37, %c0_38], %64 {strides = array<i32>} : memref<112x128xbf16, #tpu.memory_space<vmem>>, vector<112x128xbf16>,
    } else {
    }
    return
  }
  func.func @transform_0(%arg0: i32) -> (i32, i32) {
    %c0_i32 = arith.constant 0 : i32
    %c0_i32_0 = arith.constant 0 : i32
    return %arg0, %c0_i32 : i32, i32
  }
  func.func @transform_1(%arg0: i32) -> (i32, i32) {
    %c0_i32 = arith.constant 0 : i32
    %c0_i32_0 = arith.constant 0 : i32
    %c0_i32_1 = arith.constant 0 : i32
    return %c0_i32, %c0_i32_0 : i32, i32
  }
  func.func @transform_2(%arg0: i32) -> (i32, i32) {
    %c0_i32 = arith.constant 0 : i32
    %c0_i32_0 = arith.constant 0 : i32
    %c0_i32_1 = arith.constant 0 : i32
    return %c0_i32, %c0_i32_0 : i32, i32
  }
  func.func @transform_3(%arg0: i32) -> (i32, i32) {
    %c0_i32 = arith.constant 0 : i32
    %c0_i32_0 = arith.constant 0 : i32
    %c0_i32_1 = arith.constant 0 : i32
    return %c0_i32, %c0_i32_0 : i32, i32
  }
  func.func @transform_4(%arg0: i32) -> (i32, i32) {
    %c0_i32 = arith.constant 0 : i32
    %c0_i32_0 = arith.constant 0 : i32
    %c0_i32_1 = arith.constant 0 : i32
    return %c0_i32, %c0_i32_0 : i32, i32
  }
  func.func @transform_5(%arg0: i32) -> (i32, i32) {
    %c0_i32 = arith.constant 0 : i32
    %c0_i32_0 = arith.constant 0 : i32
    %c0_i32_1 = arith.constant 0 : i32
    return %c0_i32, %c0_i32_0 : i32, i32
  }
}

module attributes {stable_mosaic.version = 11 : i64} {
  func.func @_fc_bn_lrelu_final_kernel(%arg0: i32, %arg1: memref<2x896xbf16, #tpu.memory_space<vmem>>, %arg2: memref<896x1024xbf16, #tpu.memory_space<vmem>>, %arg3: memref<1x1024xf32, #tpu.memory_space<vmem>>, %arg4: memref<1x1024xf32, #tpu.memory_space<vmem>>, %arg5: memref<1x1024xf32, #tpu.memory_space<vmem>>, %arg6: memref<1024x1xbf16, #tpu.memory_space<vmem>>, %arg7: memref<1x1xf32, #tpu.memory_space<vmem>>, %arg8: memref<2x1xf32, #tpu.memory_space<vmem>>, %arg9: memref<2x1024xf32, #tpu.memory_space<vmem>>) attributes {dimension_semantics = [#tpu.dimension_semantics<arbitrary>], iteration_bounds = array<i64: 7>, scalar_prefetch = 0 : i64, scratch_operands = 1 : i64, tpu.core_type = #tpu.core_type<tc>, window_params = [{transform_indices = @transform_0, window_bounds = array<i64: 2, 896>}, {transform_indices = @transform_1, window_bounds = array<i64: 896, 1024>}, {pipeline_mode = #tpu.pipeline_mode<synchronous>, transform_indices = @transform_2, window_bounds = array<i64: 1, 1024>}, {pipeline_mode = #tpu.pipeline_mode<synchronous>, transform_indices = @transform_3, window_bounds = array<i64: 1, 1024>}, {pipeline_mode = #tpu.pipeline_mode<synchronous>, transform_indices = @transform_4, window_bounds = array<i64: 1, 1024>}, {pipeline_mode = #tpu.pipeline_mode<synchronous>, transform_indices = @transform_5, window_bounds = array<i64: 1024, 1>}, {pipeline_mode = #tpu.pipeline_mode<synchronous>, transform_indices = @transform_6, window_bounds = array<i64: 1, 1>}, {pipeline_mode = #tpu.pipeline_mode<synchronous>, transform_indices = @transform_7, window_bounds = array<i64: 2, 1>}]} {
    %c0_i32 = arith.constant 0 : i32
    %0 = arith.cmpi eq, %arg0, %c0_i32 : i32
    %1 = arith.extui %0 : i1 to i32
    %c0_i32_0 = arith.constant 0 : i32
    %2 = arith.cmpi ne, %1, %c0_i32_0 : i32
    scf.if %2 {
      %cst_9 = arith.constant 0.000000e+00 : f32
      %12 = vector.broadcast %cst_9 : f32 to vector<2x1024xf32>
      %c0_10 = arith.constant 0 : index
      %c0_11 = arith.constant 0 : index
      %13 = vector.load %arg9[%c0_10, %c0_11] : memref<2x1024xf32, #tpu.memory_space<vmem>>, vector<2x1024xf32>
      tpu.vector_store %arg9[%c0_10, %c0_11], %12 {strides = array<i32>} : memref<2x1024xf32, #tpu.memory_space<vmem>>, vector<2x1024xf32>,
    } else {
    }
    %c0 = arith.constant 0 : index
    %c0_1 = arith.constant 0 : index
    %3 = vector.load %arg9[%c0, %c0_1] : memref<2x1024xf32, #tpu.memory_space<vmem>>, vector<2x1024xf32>
    %c0_2 = arith.constant 0 : index
    %c0_3 = arith.constant 0 : index
    %4 = vector.load %arg1[%c0_2, %c0_3] : memref<2x896xbf16, #tpu.memory_space<vmem>>, vector<2x896xbf16>
    %c0_4 = arith.constant 0 : index
    %c0_5 = arith.constant 0 : index
    %5 = vector.load %arg2[%c0_4, %c0_5] : memref<896x1024xbf16, #tpu.memory_space<vmem>>, vector<896x1024xbf16>
    %cst = arith.constant dense<0.000000e+00> : vector<2x1024xf32>
    %6 = tpu.matmul %4, %5, %cst {dimension_numbers = #tpu.dot_dimension_numbers<[1], [0], [0], [1], [0, 0, 1, 1], [], []>} : vector<2x896xbf16>, vector<896x1024xbf16>, vector<2x1024xf32> -> vector<2x1024xf32>
    %7 = arith.addf %3, %6 : vector<2x1024xf32>
    %c0_6 = arith.constant 0 : index
    %c0_7 = arith.constant 0 : index
    %8 = vector.load %arg9[%c0_6, %c0_7] : memref<2x1024xf32, #tpu.memory_space<vmem>>, vector<2x1024xf32>
    tpu.vector_store %arg9[%c0_6, %c0_7], %7 {strides = array<i32>} : memref<2x1024xf32, #tpu.memory_space<vmem>>, vector<2x1024xf32>,
    %c6_i32 = arith.constant 6 : i32
    %9 = arith.cmpi eq, %arg0, %c6_i32 : i32
    %10 = arith.extui %9 : i1 to i32
    %c0_i32_8 = arith.constant 0 : i32
    %11 = arith.cmpi ne, %10, %c0_i32_8 : i32
    scf.if %11 {
      %c0_9 = arith.constant 0 : index
      %c0_10 = arith.constant 0 : index
      %12 = vector.load %arg9[%c0_9, %c0_10] : memref<2x1024xf32, #tpu.memory_space<vmem>>, vector<2x1024xf32>
      %c0_11 = arith.constant 0 : index
      %c0_12 = arith.constant 0 : index
      %13 = vector.load %arg3[%c0_11, %c0_12] : memref<1x1024xf32, #tpu.memory_space<vmem>>, vector<1x1024xf32>
      %14 = vector.broadcast %13 : vector<1x1024xf32> to vector<2x1024xf32>
      %15 = arith.addf %12, %14 : vector<2x1024xf32>
      %cst_13 = arith.constant dense<0.000000e+00> : vector<1024xf32>
      %16 = vector.multi_reduction <add>, %15, %cst_13 [0] : vector<2x1024xf32> to vector<1024xf32>
      %17 = vector.shape_cast %16 : vector<1024xf32> to vector<1x1024xf32>
      %18 = arith.mulf %15, %15 : vector<2x1024xf32>
      %cst_14 = arith.constant dense<0.000000e+00> : vector<1024xf32>
      %19 = vector.multi_reduction <add>, %18, %cst_14 [0] : vector<2x1024xf32> to vector<1024xf32>
      %20 = vector.shape_cast %19 : vector<1024xf32> to vector<1x1024xf32>
      %cst_15 = arith.constant 5.000000e-01 : f32
      %21 = vector.broadcast %cst_15 : f32 to vector<1x1024xf32>
      %22 = arith.mulf %17, %21 : vector<1x1024xf32>
      %cst_16 = arith.constant 5.000000e-01 : f32
      %23 = vector.broadcast %cst_16 : f32 to vector<1x1024xf32>
      %24 = arith.mulf %20, %23 : vector<1x1024xf32>
      %25 = arith.mulf %22, %22 : vector<1x1024xf32>
      %26 = arith.subf %24, %25 : vector<1x1024xf32>
      %cst_17 = arith.constant 0.000000e+00 : f32
      %27 = vector.broadcast %cst_17 : f32 to vector<1x1024xf32>
      %28 = arith.maximumf %26, %27 : vector<1x1024xf32>
      %29 = vector.broadcast %22 : vector<1x1024xf32> to vector<2x1024xf32>
      %30 = arith.subf %15, %29 : vector<2x1024xf32>
      %cst_18 = arith.constant 9.99999974E-6 : f32
      %31 = vector.broadcast %cst_18 : f32 to vector<1x1024xf32>
      %32 = arith.addf %28, %31 : vector<1x1024xf32>
      %33 = math.rsqrt %32 : vector<1x1024xf32>
      %34 = vector.broadcast %33 : vector<1x1024xf32> to vector<2x1024xf32>
      %35 = arith.mulf %30, %34 : vector<2x1024xf32>
      %c0_19 = arith.constant 0 : index
      %c0_20 = arith.constant 0 : index
      %36 = vector.load %arg4[%c0_19, %c0_20] : memref<1x1024xf32, #tpu.memory_space<vmem>>, vector<1x1024xf32>
      %37 = vector.broadcast %36 : vector<1x1024xf32> to vector<2x1024xf32>
      %38 = arith.mulf %35, %37 : vector<2x1024xf32>
      %c0_21 = arith.constant 0 : index
      %c0_22 = arith.constant 0 : index
      %39 = vector.load %arg5[%c0_21, %c0_22] : memref<1x1024xf32, #tpu.memory_space<vmem>>, vector<1x1024xf32>
      %40 = vector.broadcast %39 : vector<1x1024xf32> to vector<2x1024xf32>
      %41 = arith.addf %38, %40 : vector<2x1024xf32>
      %cst_23 = arith.constant 0.000000e+00 : f32
      %42 = vector.broadcast %cst_23 : f32 to vector<2x1024xf32>
      %43 = arith.cmpf ogt, %41, %42 : vector<2x1024xf32>
      %cst_24 = arith.constant 2.000000e-01 : f32
      %44 = vector.broadcast %cst_24 : f32 to vector<2x1024xf32>
      %45 = arith.mulf %44, %41 : vector<2x1024xf32>
      %46 = arith.select %43, %41, %45 : vector<2x1024xi1>, vector<2x1024xf32>
      %47 = arith.truncf %46 : vector<2x1024xf32> to vector<2x1024xbf16>
      %c0_25 = arith.constant 0 : index
      %c0_26 = arith.constant 0 : index
      %48 = vector.load %arg6[%c0_25, %c0_26] : memref<1024x1xbf16, #tpu.memory_space<vmem>>, vector<1024x1xbf16>
      %cst_27 = arith.constant dense<0.000000e+00> : vector<2x1xf32>
      %49 = tpu.matmul %47, %48, %cst_27 {dimension_numbers = #tpu.dot_dimension_numbers<[1], [0], [0], [1], [0, 0, 1, 1], [], []>} : vector<2x1024xbf16>, vector<1024x1xbf16>, vector<2x1xf32> -> vector<2x1xf32>
      %c0_28 = arith.constant 0 : index
      %c0_29 = arith.constant 0 : index
      %50 = vector.load %arg7[%c0_28, %c0_29] : memref<1x1xf32, #tpu.memory_space<vmem>>, vector<1x1xf32>
      %51 = vector.broadcast %50 : vector<1x1xf32> to vector<2x1xf32>
      %52 = arith.addf %49, %51 : vector<2x1xf32>
      %c0_30 = arith.constant 0 : index
      %c0_31 = arith.constant 0 : index
      %53 = vector.load %arg8[%c0_30, %c0_31] : memref<2x1xf32, #tpu.memory_space<vmem>>, vector<2x1xf32>
      tpu.vector_store %arg8[%c0_30, %c0_31], %52 {strides = array<i32>} : memref<2x1xf32, #tpu.memory_space<vmem>>, vector<2x1xf32>,
    } else {
    }
    return
  }
  func.func @transform_0(%arg0: i32) -> (i32, i32) {
    %c0_i32 = arith.constant 0 : i32
    %c0_i32_0 = arith.constant 0 : i32
    return %c0_i32, %arg0 : i32, i32
  }
  func.func @transform_1(%arg0: i32) -> (i32, i32) {
    %c0_i32 = arith.constant 0 : i32
    %c0_i32_0 = arith.constant 0 : i32
    return %arg0, %c0_i32 : i32, i32
  }
  func.func @transform_2(%arg0: i32) -> (i32, i32) {
    %c0_i32 = arith.constant 0 : i32
    %c0_i32_0 = arith.constant 0 : i32
    %c0_i32_1 = arith.constant 0 : i32
    return %c0_i32, %c0_i32_0 : i32, i32
  }
  func.func @transform_3(%arg0: i32) -> (i32, i32) {
    %c0_i32 = arith.constant 0 : i32
    %c0_i32_0 = arith.constant 0 : i32
    %c0_i32_1 = arith.constant 0 : i32
    return %c0_i32, %c0_i32_0 : i32, i32
  }
  func.func @transform_4(%arg0: i32) -> (i32, i32) {
    %c0_i32 = arith.constant 0 : i32
    %c0_i32_0 = arith.constant 0 : i32
    %c0_i32_1 = arith.constant 0 : i32
    return %c0_i32, %c0_i32_0 : i32, i32
  }
  func.func @transform_5(%arg0: i32) -> (i32, i32) {
    %c0_i32 = arith.constant 0 : i32
    %c0_i32_0 = arith.constant 0 : i32
    %c0_i32_1 = arith.constant 0 : i32
    return %c0_i32, %c0_i32_0 : i32, i32
  }
  func.func @transform_6(%arg0: i32) -> (i32, i32) {
    %c0_i32 = arith.constant 0 : i32
    %c0_i32_0 = arith.constant 0 : i32
    %c0_i32_1 = arith.constant 0 : i32
    return %c0_i32, %c0_i32_0 : i32, i32
  }
  func.func @transform_7(%arg0: i32) -> (i32, i32) {
    %c0_i32 = arith.constant 0 : i32
    %c0_i32_0 = arith.constant 0 : i32
    %c0_i32_1 = arith.constant 0 : i32
    return %c0_i32, %c0_i32_0 : i32, i32
  }
}

</mosaic_0001>

<bundles_post_ra>
// kernel: discriminator_forward.3
= control target key start
LH: loop header
LB: loop body
LE: loop exit
PB: predicated region body
PF: predicated region fallthrough
CT: control target
= control target key end

     0   :  { %vm382_vm0 = vcmask 392192   ;;  %vm926_vm2 = vcmask 519168   ;;  %s1992_s1 = inlined_call_operand.vmem [shape: bf16[176,64], index: 1, kind: input, shape index: {}]   ;;  %s1993_s0 = inlined_call_operand.vmem [shape: bf16[400,176], index: 0, kind: input, shape index: {}]   ;;  %s1994_s2 = inlined_call_operand.vmem [shape: f32[1,64], index: 2, kind: input, shape index: {}]   ;;  %s1995_s3 = inlined_call_operand.vmem [shape: bf16[400,64], index: 3, kind: output, shape index: {}]  }
   0x1   :  { %v1307_v0 = vld [vmem:[%s1992_s1 + $0x38] sm:$0xff]  ;;  %v1310_v1 = vld [vmem:[%s1992_s1 + $0x50] sm:$0xff]  ;;  %v1309_v3 = vld [vmem:[%s1992_s1 + $0x48] sm:$0xff] }
   0x2   :  { %458 = vmatpush.bf16.msra.mxu0 %v1307_v0  ;;  %1311 = vmatpush.bf16.msra.mxu2 %v1307_v0  ;;  %v1306_v2 = vld [vmem:[%s1992_s1 + $0x30] sm:$0xff]  ;;  %v1305_v4 = vld [vmem:[%s1992_s1 + $0x28] sm:$0xff]  ;;  %v1308_v5 = vld [vmem:[%s1992_s1 + $0x40] sm:$0xff] }
   0x3   :  { %597 = vmatpush.bf16.msra.mxu1 %v1310_v1  ;;  %1319 = vmatpush.bf16.msra.mxu3 %v1310_v1  ;;  %v1250_v6 = vld [vmem:[%s1993_s0 + $0x4] sm:$0xf]  ;;  %v985_v7 = vld [vmem:[%s1993_s0 + $0x8] sm:$0xf0]  ;;  %v1303_v10 = vld [vmem:[%s1992_s1 + $0x18] sm:$0xff] }
   0x4   :  { %v988_v8 = vor.u32 %v1250_v6, %v985_v7  ;;  %v1304_v9 = vld [vmem:[%s1992_s1 + $0x20] sm:$0xff]  ;;  %v1302_v11 = vld [vmem:[%s1992_s1 + $0x10] sm:$0xff]  ;;  %v1097_v13 = vld [vmem:[%s1993_s0 + $0xe8] sm:$0xf0] }
   0x5   :  { %v1278_v12 = vld [vmem:[%s1993_s0 + $0xe4] sm:$0xf]  ;;  %v1301_v15 = vld [vmem:[%s1992_s1 + $0x8] sm:$0xff]  ;;  %v1252_v16 = vld [vmem:[%s1993_s0 + $0x14] sm:$0xf] }
   0x6   :  { %459 = vmatpush.bf16.msra.mxu0 %v1306_v2  ;;  %1312 = vmatpush.bf16.msra.mxu2 %v1306_v2  ;;  %v1100_v14 = vor.u32 %v1278_v12, %v1097_v13  ;;  %v993_v17 = vld [vmem:[%s1993_s0 + $0x18] sm:$0xf0]  ;;  %v1300_v19 = vld [vmem:[%s1992_s1] sm:$0xff]  ;;  %v1251_v21 = vld [vmem:[%s1993_s0 + $0x4] sm:$0xf0] }
   0x7   :  { %598 = vmatpush.bf16.msra.mxu1 %v1309_v3  ;;  %1320 = vmatpush.bf16.msra.mxu3 %v1309_v3  ;;  %v996_v18 = vor.u32 %v1252_v16, %v993_v17  ;;  %v983_v20 = vld [vmem:[%s1993_s0] sm:$0xf]  ;;  %v1275_v23 = vld [vmem:[%s1993_s0 + $0xc4] sm:$0xf0]  ;;  %v1280_v26 = vld [vmem:[%s1993_s0 + $0xf4] sm:$0xf] }
   0x8   :  { %v1079_v22 = vld [vmem:[%s1993_s0 + $0xc0] sm:$0xf]  ;;  %v984_v24 = vor.u32 %v1251_v21, %v983_v20  ;;  %v1105_v27 = vld [vmem:[%s1993_s0 + $0xf8] sm:$0xf0]  ;;  %v1254_v29 = vld [vmem:[%s1993_s0 + $0x24] sm:$0xf] }
   0x9   :  { %v1080_v25 = vor.u32 %v1275_v23, %v1079_v22  ;;  %v1108_v28 = vor.u32 %v1280_v26, %v1105_v27  ;;  %v1001_v30 = vld [vmem:[%s1993_s0 + $0x28] sm:$0xf0]  ;;  %v991_v32 = vld [vmem:[%s1993_s0 + $0x10] sm:$0xf]  ;;  %v1253_v33 = vld [vmem:[%s1993_s0 + $0x14] sm:$0xf0] }
   0xa   :  { %460 = vmatpush.bf16.msra.mxu0 %v1305_v4  ;;  %1313 = vmatpush.bf16.msra.mxu2 %v1305_v4  ;;  %v1004_v31 = vor.u32 %v1254_v29, %v1001_v30  ;;  %v1087_v34 = vld [vmem:[%s1993_s0 + $0xd0] sm:$0xf]  ;;  %v1277_v35 = vld [vmem:[%s1993_s0 + $0xd4] sm:$0xf0]  ;;  %v992_v36 = vor.u32 %v1253_v33, %v991_v32  ;;  %v1282_v38 = vld [vmem:[%s1993_s0 + $0x104] sm:$0xf] }
   0xb   :  { %599 = vmatpush.bf16.msra.mxu1 %v1308_v5  ;;  %1321 = vmatpush.bf16.msra.mxu3 %v1308_v5  ;;  %v1088_v37 = vor.u32 %v1277_v35, %v1087_v34  ;;  %v1113_v39 = vld [vmem:[%s1993_s0 + $0x108] sm:$0xf0]  ;;  %v1256_v41 = vld [vmem:[%s1993_s0 + $0x34] sm:$0xf]  ;;  %v1009_v42 = vld [vmem:[%s1993_s0 + $0x38] sm:$0xf0] }
   0xc   :  { %v1116_v40 = vor.u32 %v1282_v38, %v1113_v39  ;;  %v1012_v43 = vor.u32 %v1256_v41, %v1009_v42  ;;  %v999_v44 = vld [vmem:[%s1993_s0 + $0x20] sm:$0xf]  ;;  %v1255_v45 = vld [vmem:[%s1993_s0 + $0x24] sm:$0xf0]  ;;  %v1284_v50 = vld [vmem:[%s1993_s0 + $0x114] sm:$0xf] }
   0xd   :  { %v1095_v46 = vld [vmem:[%s1993_s0 + $0xe0] sm:$0xf]  ;;  %v1279_v47 = vld [vmem:[%s1993_s0 + $0xe4] sm:$0xf0]  ;;  %v1000_v48 = vor.u32 %v1255_v45, %v999_v44  ;;  %v1121_v51 = vld [vmem:[%s1993_s0 + $0x118] sm:$0xf0] }
   0xe   :  { %1225 = vmatmul.msk.bf16.vlgmr.msra.gmra.mxu1 %vm382_vm0, %v988_v8  ;;  %461 = vmatpush.bf16.msra.mxu0 %v1304_v9  ;;  %v1096_v49 = vor.u32 %v1279_v47, %v1095_v46  ;;  %v1124_v52 = vor.u32 %v1284_v50, %v1121_v51  ;;  %v1258_v53 = vld [vmem:[%s1993_s0 + $0x44] sm:$0xf]  ;;  %v1017_v54 = vld [vmem:[%s1993_s0 + $0x48] sm:$0xf0]  ;;  %v1007_v56 = vld [vmem:[%s1993_s0 + $0x30] sm:$0xf] }
   0xf   :  { %1314 = vmatpush.bf16.msra.mxu2 %v1304_v9  ;;  %1239 = vmatmul.msk.bf16.vlgmr.msra.gmra.mxu3 %vm382_vm0, %v1100_v14  ;;  %v1020_v55 = vor.u32 %v1258_v53, %v1017_v54  ;;  %v1257_v57 = vld [vmem:[%s1993_s0 + $0x34] sm:$0xf0]  ;;  %v1103_v58 = vld [vmem:[%s1993_s0 + $0xf0] sm:$0xf]  ;;  %v1286_v62 = vld [vmem:[%s1993_s0 + $0x124] sm:$0xf] }
  0x10   :  { %v1281_v59 = vld [vmem:[%s1993_s0 + $0xf4] sm:$0xf0]  ;;  %v1008_v60 = vor.u32 %v1257_v57, %v1007_v56  ;;  %v1129_v63 = vld [vmem:[%s1993_s0 + $0x128] sm:$0xf0]  ;;  %v1260_v1 = vld [vmem:[%s1993_s0 + $0x54] sm:$0xf] }
  0x11   :  { %v1104_v61 = vor.u32 %v1281_v59, %v1103_v58  ;;  %v1132_v0 = vor.u32 %v1286_v62, %v1129_v63  ;;  %v1025_v2 = vld [vmem:[%s1993_s0 + $0x58] sm:$0xf0]  ;;  %v1015_v4 = vld [vmem:[%s1993_s0 + $0x40] sm:$0xf]  ;;  %v1259_v5 = vld [vmem:[%s1993_s0 + $0x44] sm:$0xf0] }
  0x12   :  { %462 = vmatpush.bf16.msra.mxu0 %v1303_v10  ;;  %v1028_v3 = vor.u32 %v1260_v1, %v1025_v2  ;;  %v1111_v6 = vld [vmem:[%s1993_s0 + $0x100] sm:$0xf]  ;;  %v1283_v7 = vld [vmem:[%s1993_s0 + $0x104] sm:$0xf0]  ;;  %v1016_v8 = vor.u32 %v1259_v5, %v1015_v4  ;;  %v1288_v12 = vld [vmem:[%s1993_s0 + $0x134] sm:$0xf] }
  0x13   :  { %1315 = vmatpush.bf16.msra.mxu2 %v1303_v10  ;;  %v1112_v9 = vor.u32 %v1283_v7, %v1111_v6  ;;  %v1262_v10 = vld [vmem:[%s1993_s0 + $0x64] sm:$0xf]  ;;  %v1137_v13 = vld [vmem:[%s1993_s0 + $0x138] sm:$0xf0]  ;;  %v1261_v16 = vld [vmem:[%s1993_s0 + $0x54] sm:$0xf0] }
  0x14   :  { %v1140_v17 = vor.u32 %v1288_v12, %v1137_v13  ;;  %v1264_v22 = vld [vmem:[%s1993_s0 + $0x74] sm:$0xf]  ;;  %v1041_v23 = vld [vmem:[%s1993_s0 + $0x78] sm:$0xf0]  ;;  %v1031_v27 = vld [vmem:[%s1993_s0 + $0x60] sm:$0xf] }
  0x15   :  { %v1044_v26 = vor.u32 %v1264_v22, %v1041_v23  ;;  %v1127_v30 = vld [vmem:[%s1993_s0 + $0x120] sm:$0xf]  ;;  %v1266_v34 = vld [vmem:[%s1993_s0 + $0x84] sm:$0xf]  ;;  %v1049_v35 = vld [vmem:[%s1993_s0 + $0x88] sm:$0xf0] }
  0x16   :  { %463 = vmatpush.bf16.msra.mxu0 %v1302_v11  ;;  %v1052_v38 = vor.u32 %v1266_v34, %v1049_v35  ;;  %v1039_v39 = vld [vmem:[%s1993_s0 + $0x70] sm:$0xf]  ;;  %v1289_v44 = vld [vmem:[%s1993_s0 + $0x134] sm:$0xf0]  ;;  %v1294_v50 = vld [vmem:[%s1993_s0 + $0x164] sm:$0xf] }
  0x17   :  { %1316 = vmatpush.bf16.msra.mxu2 %v1302_v11  ;;  %v1033_v11 = vld [vmem:[%s1993_s0 + $0x68] sm:$0xf0]  ;;  %v1047_v53 = vld [vmem:[%s1993_s0 + $0x80] sm:$0xf]  ;;  %v1267_v54 = vld [vmem:[%s1993_s0 + $0x84] sm:$0xf0] }
  0x18   :  { %v1036_v14 = vor.u32 %v1262_v10, %v1033_v11  ;;  %v1161_v51 = vld [vmem:[%s1993_s0 + $0x168] sm:$0xf0]  ;;  %v1612_v57 = vld [vmem:[%s1994_s2] ss:$0 sm:$0xff]  ;;  %v1291_v59 = vld [vmem:[%s1993_s0 + $0x144] sm:$0xf0] }
  0x19   :  { %v1143_v58 = vld [vmem:[%s1993_s0 + $0x140] sm:$0xf]  ;;  %v1065_v10 = vld [vmem:[%s1993_s0 + $0xa8] sm:$0xf0]  ;;  %v1296_v13 = vld [vmem:[%s1993_s0 + $0x174] sm:$0xf] }
  0x1a   :  { %464 = vmatpush.bf16.msra.mxu0 %v1301_v15  ;;  %v1144_v62 = vor.u32 %v1291_v59, %v1143_v58  ;;  %v1293_v22 = vld [vmem:[%s1993_s0 + $0x154] sm:$0xf0] }
  0x1b   :  { %1317 = vmatpush.bf16.msra.mxu2 %v1301_v15  ;;  %v1023_v15 = vld [vmem:[%s1993_s0 + $0x50] sm:$0xf] }
  0x1c   :  { %v1024_v20 = vor.u32 %v1261_v16, %v1023_v15  ;;  %v1055_v16 = vld [vmem:[%s1993_s0 + $0x90] sm:$0xf] }
  0x1e   :  { %1226 = vmatmul.msk.bf16.gmra.mxu1 %vm382_vm0, %v996_v18  ;;  %465 = vmatpush.bf16.msra.mxu0 %v1300_v19  ;;  %v1119_v18 = vld [vmem:[%s1993_s0 + $0x110] sm:$0xf] }
  0x1f   :  { %1318 = vmatpush.bf16.msra.mxu2 %v1300_v19  ;;  %1240 = vmatmul.msk.bf16.gmra.mxu3 %vm382_vm0, %v1108_v28  ;;  %v1285_v19 = vld [vmem:[%s1993_s0 + $0x114] sm:$0xf0]  ;;  %v1263_v28 = vld [vmem:[%s1993_s0 + $0x64] sm:$0xf0] }
  0x20   :  { %v1120_v21 = vor.u32 %v1285_v19, %v1119_v18  ;;  %v1032_v32 = vor.u32 %v1263_v28, %v1031_v27  ;;  %v1151_v18 = vld [vmem:[%s1993_s0 + $0x150] sm:$0xf] }
  0x21   :  { %466 = vmatmul.bf16.vlgmr.msra.gmra.mxu0 %v984_v24  ;;  %v1290_v24 = vld [vmem:[%s1993_s0 + $0x144] sm:$0xf]  ;;  %v1152_v28 = vor.u32 %v1293_v22, %v1151_v18  ;;  %v1167_v18 = vld [vmem:[%s1993_s0 + $0x170] sm:$0xf] }
  0x22   :  { %526 = vmatmul.bf16.vlgmr.msra.gmra.mxu2 %v1080_v25  ;;  %v1145_v25 = vld [vmem:[%s1993_s0 + $0x148] sm:$0xf0] }
  0x23   :  { %v1148_v29 = vor.u32 %v1290_v24, %v1145_v25 }
  0x2e   :  { %1227 = vmatmul.msk.bf16.gmra.mxu1 %vm382_vm0, %v1004_v31  ;;  %v1287_v31 = vld [vmem:[%s1993_s0 + $0x124] sm:$0xf0] }
  0x2f   :  { %1241 = vmatmul.msk.bf16.gmra.mxu3 %vm382_vm0, %v1116_v40  ;;  %v1128_v33 = vor.u32 %v1287_v31, %v1127_v30  ;;  %v1265_v40 = vld [vmem:[%s1993_s0 + $0x74] sm:$0xf0] }
  0x30   :  { %v1040_v45 = vor.u32 %v1265_v40, %v1039_v39  ;;  %v1272_v39 = vld [vmem:[%s1993_s0 + $0xb4] sm:$0xf]  ;;  %v1073_v40 = vld [vmem:[%s1993_s0 + $0xb8] sm:$0xf0] }
  0x31   :  { %471 = vmatmul.bf16.gmra.mxu0 %v992_v36  ;;  %v1292_v36 = vld [vmem:[%s1993_s0 + $0x154] sm:$0xf] }
  0x32   :  { %531 = vmatmul.bf16.gmra.mxu2 %v1088_v37  ;;  %v1153_v37 = vld [vmem:[%s1993_s0 + $0x158] sm:$0xf0] }
  0x33   :  { %v1156_v41 = vor.u32 %v1292_v36, %v1153_v37 }
  0x3e   :  { %1228 = vmatmul.msk.bf16.gmra.mxu1 %vm382_vm0, %v1012_v43  ;;  %v1135_v43 = vld [vmem:[%s1993_s0 + $0x130] sm:$0xf] }
  0x3f   :  { %1242 = vmatmul.msk.bf16.gmra.mxu3 %vm382_vm0, %v1124_v52  ;;  %v1136_v46 = vor.u32 %v1289_v44, %v1135_v43  ;;  %v1177_v43 = vld [vmem:[%s1993_s0 + $0x188] sm:$0xf0]  ;;  %v1076_v44 = vor.u32 %v1272_v39, %v1073_v40 }
  0x41   :  { %476 = vmatmul.bf16.gmra.mxu0 %v1000_v48  ;;  %v1268_v48 = vld [vmem:[%s1993_s0 + $0x94] sm:$0xf] }
  0x42   :  { %536 = vmatmul.bf16.gmra.mxu2 %v1096_v49  ;;  %v1057_v49 = vld [vmem:[%s1993_s0 + $0x98] sm:$0xf0] }
  0x43   :  { %v1060_v52 = vor.u32 %v1268_v48, %v1057_v49 }
  0x4e   :  { %1229 = vmatmul.msk.bf16.gmra.mxu1 %vm382_vm0, %v1020_v55  ;;  %v1164_v55 = vor.u32 %v1294_v50, %v1161_v51  ;;  %v1295_v51 = vld [vmem:[%s1993_s0 + $0x164] sm:$0xf0] }
  0x4f   :  { %1243 = vmatmul.msk.bf16.gmra.mxu3 %vm382_vm0, %v1132_v0 }
  0x51   :  { %481 = vmatmul.bf16.gmra.mxu0 %v1008_v60  ;;  %v1048_v60 = vor.u32 %v1267_v54, %v1047_v53 }
  0x52   :  { %541 = vmatmul.bf16.gmra.mxu2 %v1104_v61 }
  0x5e   :  { %1230 = vmatmul.msk.bf16.gmra.mxu1 %vm382_vm0, %v1028_v3 }
  0x5f   :  { %1244 = vmatmul.msk.bf16.gmra.mxu3 %vm382_vm0, %v1140_v17  ;;  %v1269_v17 = vld [vmem:[%s1993_s0 + $0x94] sm:$0xf0] }
  0x60   :  { %v1056_v25 = vor.u32 %v1269_v17, %v1055_v16 }
  0x61   :  { %486 = vmatmul.bf16.gmra.mxu0 %v1016_v8 }
  0x62   :  { %546 = vmatmul.bf16.gmra.mxu2 %v1112_v9  ;;  %v1270_v9 = vld [vmem:[%s1993_s0 + $0xa4] sm:$0xf] }
  0x63   :  { %v1068_v15 = vor.u32 %v1270_v9, %v1065_v10  ;;  %v1274_v9 = vld [vmem:[%s1993_s0 + $0xc4] sm:$0xf]  ;;  %v1081_v10 = vld [vmem:[%s1993_s0 + $0xc8] sm:$0xf0] }
  0x64   :  { %v1084_v17 = vor.u32 %v1274_v9, %v1081_v10 }
  0x6e   :  { %1231 = vmatmul.msk.bf16.gmra.mxu1 %vm382_vm0, %v1036_v14  ;;  %v1169_v14 = vld [vmem:[%s1993_s0 + $0x178] sm:$0xf0] }
  0x6f   :  { %1245 = vmatmul.msk.bf16.gmra.mxu3 %vm382_vm0, %v1148_v29  ;;  %v1172_v19 = vor.u32 %v1296_v13, %v1169_v14  ;;  %v1071_v14 = vld [vmem:[%s1993_s0 + $0xb0] sm:$0xf] }
  0x71   :  { %491 = vmatmul.bf16.gmra.mxu0 %v1024_v20 }
  0x72   :  { %551 = vmatmul.bf16.gmra.mxu2 %v1120_v21 }
  0x7e   :  { %1232 = vmatmul.msk.bf16.gmra.mxu1 %vm382_vm0, %v1044_v26 }
  0x7f   :  { %1246 = vmatmul.msk.bf16.gmra.mxu3 %vm382_vm0, %v1156_v41 }
  0x81   :  { %496 = vmatmul.bf16.gmra.mxu0 %v1032_v32 }
  0x82   :  { %556 = vmatmul.bf16.gmra.mxu2 %v1128_v33 }
  0x8b   :  { %v601_v42 = vpop.f32.mrf.mxu1 }
  0x8e   :  { %1233 = vmatmul.msk.bf16.gmra.mxu1 %vm382_vm0, %v1052_v38 }
  0x8f   :  { %1247 = vmatmul.msk.bf16.gmra.mxu3 %vm382_vm0, %v1164_v55 }
  0x91   :  { %501 = vmatmul.bf16.gmra.mxu0 %v1040_v45  ;;  %v1063_v45 = vld [vmem:[%s1993_s0 + $0xa0] sm:$0xf] }
  0x92   :  { %561 = vmatmul.bf16.gmra.mxu2 %v1136_v46  ;;  %v1623_v0 = vpop.f32.mrf.mxu3  ;;  %v1271_v46 = vld [vmem:[%s1993_s0 + $0xa4] sm:$0xf0] }
  0x93   :  { %v603_v47 = vpop.f32.mrf.mxu1  ;;  %v1064_v55 = vor.u32 %v1271_v46, %v1063_v45 }
  0x9a   :  { %v1634_v11 = vpop.f32.mrf.mxu3 }
  0x9b   :  { %v606_v56 = vpop.f32.mrf.mxu1 }
  0x9e   :  { %1234 = vmatmul.msk.bf16.gmra.mxu1 %vm382_vm0, %v1060_v52  ;;  %v467_v61 = vpop.f32.mrf.mxu0 }
  0x9f   :  { %v468_v63 = vadd.f32 %v1612_v57, %v467_v61  ;;  %1248 = vmatmul.msk.bf16.gmra.mxu3 %vm382_vm0, %v1172_v19 }
  0xa1   :  { %v602_v1 = vadd.f32 %v601_v42, %v468_v63  ;;  %506 = vmatmul.bf16.gmra.mxu0 %v1048_v60  ;;  %v1298_v42 = vld [vmem:[%s1993_s0 + $0x184] sm:$0xf] }
  0xa2   :  { %566 = vmatmul.bf16.gmra.mxu2 %v1144_v62  ;;  %v1667_v31 = vpop.f32.mrf.mxu3  ;;  %v1180_v48 = vor.u32 %v1298_v42, %v1177_v43 }
  0xa3   :  { %vm726_vm1 = vcmp.gt.f32.partialorder %v602_v1, 0.0  ;;  %v776_v2 = vmul.f32 0.2, %v602_v1  ;;  %v608_v3 = vpop.f32.mrf.mxu1 }
  0xa5   :  { %v826_v4 = vsel %vm726_vm1, %v602_v1, %v776_v2  ;;  %v1625_v5 = vpop.f32.mrf.mxu2 }
  0xa6   :  { %v876_v6 = vpack.c.bf16 %v826_v4, %v826_v4  ;;  %v469_v7 = vpop.f32.mrf.mxu0 }
  0xa7   :  { %v470_v8 = vadd.f32 %v1612_v57, %v469_v7 }
  0xa8   :  { %927 = vst.msk [vmem:[%s1995_s3] sm:$0xf] %vm926_vm2, %v876_v6 }
  0xa9   :  { %v604_v12 = vadd.f32 %v603_v47, %v470_v8  ;;  %v1159_v47 = vld [vmem:[%s1993_s0 + $0x160] sm:$0xf] }
  0xaa   :  { %v1700_v52 = vpop.f32.mrf.mxu3  ;;  %v1160_v59 = vor.u32 %v1295_v51, %v1159_v47  ;;  %v1276_v47 = vld [vmem:[%s1993_s0 + $0xd4] sm:$0xf] }
  0xab   :  { %vm727_vm3 = vcmp.gt.f32.partialorder %v604_v12, 0.0  ;;  %v777_v20 = vmul.f32 0.2, %v604_v12  ;;  %v611_v21 = vpop.f32.mrf.mxu1 }
  0xad   :  { %v827_v23 = vsel %vm727_vm3, %v604_v12, %v777_v20  ;;  %v1659_v24 = vpop.f32.mrf.mxu2 }
  0xae   :  { %v877_v26 = vpack.c.bf16 %v827_v23, %v827_v23  ;;  %1235 = vmatmul.msk.bf16.gmra.mxu1 %vm382_vm0, %v1068_v15  ;;  %v472_v27 = vpop.f32.mrf.mxu0  ;;  %v1273_v15 = vld [vmem:[%s1993_s0 + $0xb4] sm:$0xf0] }
  0xaf   :  { %v473_v29 = vadd.f32 %v1612_v57, %v472_v27  ;;  %1249 = vmatmul.msk.bf16.gmra.mxu3 %vm382_vm0, %v1180_v48  ;;  %v1089_v48 = vld [vmem:[%s1993_s0 + $0xd8] sm:$0xf0] }
  0xb0   :  { %928 = vst.msk [vmem:[%s1995_s3 + $0x4] sm:$0xf] %vm926_vm2, %v877_v26  ;;  %v1072_v26 = vor.u32 %v1273_v15, %v1071_v14 }
  0xb1   :  { %v607_v30 = vadd.f32 %v606_v56, %v473_v29  ;;  %511 = vmatmul.bf16.gmra.mxu0 %v1056_v25 }
  0xb2   :  { %571 = vmatmul.bf16.gmra.mxu2 %v1152_v28 }
  0xb3   :  { %vm728_vm4 = vcmp.gt.f32.partialorder %v607_v30, 0.0  ;;  %v778_v32 = vmul.f32 0.2, %v607_v30  ;;  %v613_v33 = vpop.f32.mrf.mxu1 }
  0xb5   :  { %v828_v34 = vsel %vm728_vm4, %v607_v30, %v778_v32  ;;  %v1669_v35 = vpop.f32.mrf.mxu2 }
  0xb6   :  { %v878_v36 = vpack.c.bf16 %v828_v34, %v828_v34  ;;  %v474_v37 = vpop.f32.mrf.mxu0 }
  0xb7   :  { %v475_v38 = vadd.f32 %v1612_v57, %v474_v37 }
  0xb8   :  { %929 = vst.msk [vmem:[%s1995_s3 + $0x8] sm:$0xf] %vm926_vm2, %v878_v36 }
  0xb9   :  { %v609_v41 = vadd.f32 %v608_v3, %v475_v38  ;;  %v1711_v3 = vpop.f32.mrf.mxu3 }
  0xbb   :  { %vm729_vm5 = vcmp.gt.f32.partialorder %v609_v41, 0.0  ;;  %v779_v49 = vmul.f32 0.2, %v609_v41  ;;  %v616_v50 = vpop.f32.mrf.mxu1 }
  0xbd   :  { %v829_v53 = vsel %vm729_vm5, %v609_v41, %v779_v49  ;;  %v1703_v54 = vpop.f32.mrf.mxu2 }
  0xbe   :  { %v879_v56 = vpack.c.bf16 %v829_v53, %v829_v53  ;;  %1236 = vmatmul.msk.bf16.gmra.mxu1 %vm382_vm0, %v1076_v44  ;;  %v477_v58 = vpop.f32.mrf.mxu0 }
  0xbf   :  { %v478_v60 = vadd.f32 %v1612_v57, %v477_v58 }
  0xc0   :  { %930 = vst.msk [vmem:[%s1995_s3 + $0xc] sm:$0xf] %vm926_vm2, %v879_v56  ;;  %v1175_v56 = vld [vmem:[%s1993_s0 + $0x180] sm:$0xf] }
  0xc1   :  { %v612_v61 = vadd.f32 %v611_v21, %v478_v60  ;;  %516 = vmatmul.bf16.gmra.mxu0 %v1064_v55  ;;  %v1092_v55 = vor.u32 %v1276_v47, %v1089_v48  ;;  %v1299_v60 = vld [vmem:[%s1993_s0 + $0x184] sm:$0xf0] }
  0xc2   :  { %576 = vmatmul.bf16.gmra.mxu2 %v1160_v59 }
  0xc3   :  { %vm730_vm6 = vcmp.gt.f32.partialorder %v612_v61, 0.0  ;;  %v780_v62 = vmul.f32 0.2, %v612_v61  ;;  %v618_v63 = vpop.f32.mrf.mxu1 }
  0xc5   :  { %v830_v1 = vsel %vm730_vm6, %v612_v61, %v780_v62  ;;  %v537_v2 = vpop.f32.mrf.mxu2 }
  0xc6   :  { %v880_v4 = vpack.c.bf16 %v830_v1, %v830_v1  ;;  %v538_v6 = vadd.f32 %v1612_v57, %v537_v2  ;;  %v479_v7 = vpop.f32.mrf.mxu0 }
  0xc7   :  { %v480_v8 = vadd.f32 %v1612_v57, %v479_v7 }
  0xc8   :  { %931 = vst.msk [vmem:[%s1995_s3 + $0x10] sm:$0xf] %vm926_vm2, %v880_v4  ;;  %v672_v12 = vadd.f32 %v1623_v0, %v538_v6  ;;  %v1297_v0 = vld [vmem:[%s1993_s0 + $0x174] sm:$0xf0]  ;;  %v1176_v6 = vor.u32 %v1299_v60, %v1175_v56 }
  0xc9   :  { %v614_v13 = vadd.f32 %v613_v33, %v480_v8  ;;  %v1168_v30 = vor.u32 %v1297_v0, %v1167_v18  ;;  %v1745_v33 = vpop.f32.mrf.mxu3 }
  0xca   :  { %vm754_vm7 = vcmp.gt.f32.partialorder %v672_v12, 0.0  ;;  %v804_v16 = vmul.f32 0.2, %v672_v12 }
  0xcb   :  { %vm731_vm8 = vcmp.gt.f32.partialorder %v614_v13, 0.0  ;;  %v781_v19 = vmul.f32 0.2, %v614_v13  ;;  %v621_v20 = vpop.f32.mrf.mxu1 }
  0xcc   :  { %v854_v21 = vsel %vm754_vm7, %v672_v12, %v804_v16 }
  0xcd   :  { %v904_v22 = vpack.c.bf16 %v854_v21, %v854_v21  ;;  %v831_v23 = vsel %vm731_vm8, %v614_v13, %v781_v19  ;;  %v539_v25 = vpop.f32.mrf.mxu2 }
  0xce   :  { %v881_v27 = vpack.c.bf16 %v831_v23, %v831_v23  ;;  %v540_v28 = vadd.f32 %v1612_v57, %v539_v25  ;;  %1237 = vmatmul.msk.bf16.gmra.mxu1 %vm382_vm0, %v1084_v17  ;;  %v482_v29 = vpop.f32.mrf.mxu0 }
  0xcf   :  { %955 = vst.msk [vmem:[%s1995_s3 + $0x70] sm:$0xf] %vm926_vm2, %v904_v22  ;;  %v483_v32 = vadd.f32 %v1612_v57, %v482_v29 }
  0xd0   :  { %932 = vst.msk [vmem:[%s1995_s3 + $0x14] sm:$0xf] %vm926_vm2, %v881_v27  ;;  %v674_v34 = vadd.f32 %v1634_v11, %v540_v28 }
  0xd1   :  { %v617_v36 = vadd.f32 %v616_v50, %v483_v32  ;;  %521 = vmatmul.bf16.gmra.mxu0 %v1072_v26  ;;  %v1769_v51 = vpop.f32.mrf.mxu3 }
  0xd2   :  { %vm755_vm9 = vcmp.gt.f32.partialorder %v674_v34, 0.0  ;;  %v805_v37 = vmul.f32 0.2, %v674_v34  ;;  %581 = vmatmul.bf16.gmra.mxu2 %v1168_v30 }
  0xd3   :  { %vm732_vm10 = vcmp.gt.f32.partialorder %v617_v36, 0.0  ;;  %v782_v38 = vmul.f32 0.2, %v617_v36  ;;  %v623_v39 = vpop.f32.mrf.mxu1 }
  0xd4   :  { %v855_v40 = vsel %vm755_vm9, %v674_v34, %v805_v37 }
  0xd5   :  { %v905_v41 = vpack.c.bf16 %v855_v40, %v855_v40  ;;  %v832_v42 = vsel %vm732_vm10, %v617_v36, %v782_v38  ;;  %v542_v43 = vpop.f32.mrf.mxu2 }
  0xd6   :  { %v882_v44 = vpack.c.bf16 %v832_v42, %v832_v42  ;;  %v543_v45 = vadd.f32 %v1612_v57, %v542_v43  ;;  %v484_v46 = vpop.f32.mrf.mxu0 }
  0xd7   :  { %956 = vst.msk [vmem:[%s1995_s3 + $0x74] sm:$0xf] %vm926_vm2, %v905_v41  ;;  %v485_v11 = vadd.f32 %v1612_v57, %v484_v46 }
  0xd8   :  { %933 = vst.msk [vmem:[%s1995_s3 + $0x18] sm:$0xf] %vm926_vm2, %v882_v44  ;;  %v677_v49 = vadd.f32 %v1667_v31, %v543_v45 }
  0xd9   :  { %v619_v50 = vadd.f32 %v618_v63, %v485_v11  ;;  %v1789_v14 = vpop.f32.mrf.mxu3 }
  0xda   :  { %vm756_vm11 = vcmp.gt.f32.partialorder %v677_v49, 0.0  ;;  %v806_v53 = vmul.f32 0.2, %v677_v49 }
  0xdb   :  { %vm733_vm12 = vcmp.gt.f32.partialorder %v619_v50, 0.0  ;;  %v783_v58 = vmul.f32 0.2, %v619_v50  ;;  %v626_v59 = vpop.f32.mrf.mxu1 }
  0xdc   :  { %v856_v61 = vsel %vm756_vm11, %v677_v49, %v806_v53 }
  0xdd   :  { %v906_v62 = vpack.c.bf16 %v856_v61, %v856_v61  ;;  %v833_v31 = vsel %vm733_vm12, %v619_v50, %v783_v58  ;;  %v544_v63 = vpop.f32.mrf.mxu2 }
  0xde   :  { %v883_v1 = vpack.c.bf16 %v833_v31, %v833_v31  ;;  %v545_v2 = vadd.f32 %v1612_v57, %v544_v63  ;;  %1238 = vmatmul.msk.bf16.gmra.mxu1 %vm382_vm0, %v1092_v55  ;;  %v487_v4 = vpop.f32.mrf.mxu0 }
  0xdf   :  { %957 = vst.msk [vmem:[%s1995_s3 + $0x78] sm:$0xf] %vm926_vm2, %v906_v62  ;;  %v488_v7 = vadd.f32 %v1612_v57, %v487_v4 }
  0xe0   :  { %934 = vst.msk [vmem:[%s1995_s3 + $0x1c] sm:$0xf] %vm926_vm2, %v883_v1  ;;  %v679_v8 = vadd.f32 %v1700_v52, %v545_v2 }
  0xe1   :  { %v622_v9 = vadd.f32 %v621_v20, %v488_v7  ;;  %v691_v32 = vpop.f32.mrf.mxu3 }
  0xe2   :  { %vm757_vm13 = vcmp.gt.f32.partialorder %v679_v8, 0.0  ;;  %v807_v10 = vmul.f32 0.2, %v679_v8  ;;  %586 = vmatmul.bf16.gmra.mxu2 %v1176_v6 }
  0xe3   :  { %vm734_vm14 = vcmp.gt.f32.partialorder %v622_v9, 0.0  ;;  %v784_v12 = vmul.f32 0.2, %v622_v9  ;;  %v628_v13 = vpop.f32.mrf.mxu1 }
  0xe4   :  { %v857_v15 = vsel %vm757_vm13, %v679_v8, %v807_v10 }
  0xe5   :  { %v907_v16 = vpack.c.bf16 %v857_v15, %v857_v15  ;;  %v834_v17 = vsel %vm734_vm14, %v622_v9, %v784_v12  ;;  %v547_v18 = vpop.f32.mrf.mxu2 }
  0xe6   :  { %v884_v19 = vpack.c.bf16 %v834_v17, %v834_v17  ;;  %v548_v0 = vadd.f32 %v1612_v57, %v547_v18  ;;  %v489_v21 = vpop.f32.mrf.mxu0 }
  0xe7   :  { %958 = vst.msk [vmem:[%s1995_s3 + $0x7c] sm:$0xf] %vm926_vm2, %v907_v16  ;;  %v490_v52 = vadd.f32 %v1612_v57, %v489_v21 }
  0xe8   :  { %935 = vst.msk [vmem:[%s1995_s3 + $0x20] sm:$0xf] %vm926_vm2, %v884_v19  ;;  %v682_v20 = vadd.f32 %v1711_v3, %v548_v0 }
  0xe9   :  { %v624_v22 = vadd.f32 %v623_v39, %v490_v52  ;;  %v693_v49 = vpop.f32.mrf.mxu3 }
  0xea   :  { %vm758_vm15 = vcmp.gt.f32.partialorder %v682_v20, 0.0  ;;  %v808_v23 = vmul.f32 0.2, %v682_v20 }
  0xeb   :  { %vm735_vm0 = vcmp.gt.f32.partialorder %v624_v22, 0.0  ;;  %v785_v25 = vmul.f32 0.2, %v624_v22  ;;  %v631_v26 = vpop.f32.mrf.mxu1 }
  0xec   :  { %v858_v27 = vsel %vm758_vm15, %v682_v20, %v808_v23 }
  0xed   :  { %v908_v28 = vpack.c.bf16 %v858_v27, %v858_v27  ;;  %v835_v29 = vsel %vm735_vm0, %v624_v22, %v785_v25  ;;  %v549_v30 = vpop.f32.mrf.mxu2 }
  0xee   :  { %v885_v34 = vpack.c.bf16 %v835_v29, %v835_v29  ;;  %v550_v36 = vadd.f32 %v1612_v57, %v549_v30  ;;  %v492_v37 = vpop.f32.mrf.mxu0 }
  0xef   :  { %959 = vst.msk [vmem:[%s1995_s3 + $0x80] sm:$0xf] %vm926_vm2, %v908_v28  ;;  %v493_v3 = vadd.f32 %v1612_v57, %v492_v37 }
  0xf0   :  { %936 = vst.msk [vmem:[%s1995_s3 + $0x24] sm:$0xf] %vm926_vm2, %v885_v34  ;;  %v684_v38 = vadd.f32 %v1745_v33, %v550_v36 }
  0xf1   :  { %v627_v39 = vadd.f32 %v626_v59, %v493_v3  ;;  %v696_v6 = vpop.f32.mrf.mxu3 }
  0xf2   :  { %vm759_vm1 = vcmp.gt.f32.partialorder %v684_v38, 0.0  ;;  %v809_v40 = vmul.f32 0.2, %v684_v38 }
  0xf3   :  { %vm736_vm3 = vcmp.gt.f32.partialorder %v627_v39, 0.0  ;;  %v786_v41 = vmul.f32 0.2, %v627_v39  ;;  %v633_v42 = vpop.f32.mrf.mxu1 }
  0xf4   :  { %v859_v43 = vsel %vm759_vm1, %v684_v38, %v809_v40 }
  0xf5   :  { %v909_v44 = vpack.c.bf16 %v859_v43, %v859_v43  ;;  %v836_v45 = vsel %vm736_vm3, %v627_v39, %v786_v41  ;;  %v552_v46 = vpop.f32.mrf.mxu2 }
  0xf6   :  { %v886_v11 = vpack.c.bf16 %v836_v45, %v836_v45  ;;  %v553_v47 = vadd.f32 %v1612_v57, %v552_v46  ;;  %v494_v48 = vpop.f32.mrf.mxu0 }
  0xf7   :  { %960 = vst.msk [vmem:[%s1995_s3 + $0x84] sm:$0xf] %vm926_vm2, %v909_v44  ;;  %v495_v33 = vadd.f32 %v1612_v57, %v494_v48 }
  0xf8   :  { %937 = vst.msk [vmem:[%s1995_s3 + $0x28] sm:$0xf] %vm926_vm2, %v886_v11  ;;  %v687_v50 = vadd.f32 %v1769_v51, %v553_v47 }
  0xf9   :  { %v629_v53 = vadd.f32 %v628_v13, %v495_v33  ;;  %v698_v22 = vpop.f32.mrf.mxu3 }
  0xfa   :  { %vm760_vm4 = vcmp.gt.f32.partialorder %v687_v50, 0.0  ;;  %v810_v55 = vmul.f32 0.2, %v687_v50 }
  0xfb   :  { %vm737_vm5 = vcmp.gt.f32.partialorder %v629_v53, 0.0  ;;  %v787_v56 = vmul.f32 0.2, %v629_v53  ;;  %v636_v58 = vpop.f32.mrf.mxu1 }
  0xfc   :  { %v860_v59 = vsel %vm760_vm4, %v687_v50, %v810_v55 }
  0xfd   :  { %v910_v60 = vpack.c.bf16 %v860_v59, %v860_v59  ;;  %v837_v61 = vsel %vm737_vm5, %v629_v53, %v787_v56  ;;  %v554_v62 = vpop.f32.mrf.mxu2 }
  0xfe   :  { %v887_v31 = vpack.c.bf16 %v837_v61, %v837_v61  ;;  %v555_v63 = vadd.f32 %v1612_v57, %v554_v62  ;;  %v497_v1 = vpop.f32.mrf.mxu0 }
  0xff   :  { %961 = vst.msk [vmem:[%s1995_s3 + $0x88] sm:$0xf] %vm926_vm2, %v910_v60  ;;  %v498_v51 = vadd.f32 %v1612_v57, %v497_v1 }
 0x100   :  { %938 = vst.msk [vmem:[%s1995_s3 + $0x2c] sm:$0xf] %vm926_vm2, %v887_v31  ;;  %v689_v2 = vadd.f32 %v1789_v14, %v555_v63 }
 0x101   :  { %v632_v4 = vadd.f32 %v631_v26, %v498_v51  ;;  %v701_v43 = vpop.f32.mrf.mxu3 }
 0x102   :  { %vm761_vm6 = vcmp.gt.f32.partialorder %v689_v2, 0.0  ;;  %v811_v7 = vmul.f32 0.2, %v689_v2 }
 0x103   :  { %vm738_vm7 = vcmp.gt.f32.partialorder %v632_v4, 0.0  ;;  %v788_v8 = vmul.f32 0.2, %v632_v4  ;;  %v638_v9 = vpop.f32.mrf.mxu1 }
 0x104   :  { %v861_v10 = vsel %vm761_vm6, %v689_v2, %v811_v7 }
 0x105   :  { %v911_v12 = vpack.c.bf16 %v861_v10, %v861_v10  ;;  %v838_v13 = vsel %vm738_vm7, %v632_v4, %v788_v8  ;;  %v557_v15 = vpop.f32.mrf.mxu2 }
 0x106   :  { %v888_v16 = vpack.c.bf16 %v838_v13, %v838_v13  ;;  %v558_v17 = vadd.f32 %v1612_v57, %v557_v15  ;;  %v499_v18 = vpop.f32.mrf.mxu0 }
 0x107   :  { %962 = vst.msk [vmem:[%s1995_s3 + $0x8c] sm:$0xf] %vm926_vm2, %v911_v12  ;;  %v500_v14 = vadd.f32 %v1612_v57, %v499_v18 }
 0x108   :  { %939 = vst.msk [vmem:[%s1995_s3 + $0x30] sm:$0xf] %vm926_vm2, %v888_v16  ;;  %v692_v19 = vadd.f32 %v691_v32, %v558_v17 }
 0x109   :  { %v634_v0 = vadd.f32 %v633_v42, %v500_v14  ;;  %v703_v31 = vpop.f32.mrf.mxu3 }
 0x10a   :  { %vm762_vm8 = vcmp.gt.f32.partialorder %v692_v19, 0.0  ;;  %v812_v21 = vmul.f32 0.2, %v692_v19 }
 0x10b   :  { %vm739_vm9 = vcmp.gt.f32.partialorder %v634_v0, 0.0  ;;  %v789_v52 = vmul.f32 0.2, %v634_v0  ;;  %v641_v20 = vpop.f32.mrf.mxu1 }
 0x10c   :  { %v862_v23 = vsel %vm762_vm8, %v692_v19, %v812_v21 }
 0x10d   :  { %v912_v25 = vpack.c.bf16 %v862_v23, %v862_v23  ;;  %v839_v26 = vsel %vm739_vm9, %v634_v0, %v789_v52  ;;  %v559_v27 = vpop.f32.mrf.mxu2 }
 0x10e   :  { %v889_v28 = vpack.c.bf16 %v839_v26, %v839_v26  ;;  %v560_v29 = vadd.f32 %v1612_v57, %v559_v27  ;;  %v502_v30 = vpop.f32.mrf.mxu0 }
 0x10f   :  { %963 = vst.msk [vmem:[%s1995_s3 + $0x90] sm:$0xf] %vm926_vm2, %v912_v25  ;;  %v503_v32 = vadd.f32 %v1612_v57, %v502_v30 }
 0x110   :  { %940 = vst.msk [vmem:[%s1995_s3 + $0x34] sm:$0xf] %vm926_vm2, %v889_v28  ;;  %v694_v34 = vadd.f32 %v693_v49, %v560_v29 }
 0x111   :  { %v637_v36 = vadd.f32 %v636_v58, %v503_v32  ;;  %v706_v18 = vpop.f32.mrf.mxu3 }
 0x112   :  { %vm763_vm10 = vcmp.gt.f32.partialorder %v694_v34, 0.0  ;;  %v813_v37 = vmul.f32 0.2, %v694_v34 }
 0x113   :  { %vm740_vm11 = vcmp.gt.f32.partialorder %v637_v36, 0.0  ;;  %v790_v3 = vmul.f32 0.2, %v637_v36  ;;  %v643_v38 = vpop.f32.mrf.mxu1 }
 0x114   :  { %v863_v39 = vsel %vm763_vm10, %v694_v34, %v813_v37 }
 0x115   :  { %v913_v40 = vpack.c.bf16 %v863_v39, %v863_v39  ;;  %v840_v41 = vsel %vm740_vm11, %v637_v36, %v790_v3  ;;  %v562_v42 = vpop.f32.mrf.mxu2 }
 0x116   :  { %v890_v44 = vpack.c.bf16 %v840_v41, %v840_v41  ;;  %v563_v45 = vadd.f32 %v1612_v57, %v562_v42  ;;  %v504_v46 = vpop.f32.mrf.mxu0 }
 0x117   :  { %964 = vst.msk [vmem:[%s1995_s3 + $0x94] sm:$0xf] %vm926_vm2, %v913_v40  ;;  %v505_v11 = vadd.f32 %v1612_v57, %v504_v46 }
 0x118   :  { %941 = vst.msk [vmem:[%s1995_s3 + $0x38] sm:$0xf] %vm926_vm2, %v890_v44  ;;  %v697_v47 = vadd.f32 %v696_v6, %v563_v45 }
 0x119   :  { %v639_v48 = vadd.f32 %v638_v9, %v505_v11  ;;  %v708_v36 = vpop.f32.mrf.mxu3 }
 0x11a   :  { %vm764_vm12 = vcmp.gt.f32.partialorder %v697_v47, 0.0  ;;  %v814_v33 = vmul.f32 0.2, %v697_v47 }
 0x11b   :  { %vm741_vm13 = vcmp.gt.f32.partialorder %v639_v48, 0.0  ;;  %v791_v49 = vmul.f32 0.2, %v639_v48  ;;  %v646_v50 = vpop.f32.mrf.mxu1 }
 0x11c   :  { %v864_v53 = vsel %vm764_vm12, %v697_v47, %v814_v33 }
 0x11d   :  { %v914_v55 = vpack.c.bf16 %v864_v53, %v864_v53  ;;  %v841_v56 = vsel %vm741_vm13, %v639_v48, %v791_v49  ;;  %v564_v58 = vpop.f32.mrf.mxu2 }
 0x11e   :  { %v891_v59 = vpack.c.bf16 %v841_v56, %v841_v56  ;;  %v565_v60 = vadd.f32 %v1612_v57, %v564_v58  ;;  %v507_v61 = vpop.f32.mrf.mxu0 }
 0x11f   :  { %965 = vst.msk [vmem:[%s1995_s3 + $0x98] sm:$0xf] %vm926_vm2, %v914_v55  ;;  %v508_v62 = vadd.f32 %v1612_v57, %v507_v61 }
 0x120   :  { %942 = vst.msk [vmem:[%s1995_s3 + $0x3c] sm:$0xf] %vm926_vm2, %v891_v59  ;;  %v699_v63 = vadd.f32 %v698_v22, %v565_v60 }
 0x121   :  { %v642_v1 = vadd.f32 %v641_v20, %v508_v62  ;;  %v711_v53 = vpop.f32.mrf.mxu3 }
 0x122   :  { %vm765_vm14 = vcmp.gt.f32.partialorder %v699_v63, 0.0  ;;  %v815_v51 = vmul.f32 0.2, %v699_v63 }
 0x123   :  { %vm742_vm15 = vcmp.gt.f32.partialorder %v642_v1, 0.0  ;;  %v792_v2 = vmul.f32 0.2, %v642_v1  ;;  %v648_v4 = vpop.f32.mrf.mxu1 }
 0x124   :  { %v865_v6 = vsel %vm765_vm14, %v699_v63, %v815_v51 }
 0x125   :  { %v915_v7 = vpack.c.bf16 %v865_v6, %v865_v6  ;;  %v842_v8 = vsel %vm742_vm15, %v642_v1, %v792_v2  ;;  %v567_v9 = vpop.f32.mrf.mxu2 }
 0x126   :  { %v892_v10 = vpack.c.bf16 %v842_v8, %v842_v8  ;;  %v568_v12 = vadd.f32 %v1612_v57, %v567_v9  ;;  %v509_v13 = vpop.f32.mrf.mxu0 }
 0x127   :  { %966 = vst.msk [vmem:[%s1995_s3 + $0x9c] sm:$0xf] %vm926_vm2, %v915_v7  ;;  %v510_v15 = vadd.f32 %v1612_v57, %v509_v13 }
 0x128   :  { %943 = vst.msk [vmem:[%s1995_s3 + $0x40] sm:$0xf] %vm926_vm2, %v892_v10  ;;  %v702_v16 = vadd.f32 %v701_v43, %v568_v12 }
 0x129   :  { %v644_v17 = vadd.f32 %v643_v38, %v510_v15  ;;  %v713_v10 = vpop.f32.mrf.mxu3  ;;  %v528_v15 = vadd.f32 %v1612_v57, %v1625_v5 }
 0x12a   :  { %vm766_vm0 = vcmp.gt.f32.partialorder %v702_v16, 0.0  ;;  %v816_v14 = vmul.f32 0.2, %v702_v16 }
 0x12b   :  { %vm743_vm1 = vcmp.gt.f32.partialorder %v644_v17, 0.0  ;;  %v793_v19 = vmul.f32 0.2, %v644_v17  ;;  %v651_v0 = vpop.f32.mrf.mxu1 }
 0x12c   :  { %v866_v21 = vsel %vm766_vm0, %v702_v16, %v816_v14 }
 0x12d   :  { %v916_v52 = vpack.c.bf16 %v866_v21, %v866_v21  ;;  %v843_v20 = vsel %vm743_vm1, %v644_v17, %v793_v19  ;;  %v569_v22 = vpop.f32.mrf.mxu2 }
 0x12e   :  { %v893_v23 = vpack.c.bf16 %v843_v20, %v843_v20  ;;  %v570_v25 = vadd.f32 %v1612_v57, %v569_v22  ;;  %v512_v26 = vpop.f32.mrf.mxu0 }
 0x12f   :  { %967 = vst.msk [vmem:[%s1995_s3 + $0xa0] sm:$0xf] %vm926_vm2, %v916_v52  ;;  %v513_v27 = vadd.f32 %v1612_v57, %v512_v26 }
 0x130   :  { %944 = vst.msk [vmem:[%s1995_s3 + $0x44] sm:$0xf] %vm926_vm2, %v893_v23  ;;  %v704_v28 = vadd.f32 %v703_v31, %v570_v25 }
 0x131   :  { %v647_v29 = vadd.f32 %v646_v50, %v513_v27 }
 0x132   :  { %vm767_vm3 = vcmp.gt.f32.partialorder %v704_v28, 0.0  ;;  %v817_v30 = vmul.f32 0.2, %v704_v28 }
 0x133   :  { %vm744_vm4 = vcmp.gt.f32.partialorder %v647_v29, 0.0  ;;  %v794_v32 = vmul.f32 0.2, %v647_v29  ;;  %v653_v34 = vpop.f32.mrf.mxu1 }
 0x134   :  { %v867_v37 = vsel %vm767_vm3, %v704_v28, %v817_v30  ;;  %v716_v30 = vpop.f32.mrf.mxu3 }
 0x135   :  { %v917_v3 = vpack.c.bf16 %v867_v37, %v867_v37  ;;  %v844_v38 = vsel %vm744_vm4, %v647_v29, %v794_v32  ;;  %v572_v39 = vpop.f32.mrf.mxu2  ;;  %v530_v32 = vadd.f32 %v1612_v57, %v1659_v24 }
 0x136   :  { %v894_v40 = vpack.c.bf16 %v844_v38, %v844_v38  ;;  %v573_v41 = vadd.f32 %v1612_v57, %v572_v39  ;;  %v514_v42 = vpop.f32.mrf.mxu0 }
 0x137   :  { %968 = vst.msk [vmem:[%s1995_s3 + $0xa4] sm:$0xf] %vm926_vm2, %v917_v3  ;;  %v515_v43 = vadd.f32 %v1612_v57, %v514_v42 }
 0x138   :  { %945 = vst.msk [vmem:[%s1995_s3 + $0x48] sm:$0xf] %vm926_vm2, %v894_v40  ;;  %v707_v44 = vadd.f32 %v706_v18, %v573_v41 }
 0x139   :  { %v649_v45 = vadd.f32 %v648_v4, %v515_v43 }
 0x13a   :  { %vm768_vm5 = vcmp.gt.f32.partialorder %v707_v44, 0.0  ;;  %v818_v46 = vmul.f32 0.2, %v707_v44 }
 0x13b   :  { %vm745_vm6 = vcmp.gt.f32.partialorder %v649_v45, 0.0  ;;  %v795_v11 = vmul.f32 0.2, %v649_v45  ;;  %v656_v47 = vpop.f32.mrf.mxu1 }
 0x13c   :  { %v868_v48 = vsel %vm768_vm5, %v707_v44, %v818_v46 }
 0x13d   :  { %v918_v33 = vpack.c.bf16 %v868_v48, %v868_v48  ;;  %v845_v49 = vsel %vm745_vm6, %v649_v45, %v795_v11  ;;  %v574_v50 = vpop.f32.mrf.mxu2 }
 0x13e   :  { %v895_v55 = vpack.c.bf16 %v845_v49, %v845_v49  ;;  %v575_v56 = vadd.f32 %v1612_v57, %v574_v50  ;;  %v517_v58 = vpop.f32.mrf.mxu0 }
 0x13f   :  { %969 = vst.msk [vmem:[%s1995_s3 + $0xa8] sm:$0xf] %vm926_vm2, %v918_v33  ;;  %v518_v59 = vadd.f32 %v1612_v57, %v517_v58  ;;  %v533_v33 = vadd.f32 %v1612_v57, %v1669_v35 }
 0x140   :  { %946 = vst.msk [vmem:[%s1995_s3 + $0x4c] sm:$0xf] %vm926_vm2, %v895_v55  ;;  %v709_v60 = vadd.f32 %v708_v36, %v575_v56 }
 0x141   :  { %v652_v61 = vadd.f32 %v651_v0, %v518_v59 }
 0x142   :  { %vm769_vm7 = vcmp.gt.f32.partialorder %v709_v60, 0.0  ;;  %v819_v62 = vmul.f32 0.2, %v709_v60 }
 0x143   :  { %vm746_vm8 = vcmp.gt.f32.partialorder %v652_v61, 0.0  ;;  %v796_v31 = vmul.f32 0.2, %v652_v61  ;;  %v658_v63 = vpop.f32.mrf.mxu1 }
 0x144   :  { %v869_v1 = vsel %vm769_vm7, %v709_v60, %v819_v62 }
 0x145   :  { %v919_v51 = vpack.c.bf16 %v869_v1, %v869_v1  ;;  %v846_v2 = vsel %vm746_vm8, %v652_v61, %v796_v31  ;;  %v577_v4 = vpop.f32.mrf.mxu2 }
 0x146   :  { %v896_v6 = vpack.c.bf16 %v846_v2, %v846_v2  ;;  %v578_v7 = vadd.f32 %v1612_v57, %v577_v4  ;;  %v519_v8 = vpop.f32.mrf.mxu0  ;;  %v535_v2 = vadd.f32 %v1612_v57, %v1703_v54 }
 0x147   :  { %970 = vst.msk [vmem:[%s1995_s3 + $0xac] sm:$0xf] %vm926_vm2, %v919_v51  ;;  %v520_v9 = vadd.f32 %v1612_v57, %v519_v8 }
 0x148   :  { %947 = vst.msk [vmem:[%s1995_s3 + $0x50] sm:$0xf] %vm926_vm2, %v896_v6  ;;  %v712_v12 = vadd.f32 %v711_v53, %v578_v7  ;;  %v718_v53 = vpop.f32.mrf.mxu3 }
 0x149   :  { %v654_v13 = vadd.f32 %v653_v34, %v520_v9 }
 0x14a   :  { %vm770_vm9 = vcmp.gt.f32.partialorder %v712_v12, 0.0  ;;  %v820_v16 = vmul.f32 0.2, %v712_v12 }
 0x14b   :  { %vm747_vm10 = vcmp.gt.f32.partialorder %v654_v13, 0.0  ;;  %v797_v17 = vmul.f32 0.2, %v654_v13  ;;  %v661_v18 = vpop.f32.mrf.mxu1 }
 0x14c   :  { %v870_v14 = vsel %vm770_vm9, %v712_v12, %v820_v16  ;;  %v662_v19 = vadd.f32 %v661_v18, %v528_v15 }
 0x14d   :  { %v920_v0 = vpack.c.bf16 %v870_v14, %v870_v14  ;;  %v847_v21 = vsel %vm747_vm10, %v654_v13, %v797_v17  ;;  %v579_v52 = vpop.f32.mrf.mxu2 }
 0x14e   :  { %v897_v20 = vpack.c.bf16 %v847_v21, %v847_v21  ;;  %vm750_vm11 = vcmp.gt.f32.partialorder %v662_v19, 0.0  ;;  %v800_v22 = vmul.f32 0.2, %v662_v19  ;;  %v580_v23 = vadd.f32 %v1612_v57, %v579_v52  ;;  %v522_v25 = vpop.f32.mrf.mxu0 }
 0x14f   :  { %971 = vst.msk [vmem:[%s1995_s3 + $0xb0] sm:$0xf] %vm926_vm2, %v920_v0  ;;  %v523_v5 = vadd.f32 %v1612_v57, %v522_v25 }
 0x150   :  { %948 = vst.msk [vmem:[%s1995_s3 + $0x54] sm:$0xf] %vm926_vm2, %v897_v20  ;;  %v850_v26 = vsel %vm750_vm11, %v662_v19, %v800_v22  ;;  %v714_v27 = vadd.f32 %v713_v10, %v580_v23  ;;  %v721_v10 = vpop.f32.mrf.mxu3 }
 0x151   :  { %v900_v28 = vpack.c.bf16 %v850_v26, %v850_v26  ;;  %v657_v29 = vadd.f32 %v656_v47, %v523_v5 }
 0x152   :  { %vm771_vm12 = vcmp.gt.f32.partialorder %v714_v27, 0.0  ;;  %v821_v34 = vmul.f32 0.2, %v714_v27 }
 0x153   :  { %951 = vst.msk [vmem:[%s1995_s3 + $0x60] sm:$0xf] %vm926_vm2, %v900_v28  ;;  %vm748_vm13 = vcmp.gt.f32.partialorder %v657_v29, 0.0  ;;  %v798_v36 = vmul.f32 0.2, %v657_v29  ;;  %v663_v37 = vpop.f32.mrf.mxu1 }
 0x154   :  { %v871_v3 = vsel %vm771_vm12, %v714_v27, %v821_v34  ;;  %v664_v38 = vadd.f32 %v663_v37, %v530_v32 }
 0x155   :  { %v921_v39 = vpack.c.bf16 %v871_v3, %v871_v3  ;;  %v848_v40 = vsel %vm748_vm13, %v657_v29, %v798_v36  ;;  %v582_v41 = vpop.f32.mrf.mxu2 }
 0x156   :  { %v898_v42 = vpack.c.bf16 %v848_v40, %v848_v40  ;;  %vm751_vm14 = vcmp.gt.f32.partialorder %v664_v38, 0.0  ;;  %v801_v43 = vmul.f32 0.2, %v664_v38  ;;  %v583_v24 = vadd.f32 %v1612_v57, %v582_v41  ;;  %v524_v44 = vpop.f32.mrf.mxu0 }
 0x157   :  { %972 = vst.msk [vmem:[%s1995_s3 + $0xb4] sm:$0xf] %vm926_vm2, %v921_v39  ;;  %v525_v45 = vadd.f32 %v1612_v57, %v524_v44 }
 0x158   :  { %949 = vst.msk [vmem:[%s1995_s3 + $0x58] sm:$0xf] %vm926_vm2, %v898_v42  ;;  %v851_v46 = vsel %vm751_vm14, %v664_v38, %v801_v43  ;;  %v717_v11 = vadd.f32 %v716_v30, %v583_v24  ;;  %v723_v52 = vpop.f32.mrf.mxu3 }
 0x159   :  { %v901_v47 = vpack.c.bf16 %v851_v46, %v851_v46  ;;  %v659_v48 = vadd.f32 %v658_v63, %v525_v45 }
 0x15a   :  { %vm772_vm15 = vcmp.gt.f32.partialorder %v717_v11, 0.0  ;;  %v822_v49 = vmul.f32 0.2, %v717_v11 }
 0x15b   :  { %952 = vst.msk [vmem:[%s1995_s3 + $0x64] sm:$0xf] %vm926_vm2, %v901_v47  ;;  %vm749_vm0 = vcmp.gt.f32.partialorder %v659_v48, 0.0  ;;  %v799_v50 = vmul.f32 0.2, %v659_v48  ;;  %v666_v55 = vpop.f32.mrf.mxu1 }
 0x15c   :  { %v872_v56 = vsel %vm772_vm15, %v717_v11, %v822_v49  ;;  %v667_v58 = vadd.f32 %v666_v55, %v533_v33 }
 0x15d   :  { %v922_v59 = vpack.c.bf16 %v872_v56, %v872_v56  ;;  %v849_v60 = vsel %vm749_vm0, %v659_v48, %v799_v50  ;;  %v584_v61 = vpop.f32.mrf.mxu2 }
 0x15e   :  { %v899_v62 = vpack.c.bf16 %v849_v60, %v849_v60  ;;  %vm752_vm1 = vcmp.gt.f32.partialorder %v667_v58, 0.0  ;;  %v802_v31 = vmul.f32 0.2, %v667_v58  ;;  %v585_v35 = vadd.f32 %v1612_v57, %v584_v61 }
 0x15f   :  { %973 = vst.msk [vmem:[%s1995_s3 + $0xb8] sm:$0xf] %vm926_vm2, %v922_v59 }
 0x160   :  { %950 = vst.msk [vmem:[%s1995_s3 + $0x5c] sm:$0xf] %vm926_vm2, %v899_v62  ;;  %v852_v63 = vsel %vm752_vm1, %v667_v58, %v802_v31  ;;  %v719_v1 = vadd.f32 %v718_v53, %v585_v35 }
 0x161   :  { %v902_v51 = vpack.c.bf16 %v852_v63, %v852_v63 }
 0x162   :  { %vm773_vm3 = vcmp.gt.f32.partialorder %v719_v1, 0.0  ;;  %v823_v4 = vmul.f32 0.2, %v719_v1 }
 0x163   :  { %953 = vst.msk [vmem:[%s1995_s3 + $0x68] sm:$0xf] %vm926_vm2, %v902_v51  ;;  %v668_v6 = vpop.f32.mrf.mxu1 }
 0x164   :  { %v873_v7 = vsel %vm773_vm3, %v719_v1, %v823_v4  ;;  %v669_v8 = vadd.f32 %v668_v6, %v535_v2 }
 0x165   :  { %v923_v9 = vpack.c.bf16 %v873_v7, %v873_v7  ;;  %v587_v12 = vpop.f32.mrf.mxu2 }
 0x166   :  { %vm753_vm4 = vcmp.gt.f32.partialorder %v669_v8, 0.0  ;;  %v803_v13 = vmul.f32 0.2, %v669_v8  ;;  %v588_v15 = vadd.f32 %v1612_v57, %v587_v12 }
 0x167   :  { %974 = vst.msk [vmem:[%s1995_s3 + $0xbc] sm:$0xf] %vm926_vm2, %v923_v9 }
 0x168   :  { %v853_v54 = vsel %vm753_vm4, %v669_v8, %v803_v13  ;;  %v722_v16 = vadd.f32 %v721_v10, %v588_v15 }
 0x169   :  { %v903_v17 = vpack.c.bf16 %v853_v54, %v853_v54 }
 0x16a   :  { %vm774_vm5 = vcmp.gt.f32.partialorder %v722_v16, 0.0  ;;  %v824_v18 = vmul.f32 0.2, %v722_v16 }
 0x16b   :  { %954 = vst.msk [vmem:[%s1995_s3 + $0x6c] sm:$0xf] %vm926_vm2, %v903_v17 }
 0x16c   :  { %v874_v14 = vsel %vm774_vm5, %v722_v16, %v824_v18 }
 0x16d   :  { %v924_v19 = vpack.c.bf16 %v874_v14, %v874_v14  ;;  %v589_v0 = vpop.f32.mrf.mxu2 }
 0x16e   :  { %v590_v21 = vadd.f32 %v1612_v57, %v589_v0 }
 0x16f   :  { %975 = vst.msk [vmem:[%s1995_s3 + $0xc0] sm:$0xf] %vm926_vm2, %v924_v19 }
 0x170   :  { %v724_v20 = vadd.f32 %v723_v52, %v590_v21 }
 0x172   :  { %vm775_vm6 = vcmp.gt.f32.partialorder %v724_v20, 0.0  ;;  %v825_v22 = vmul.f32 0.2, %v724_v20 }
 0x174   :  { %v875_v23 = vsel %vm775_vm6, %v724_v20, %v825_v22 }
 0x175   :  { %v925_v25 = vpack.c.bf16 %v875_v23, %v875_v23 }
 0x177   :  { %976 = vst.msk [vmem:[%s1995_s3 + $0xc4] sm:$0xf] %vm926_vm2, %v925_v25 }

// kernel: discriminator_forward.4
= control target key start
LH: loop header
LB: loop body
LE: loop exit
PB: predicated region body
PF: predicated region fallthrough
CT: control target
= control target key end

     0   :  { %s2925_s1 = inlined_call_operand.vmem [shape: bf16[1024,128], index: 1, kind: input, shape index: {}]   ;;  %s2926_s2 = inlined_call_operand.vmem [shape: f32[1,128], index: 2, kind: input, shape index: {}]   ;;  %s2927_s0 = inlined_call_operand.vmem [shape: bf16[112,1024], index: 0, kind: input, shape index: {}]   ;;  %s2928_s3 = inlined_call_operand.vmem [shape: f32[1,128], index: 3, kind: input, shape index: {}]   ;;  %s2929_s4 = inlined_call_operand.vmem [shape: f32[1,128], index: 4, kind: input, shape index: {}]   ;;  %s2930_s5 = inlined_call_operand.vmem [shape: bf16[112,128], index: 5, kind: output, shape index: {}]  }
   0x1   :  { %v2084_v0 = vld [vmem:[%s2925_s1 + $0x38] sm:$0xff]  ;;  %v2083_v4 = vld [vmem:[%s2925_s1 + $0x30] sm:$0xff]  ;;  %v2082_v8 = vld [vmem:[%s2925_s1 + $0x28] sm:$0xff] }
   0x2   :  { %v2092_v1 = vld [vmem:[%s2925_s1 + $0x78] sm:$0xff]  ;;  %878 = vmatpush.bf16.msra.mxu0 %v2084_v0  ;;  %v2091_v5 = vld [vmem:[%s2925_s1 + $0x70] sm:$0xff]  ;;  %v2090_v9 = vld [vmem:[%s2925_s1 + $0x68] sm:$0xff] }
   0x3   :  { %v2100_v2 = vld [vmem:[%s2925_s1 + $0xb8] sm:$0xff]  ;;  %922 = vmatpush.bf16.msra.mxu1 %v2092_v1  ;;  %v2099_v6 = vld [vmem:[%s2925_s1 + $0xb0] sm:$0xff]  ;;  %v2098_v10 = vld [vmem:[%s2925_s1 + $0xa8] sm:$0xff] }
   0x4   :  { %v2108_v3 = vld [vmem:[%s2925_s1 + $0xf8] sm:$0xff]  ;;  %966 = vmatpush.bf16.msra.mxu2 %v2100_v2  ;;  %v2107_v7 = vld [vmem:[%s2925_s1 + $0xf0] sm:$0xff]  ;;  %v2106_v11 = vld [vmem:[%s2925_s1 + $0xe8] sm:$0xff] }
   0x5   :  { %1010 = vmatpush.bf16.msra.mxu3 %v2108_v3  ;;  %v2081_v12 = vld [vmem:[%s2925_s1 + $0x20] sm:$0xff]  ;;  %v2080_v16 = vld [vmem:[%s2925_s1 + $0x18] sm:$0xff]  ;;  %v2079_v20 = vld [vmem:[%s2925_s1 + $0x10] sm:$0xff] }
   0x6   :  { %879 = vmatpush.bf16.msra.mxu0 %v2083_v4  ;;  %v2089_v13 = vld [vmem:[%s2925_s1 + $0x60] sm:$0xff]  ;;  %v2088_v17 = vld [vmem:[%s2925_s1 + $0x58] sm:$0xff]  ;;  %v2087_v21 = vld [vmem:[%s2925_s1 + $0x50] sm:$0xff] }
   0x7   :  { %923 = vmatpush.bf16.msra.mxu1 %v2091_v5  ;;  %v2097_v14 = vld [vmem:[%s2925_s1 + $0xa0] sm:$0xff]  ;;  %v2096_v18 = vld [vmem:[%s2925_s1 + $0x98] sm:$0xff]  ;;  %v2095_v22 = vld [vmem:[%s2925_s1 + $0x90] sm:$0xff] }
   0x8   :  { %967 = vmatpush.bf16.msra.mxu2 %v2099_v6  ;;  %v2105_v15 = vld [vmem:[%s2925_s1 + $0xe0] sm:$0xff]  ;;  %v2104_v19 = vld [vmem:[%s2925_s1 + $0xd8] sm:$0xff]  ;;  %v2103_v23 = vld [vmem:[%s2925_s1 + $0xd0] sm:$0xff] }
   0x9   :  { %1011 = vmatpush.bf16.msra.mxu3 %v2107_v7  ;;  %v2078_v24 = vld [vmem:[%s2925_s1 + $0x8] sm:$0xff]  ;;  %v2077_v28 = vld [vmem:[%s2925_s1] sm:$0xff]  ;;  %v2132_v40 = vld [vmem:[%s2925_s1 + $0x1b8] sm:$0xff] }
   0xa   :  { %880 = vmatpush.bf16.msra.mxu0 %v2082_v8  ;;  %v2086_v25 = vld [vmem:[%s2925_s1 + $0x48] sm:$0xff]  ;;  %v2085_v29 = vld [vmem:[%s2925_s1 + $0x40] sm:$0xff]  ;;  %v2116_v41 = vld [vmem:[%s2925_s1 + $0x138] sm:$0xff] }
   0xb   :  { %924 = vmatpush.bf16.msra.mxu1 %v2090_v9  ;;  %v2094_v26 = vld [vmem:[%s2925_s1 + $0x88] sm:$0xff]  ;;  %v2093_v30 = vld [vmem:[%s2925_s1 + $0x80] sm:$0xff]  ;;  %v2140_v46 = vld [vmem:[%s2925_s1 + $0x1f8] sm:$0xff] }
   0xc   :  { %968 = vmatpush.bf16.msra.mxu2 %v2098_v10  ;;  %v2102_v27 = vld [vmem:[%s2925_s1 + $0xc8] sm:$0xff]  ;;  %v2101_v31 = vld [vmem:[%s2925_s1 + $0xc0] sm:$0xff]  ;;  %v2124_v47 = vld [vmem:[%s2925_s1 + $0x178] sm:$0xff] }
   0xd   :  { %1012 = vmatpush.bf16.msra.mxu3 %v2106_v11  ;;  %v1543_v32 = vld [vmem:[%s2927_s0] sm:$0xf]  ;;  %v2021_v34 = vld [vmem:[%s2927_s0 + $0x4] sm:$0xf]  ;;  %v1551_v36 = vld [vmem:[%s2927_s0 + $0x8] sm:$0xf] }
   0xe   :  { %881 = vmatpush.bf16.msra.mxu0 %v2081_v12  ;;  %v2025_v33 = vld [vmem:[%s2927_s0 + $0x1c] sm:$0xf0]  ;;  %v1545_v35 = vld [vmem:[%s2927_s0 + $0x20] sm:$0xf0]  ;;  %v2026_v37 = vld [vmem:[%s2927_s0 + $0x24] sm:$0xf0] }
   0xf   :  { %925 = vmatpush.bf16.msra.mxu1 %v2089_v13  ;;  %v2022_v38 = vld [vmem:[%s2927_s0 + $0xc] sm:$0xf]  ;;  %v1544_v42 = vor.u32 %v2025_v33, %v1543_v32  ;;  %v1548_v43 = vor.u32 %v2021_v34, %v1545_v35  ;;  %v1552_v44 = vor.u32 %v2026_v37, %v1551_v36  ;;  %v2131_v48 = vld [vmem:[%s2925_s1 + $0x1b0] sm:$0xff]  ;;  %v1575_v56 = vld [vmem:[%s2927_s0 + $0x40] sm:$0xf] }
  0x10   :  { %969 = vmatpush.bf16.msra.mxu2 %v2097_v14  ;;  %v1553_v39 = vld [vmem:[%s2927_s0 + $0x28] sm:$0xf0]  ;;  %v2115_v49 = vld [vmem:[%s2925_s1 + $0x130] sm:$0xff]  ;;  %v2129_v57 = vld [vmem:[%s2925_s1 + $0x1a0] sm:$0xff] }
  0x11   :  { %1013 = vmatpush.bf16.msra.mxu3 %v2105_v15  ;;  %v1556_v45 = vor.u32 %v2022_v38, %v1553_v39  ;;  %v2139_v50 = vld [vmem:[%s2925_s1 + $0x1f0] sm:$0xff]  ;;  %v2130_v52 = vld [vmem:[%s2925_s1 + $0x1a8] sm:$0xff]  ;;  %v2113_v58 = vld [vmem:[%s2925_s1 + $0x120] sm:$0xff] }
  0x12   :  { %882 = vmatpush.bf16.msra.mxu0 %v2080_v16  ;;  %v2123_v51 = vld [vmem:[%s2925_s1 + $0x170] sm:$0xff]  ;;  %v2114_v53 = vld [vmem:[%s2925_s1 + $0x128] sm:$0xff]  ;;  %v2033_v59 = vld [vmem:[%s2927_s0 + $0x5c] sm:$0xf0] }
  0x13   :  { %926 = vmatpush.bf16.msra.mxu1 %v2088_v17  ;;  %v2138_v54 = vld [vmem:[%s2925_s1 + $0x1e8] sm:$0xff]  ;;  %v2029_v60 = vld [vmem:[%s2927_s0 + $0x44] sm:$0xf]  ;;  %v1576_v4 = vor.u32 %v2033_v59, %v1575_v56  ;;  %v2128_v8 = vld [vmem:[%s2925_s1 + $0x198] sm:$0xff] }
  0x14   :  { %970 = vmatpush.bf16.msra.mxu2 %v2096_v18  ;;  %v2122_v55 = vld [vmem:[%s2925_s1 + $0x168] sm:$0xff]  ;;  %v1577_v61 = vld [vmem:[%s2927_s0 + $0x60] sm:$0xf0]  ;;  %v2112_v9 = vld [vmem:[%s2925_s1 + $0x118] sm:$0xff] }
  0x15   :  { %1014 = vmatpush.bf16.msra.mxu3 %v2104_v19  ;;  %v1583_v62 = vld [vmem:[%s2927_s0 + $0x48] sm:$0xf]  ;;  %v2030_v0 = vld [vmem:[%s2927_s0 + $0x4c] sm:$0xf]  ;;  %v2137_v2 = vld [vmem:[%s2925_s1 + $0x1e0] sm:$0xff]  ;;  %v1580_v5 = vor.u32 %v2029_v60, %v1577_v61 }
  0x16   :  { %883 = vmatpush.bf16.msra.mxu0 %v2079_v20  ;;  %v2034_v63 = vld [vmem:[%s2927_s0 + $0x64] sm:$0xf0]  ;;  %v1585_v1 = vld [vmem:[%s2927_s0 + $0x68] sm:$0xf0]  ;;  %v2121_v3 = vld [vmem:[%s2925_s1 + $0x160] sm:$0xff] }
  0x17   :  { %927 = vmatpush.bf16.msra.mxu1 %v2087_v21  ;;  %v1584_v6 = vor.u32 %v2034_v63, %v1583_v62  ;;  %v1588_v7 = vor.u32 %v2030_v0, %v1585_v1  ;;  %v2136_v10 = vld [vmem:[%s2925_s1 + $0x1d8] sm:$0xff]  ;;  %v1607_v12 = vld [vmem:[%s2927_s0 + $0x80] sm:$0xf]  ;;  %v2037_v14 = vld [vmem:[%s2927_s0 + $0x84] sm:$0xf] }
  0x18   :  { %971 = vmatpush.bf16.msra.mxu2 %v2095_v22  ;;  %v2120_v11 = vld [vmem:[%s2925_s1 + $0x158] sm:$0xff]  ;;  %v2041_v13 = vld [vmem:[%s2927_s0 + $0x9c] sm:$0xf0]  ;;  %v1609_v15 = vld [vmem:[%s2927_s0 + $0xa0] sm:$0xf0] }
  0x19   :  { %1015 = vmatpush.bf16.msra.mxu3 %v2103_v23  ;;  %v1615_v16 = vld [vmem:[%s2927_s0 + $0x88] sm:$0xf]  ;;  %v2038_v18 = vld [vmem:[%s2927_s0 + $0x8c] sm:$0xf]  ;;  %v1608_v20 = vor.u32 %v2041_v13, %v1607_v12  ;;  %v1612_v21 = vor.u32 %v2037_v14, %v1609_v15  ;;  %v2125_v56 = vld [vmem:[%s2925_s1 + $0x180] sm:$0xff] }
  0x1a   :  { %884 = vmatpush.bf16.msra.mxu0 %v2078_v24  ;;  %v2042_v17 = vld [vmem:[%s2927_s0 + $0xa4] sm:$0xf0]  ;;  %v1617_v19 = vld [vmem:[%s2927_s0 + $0xa8] sm:$0xf0]  ;;  %v2127_v24 = vld [vmem:[%s2925_s1 + $0x190] sm:$0xff] }
  0x1b   :  { %928 = vmatpush.bf16.msra.mxu1 %v2086_v25  ;;  %v1616_v22 = vor.u32 %v2042_v17, %v1615_v16  ;;  %v1620_v23 = vor.u32 %v2038_v18, %v1617_v19  ;;  %v2111_v25 = vld [vmem:[%s2925_s1 + $0x110] sm:$0xff]  ;;  %v1647_v32 = vld [vmem:[%s2927_s0 + $0xc8] sm:$0xf]  ;;  %v2046_v34 = vld [vmem:[%s2927_s0 + $0xcc] sm:$0xf] }
  0x1c   :  { %972 = vmatpush.bf16.msra.mxu2 %v2094_v26  ;;  %v2135_v26 = vld [vmem:[%s2925_s1 + $0x1d0] sm:$0xff]  ;;  %v2050_v33 = vld [vmem:[%s2927_s0 + $0xe4] sm:$0xf0]  ;;  %v1649_v35 = vld [vmem:[%s2927_s0 + $0xe8] sm:$0xf0] }
  0x1d   :  { %1016 = vmatpush.bf16.msra.mxu3 %v2102_v27  ;;  %v2119_v27 = vld [vmem:[%s2925_s1 + $0x150] sm:$0xff]  ;;  %v1648_v38 = vor.u32 %v2050_v33, %v1647_v32  ;;  %v1652_v39 = vor.u32 %v2046_v34, %v1649_v35  ;;  %v2117_v59 = vld [vmem:[%s2925_s1 + $0x140] sm:$0xff]  ;;  %v1711_v0 = vld [vmem:[%s2927_s0 + $0x148] sm:$0xf] }
  0x1e   :  { %885 = vmatpush.bf16.msra.mxu0 %v2077_v28  ;;  %v1639_v28 = vld [vmem:[%s2927_s0 + $0xc0] sm:$0xf]  ;;  %v2061_v62 = vld [vmem:[%s2927_s0 + $0x144] sm:$0xf]  ;;  %v2066_v1 = vld [vmem:[%s2927_s0 + $0x164] sm:$0xf0] }
  0x1f   :  { %929 = vmatpush.bf16.msra.mxu1 %v2085_v29  ;;  %v2049_v29 = vld [vmem:[%s2927_s0 + $0xdc] sm:$0xf0]  ;;  %v1705_v63 = vld [vmem:[%s2927_s0 + $0x160] sm:$0xf0]  ;;  %v1743_v12 = vld [vmem:[%s2927_s0 + $0x188] sm:$0xf] }
  0x20   :  { %973 = vmatpush.bf16.msra.mxu2 %v2093_v30  ;;  %v2045_v30 = vld [vmem:[%s2927_s0 + $0xc4] sm:$0xf]  ;;  %v1640_v36 = vor.u32 %v2049_v29, %v1639_v28  ;;  %v1703_v60 = vld [vmem:[%s2927_s0 + $0x140] sm:$0xf]  ;;  %v2074_v13 = vld [vmem:[%s2927_s0 + $0x1a4] sm:$0xf0] }
  0x21   :  { %1017 = vmatpush.bf16.msra.mxu3 %v2101_v31  ;;  %886 = vmatmul.bf16.vlgmr.msra.gmra.mxu0 %v1544_v42  ;;  %v1641_v31 = vld [vmem:[%s2927_s0 + $0xe0] sm:$0xf0]  ;;  %v2134_v42 = vld [vmem:[%s2925_s1 + $0x1c8] sm:$0xff]  ;;  %v2065_v61 = vld [vmem:[%s2927_s0 + $0x15c] sm:$0xf0]  ;;  %v1744_v18 = vor.u32 %v2074_v13, %v1743_v12 }
  0x22   :  { %1054 = vmatpush.bf16.msrb.mxu0 %v2116_v41  ;;  %930 = vmatmul.bf16.vlgmr.msra.gmra.mxu1 %v1548_v43  ;;  %v1644_v37 = vor.u32 %v2045_v30, %v1641_v31  ;;  %v2110_v41 = vld [vmem:[%s2925_s1 + $0x108] sm:$0xff]  ;;  %v2606_v32 = vld [vmem:[%s2926_s2] ss:$0 sm:$0xff]  ;;  %v1591_v33 = vld [vmem:[%s2927_s0 + $0x50] sm:$0xf] }
  0x23   :  { %974 = vmatmul.bf16.vlgmr.msra.gmra.mxu2 %v1552_v44  ;;  %1098 = vmatpush.bf16.msrb.mxu1 %v2124_v47  ;;  %v2118_v43 = vld [vmem:[%s2925_s1 + $0x148] sm:$0xff]  ;;  %v1671_v44 = vld [vmem:[%s2927_s0 + $0x100] sm:$0xf]  ;;  %v1673_v47 = vld [vmem:[%s2927_s0 + $0x120] sm:$0xf0] }
  0x24   :  { %1142 = vmatpush.bf16.msrb.mxu2 %v2132_v40  ;;  %1018 = vmatmul.bf16.vlgmr.msra.gmra.mxu3 %v1556_v45  ;;  %v2126_v40 = vld [vmem:[%s2925_s1 + $0x188] sm:$0xff]  ;;  %v2057_v45 = vld [vmem:[%s2927_s0 + $0x11c] sm:$0xf0]  ;;  %v2035_v34 = vld [vmem:[%s2927_s0 + $0x6c] sm:$0xf0] }
  0x25   :  { %1186 = vmatpush.bf16.msrb.mxu3 %v2140_v46  ;;  %v2053_v46 = vld [vmem:[%s2927_s0 + $0x104] sm:$0xf]  ;;  %v2070_v14 = vld [vmem:[%s2927_s0 + $0x18c] sm:$0xf]  ;;  %v2031_v35 = vld [vmem:[%s2927_s0 + $0x54] sm:$0xf] }
  0x26   :  { %1055 = vmatpush.bf16.msrb.mxu0 %v2115_v49  ;;  %v2058_v49 = vld [vmem:[%s2927_s0 + $0x124] sm:$0xf0]  ;;  %v1745_v15 = vld [vmem:[%s2927_s0 + $0x1a8] sm:$0xf0] }
  0x27   :  { %1099 = vmatpush.bf16.msrb.mxu1 %v2123_v51  ;;  %v1681_v51 = vld [vmem:[%s2927_s0 + $0x128] sm:$0xf0]  ;;  %v1748_v19 = vor.u32 %v2070_v14, %v1745_v15 }
  0x28   :  { %1143 = vmatpush.bf16.msrb.mxu2 %v2131_v48  ;;  %v1679_v48 = vld [vmem:[%s2927_s0 + $0x108] sm:$0xf] }
  0x29   :  { %1187 = vmatpush.bf16.msrb.mxu3 %v2139_v50  ;;  %v2054_v50 = vld [vmem:[%s2927_s0 + $0x10c] sm:$0xf] }
  0x2a   :  { %1056 = vmatpush.bf16.msrb.mxu0 %v2114_v53  ;;  %v1676_v53 = vor.u32 %v2053_v46, %v1673_v47 }
  0x2b   :  { %1100 = vmatpush.bf16.msrb.mxu1 %v2122_v55  ;;  %v1684_v55 = vor.u32 %v2054_v50, %v1681_v51 }
  0x2c   :  { %1144 = vmatpush.bf16.msrb.mxu2 %v2130_v52  ;;  %v1672_v52 = vor.u32 %v2057_v45, %v1671_v44 }
  0x2d   :  { %1188 = vmatpush.bf16.msrb.mxu3 %v2138_v54  ;;  %v1680_v54 = vor.u32 %v2058_v49, %v1679_v48 }
  0x2e   :  { %1057 = vmatpush.bf16.msrb.mxu0 %v2113_v58  ;;  %v2133_v58 = vld [vmem:[%s2925_s1 + $0x1c0] sm:$0xff] }
  0x2f   :  { %1101 = vmatpush.bf16.msrb.mxu1 %v2121_v3  ;;  %v1713_v3 = vld [vmem:[%s2927_s0 + $0x168] sm:$0xf0] }
  0x30   :  { %1145 = vmatpush.bf16.msrb.mxu2 %v2129_v57  ;;  %v2109_v57 = vld [vmem:[%s2925_s1 + $0x100] sm:$0xff] }
  0x31   :  { %1189 = vmatpush.bf16.msrb.mxu3 %v2137_v2  ;;  %891 = vmatmul.bf16.gmra.mxu0 %v1576_v4  ;;  %v2062_v2 = vld [vmem:[%s2927_s0 + $0x14c] sm:$0xf]  ;;  %v1704_v4 = vor.u32 %v2065_v61, %v1703_v60  ;;  %v1625_v60 = vld [vmem:[%s2927_s0 + $0xb0] sm:$0xf0]  ;;  %v1631_v61 = vld [vmem:[%s2927_s0 + $0x98] sm:$0xf] }
  0x32   :  { %935 = vmatmul.bf16.gmra.mxu1 %v1580_v5  ;;  %1058 = vmatpush.bf16.msrb.mxu0 %v2112_v9  ;;  %v1708_v5 = vor.u32 %v2061_v62, %v1705_v63  ;;  %v2073_v9 = vld [vmem:[%s2927_s0 + $0x19c] sm:$0xf0]  ;;  %v2044_v62 = vld [vmem:[%s2927_s0 + $0xb4] sm:$0xf0]  ;;  %v2040_v63 = vld [vmem:[%s2927_s0 + $0x9c] sm:$0xf] }
  0x33   :  { %979 = vmatmul.bf16.gmra.mxu2 %v1584_v6  ;;  %1102 = vmatpush.bf16.msrb.mxu1 %v2120_v11  ;;  %v1712_v6 = vor.u32 %v2066_v1, %v1711_v0  ;;  %v1737_v11 = vld [vmem:[%s2927_s0 + $0x1a0] sm:$0xf0]  ;;  %v1633_v0 = vld [vmem:[%s2927_s0 + $0xb8] sm:$0xf0] }
  0x34   :  { %1023 = vmatmul.bf16.gmra.mxu3 %v1588_v7  ;;  %1146 = vmatpush.bf16.msrb.mxu2 %v2128_v8  ;;  %v1716_v7 = vor.u32 %v2062_v2, %v1713_v3  ;;  %v1735_v8 = vld [vmem:[%s2927_s0 + $0x180] sm:$0xf] }
  0x35   :  { %1190 = vmatpush.bf16.msrb.mxu3 %v2136_v10  ;;  %v2069_v10 = vld [vmem:[%s2927_s0 + $0x184] sm:$0xf]  ;;  %v1736_v16 = vor.u32 %v2073_v9, %v1735_v8  ;;  %v1632_v8 = vor.u32 %v2044_v62, %v1631_v61  ;;  %v1636_v9 = vor.u32 %v2040_v63, %v1633_v0 }
  0x36   :  { %1059 = vmatpush.bf16.msrb.mxu0 %v2111_v25  ;;  %v1740_v17 = vor.u32 %v2069_v10, %v1737_v11  ;;  %v2028_v25 = vld [vmem:[%s2927_s0 + $0x34] sm:$0xf0] }
  0x37   :  { %1103 = vmatpush.bf16.msrb.mxu1 %v2119_v27  ;;  %v1569_v27 = vld [vmem:[%s2927_s0 + $0x38] sm:$0xf0] }
  0x38   :  { %1147 = vmatpush.bf16.msrb.mxu2 %v2127_v24  ;;  %v1567_v24 = vld [vmem:[%s2927_s0 + $0x18] sm:$0xf] }
  0x39   :  { %1191 = vmatpush.bf16.msrb.mxu3 %v2135_v26  ;;  %v2024_v26 = vld [vmem:[%s2927_s0 + $0x1c] sm:$0xf]  ;;  %v1568_v30 = vor.u32 %v2028_v25, %v1567_v24  ;;  %v1657_v24 = vld [vmem:[%s2927_s0 + $0xf0] sm:$0xf0]  ;;  %v1663_v25 = vld [vmem:[%s2927_s0 + $0xd8] sm:$0xf] }
  0x3a   :  { %1060 = vmatpush.bf16.msrb.mxu0 %v2110_v41  ;;  %v1572_v31 = vor.u32 %v2024_v26, %v1569_v27  ;;  %v1592_v41 = vor.u32 %v2035_v34, %v1591_v33  ;;  %v2052_v26 = vld [vmem:[%s2927_s0 + $0xf4] sm:$0xf0]  ;;  %v2048_v27 = vld [vmem:[%s2927_s0 + $0xdc] sm:$0xf] }
  0x3b   :  { %1104 = vmatpush.bf16.msrb.mxu1 %v2118_v43 }
  0x3c   :  { %1148 = vmatpush.bf16.msrb.mxu2 %v2126_v40  ;;  %v1601_v40 = vld [vmem:[%s2927_s0 + $0x78] sm:$0xf0] }
  0x3d   :  { %1192 = vmatpush.bf16.msrb.mxu3 %v2134_v42 }
  0x3e   :  { %1061 = vmatpush.bf16.msrb.mxu0 %v2109_v57  ;;  %v1623_v57 = vld [vmem:[%s2927_s0 + $0x90] sm:$0xf] }
  0x3f   :  { %1105 = vmatpush.bf16.msrb.mxu1 %v2117_v59  ;;  %v2039_v59 = vld [vmem:[%s2927_s0 + $0x94] sm:$0xf] }
  0x40   :  { %1149 = vmatpush.bf16.msrb.mxu2 %v2125_v56 }
  0x41   :  { %896 = vmatmul.bf16.gmra.mxu0 %v1608_v20  ;;  %1193 = vmatpush.bf16.msrb.mxu3 %v2133_v58  ;;  %v1559_v20 = vld [vmem:[%s2927_s0 + $0x10] sm:$0xf] }
  0x42   :  { %940 = vmatmul.bf16.gmra.mxu1 %v1612_v21  ;;  %v2027_v21 = vld [vmem:[%s2927_s0 + $0x2c] sm:$0xf0] }
  0x43   :  { %984 = vmatmul.bf16.gmra.mxu2 %v1616_v22  ;;  %v2023_v22 = vld [vmem:[%s2927_s0 + $0x14] sm:$0xf]  ;;  %v1560_v28 = vor.u32 %v2027_v21, %v1559_v20  ;;  %v2043_v58 = vld [vmem:[%s2927_s0 + $0xac] sm:$0xf0] }
  0x44   :  { %1028 = vmatmul.bf16.gmra.mxu3 %v1620_v23  ;;  %v1561_v23 = vld [vmem:[%s2927_s0 + $0x30] sm:$0xf0]  ;;  %v1624_v3 = vor.u32 %v2043_v58, %v1623_v57  ;;  %v1655_v21 = vld [vmem:[%s2927_s0 + $0xd0] sm:$0xf]  ;;  %v2056_v57 = vld [vmem:[%s2927_s0 + $0x11c] sm:$0xf] }
  0x45   :  { %v1564_v29 = vor.u32 %v2023_v22, %v1561_v23  ;;  %v2051_v22 = vld [vmem:[%s2927_s0 + $0xec] sm:$0xf0]  ;;  %v2047_v23 = vld [vmem:[%s2927_s0 + $0xd4] sm:$0xf]  ;;  %v1697_v58 = vld [vmem:[%s2927_s0 + $0x138] sm:$0xf0] }
  0x46   :  { %v1660_v33 = vor.u32 %v2047_v23, %v1657_v24  ;;  %v2064_v23 = vld [vmem:[%s2927_s0 + $0x15c] sm:$0xf] }
  0x47   :  { %v1729_v24 = vld [vmem:[%s2927_s0 + $0x178] sm:$0xf0] }
  0x51   :  { %901 = vmatmul.bf16.gmra.mxu0 %v1640_v36  ;;  %v1593_v36 = vld [vmem:[%s2927_s0 + $0x70] sm:$0xf0] }
  0x52   :  { %945 = vmatmul.bf16.gmra.mxu1 %v1644_v37  ;;  %v1599_v37 = vld [vmem:[%s2927_s0 + $0x58] sm:$0xf]  ;;  %v1596_v42 = vor.u32 %v2031_v35, %v1593_v36 }
  0x53   :  { %989 = vmatmul.bf16.gmra.mxu2 %v1648_v38  ;;  %v2036_v38 = vld [vmem:[%s2927_s0 + $0x74] sm:$0xf0] }
  0x54   :  { %1033 = vmatmul.bf16.gmra.mxu3 %v1652_v39  ;;  %v2032_v39 = vld [vmem:[%s2927_s0 + $0x5c] sm:$0xf]  ;;  %v1600_v45 = vor.u32 %v2036_v38, %v1599_v37  ;;  %v1664_v37 = vor.u32 %v2052_v26, %v1663_v25 }
  0x55   :  { %v1604_v46 = vor.u32 %v2032_v39, %v1601_v40 }
  0x61   :  { %906 = vmatmul.bf16.gmra.mxu0 %v1672_v52 }
  0x62   :  { %950 = vmatmul.bf16.gmra.mxu1 %v1676_v53 }
  0x63   :  { %994 = vmatmul.bf16.gmra.mxu2 %v1680_v54 }
  0x64   :  { %1038 = vmatmul.bf16.gmra.mxu3 %v1684_v55 }
  0x71   :  { %911 = vmatmul.bf16.gmra.mxu0 %v1704_v4  ;;  %v1628_v4 = vor.u32 %v2039_v59, %v1625_v60 }
  0x72   :  { %955 = vmatmul.bf16.gmra.mxu1 %v1708_v5 }
  0x73   :  { %999 = vmatmul.bf16.gmra.mxu2 %v1712_v6 }
  0x74   :  { %1043 = vmatmul.bf16.gmra.mxu3 %v1716_v7 }
  0x81   :  { %916 = vmatmul.bf16.gmra.mxu0 %v1736_v16 }
  0x82   :  { %960 = vmatmul.bf16.gmra.mxu1 %v1740_v17 }
  0x83   :  { %1004 = vmatmul.bf16.gmra.mxu2 %v1744_v18 }
  0x84   :  { %1048 = vmatmul.bf16.gmra.mxu3 %v1748_v19 }
  0x91   :  { %1062 = vmatmul.bf16.vlgmr.msrb.gmra.mxu0 %v1560_v28  ;;  %v1665_v28 = vld [vmem:[%s2927_s0 + $0xf8] sm:$0xf0] }
  0x92   :  { %1106 = vmatmul.bf16.vlgmr.msrb.gmra.mxu1 %v1564_v29  ;;  %v1668_v38 = vor.u32 %v2048_v27, %v1665_v28 }
  0x93   :  { %1150 = vmatmul.bf16.vlgmr.msrb.gmra.mxu2 %v1568_v30 }
  0x94   :  { %1194 = vmatmul.bf16.vlgmr.msrb.gmra.mxu3 %v1572_v31  ;;  %v1656_v31 = vor.u32 %v2051_v22, %v1655_v21  ;;  %v1727_v21 = vld [vmem:[%s2927_s0 + $0x158] sm:$0xf] }
  0x95   :  { %v2068_v22 = vld [vmem:[%s2927_s0 + $0x174] sm:$0xf0] }
  0x9e   :  { %v887_v43 = vpop.f32.mrf.mxu0 }
  0x9f   :  { %v931_v44 = vpop.f32.mrf.mxu1  ;;  %v888_v47 = vadd.f32 %v2606_v32, %v887_v43 }
  0xa1   :  { %v932_v48 = vadd.f32 %v931_v44, %v888_v47  ;;  %1067 = vmatmul.bf16.gmra.mxu0 %v1592_v41 }
  0xa2   :  { %1111 = vmatmul.bf16.gmra.mxu1 %v1596_v42 }
  0xa3   :  { %1155 = vmatmul.bf16.gmra.mxu2 %v1600_v45 }
  0xa4   :  { %1199 = vmatmul.bf16.gmra.mxu3 %v1604_v46 }
  0xa6   :  { %v975_v49 = vpop.f32.mrf.mxu2  ;;  %v889_v52 = vpop.f32.mrf.mxu0 }
  0xa7   :  { %v1019_v50 = vpop.f32.mrf.mxu3  ;;  %v976_v51 = vadd.f32 %v975_v49, %v932_v48  ;;  %v933_v53 = vpop.f32.mrf.mxu1  ;;  %v890_v54 = vadd.f32 %v2606_v32, %v889_v52  ;;  %v2055_v52 = vld [vmem:[%s2927_s0 + $0x114] sm:$0xf] }
  0xa9   :  { %v2634_v55 = vadd.f32 %v1019_v50, %v976_v51  ;;  %v934_v56 = vadd.f32 %v933_v53, %v890_v54  ;;  %v1687_v50 = vld [vmem:[%s2927_s0 + $0x110] sm:$0xf]  ;;  %v1689_v53 = vld [vmem:[%s2927_s0 + $0x130] sm:$0xf0]  ;;  %v1695_v54 = vld [vmem:[%s2927_s0 + $0x118] sm:$0xf] }
  0xaa   :  { %v2059_v51 = vld [vmem:[%s2927_s0 + $0x12c] sm:$0xf0]  ;;  %v1692_v62 = vor.u32 %v2055_v52, %v1689_v53  ;;  %v1759_v52 = vld [vmem:[%s2927_s0 + $0x198] sm:$0xf] }
  0xab   :  { %v1688_v61 = vor.u32 %v2059_v51, %v1687_v50  ;;  %v2071_v50 = vld [vmem:[%s2927_s0 + $0x194] sm:$0xf]  ;;  %v2076_v53 = vld [vmem:[%s2927_s0 + $0x1b4] sm:$0xf0] }
  0xac   :  { %v1753_v51 = vld [vmem:[%s2927_s0 + $0x1b0] sm:$0xf0] }
  0xae   :  { %v977_v1 = vpop.f32.mrf.mxu2  ;;  %v892_v6 = vpop.f32.mrf.mxu0 }
  0xaf   :  { %v1021_v2 = vpop.f32.mrf.mxu3  ;;  %v978_v5 = vadd.f32 %v977_v1, %v934_v56  ;;  %v936_v7 = vpop.f32.mrf.mxu1  ;;  %v893_v10 = vadd.f32 %v2606_v32, %v892_v6  ;;  %v2060_v56 = vld [vmem:[%s2927_s0 + $0x134] sm:$0xf0] }
  0xb1   :  { %v2661_v11 = vadd.f32 %v1021_v2, %v978_v5  ;;  %v937_v12 = vadd.f32 %v936_v7, %v893_v10  ;;  %1072 = vmatmul.bf16.gmra.mxu0 %v1624_v3  ;;  %v1696_v2 = vor.u32 %v2060_v56, %v1695_v54  ;;  %v1700_v3 = vor.u32 %v2056_v57, %v1697_v58  ;;  %v2072_v54 = vld [vmem:[%s2927_s0 + $0x19c] sm:$0xf] }
  0xb2   :  { %1116 = vmatmul.bf16.gmra.mxu1 %v1628_v4  ;;  %v1761_v56 = vld [vmem:[%s2927_s0 + $0x1b8] sm:$0xf0] }
  0xb3   :  { %1160 = vmatmul.bf16.gmra.mxu2 %v1632_v8 }
  0xb4   :  { %1204 = vmatmul.bf16.gmra.mxu3 %v1636_v9 }
  0xb6   :  { %v980_v13 = vpop.f32.mrf.mxu2  ;;  %v894_v16 = vpop.f32.mrf.mxu0 }
  0xb7   :  { %v1024_v14 = vpop.f32.mrf.mxu3  ;;  %v981_v15 = vadd.f32 %v980_v13, %v937_v12  ;;  %v938_v17 = vpop.f32.mrf.mxu1  ;;  %v895_v18 = vadd.f32 %v2606_v32, %v894_v16  ;;  %v1719_v16 = vld [vmem:[%s2927_s0 + $0x150] sm:$0xf] }
  0xb9   :  { %v2664_v19 = vadd.f32 %v1024_v14, %v981_v15  ;;  %v939_v20 = vadd.f32 %v938_v17, %v895_v18  ;;  %v2067_v17 = vld [vmem:[%s2927_s0 + $0x16c] sm:$0xf0]  ;;  %v2063_v18 = vld [vmem:[%s2927_s0 + $0x154] sm:$0xf] }
  0xba   :  { %v1720_v27 = vor.u32 %v2067_v17, %v1719_v16 }
  0xbe   :  { %v982_v29 = vpop.f32.mrf.mxu2  ;;  %v897_v35 = vpop.f32.mrf.mxu0 }
  0xbf   :  { %v1026_v30 = vpop.f32.mrf.mxu3  ;;  %v983_v34 = vadd.f32 %v982_v29, %v939_v20  ;;  %v941_v36 = vpop.f32.mrf.mxu1  ;;  %v898_v39 = vadd.f32 %v2606_v32, %v897_v35  ;;  %v1721_v20 = vld [vmem:[%s2927_s0 + $0x170] sm:$0xf0] }
  0xc0   :  { %v1724_v28 = vor.u32 %v2063_v18, %v1721_v20 }
  0xc1   :  { %v2691_v40 = vadd.f32 %v1026_v30, %v983_v34  ;;  %v942_v41 = vadd.f32 %v941_v36, %v898_v39  ;;  %1077 = vmatmul.bf16.gmra.mxu0 %v1656_v31  ;;  %v1732_v34 = vor.u32 %v2064_v23, %v1729_v24 }
  0xc2   :  { %1121 = vmatmul.bf16.gmra.mxu1 %v1660_v33  ;;  %v1728_v33 = vor.u32 %v2068_v22, %v1727_v21 }
  0xc3   :  { %1165 = vmatmul.bf16.gmra.mxu2 %v1664_v37 }
  0xc4   :  { %1209 = vmatmul.bf16.gmra.mxu3 %v1668_v38 }
  0xc6   :  { %v985_v42 = vpop.f32.mrf.mxu2  ;;  %v899_v45 = vpop.f32.mrf.mxu0 }
  0xc7   :  { %v1029_v43 = vpop.f32.mrf.mxu3  ;;  %v986_v44 = vadd.f32 %v985_v42, %v942_v41  ;;  %v943_v46 = vpop.f32.mrf.mxu1  ;;  %v900_v47 = vadd.f32 %v2606_v32, %v899_v45 }
  0xc9   :  { %v2694_v48 = vadd.f32 %v1029_v43, %v986_v44  ;;  %v944_v49 = vadd.f32 %v943_v46, %v900_v47  ;;  %v1751_v47 = vld [vmem:[%s2927_s0 + $0x190] sm:$0xf] }
  0xce   :  { %v987_v59 = vpop.f32.mrf.mxu2  ;;  %v902_v0 = vpop.f32.mrf.mxu0 }
  0xcf   :  { %v1031_v60 = vpop.f32.mrf.mxu3  ;;  %v988_v63 = vadd.f32 %v987_v59, %v944_v49  ;;  %v946_v1 = vpop.f32.mrf.mxu1  ;;  %v903_v4 = vadd.f32 %v2606_v32, %v902_v0  ;;  %v2075_v49 = vld [vmem:[%s2927_s0 + $0x1ac] sm:$0xf0]  ;;  %v1760_v0 = vor.u32 %v2076_v53, %v1759_v52 }
  0xd0   :  { %v1752_v59 = vor.u32 %v2075_v49, %v1751_v47 }
  0xd1   :  { %v2721_v5 = vadd.f32 %v1031_v60, %v988_v63  ;;  %v947_v6 = vadd.f32 %v946_v1, %v903_v4  ;;  %1082 = vmatmul.bf16.gmra.mxu0 %v1688_v61  ;;  %v1756_v60 = vor.u32 %v2071_v50, %v1753_v51  ;;  %v1764_v1 = vor.u32 %v2072_v54, %v1761_v56 }
  0xd2   :  { %1126 = vmatmul.bf16.gmra.mxu1 %v1692_v62 }
  0xd3   :  { %1170 = vmatmul.bf16.gmra.mxu2 %v1696_v2 }
  0xd4   :  { %1214 = vmatmul.bf16.gmra.mxu3 %v1700_v3 }
  0xd6   :  { %v990_v7 = vpop.f32.mrf.mxu2  ;;  %v904_v10 = vpop.f32.mrf.mxu0 }
  0xd7   :  { %v1034_v8 = vpop.f32.mrf.mxu3  ;;  %v991_v9 = vadd.f32 %v990_v7, %v947_v6  ;;  %v948_v12 = vpop.f32.mrf.mxu1  ;;  %v905_v13 = vadd.f32 %v2606_v32, %v904_v10 }
  0xd9   :  { %v2724_v14 = vadd.f32 %v1034_v8, %v991_v9  ;;  %v949_v15 = vadd.f32 %v948_v12, %v905_v13 }
  0xde   :  { %v992_v25 = vpop.f32.mrf.mxu2  ;;  %v907_v30 = vpop.f32.mrf.mxu0 }
  0xdf   :  { %v1036_v26 = vpop.f32.mrf.mxu3  ;;  %v993_v29 = vadd.f32 %v992_v25, %v949_v15  ;;  %v951_v31 = vpop.f32.mrf.mxu1  ;;  %v908_v35 = vadd.f32 %v2606_v32, %v907_v30 }
  0xe1   :  { %v2751_v36 = vadd.f32 %v1036_v26, %v993_v29  ;;  %v952_v37 = vadd.f32 %v951_v31, %v908_v35  ;;  %1087 = vmatmul.bf16.gmra.mxu0 %v1720_v27 }
  0xe2   :  { %1131 = vmatmul.bf16.gmra.mxu1 %v1724_v28 }
  0xe3   :  { %1175 = vmatmul.bf16.gmra.mxu2 %v1728_v33 }
  0xe4   :  { %1219 = vmatmul.bf16.gmra.mxu3 %v1732_v34 }
  0xe6   :  { %v995_v38 = vpop.f32.mrf.mxu2  ;;  %v909_v42 = vpop.f32.mrf.mxu0 }
  0xe7   :  { %v1039_v39 = vpop.f32.mrf.mxu3  ;;  %v996_v41 = vadd.f32 %v995_v38, %v952_v37  ;;  %v953_v43 = vpop.f32.mrf.mxu1  ;;  %v910_v44 = vadd.f32 %v2606_v32, %v909_v42 }
  0xe9   :  { %v2754_v45 = vadd.f32 %v1039_v39, %v996_v41  ;;  %v954_v46 = vadd.f32 %v953_v43, %v910_v44 }
  0xee   :  { %v997_v57 = vpop.f32.mrf.mxu2  ;;  %v912_v62 = vpop.f32.mrf.mxu0 }
  0xef   :  { %v1041_v58 = vpop.f32.mrf.mxu3  ;;  %v998_v61 = vadd.f32 %v997_v57, %v954_v46  ;;  %v956_v63 = vpop.f32.mrf.mxu1  ;;  %v913_v2 = vadd.f32 %v2606_v32, %v912_v62 }
  0xf1   :  { %v2781_v3 = vadd.f32 %v1041_v58, %v998_v61  ;;  %v957_v4 = vadd.f32 %v956_v63, %v913_v2  ;;  %1092 = vmatmul.bf16.gmra.mxu0 %v1752_v59 }
  0xf2   :  { %1136 = vmatmul.bf16.gmra.mxu1 %v1756_v60 }
  0xf3   :  { %1180 = vmatmul.bf16.gmra.mxu2 %v1760_v0 }
  0xf4   :  { %1224 = vmatmul.bf16.gmra.mxu3 %v1764_v1 }
  0xf6   :  { %v1000_v6 = vpop.f32.mrf.mxu2  ;;  %v914_v9 = vpop.f32.mrf.mxu0 }
  0xf7   :  { %v1044_v7 = vpop.f32.mrf.mxu3  ;;  %v1001_v8 = vadd.f32 %v1000_v6, %v957_v4  ;;  %v958_v10 = vpop.f32.mrf.mxu1  ;;  %v915_v12 = vadd.f32 %v2606_v32, %v914_v9 }
  0xf9   :  { %v2784_v13 = vadd.f32 %v1044_v7, %v1001_v8  ;;  %v959_v15 = vadd.f32 %v958_v10, %v915_v12 }
  0xfe   :  { %v1002_v16 = vpop.f32.mrf.mxu2  ;;  %v917_v20 = vpop.f32.mrf.mxu0 }
  0xff   :  { %v1046_v17 = vpop.f32.mrf.mxu3  ;;  %v1003_v18 = vadd.f32 %v1002_v16, %v959_v15  ;;  %v961_v21 = vpop.f32.mrf.mxu1  ;;  %v918_v22 = vadd.f32 %v2606_v32, %v917_v20 }
 0x101   :  { %v2787_v23 = vadd.f32 %v1046_v17, %v1003_v18  ;;  %v962_v24 = vadd.f32 %v961_v21, %v918_v22 }
 0x106   :  { %v1005_v25 = vpop.f32.mrf.mxu2  ;;  %v919_v28 = vpop.f32.mrf.mxu0 }
 0x107   :  { %v1049_v26 = vpop.f32.mrf.mxu3  ;;  %v1006_v27 = vadd.f32 %v1005_v25, %v962_v24  ;;  %v963_v29 = vpop.f32.mrf.mxu1  ;;  %v920_v30 = vadd.f32 %v2606_v32, %v919_v28 }
 0x109   :  { %v2790_v31 = vadd.f32 %v1049_v26, %v1006_v27  ;;  %v964_v33 = vadd.f32 %v963_v29, %v920_v30 }
 0x10e   :  { %v1007_v34 = vpop.f32.mrf.mxu2  ;;  %v1063_v38 = vpop.f32.mrf.mxu0 }
 0x10f   :  { %v1051_v35 = vpop.f32.mrf.mxu3  ;;  %v1008_v37 = vadd.f32 %v1007_v34, %v964_v33  ;;  %v1107_v39 = vpop.f32.mrf.mxu1  ;;  %v1064_v41 = vadd.f32 %v1063_v38, %v2634_v55 }
 0x111   :  { %v2793_v42 = vadd.f32 %v1051_v35, %v1008_v37  ;;  %v1108_v43 = vadd.f32 %v1107_v39, %v1064_v41 }
 0x116   :  { %v1151_v44 = vpop.f32.mrf.mxu2  ;;  %v1065_v49 = vpop.f32.mrf.mxu0 }
 0x117   :  { %v1195_v46 = vpop.f32.mrf.mxu3  ;;  %v1152_v47 = vadd.f32 %v1151_v44, %v1108_v43  ;;  %v1109_v50 = vpop.f32.mrf.mxu1  ;;  %v1066_v32 = vadd.f32 %v1065_v49, %v2661_v11 }
 0x119   :  { %v2796_v51 = vadd.f32 %v1195_v46, %v1152_v47  ;;  %v1110_v52 = vadd.f32 %v1109_v50, %v1066_v32 }
 0x11e   :  { %v1153_v53 = vpop.f32.mrf.mxu2  ;;  %v1068_v57 = vpop.f32.mrf.mxu0 }
 0x11f   :  { %v1197_v54 = vpop.f32.mrf.mxu3  ;;  %v1154_v56 = vadd.f32 %v1153_v53, %v1110_v52  ;;  %v1112_v58 = vpop.f32.mrf.mxu1  ;;  %v1069_v15 = vadd.f32 %v1068_v57, %v2664_v19 }
 0x121   :  { %v2798_v59 = vadd.f32 %v1197_v54, %v1154_v56  ;;  %v1113_v22 = vadd.f32 %v1112_v58, %v1069_v15 }
 0x123   :  { %v1290_v46 = vadd.f32 %v2798_v59, %v2796_v51 }
 0x126   :  { %v1156_v55 = vpop.f32.mrf.mxu2  ;;  %v1070_v61 = vpop.f32.mrf.mxu0 }
 0x127   :  { %v1200_v60 = vpop.f32.mrf.mxu3  ;;  %v1114_v62 = vpop.f32.mrf.mxu1  ;;  %v1071_v16 = vadd.f32 %v1070_v61, %v2691_v40  ;;  %v1157_v25 = vadd.f32 %v1156_v55, %v1113_v22 }
 0x129   :  { %v1115_v26 = vadd.f32 %v1114_v62, %v1071_v16  ;;  %v2805_v33 = vadd.f32 %v1200_v60, %v1157_v25 }
 0x12b   :  { %v1291_v52 = vadd.f32 %v1290_v46, %v2805_v33 }
 0x12e   :  { %v1158_v63 = vpop.f32.mrf.mxu2  ;;  %v1073_v1 = vpop.f32.mrf.mxu0 }
 0x12f   :  { %v1202_v0 = vpop.f32.mrf.mxu3  ;;  %v1117_v2 = vpop.f32.mrf.mxu1  ;;  %v1074_v24 = vadd.f32 %v1073_v1, %v2694_v48  ;;  %v1159_v28 = vadd.f32 %v1158_v63, %v1115_v26  ;;  %v1313_v48 = vmul.f32 %v2798_v59, %v2798_v59 }
 0x131   :  { %v1118_v29 = vadd.f32 %v1117_v2, %v1074_v24  ;;  %v2810_v41 = vadd.f32 %v1202_v0, %v1159_v28 }
 0x133   :  { %v1315_v53 = vmul.f32 %v2810_v41, %v2810_v41  ;;  %v1292_v58 = vadd.f32 %v1291_v52, %v2810_v41 }
 0x136   :  { %v1161_v4 = vpop.f32.mrf.mxu2  ;;  %v1075_v6 = vpop.f32.mrf.mxu0 }
 0x137   :  { %v1205_v11 = vpop.f32.mrf.mxu3  ;;  %v1119_v7 = vpop.f32.mrf.mxu1  ;;  %v1076_v27 = vadd.f32 %v1075_v6, %v2721_v5  ;;  %v1162_v40 = vadd.f32 %v1161_v4, %v1118_v29  ;;  %v2188_v4 = vmov 0.0  }
 0x138   :  { %24 = vst [vmem:[#allocation3] sm:$0x1] %v2188_v4 }
 0x139   :  { %v1120_v35 = vadd.f32 %v1119_v7, %v1076_v27  ;;  %v2819_v47 = vadd.f32 %v1205_v11, %v1162_v40  ;;  %25 = vst [vmem:[#allocation4] sm:$0x1] %v2188_v4 }
 0x13b   :  { %v1316_v61 = vmul.f32 %v2819_v47, %v2819_v47  ;;  %v1293_v11 = vadd.f32 %v1292_v58, %v2819_v47 }
 0x13e   :  { %v1163_v8 = vpop.f32.mrf.mxu2  ;;  %v1078_v10 = vpop.f32.mrf.mxu0 }
 0x13f   :  { %v1207_v9 = vpop.f32.mrf.mxu3  ;;  %v1122_v12 = vpop.f32.mrf.mxu1  ;;  %v1079_v30 = vadd.f32 %v1078_v10, %v2724_v14  ;;  %v1164_v5 = vadd.f32 %v1163_v8, %v1120_v35  ;;  %v1312_v14 = vmul.f32 %v2796_v51, %v2796_v51 }
 0x141   :  { %v1123_v43 = vadd.f32 %v1122_v12, %v1079_v30  ;;  %v1326_v32 = vadd.f32 %v1313_v48, %v1312_v14 }
 0x146   :  { %v1166_v17 = vpop.f32.mrf.mxu2  ;;  %v1080_v20 = vpop.f32.mrf.mxu0 }
 0x147   :  { %v1210_v18 = vpop.f32.mrf.mxu3  ;;  %v1124_v21 = vpop.f32.mrf.mxu1  ;;  %v1081_v37 = vadd.f32 %v1080_v20, %v2751_v36  ;;  %v1314_v36 = vmul.f32 %v2805_v33, %v2805_v33  ;;  %v1167_v49 = vadd.f32 %v1166_v17, %v1123_v43 }
 0x149   :  { %v1125_v50 = vadd.f32 %v1124_v21, %v1081_v37  ;;  %v1327_v57 = vadd.f32 %v1326_v32, %v1314_v36  ;;  %v2829_v62 = vadd.f32 %v1210_v18, %v1167_v49 }
 0x14b   :  { %v1328_v2 = vadd.f32 %v1327_v57, %v1315_v53  ;;  %v1318_v12 = vmul.f32 %v2829_v62, %v2829_v62 }
 0x14e   :  { %v1168_v19 = vpop.f32.mrf.mxu2  ;;  %v1083_v38 = vpop.f32.mrf.mxu0 }
 0x14f   :  { %v1212_v34 = vpop.f32.mrf.mxu3  ;;  %v1127_v39 = vpop.f32.mrf.mxu1  ;;  %v1084_v44 = vadd.f32 %v1083_v38, %v2754_v45  ;;  %v2824_v45 = vadd.f32 %v1207_v9, %v1164_v5  ;;  %v1169_v54 = vadd.f32 %v1168_v19, %v1125_v50  ;;  %v1329_v9 = vadd.f32 %v1328_v2, %v1316_v61 }
 0x150   :  { %v1231_v50 = vlaneseq }
 0x151   :  { %v1128_v56 = vadd.f32 %v1127_v39, %v1084_v44  ;;  %v1317_v6 = vmul.f32 %v2824_v45, %v2824_v45  ;;  %v2834_v7 = vadd.f32 %v1212_v34, %v1169_v54  ;;  %v1294_v10 = vadd.f32 %v1293_v11, %v2824_v45 }
 0x152   :  { %v1232_v58 = vshrl.u32 %v1231_v50, 7 }
 0x153   :  { %v1330_v16 = vadd.f32 %v1329_v9, %v1317_v6  ;;  %v1295_v17 = vadd.f32 %v1294_v10, %v2829_v62  ;;  %v1319_v18 = vmul.f32 %v2834_v7, %v2834_v7 }
 0x155   :  { %v1331_v24 = vadd.f32 %v1330_v16, %v1318_v12 }
 0x156   :  { %v1171_v55 = vpop.f32.mrf.mxu2  ;;  %v1085_v0 = vpop.f32.mrf.mxu0 }
 0x157   :  { %v1215_v60 = vpop.f32.mrf.mxu3  ;;  %v1172_v63 = vadd.f32 %v1171_v55, %v1128_v56  ;;  %v1129_v1 = vpop.f32.mrf.mxu1  ;;  %v1086_v8 = vadd.f32 %v1085_v0, %v2781_v3  ;;  %v1296_v3 = vadd.f32 %v1295_v17, %v2834_v7  ;;  %v1332_v29 = vadd.f32 %v1331_v24, %v1319_v18 }
 0x158   :  { %v1244_v0 = vadd.s32 96, %v1232_v58 }
 0x159   :  { %v2840_v15 = vadd.f32 %v1215_v60, %v1172_v63  ;;  %v1130_v20 = vadd.f32 %v1129_v1, %v1086_v8 }
 0x15a   :  { %vm1273_vm0 = vcmp.lt.s32.totalorder %v1244_v0, 98 }
 0x15b   :  { %v1320_v25 = vmul.f32 %v2840_v15, %v2840_v15  ;;  %v1297_v30 = vadd.f32 %v1296_v3, %v2840_v15 }
 0x15d   :  { %v1333_v40 = vadd.f32 %v1332_v29, %v1320_v25  ;;  %v1311_v29 = vld [vmem:[#allocation4] sm:$0x1] }
 0x15e   :  { %v1173_v21 = vpop.f32.mrf.mxu2  ;;  %v1088_v27 = vpop.f32.mrf.mxu0 }
 0x15f   :  { %v1217_v22 = vpop.f32.mrf.mxu3  ;;  %v1174_v26 = vadd.f32 %v1173_v21, %v1130_v20  ;;  %v1132_v28 = vpop.f32.mrf.mxu1  ;;  %v1089_v34 = vadd.f32 %v1088_v27, %v2784_v13 }
 0x161   :  { %v2849_v19 = vadd.f32 %v1217_v22, %v1174_v26  ;;  %v1133_v39 = vadd.f32 %v1132_v28, %v1089_v34  ;;  %v1289_v26 = vld [vmem:[#allocation3] sm:$0x1] }
 0x163   :  { %v1298_v35 = vadd.f32 %v1297_v30, %v2849_v19  ;;  %v1321_v37 = vmul.f32 %v2849_v19, %v2849_v19 }
 0x165   :  { %v1334_v38 = vadd.f32 %v1333_v40, %v1321_v37 }
 0x166   :  { %v1176_v48 = vpop.f32.mrf.mxu2  ;;  %v1090_v44 = vpop.f32.mrf.mxu0 }
 0x167   :  { %v1220_v5 = vpop.f32.mrf.mxu3  ;;  %v1177_v43 = vadd.f32 %v1176_v48, %v1133_v39  ;;  %v1091_v46 = vadd.f32 %v1090_v44, %v2787_v23  ;;  %v1134_v36 = vpop.f32.mrf.mxu1 }
 0x169   :  { %v2855_v14 = vadd.f32 %v1220_v5, %v1177_v43  ;;  %v1135_v52 = vadd.f32 %v1134_v36, %v1091_v46 }
 0x16b   :  { %v1299_v49 = vadd.f32 %v1298_v35, %v2855_v14  ;;  %v1322_v13 = vmul.f32 %v2855_v14, %v2855_v14 }
 0x16d   :  { %v1335_v32 = vadd.f32 %v1334_v38, %v1322_v13 }
 0x16e   :  { %v1178_v53 = vpop.f32.mrf.mxu2  ;;  %v1093_v57 = vpop.f32.mrf.mxu0 }
 0x16f   :  { %v1222_v54 = vpop.f32.mrf.mxu3  ;;  %v1179_v56 = vadd.f32 %v1178_v53, %v1135_v52  ;;  %v1094_v60 = vadd.f32 %v1093_v57, %v2790_v31  ;;  %v1137_v63 = vpop.f32.mrf.mxu1 }
 0x171   :  { %v2861_v55 = vadd.f32 %v1222_v54, %v1179_v56  ;;  %v1138_v2 = vadd.f32 %v1137_v63, %v1094_v60 }
 0x173   :  { %v1300_v23 = vadd.f32 %v1299_v49, %v2861_v55  ;;  %v1323_v61 = vmul.f32 %v2861_v55, %v2861_v55 }
 0x175   :  { %v1336_v1 = vadd.f32 %v1335_v32, %v1323_v61 }
 0x176   :  { %v1181_v4 = vpop.f32.mrf.mxu2  ;;  %v1095_v46 = vpop.f32.mrf.mxu0 }
 0x177   :  { %v1182_v11 = vadd.f32 %v1181_v4, %v1138_v2  ;;  %v1225_v6 = vpop.f32.mrf.mxu3  ;;  %v1096_v36 = vadd.f32 %v1095_v46, %v2793_v42  ;;  %v1139_v50 = vpop.f32.mrf.mxu1 }
 0x179   :  { %v2867_v8 = vadd.f32 %v1225_v6, %v1182_v11  ;;  %v1140_v53 = vadd.f32 %v1139_v50, %v1096_v36 }
 0x17b   :  { %v1287_v9 = vsel %vm1273_vm0, %v2867_v8, 0.0 }
 0x17c   :  { %v1301_v10 = vadd.f32 %v1300_v23, %v1287_v9  ;;  %v1324_v12 = vmul.f32 %v1287_v9, %v1287_v9 }
 0x17e   :  { %v1303_v31 = vrot.slane %v1301_v10, 4  ;;  %v1337_v16 = vadd.f32 %v1336_v1, %v1324_v12  ;;  %v1183_v32 = vpop.f32.mrf.mxu2 }
 0x17f   :  { %v1184_v56 = vadd.f32 %v1183_v32, %v1140_v53  ;;  %v1227_v60 = vpop.f32.mrf.mxu3 }
 0x180   :  { %v1304_v17 = vadd.f32 %v1303_v31, %v1301_v10  ;;  %v1339_v18 = vrot.slane %v1337_v16, 4  ;;  %v2184_v10 = vld [vmem:[%s2928_s3] ss:$0 sm:$0xff] }
 0x181   :  { %v1228_v61 = vadd.f32 %v1227_v60, %v1184_v56 }
 0x182   :  { %v1305_v20 = vrot.slane %v1304_v17, 2  ;;  %v1340_v21 = vadd.f32 %v1339_v18, %v1337_v16 }
 0x184   :  { %v1306_v22 = vadd.f32 %v1305_v20, %v1304_v17  ;;  %v1341_v24 = vrot.slane %v1340_v21, 2 }
 0x186   :  { %v1307_v3 = vrot.slane %v1306_v22, 1  ;;  %v1342_v25 = vadd.f32 %v1341_v24, %v1340_v21 }
 0x188   :  { %v1308_v27 = vadd.f32 %v1307_v3, %v1306_v22  ;;  %v1343_v28 = vrot.slane %v1342_v25, 1 }
 0x18a   :  { %v1309_v30 = vadd.f32 %v1308_v27, %v1289_v26  ;;  %v1344_v34 = vadd.f32 %v1343_v28, %v1342_v25 }
 0x18c   :  { %1310 = vst [vmem:[#allocation3] sm:$0x1] %v1309_v30  ;;  %v1345_v40 = vadd.f32 %v1344_v34, %v1311_v29 }
 0x18e   :  { %1346 = vst [vmem:[#allocation4] sm:$0x1] %v1345_v40 }
 0x193   :  { %v1365_v35 = vld [vmem:[#allocation3] sm:$0x1] }
 0x194   :  { %v1366_v37 = vmul.f32 0.010204081, %v1365_v35 }
 0x195   :  { %v1367_v38 = vld [vmem:[#allocation4] sm:$0x1] }
 0x196   :  { %v1368_v39 = vmul.f32 0.010204081, %v1367_v38  ;;  %v1369_v48 = vmul.f32 %v1366_v37, %v1366_v37  ;;  %v1387_v57 = vperm.slane %v1366_v37, 0 }
 0x198   :  { %v1370_v5 = vsub.f32 %v1368_v39, %v1369_v48  ;;  %v1401_v63 = vsub.f32 %v2867_v8, %v1387_v57  ;;  %v1389_v42 = vsub.f32 %v2796_v51, %v1387_v57  ;;  %v1390_v0 = vsub.f32 %v2798_v59, %v1387_v57 }
 0x199   :  { %v1391_v1 = vsub.f32 %v2805_v33, %v1387_v57  ;;  %v1392_v4 = vsub.f32 %v2810_v41, %v1387_v57  ;;  %v1393_v11 = vsub.f32 %v2819_v47, %v1387_v57  ;;  %v1394_v6 = vsub.f32 %v2824_v45, %v1387_v57  ;;  %v2185_v45 = vld [vmem:[%s2929_s4] ss:$0 sm:$0xff] }
 0x19a   :  { %v1371_v43 = vmax.f32 %v1370_v5, 0.0  ;;  %v1395_v8 = vsub.f32 %v2829_v62, %v1387_v57  ;;  %v1396_v51 = vsub.f32 %v2834_v7, %v1387_v57  ;;  %v1397_v59 = vsub.f32 %v2840_v15, %v1387_v57 }
 0x19b   :  { %v1398_v33 = vsub.f32 %v2849_v19, %v1387_v57  ;;  %v1399_v12 = vsub.f32 %v2855_v14, %v1387_v57  ;;  %v1400_v41 = vsub.f32 %v2861_v55, %v1387_v57  ;;  %v1402_v47 = vsub.f32 %v1228_v61, %v1387_v57 }
 0x19c   :  { %v1403_v44 = vadd.f32 1e-05, %v1371_v43 }
 0x19e   :  { %2186 = vrsqrt.f32 %v1403_v44  ;;  %vm1410_vm2 = vweird.f32 %v1403_v44 }
 0x1a4   :  { %v2187_v49 = vpop.eup %2186 }
 0x1a5   :  { %v1405_v13 = vmul.f32 %v2187_v49, %v1403_v44  ;;  %vm1411_vm1 = vweird.f32 %v2187_v49 }
 0x1a6   :  { %vm1412_vm3 = vmor %vm1410_vm2, %vm1411_vm1 }
 0x1a7   :  { %v1406_v52 = vmul.f32 %v2187_v49, %v1405_v13 }
 0x1a9   :  { %v1407_v54 = vmul.f32 0.5, %v1406_v52 }
 0x1ab   :  { %v1408_v58 = vsub.f32 1.5, %v1407_v54 }
 0x1ad   :  { %v1409_v23 = vmul.f32 %v2187_v49, %v1408_v58 }
 0x1af   :  { %v1413_v2 = vsel %vm1412_vm3, %v2187_v49, %v1409_v23 }
 0x1b0   :  { %v1415_v9 = vperm.slane %v1413_v2, 0 }
 0x1b2   :  { %v1429_v31 = vmul.f32 %v1415_v9, %v1401_v63  ;;  %v1417_v16 = vmul.f32 %v1415_v9, %v1389_v42  ;;  %v1418_v17 = vmul.f32 %v1415_v9, %v1390_v0  ;;  %v1419_v18 = vmul.f32 %v1415_v9, %v1391_v1 }
 0x1b3   :  { %v1420_v62 = vmul.f32 %v1415_v9, %v1392_v4  ;;  %v1421_v20 = vmul.f32 %v1415_v9, %v1393_v11  ;;  %v1422_v7 = vmul.f32 %v1415_v9, %v1394_v6  ;;  %v1423_v21 = vmul.f32 %v1415_v9, %v1395_v8 }
 0x1b4   :  { %v1447_v15 = vmul.f32 %v2184_v10, %v1429_v31  ;;  %v1424_v22 = vmul.f32 %v1415_v9, %v1396_v51  ;;  %v1425_v19 = vmul.f32 %v1415_v9, %v1397_v59  ;;  %v1426_v24 = vmul.f32 %v1415_v9, %v1398_v33 }
 0x1b5   :  { %v1427_v14 = vmul.f32 %v1415_v9, %v1399_v12  ;;  %v1428_v3 = vmul.f32 %v1415_v9, %v1400_v41  ;;  %v1430_v55 = vmul.f32 %v1415_v9, %v1402_v47  ;;  %v1435_v25 = vmul.f32 %v2184_v10, %v1417_v16 }
 0x1b6   :  { %v1465_v26 = vadd.f32 %v2185_v45, %v1447_v15  ;;  %v1436_v27 = vmul.f32 %v2184_v10, %v1418_v17  ;;  %v1437_v28 = vmul.f32 %v2184_v10, %v1419_v18  ;;  %v1438_v29 = vmul.f32 %v2184_v10, %v1420_v62 }
 0x1b7   :  { %v1439_v30 = vmul.f32 %v2184_v10, %v1421_v20  ;;  %v1440_v34 = vmul.f32 %v2184_v10, %v1422_v7  ;;  %v1441_v40 = vmul.f32 %v2184_v10, %v1423_v21  ;;  %v1442_v35 = vmul.f32 %v2184_v10, %v1424_v22 }
 0x1b8   :  { %vm1479_vm4 = vcmp.gt.f32.partialorder %v1465_v26, 0.0  ;;  %v1443_v37 = vmul.f32 %v2184_v10, %v1425_v19  ;;  %v1444_v38 = vmul.f32 %v2184_v10, %v1426_v24  ;;  %v1445_v39 = vmul.f32 %v2184_v10, %v1427_v14 }
 0x1b9   :  { %v1446_v48 = vmul.f32 %v2184_v10, %v1428_v3  ;;  %v1448_v5 = vmul.f32 %v2184_v10, %v1430_v55  ;;  %v1453_v43 = vadd.f32 %v2185_v45, %v1435_v25  ;;  %v1493_v44 = vmul.f32 0.2, %v1465_v26 }
 0x1ba   :  { %v1454_v46 = vadd.f32 %v2185_v45, %v1436_v27  ;;  %v1455_v36 = vadd.f32 %v2185_v45, %v1437_v28  ;;  %v1456_v49 = vadd.f32 %v2185_v45, %v1438_v29  ;;  %v1457_v13 = vadd.f32 %v2185_v45, %v1439_v30 }
 0x1bb   :  { %v1458_v50 = vadd.f32 %v2185_v45, %v1440_v34  ;;  %v1459_v32 = vadd.f32 %v2185_v45, %v1441_v40  ;;  %v1460_v52 = vadd.f32 %v2185_v45, %v1442_v35  ;;  %v1461_v53 = vadd.f32 %v2185_v45, %v1443_v37 }
 0x1bc   :  { %v1462_v54 = vadd.f32 %v2185_v45, %v1444_v38  ;;  %v1463_v56 = vadd.f32 %v2185_v45, %v1445_v39  ;;  %v1464_v57 = vadd.f32 %v2185_v45, %v1446_v48  ;;  %v1466_v58 = vadd.f32 %v2185_v45, %v1448_v5 }
 0x1bd   :  { %vm1467_vm5 = vcmp.gt.f32.partialorder %v1453_v43, 0.0  ;;  %vm1468_vm6 = vcmp.gt.f32.partialorder %v1454_v46, 0.0  ;;  %vm1469_vm7 = vcmp.gt.f32.partialorder %v1455_v36, 0.0  ;;  %vm1470_vm8 = vcmp.gt.f32.partialorder %v1456_v49, 0.0 }
 0x1be   :  { %vm1471_vm9 = vcmp.gt.f32.partialorder %v1457_v13, 0.0  ;;  %vm1472_vm10 = vcmp.gt.f32.partialorder %v1458_v50, 0.0  ;;  %vm1473_vm11 = vcmp.gt.f32.partialorder %v1459_v32, 0.0  ;;  %vm1474_vm12 = vcmp.gt.f32.partialorder %v1460_v52, 0.0 }
 0x1bf   :  { %vm1475_vm13 = vcmp.gt.f32.partialorder %v1461_v53, 0.0  ;;  %vm1476_vm14 = vcmp.gt.f32.partialorder %v1462_v54, 0.0  ;;  %vm1477_vm15 = vcmp.gt.f32.partialorder %v1463_v56, 0.0  ;;  %vm1478_vm0 = vcmp.gt.f32.partialorder %v1464_v57, 0.0 }
 0x1c0   :  { %vm1480_vm1 = vcmp.gt.f32.partialorder %v1466_v58, 0.0  ;;  %v1481_v60 = vmul.f32 0.2, %v1453_v43  ;;  %v1482_v23 = vmul.f32 0.2, %v1454_v46  ;;  %v1507_v61 = vsel %vm1479_vm4, %v1465_v26, %v1493_v44 }
 0x1c1   :  { %v1483_v63 = vmul.f32 0.2, %v1455_v36  ;;  %v1484_v42 = vmul.f32 0.2, %v1456_v49  ;;  %v1485_v0 = vmul.f32 0.2, %v1457_v13 }
 0x1c2   :  { %v1486_v1 = vmul.f32 0.2, %v1458_v50  ;;  %v1487_v2 = vmul.f32 0.2, %v1459_v32  ;;  %v1488_v4 = vmul.f32 0.2, %v1460_v52  ;;  %v1495_v11 = vsel %vm1467_vm5, %v1453_v43, %v1481_v60 }
 0x1c3   :  { %v1489_v6 = vmul.f32 0.2, %v1461_v53  ;;  %v1490_v9 = vmul.f32 0.2, %v1462_v54  ;;  %v1491_v10 = vmul.f32 0.2, %v1463_v56  ;;  %v1496_v8 = vsel %vm1468_vm6, %v1454_v46, %v1482_v23 }
 0x1c4   :  { %v1492_v51 = vmul.f32 0.2, %v1464_v57  ;;  %v1494_v59 = vmul.f32 0.2, %v1466_v58  ;;  %v1497_v33 = vsel %vm1469_vm7, %v1455_v36, %v1483_v63  ;;  %v1498_v12 = vsel %vm1470_vm8, %v1456_v49, %v1484_v42 }
 0x1c5   :  { %v1499_v41 = vsel %vm1471_vm9, %v1457_v13, %v1485_v0  ;;  %v1500_v47 = vsel %vm1472_vm10, %v1458_v50, %v1486_v1  ;;  %v1501_v31 = vsel %vm1473_vm11, %v1459_v32, %v1487_v2  ;;  %v1502_v45 = vsel %vm1474_vm12, %v1460_v52, %v1488_v4 }
 0x1c6   :  { %v1503_v16 = vsel %vm1475_vm13, %v1461_v53, %v1489_v6  ;;  %v1504_v17 = vsel %vm1476_vm14, %v1462_v54, %v1490_v9  ;;  %v1505_v18 = vsel %vm1477_vm15, %v1463_v56, %v1491_v10  ;;  %v1506_v62 = vsel %vm1478_vm0, %v1464_v57, %v1492_v51 }
 0x1c7   :  { %v1508_v20 = vsel %vm1480_vm1, %v1466_v58, %v1494_v59  ;;  %v2144_v7 = vpack.c.bf16 %v1496_v8, %v1495_v11  ;;  %v2149_v21 = vpack.c.bf16 %v1498_v12, %v1497_v33  ;;  %v2154_v15 = vpack.c.bf16 %v1500_v47, %v1499_v41 }
 0x1c8   :  { %v2159_v22 = vpack.c.bf16 %v1502_v45, %v1501_v31  ;;  %v2164_v19 = vpack.c.bf16 %v1504_v17, %v1503_v16  ;;  %v2169_v24 = vpack.c.bf16 %v1506_v62, %v1505_v18  ;;  %v2174_v14 = vpack.c.bf16 %v1508_v20, %v1507_v61 }
 0x1c9   :  { %2145 = vst [vmem:[%s2930_s5] sm:$0xff] %v2144_v7  }
 0x1ca   :  { %2176 = vst [vmem:[%s2930_s5 + $0x8] sm:$0xff] %v2149_v21  }
 0x1cb   :  { %2177 = vst [vmem:[%s2930_s5 + $0x10] sm:$0xff] %v2154_v15  }
 0x1cc   :  { %2178 = vst [vmem:[%s2930_s5 + $0x18] sm:$0xff] %v2159_v22  }
 0x1cd   :  { %2179 = vst [vmem:[%s2930_s5 + $0x20] sm:$0xff] %v2164_v19  }
 0x1ce   :  { %2180 = vst [vmem:[%s2930_s5 + $0x28] sm:$0xff] %v2169_v24  }
 0x1cf   :  { %2181 = vst [vmem:[%s2930_s5 + $0x30] sm:$0xff] %v2174_v14  }

// kernel: discriminator_forward.5
= control target key start
LH: loop header
LB: loop body
LE: loop exit
PB: predicated region body
PF: predicated region fallthrough
CT: control target
= control target key end

     0   :  { %s9281_s0 = inlined_call_operand.vmem [shape: bf16[2,6272], index: 0, kind: input, shape index: {}]   ;;  %s9282_s1 = inlined_call_operand.hbm [shape: bf16[6272,1024], index: 1, kind: input, shape index: {}]   ;;  %s9283_s2 = inlined_call_operand.vmem [shape: f32[1,1024], index: 2, kind: input, shape index: {}]   ;;  %s9284_s3 = inlined_call_operand.vmem [shape: f32[1,1024], index: 3, kind: input, shape index: {}]   ;;  %s9285_s4 = inlined_call_operand.vmem [shape: f32[1,1024], index: 4, kind: input, shape index: {}]   ;;  %s9286_s5 = inlined_call_operand.vmem [shape: bf16[1024,1], index: 5, kind: input, shape index: {}]   ;;  %s9287_s6 = inlined_call_operand.<no memory space> [shape: f32[1,1], index: 6, kind: input, shape index: {}]   ;;  %s9288_s7 = inlined_call_operand.vmem [shape: f32[2,1], index: 7, kind: output, shape index: {}]  }
   0x1   :  { %v12_v0 = vstv %s9287_s6 }
   0x2   :  { %13 = vst [vmem:[#allocation3] sm:$0x1] %v12_v0 }
   0x3   :  { %14 = vsyncpa [#allocation5], 0 }
   0x4   :  { %16 = vsyncpa [#allocation5 + $0x1], 0  ;;  %s7660_s26 = smov 0   ;;  %s7662_s27 = smov 0  }
   0x5   :  { %s7664_s28 = smov 0   ;;  %s7666_s29 = smov 0  }
   0x6 LB: > { %s7679_s6 = sadd.s32 4294967295, %s7612_s29   ;;  %s7682_s30 = sadd.s32 1, %s7612_s29   ;;  %s7612_s29 = sphi %s7666_s29, %s9308_s29   ;;  %s7608_s28 = sphi %s7664_s28, %s9307_s28   ;;  %s7604_s27 = sphi %s7662_s27, %s9306_s27   ;;  %s7600_s26 = sphi %s7660_s26, %s9305_s26  }
   0x7   : > { %s52_s8 = ssub.s32 %s7612_s29, %s7682_s30  ;;  %s55_s9 = sadd.s32 1, %s7608_s28 }
   0x8   : > { %p53_p0 = scmp.eq.s32.totalorder %s52_s8, 0  ;;  %p62_p1 = scmp.ne.s32.totalorder %s7608_s28, %s7604_s27 }
   0x9   : > { %p63_p2 = scmp.eq.s32.totalorder %s7612_s29, 0  ;;  %p68_p3 = scmp.ne.s32.totalorder %s7604_s27, %s7600_s26 }
   0xa   : > { %s7692_s10 = scalar_select %p53_p0, %s7608_s28, %s55_s9  }
   0xb   : > { %p64_p4 = por %p63_p2, %p62_p1  ;;  %p69_p5 = scmp.eq.s32.totalorder %s7679_s6, 0 }
   0xc   : > { %p7481_p6 = scmp.lt.s32.totalorder %s7612_s29, 7  ;;  %s241_s12 = sand.u32 1, %s7608_s28  }
   0xd   : > { %p7696_p7 = por %p69_p5, %p68_p3  ;;  %s7473_s13 = smul.u32 3584, %s241_s12 }
   0xe   : > { %s7472_s14 = smul.u32 3584, %s7612_s29  ;;  %p7702_p8 = pnand %p7481_p6, %p64_p4 }
   0xf   : > { %s245_s19 = scalar_lea.vmem [#allocation4], %s7473_s13  ;;  %p4905_p9 = scmp.ge.s32.totalorder %s7612_s29, 1 }
  0x10   : > { %s251_s18 = scalar_lea.hbm %s9282_s1, %s7472_s14  ;;  %s254_s20 = sshll.u32 %s245_s19, 4  ;;  %s255_s20 = int_to_ptr.vmem [resolvable:$true] %s254_s20 }
  0x11   : > { %s252_s21 = sshll.u32 %s251_s18, 4  ;;  %s242_s22 = scalar_lea.sflag [#allocation5], %s241_s12  ;;  %s253_s21 = int_to_ptr.hbm [resolvable:$true] %s252_s21 }
  0x12   : > { %s7548_s23 = sshra.s32 %s253_s21, 4  ;;  %p7552_p11 = pneg %p7702_p8  ;;  %s7549_s23 = int_to_ptr.hbm [resolvable:$true] %s7548_s23 }
  0x13   : > { %s7550_s24 = scalar_lea.hbm %s7549_s23, 3584  ;;  %s7555_s8 = scalar_lea.hbm %s9282_s1, 25088 }
  0x14   : > { %p7551_p10 = scmp.ne.s32.totalorder %s7549_s23, %s7550_s24  ;;  %p7556_p0 = scmp.lt.s32.totalorder %s7549_s23, %s9282_s1 }
  0x15   : > { %p7557_p1 = scmp.lt.s32.totalorder %s7555_s8, %s7550_s24 }
  0x16   : > { %p7553_p12 = pnand %p7552_p11, %p7551_p10 }
  0x17   : > { %p7558_p2 = por %p7557_p1, %p7556_p0 }
  0x18   : > { %p7554_p13 = pneg %p7553_p12 }
  0x1a   : > { %p7559_p3 = pnand %p7558_p2, %p7554_p13 }
  0x1c   : > { %7562 = shalt.err (!%p7559_p3)
}
  0x1d   : > { %s7614_s12 = smov 512   ;;  %s7615_s14 = smov 32  }
  0x1e   : > { %7480 = dma.hbm_to_vmem [thread:$0]  (!%p7702_p8), %s253_s21, 57344, %s255_s20, %s242_s22, %s7614_s12, %s7614_s12, %s7615_s14  }
  0x1f   : > { %p262_p4 = scmp.lt.s32.totalorder %s7612_s29, 8 }
  0x21   : > { %p263_p5 = pnand %p4905_p9, %p262_p4 }
  0x22   : > { %s268_s16 = sand.u32 (!%p263_p5), 1, %s7604_s27  }
  0x23   : > { %266 = sbr.rel (%p263_p5) target bundleno = 1039 (0x40f), region = 48  ;;  %s269_s18 = scalar_lea.sflag (!%p263_p5), [#allocation5], %s268_s16 }
  0x24   : > { %s7474_s17 = smul.u32 (!%p263_p5), 3584, %s268_s16 }
  0x26   : > { %s7724_s19 = scalar_lea.vmem (!%p263_p5), [#allocation4], %s7474_s17 }
  0x28   : > { %7595 = dma.done.wait (%p7696_p7), %s269_s18, 57344  }
  0x29   : > { %7597 = vsyncadd (%p7696_p7), %s269_s18, 4294909952  ;;  %s303_s23 = smul.u32 7, %s7679_s6  ;;  %p4906_p8 = scmp.ne.s32.totalorder %s7679_s6, 0 }
  0x2b   : > { %p304_p6 = scmp.lt.s32.totalorder %s303_s23, 48  ;;  %312 = sbr.rel (%p4906_p8) target bundleno = 51 (0x33), region = 56 }
  0x2d   : > { %s9310_s23 = smov (!%p304_p6, %s303_s23), 48 }
  0x2e   : > { %s306_s20 = scalar_lea.vmem %s9281_s0, %s9310_s23 }
  0x30   : > { %v7616_v1 = vmov 0.0  }
  0x31   : > { %313 = vst [vmem:[#allocation2] sm:$0xff] %v7616_v1 }
  0x32   : > { %314 = vst [vmem:[#allocation2 + $0x8] sm:$0xff] %v7616_v1 }
  0x33 PF: > { %v5133_v2 = vld [vmem:[%s7724_s19 + $0x1c0] sm:$0xf]  ;;  %vm3764_vm0 = vcmask 1041408   ;;  %vm3766_vm1 = vcmask 1045508   ;;  %vm3768_vm2 = vcmask 1043456   ;;  %p6699_p7 = scmp.ne.s32.totalorder %s7679_s6, 6 }
  0x34   : > { %v7020_v3 = vld [vmem:[%s7724_s19 + $0x1dc] sm:$0xf0] }
  0x35   : > { %v5389_v4 = vld [vmem:[%s7724_s19 + $0x3c0] sm:$0xf]  ;;  %v5134_v5 = vor.u32 %v7020_v3, %v5133_v2 }
  0x36   : > { %v7084_v6 = vld [vmem:[%s7724_s19 + $0x3dc] sm:$0xf0] }
  0x37   : > { %v5645_v7 = vld [vmem:[%s7724_s19 + $0x5c0] sm:$0xf]  ;;  %v5390_v9 = vor.u32 %v7084_v6, %v5389_v4  ;;  %3022 = vmatpush.bf16.msra.mxu0 %v5134_v5 }
  0x38   : > { %v7148_v8 = vld [vmem:[%s7724_s19 + $0x5dc] sm:$0xf0] }
  0x39   : > { %v5646_v10 = vor.u32 %v7148_v8, %v5645_v7  ;;  %v5901_v11 = vld [vmem:[%s7724_s19 + $0x7c0] sm:$0xf]  ;;  %3035 = vmatpush.bf16.msra.mxu1 %v5390_v9 }
  0x3a   : > { %v7212_v12 = vld [vmem:[%s7724_s19 + $0x7dc] sm:$0xf0] }
  0x3b   : > { %v5101_v13 = vld [vmem:[%s7724_s19 + $0x180] sm:$0xf]  ;;  %v5902_v14 = vor.u32 %v7212_v12, %v5901_v11  ;;  %3048 = vmatpush.bf16.msra.mxu2 %v5646_v10 }
  0x3c   : > { %v7012_v15 = vld [vmem:[%s7724_s19 + $0x19c] sm:$0xf0] }
  0x3d   : > { %v5357_v16 = vld [vmem:[%s7724_s19 + $0x380] sm:$0xf]  ;;  %v5102_v18 = vor.u32 %v7012_v15, %v5101_v13  ;;  %3061 = vmatpush.bf16.msra.mxu3 %v5902_v14 }
  0x3e   : > { %v7076_v17 = vld [vmem:[%s7724_s19 + $0x39c] sm:$0xf0] }
  0x3f   : > { %v5358_v19 = vor.u32 %v7076_v17, %v5357_v16  ;;  %v5613_v20 = vld [vmem:[%s7724_s19 + $0x580] sm:$0xf]  ;;  %3023 = vmatpush.bf16.msra.mxu0 %v5102_v18 }
  0x40   : > { %v7140_v21 = vld [vmem:[%s7724_s19 + $0x59c] sm:$0xf0] }
  0x41   : > { %v5869_v22 = vld [vmem:[%s7724_s19 + $0x780] sm:$0xf]  ;;  %v5614_v23 = vor.u32 %v7140_v21, %v5613_v20  ;;  %3036 = vmatpush.bf16.msra.mxu1 %v5358_v19 }
  0x42   : > { %v7204_v24 = vld [vmem:[%s7724_s19 + $0x79c] sm:$0xf0] }
  0x43   : > { %v5069_v25 = vld [vmem:[%s7724_s19 + $0x140] sm:$0xf]  ;;  %v5870_v27 = vor.u32 %v7204_v24, %v5869_v22  ;;  %3049 = vmatpush.bf16.msra.mxu2 %v5614_v23 }
  0x44   : > { %v7004_v26 = vld [vmem:[%s7724_s19 + $0x15c] sm:$0xf0] }
  0x45   : > { %v5325_v28 = vld [vmem:[%s7724_s19 + $0x340] sm:$0xf]  ;;  %v5070_v31 = vor.u32 %v7004_v26, %v5069_v25  ;;  %3062 = vmatpush.bf16.msra.mxu3 %v5870_v27 }
  0x46   : > { %v7068_v29 = vld [vmem:[%s7724_s19 + $0x35c] sm:$0xf0] }
  0x47   : > { %v5581_v30 = vld [vmem:[%s7724_s19 + $0x540] sm:$0xf]  ;;  %v5326_v35 = vor.u32 %v7068_v29, %v5325_v28  ;;  %3024 = vmatpush.bf16.msra.mxu0 %v5070_v31 }
  0x48   : > { %v7132_v32 = vld [vmem:[%s7724_s19 + $0x55c] sm:$0xf0] }
  0x49   : > { %v5837_v33 = vld [vmem:[%s7724_s19 + $0x740] sm:$0xf]  ;;  %v5582_v36 = vor.u32 %v7132_v32, %v5581_v30  ;;  %3037 = vmatpush.bf16.msra.mxu1 %v5326_v35 }
  0x4a   : > { %v7196_v34 = vld [vmem:[%s7724_s19 + $0x75c] sm:$0xf0] }
  0x4b   : > { %v5037_v37 = vld [vmem:[%s7724_s19 + $0x100] sm:$0xf]  ;;  %v5838_v40 = vor.u32 %v7196_v34, %v5837_v33  ;;  %3050 = vmatpush.bf16.msra.mxu2 %v5582_v36 }
  0x4c   : > { %v6996_v38 = vld [vmem:[%s7724_s19 + $0x11c] sm:$0xf0] }
  0x4d   : > { %v5293_v39 = vld [vmem:[%s7724_s19 + $0x300] sm:$0xf]  ;;  %v5038_v46 = vor.u32 %v6996_v38, %v5037_v37  ;;  %3063 = vmatpush.bf16.msra.mxu3 %v5838_v40  ;;  %v5135_v40 = vld [vmem:[%s7724_s19 + $0x1e0] sm:$0xf0] }
  0x4e   : > { %v7060_v41 = vld [vmem:[%s7724_s19 + $0x31c] sm:$0xf0] }
  0x4f   : > { %v5549_v42 = vld [vmem:[%s7724_s19 + $0x500] sm:$0xf]  ;;  %v5294_v47 = vor.u32 %v7060_v41, %v5293_v39  ;;  %3025 = vmatpush.bf16.msra.mxu0 %v5038_v46  ;;  %v7016_v39 = vld [vmem:[%s7724_s19 + $0x1c4] sm:$0xf] }
  0x50   : > { %v7124_v43 = vld [vmem:[%s7724_s19 + $0x51c] sm:$0xf0] }
  0x51   : > { %v5805_v44 = vld [vmem:[%s7724_s19 + $0x700] sm:$0xf]  ;;  %v5550_v48 = vor.u32 %v7124_v43, %v5549_v42  ;;  %3038 = vmatpush.bf16.msra.mxu1 %v5294_v47 }
  0x52   : > { %v7188_v45 = vld [vmem:[%s7724_s19 + $0x71c] sm:$0xf0] }
  0x53   : > { %v5005_v49 = vld [vmem:[%s7724_s19 + $0xc0] sm:$0xf]  ;;  %v5806_v52 = vor.u32 %v7188_v45, %v5805_v44  ;;  %3051 = vmatpush.bf16.msra.mxu2 %v5550_v48  ;;  %v5138_v48 = vor.u32 %v7016_v39, %v5135_v40 }
  0x54   : > { %v6988_v50 = vld [vmem:[%s7724_s19 + $0xdc] sm:$0xf0] }
  0x55   : > { %v5261_v51 = vld [vmem:[%s7724_s19 + $0x2c0] sm:$0xf]  ;;  %v5006_v58 = vor.u32 %v6988_v50, %v5005_v49  ;;  %3064 = vmatpush.bf16.msra.mxu3 %v5806_v52  ;;  %v7008_v52 = vld [vmem:[%s7724_s19 + $0x184] sm:$0xf] }
  0x56   : > { %v7052_v53 = vld [vmem:[%s7724_s19 + $0x2dc] sm:$0xf0] }
  0x57   : > { %v5517_v54 = vld [vmem:[%s7724_s19 + $0x4c0] sm:$0xf]  ;;  %v5262_v59 = vor.u32 %v7052_v53, %v5261_v51  ;;  %3026 = vmatpush.bf16.msra.mxu0 %v5006_v58  ;;  %v5103_v53 = vld [vmem:[%s7724_s19 + $0x1a0] sm:$0xf0] }
  0x58   : > { %v7116_v55 = vld [vmem:[%s7724_s19 + $0x4dc] sm:$0xf0] }
  0x59   : > { %v5773_v56 = vld [vmem:[%s7724_s19 + $0x6c0] sm:$0xf]  ;;  %v5518_v60 = vor.u32 %v7116_v55, %v5517_v54  ;;  %3039 = vmatpush.bf16.msra.mxu1 %v5262_v59 }
  0x5a   : > { %v7180_v57 = vld [vmem:[%s7724_s19 + $0x6dc] sm:$0xf0] }
  0x5b   : > { %v4973_v61 = vld [vmem:[%s7724_s19 + $0x80] sm:$0xf]  ;;  %v5774_v0 = vor.u32 %v7180_v57, %v5773_v56  ;;  %3052 = vmatpush.bf16.msra.mxu2 %v5518_v60 }
  0x5c   : > { %v6980_v62 = vld [vmem:[%s7724_s19 + $0x9c] sm:$0xf0] }
  0x5d   : > { %v5229_v63 = vld [vmem:[%s7724_s19 + $0x280] sm:$0xf]  ;;  %v4974_v6 = vor.u32 %v6980_v62, %v4973_v61  ;;  %3065 = vmatpush.bf16.msra.mxu3 %v5774_v0  ;;  %v317_v61 = vld [vmem:[%s306_s20] sm:$0x7f]  ;;  %v5106_v62 = vor.u32 %v7008_v52, %v5103_v53 }
  0x5e   : > { %v7044_v1 = vld [vmem:[%s7724_s19 + $0x29c] sm:$0xf0]  ;;  %767 = vst [vmem:[#allocation1] ss:$9 sm:$0xff] %v317_v61  ;;  %v6968_v53 = vld [vmem:[%s7724_s19 + $0x44] sm:$0xf] }
  0x5f   : > { %v5485_v2 = vld [vmem:[%s7724_s19 + $0x480] sm:$0xf]  ;;  %v5230_v7 = vor.u32 %v7044_v1, %v5229_v63  ;;  %3027 = vmatpush.bf16.msra.mxu0 %v4974_v6  ;;  %v7000_v1 = vld [vmem:[%s7724_s19 + $0x144] sm:$0xf] }
  0x60   : > { %v7108_v3 = vld [vmem:[%s7724_s19 + $0x49c] sm:$0xf0] }
  0x61   : > { %v5741_v4 = vld [vmem:[%s7724_s19 + $0x680] sm:$0xf]  ;;  %v5486_v8 = vor.u32 %v7108_v3, %v5485_v2  ;;  %3040 = vmatpush.bf16.msra.mxu1 %v5230_v7  ;;  %v5071_v2 = vld [vmem:[%s7724_s19 + $0x160] sm:$0xf0] }
  0x62   : > { %v7172_v5 = vld [vmem:[%s7724_s19 + $0x69c] sm:$0xf0] }
  0x63   : > { %v4941_v9 = vld [vmem:[%s7724_s19 + $0x40] sm:$0xf]  ;;  %v5742_v12 = vor.u32 %v7172_v5, %v5741_v4  ;;  %3053 = vmatpush.bf16.msra.mxu2 %v5486_v8 }
  0x64   : > { %v6972_v10 = vld [vmem:[%s7724_s19 + $0x5c] sm:$0xf0] }
  0x65   : > { %v5197_v11 = vld [vmem:[%s7724_s19 + $0x240] sm:$0xf]  ;;  %v4942_v18 = vor.u32 %v6972_v10, %v4941_v9  ;;  %3066 = vmatpush.bf16.msra.mxu3 %v5742_v12  ;;  %v5074_v9 = vor.u32 %v7000_v1, %v5071_v2  ;;  %v6960_v1 = vld [vmem:[%s7724_s19 + $0x4] sm:$0xf] }
  0x66   : > { %v7036_v13 = vld [vmem:[%s7724_s19 + $0x25c] sm:$0xf0]  ;;  %v4911_v2 = vld [vmem:[%s7724_s19 + $0x20] sm:$0xf0] }
  0x67   : > { %v5453_v14 = vld [vmem:[%s7724_s19 + $0x440] sm:$0xf]  ;;  %v5198_v21 = vor.u32 %v7036_v13, %v5197_v11  ;;  %3028 = vmatpush.bf16.msra.mxu0 %v4942_v18  ;;  %v6992_v13 = vld [vmem:[%s7724_s19 + $0x104] sm:$0xf] }
  0x68   : > { %v7100_v15 = vld [vmem:[%s7724_s19 + $0x45c] sm:$0xf0] }
  0x69   : > { %v5709_v16 = vld [vmem:[%s7724_s19 + $0x640] sm:$0xf]  ;;  %v5454_v22 = vor.u32 %v7100_v15, %v5453_v14  ;;  %3041 = vmatpush.bf16.msra.mxu1 %v5198_v21  ;;  %v5039_v14 = vld [vmem:[%s7724_s19 + $0x120] sm:$0xf0] }
  0x6a   : > { %v7164_v17 = vld [vmem:[%s7724_s19 + $0x65c] sm:$0xf0] }
  0x6b   : > { %v4909_v19 = vld [vmem:[%s7724_s19] sm:$0xf]  ;;  %v5710_v26 = vor.u32 %v7164_v17, %v5709_v16  ;;  %3054 = vmatpush.bf16.msra.mxu2 %v5454_v22 }
  0x6c   : > { %v6964_v20 = vld [vmem:[%s7724_s19 + $0x1c] sm:$0xf0] }
  0x6d   : > { %v5165_v23 = vld [vmem:[%s7724_s19 + $0x200] sm:$0xf]  ;;  %v4910_v33 = vor.u32 %v6964_v20, %v4909_v19  ;;  %3067 = vmatpush.bf16.msra.mxu3 %v5710_v26 }
  0x6e   : > { %v7028_v24 = vld [vmem:[%s7724_s19 + $0x21c] sm:$0xf0] }
  0x6f   : > { %v5421_v25 = vld [vmem:[%s7724_s19 + $0x400] sm:$0xf]  ;;  %v5166_v37 = vor.u32 %v7028_v24, %v5165_v23  ;;  %3029 = vmatpush.bf16.msra.mxu0 %v4910_v33  ;;  %v7845_v23 = vld [vmem:[#allocation1] sm:$0xff]  ;;  %v7847_v24 = vld [vmem:[#allocation1 + $0x9] sm:$0xff] }
  0x70   : > { %v7092_v27 = vld [vmem:[%s7724_s19 + $0x41c] sm:$0xf0] }
  0x71   : > { %v5677_v28 = vld [vmem:[%s7724_s19 + $0x600] sm:$0xf]  ;;  %v5422_v38 = vor.u32 %v7092_v27, %v5421_v25  ;;  %3042 = vmatpush.bf16.msra.mxu1 %v5166_v37  ;;  %v5042_v25 = vor.u32 %v6992_v13, %v5039_v14  ;;  %v6159_v13 = vld [vmem:[%s7724_s19 + $0x9e0] sm:$0xf0]  ;;  %v4914_v14 = vor.u32 %v6960_v1, %v4911_v2 }
  0x72   : > { %v7156_v29 = vld [vmem:[%s7724_s19 + $0x61c] sm:$0xf0]  ;;  %3030 = vmatmul.bf16.vlgmr.msra.gmra.mxu0 %v7845_v23  ;;  %v5519_v1 = vld [vmem:[%s7724_s19 + $0x4e0] sm:$0xf0] }
  0x73   : > { %v6157_v30 = vld [vmem:[%s7724_s19 + $0x9c0] sm:$0xf]  ;;  %v5678_v41 = vor.u32 %v7156_v29, %v5677_v28  ;;  %3055 = vmatpush.bf16.msra.mxu2 %v5422_v38  ;;  %v6984_v29 = vld [vmem:[%s7724_s19 + $0xc4] sm:$0xf] }
  0x74   : > { %v7276_v31 = vld [vmem:[%s7724_s19 + $0x9dc] sm:$0xf0]  ;;  %3043 = vmatmul.bf16.vlgmr.msra.gmra.mxu1 %v7847_v24  ;;  %v7176_v2 = vld [vmem:[%s7724_s19 + $0x6c4] sm:$0xf] }
  0x75   : > { %v6413_v32 = vld [vmem:[%s7724_s19 + $0xbc0] sm:$0xf]  ;;  %v6158_v42 = vor.u32 %v7276_v31, %v6157_v30  ;;  %3068 = vmatpush.bf16.msra.mxu3 %v5678_v41  ;;  %v5007_v30 = vld [vmem:[%s7724_s19 + $0xe0] sm:$0xf0] }
  0x76   : > { %v7340_v34 = vld [vmem:[%s7724_s19 + $0xbdc] sm:$0xf0]  ;;  %v5010_v37 = vor.u32 %v6984_v29, %v5007_v30  ;;  %v6976_v41 = vld [vmem:[%s7724_s19 + $0x84] sm:$0xf] }
  0x77   : > { %v6669_v35 = vld [vmem:[%s7724_s19 + $0xdc0] sm:$0xf]  ;;  %v6414_v43 = vor.u32 %v7340_v34, %v6413_v32  ;;  %3074 = vmatpush.bf16.msrb.mxu0 %v6158_v42  ;;  %v4975_v42 = vld [vmem:[%s7724_s19 + $0xa0] sm:$0xf0] }
  0x78   : > { %v7404_v36 = vld [vmem:[%s7724_s19 + $0xddc] sm:$0xf0]  ;;  %v7264_v29 = vld [vmem:[%s7724_s19 + $0x984] sm:$0xf] }
  0x79   : > { %v6670_v44 = vor.u32 %v7404_v36, %v6669_v35  ;;  %v6125_v45 = vld [vmem:[%s7724_s19 + $0x980] sm:$0xf]  ;;  %3087 = vmatpush.bf16.msrb.mxu1 %v6414_v43  ;;  %3113 = vmatpush.bf16.msrb.mxu3 %v5138_v48  ;;  %v6127_v30 = vld [vmem:[%s7724_s19 + $0x9a0] sm:$0xf0] }
  0x7a   : > { %v7268_v46 = vld [vmem:[%s7724_s19 + $0x99c] sm:$0xf0] }
  0x7b   : > { %v6381_v47 = vld [vmem:[%s7724_s19 + $0xb80] sm:$0xf]  ;;  %v6126_v54 = vor.u32 %v7268_v46, %v6125_v45  ;;  %3100 = vmatpush.bf16.msrb.mxu2 %v6670_v44 }
  0x7c   : > { %v7332_v49 = vld [vmem:[%s7724_s19 + $0xb9c] sm:$0xf0] }
  0x7d   : > { %v6637_v50 = vld [vmem:[%s7724_s19 + $0xd80] sm:$0xf]  ;;  %v6382_v57 = vor.u32 %v7332_v49, %v6381_v47  ;;  %3075 = vmatpush.bf16.msrb.mxu0 %v6126_v54  ;;  %3114 = vmatpush.bf16.msrb.mxu3 %v5106_v62  ;;  %v4978_v49 = vor.u32 %v6976_v41, %v4975_v42  ;;  %v4943_v54 = vld [vmem:[%s7724_s19 + $0x60] sm:$0xf0] }
  0x7e   : > { %v7396_v51 = vld [vmem:[%s7724_s19 + $0xd9c] sm:$0xf0]  ;;  %v5583_v41 = vld [vmem:[%s7724_s19 + $0x560] sm:$0xf0] }
  0x7f   : > { %v6093_v55 = vld [vmem:[%s7724_s19 + $0x940] sm:$0xf]  ;;  %v6638_v58 = vor.u32 %v7396_v51, %v6637_v50  ;;  %3088 = vmatpush.bf16.msrb.mxu1 %v6382_v57  ;;  %v7192_v42 = vld [vmem:[%s7724_s19 + $0x744] sm:$0xf] }
  0x80   : > { %v7260_v56 = vld [vmem:[%s7724_s19 + $0x95c] sm:$0xf0] }
  0x81   : > { %v6349_v59 = vld [vmem:[%s7724_s19 + $0xb40] sm:$0xf]  ;;  %v6094_v3 = vor.u32 %v7260_v56, %v6093_v55  ;;  %3101 = vmatpush.bf16.msrb.mxu2 %v6638_v58  ;;  %3115 = vmatpush.bf16.msrb.mxu3 %v5074_v9  ;;  %v5903_v9 = vld [vmem:[%s7724_s19 + $0x7e0] sm:$0xf0] }
  0x82   : > { %v7324_v60 = vld [vmem:[%s7724_s19 + $0xb5c] sm:$0xf0] }
  0x83   : > { %v6605_v63 = vld [vmem:[%s7724_s19 + $0xd40] sm:$0xf]  ;;  %v6350_v4 = vor.u32 %v7324_v60, %v6349_v59  ;;  %3076 = vmatpush.bf16.msrb.mxu0 %v6094_v3  ;;  %v7080_v3 = vld [vmem:[%s7724_s19 + $0x3c4] sm:$0xf] }
  0x84   : > { %v7388_v0 = vld [vmem:[%s7724_s19 + $0xd5c] sm:$0xf0] }
  0x85   : > { %v6606_v5 = vor.u32 %v7388_v0, %v6605_v63  ;;  %v6061_v6 = vld [vmem:[%s7724_s19 + $0x900] sm:$0xf]  ;;  %3089 = vmatpush.bf16.msrb.mxu1 %v6350_v4  ;;  %3116 = vmatpush.bf16.msrb.mxu3 %v5042_v25  ;;  %v4946_v63 = vor.u32 %v6968_v53, %v4943_v54  ;;  %v5391_v4 = vld [vmem:[%s7724_s19 + $0x3e0] sm:$0xf0] }
  0x86   : > { %v7252_v7 = vld [vmem:[%s7724_s19 + $0x91c] sm:$0xf0]  ;;  %v5615_v25 = vld [vmem:[%s7724_s19 + $0x5a0] sm:$0xf0] }
  0x87   : > { %v6317_v8 = vld [vmem:[%s7724_s19 + $0xb00] sm:$0xf]  ;;  %v6062_v16 = vor.u32 %v7252_v7, %v6061_v6  ;;  %3102 = vmatpush.bf16.msrb.mxu2 %v6606_v5  ;;  %v7144_v5 = vld [vmem:[%s7724_s19 + $0x5c4] sm:$0xf] }
  0x88   : > { %v7316_v10 = vld [vmem:[%s7724_s19 + $0xb1c] sm:$0xf0]  ;;  %v5647_v7 = vld [vmem:[%s7724_s19 + $0x5e0] sm:$0xf0] }
  0x89   : > { %v6573_v11 = vld [vmem:[%s7724_s19 + $0xd00] sm:$0xf]  ;;  %v6318_v20 = vor.u32 %v7316_v10, %v6317_v8  ;;  %3077 = vmatpush.bf16.msrb.mxu0 %v6062_v16  ;;  %3117 = vmatpush.bf16.msrb.mxu3 %v5010_v37  ;;  %v7208_v8 = vld [vmem:[%s7724_s19 + $0x7c4] sm:$0xf]  ;;  %v5650_v16 = vor.u32 %v7144_v5, %v5647_v7 }
  0x8a   : > { %v7380_v12 = vld [vmem:[%s7724_s19 + $0xd1c] sm:$0xf0]  ;;  %v7064_v37 = vld [vmem:[%s7724_s19 + $0x344] sm:$0xf] }
  0x8b   : > { %v6029_v15 = vld [vmem:[%s7724_s19 + $0x8c0] sm:$0xf]  ;;  %v6574_v21 = vor.u32 %v7380_v12, %v6573_v11  ;;  %3090 = vmatpush.bf16.msrb.mxu1 %v6318_v20  ;;  %v7272_v12 = vld [vmem:[%s7724_s19 + $0x9c4] sm:$0xf] }
  0x8c   : > { %v7244_v17 = vld [vmem:[%s7724_s19 + $0x8dc] sm:$0xf0]  ;;  %v7136_v20 = vld [vmem:[%s7724_s19 + $0x584] sm:$0xf] }
  0x8d   : > { %v6285_v18 = vld [vmem:[%s7724_s19 + $0xac0] sm:$0xf]  ;;  %v6030_v31 = vor.u32 %v7244_v17, %v6029_v15  ;;  %3103 = vmatpush.bf16.msrb.mxu2 %v6574_v21  ;;  %3118 = vmatpush.bf16.msrb.mxu3 %v4978_v49  ;;  %v5394_v15 = vor.u32 %v7080_v3, %v5391_v4  ;;  %v5906_v17 = vor.u32 %v7208_v8, %v5903_v9  ;;  %v7056_v49 = vld [vmem:[%s7724_s19 + $0x304] sm:$0xf] }
  0x8e   : > { %v7308_v19 = vld [vmem:[%s7724_s19 + $0xadc] sm:$0xf0]  ;;  %v6162_v21 = vor.u32 %v7272_v12, %v6159_v13  ;;  %v5551_v53 = vld [vmem:[%s7724_s19 + $0x520] sm:$0xf0] }
  0x8f   : > { %v7843_v22 = vld [vmem:[#allocation1 + $0x12] sm:$0xff]  ;;  %v7852_v28 = vld [vmem:[#allocation1 + $0x1b] sm:$0xff]  ;;  %v6286_v32 = vor.u32 %v7308_v19, %v6285_v18  ;;  %3078 = vmatpush.bf16.msrb.mxu0 %v6030_v31 }
  0x90   : > { %v6541_v26 = vld [vmem:[%s7724_s19 + $0xcc0] sm:$0xf]  ;;  %3056 = vmatmul.bf16.vlgmr.msra.gmra.mxu2 %v7843_v22  ;;  %3069 = vmatmul.bf16.vlgmr.msra.gmra.mxu3 %v7852_v28  ;;  %v7072_v18 = vld [vmem:[%s7724_s19 + $0x384] sm:$0xf] }
  0x91   : > { %v7372_v27 = vld [vmem:[%s7724_s19 + $0xcdc] sm:$0xf0]  ;;  %3091 = vmatpush.bf16.msrb.mxu1 %v6286_v32  ;;  %3119 = vmatpush.bf16.msrb.mxu3 %v4946_v63  ;;  %v5359_v19 = vld [vmem:[%s7724_s19 + $0x3a0] sm:$0xf0] }
  0x92   : > { %v6542_v33 = vor.u32 %v7372_v27, %v6541_v26  ;;  %v5997_v34 = vld [vmem:[%s7724_s19 + $0x880] sm:$0xf]  ;;  %v7200_v26 = vld [vmem:[%s7724_s19 + $0x784] sm:$0xf]  ;;  %v5362_v32 = vor.u32 %v7072_v18, %v5359_v19 }
  0x93   : > { %v7236_v35 = vld [vmem:[%s7724_s19 + $0x89c] sm:$0xf0]  ;;  %v5871_v27 = vld [vmem:[%s7724_s19 + $0x7a0] sm:$0xf0] }
  0x94   : > { %v6253_v36 = vld [vmem:[%s7724_s19 + $0xa80] sm:$0xf]  ;;  %v5998_v43 = vor.u32 %v7236_v35, %v5997_v34  ;;  %3104 = vmatpush.bf16.msrb.mxu2 %v6542_v33  ;;  %v7901_v33 = vld [vmem:[#allocation1 + $0x24] sm:$0xff]  ;;  %v7903_v34 = vld [vmem:[#allocation1 + $0x2d] sm:$0xff]  ;;  %v5618_v35 = vor.u32 %v7136_v20, %v5615_v25 }
  0x95   : > { %v7300_v38 = vld [vmem:[%s7724_s19 + $0xa9c] sm:$0xf0]  ;;  %3120 = vmatpush.bf16.msrb.mxu3 %v4914_v14  ;;  %v7184_v54 = vld [vmem:[%s7724_s19 + $0x704] sm:$0xf] }
  0x96   : > { %v6509_v39 = vld [vmem:[%s7724_s19 + $0xc80] sm:$0xf]  ;;  %v6254_v44 = vor.u32 %v7300_v38, %v6253_v36  ;;  %3079 = vmatpush.bf16.msrb.mxu0 %v5998_v43  ;;  %v5874_v36 = vor.u32 %v7200_v26, %v5871_v27  ;;  %v5327_v38 = vld [vmem:[%s7724_s19 + $0x360] sm:$0xf0] }
  0x97   : > { %v7364_v40 = vld [vmem:[%s7724_s19 + $0xc9c] sm:$0xf0]  ;;  %v5839_v43 = vld [vmem:[%s7724_s19 + $0x760] sm:$0xf0] }
  0x98   : > { %v6510_v45 = vor.u32 %v7364_v40, %v6509_v39  ;;  %v5965_v46 = vld [vmem:[%s7724_s19 + $0x840] sm:$0xf]  ;;  %3092 = vmatpush.bf16.msrb.mxu1 %v6254_v44  ;;  %v7128_v39 = vld [vmem:[%s7724_s19 + $0x544] sm:$0xf]  ;;  %v6130_v40 = vor.u32 %v7264_v29, %v6127_v30 }
  0x99   : > { %v7228_v47 = vld [vmem:[%s7724_s19 + $0x85c] sm:$0xf0]  ;;  %3165 = vmatpush.bf16.msra.mxu3 %v6162_v21  ;;  %v7256_v44 = vld [vmem:[%s7724_s19 + $0x944] sm:$0xf] }
  0x9a   : > { %v6221_v48 = vld [vmem:[%s7724_s19 + $0xa40] sm:$0xf]  ;;  %v5966_v55 = vor.u32 %v7228_v47, %v5965_v46  ;;  %3105 = vmatpush.bf16.msrb.mxu2 %v6510_v45  ;;  %v6095_v45 = vld [vmem:[%s7724_s19 + $0x960] sm:$0xf0]  ;;  %v5330_v46 = vor.u32 %v7064_v37, %v5327_v38  ;;  %v5586_v47 = vor.u32 %v7128_v39, %v5583_v41 }
  0x9b   : > { %v7292_v50 = vld [vmem:[%s7724_s19 + $0xa5c] sm:$0xf0]  ;;  %v7112_v63 = vld [vmem:[%s7724_s19 + $0x4c4] sm:$0xf] }
  0x9c   : > { %v6477_v51 = vld [vmem:[%s7724_s19 + $0xc40] sm:$0xf]  ;;  %v6222_v58 = vor.u32 %v7292_v50, %v6221_v48  ;;  %3080 = vmatpush.bf16.msrb.mxu0 %v5966_v55  ;;  %v5842_v48 = vor.u32 %v7192_v42, %v5839_v43  ;;  %v5295_v50 = vld [vmem:[%s7724_s19 + $0x320] sm:$0xf0]  ;;  %v5522_v7 = vor.u32 %v7112_v63, %v5519_v1 }
  0x9d   : > { %v7356_v52 = vld [vmem:[%s7724_s19 + $0xc5c] sm:$0xf0]  ;;  %3166 = vmatpush.bf16.msra.mxu3 %v6130_v40  ;;  %v5807_v55 = vld [vmem:[%s7724_s19 + $0x720] sm:$0xf0] }
  0x9e   : > { %v5933_v56 = vld [vmem:[%s7724_s19 + $0x800] sm:$0xf]  ;;  %v6478_v59 = vor.u32 %v7356_v52, %v6477_v51  ;;  %3093 = vmatpush.bf16.msrb.mxu1 %v6222_v58  ;;  %v7120_v51 = vld [vmem:[%s7724_s19 + $0x504] sm:$0xf]  ;;  %v6098_v52 = vor.u32 %v7256_v44, %v6095_v45  ;;  %v5298_v58 = vor.u32 %v7056_v49, %v5295_v50 }
  0x9f   : > { %v7220_v57 = vld [vmem:[%s7724_s19 + $0x81c] sm:$0xf0]  ;;  %v5775_v3 = vld [vmem:[%s7724_s19 + $0x6e0] sm:$0xf0] }
  0xa0   : > { %v6189_v60 = vld [vmem:[%s7724_s19 + $0xa00] sm:$0xf]  ;;  %v5934_v6 = vor.u32 %v7220_v57, %v5933_v56  ;;  %3106 = vmatpush.bf16.msrb.mxu2 %v6478_v59  ;;  %3121 = vmatmul.bf16.vlgmr.msrb.gmra.mxu3 %v7845_v23  ;;  %v7248_v56 = vld [vmem:[%s7724_s19 + $0x904] sm:$0xf]  ;;  %v5554_v59 = vor.u32 %v7120_v51, %v5551_v53  ;;  %v5778_v8 = vor.u32 %v7176_v2, %v5775_v3 }
  0xa1   : > { %v7284_v61 = vld [vmem:[%s7724_s19 + $0xa1c] sm:$0xf0]  ;;  %v6063_v57 = vld [vmem:[%s7724_s19 + $0x920] sm:$0xf0]  ;;  %3167 = vmatpush.bf16.msra.mxu3 %v6098_v52 }
  0xa2   : > { %v6445_v62 = vld [vmem:[%s7724_s19 + $0xc00] sm:$0xf]  ;;  %v6190_v10 = vor.u32 %v7284_v61, %v6189_v60  ;;  %3081 = vmatpush.bf16.msrb.mxu0 %v5934_v6  ;;  %v5810_v60 = vor.u32 %v7184_v54, %v5807_v55  ;;  %v7048_v61 = vld [vmem:[%s7724_s19 + $0x2c4] sm:$0xf]  ;;  %v5141_v54 = vld [vmem:[%s7724_s19 + $0x1c8] sm:$0xf] }
  0xa3   : > { %v7348_v0 = vld [vmem:[%s7724_s19 + $0xc1c] sm:$0xf0]  ;;  %v7240_v4 = vld [vmem:[%s7724_s19 + $0x8c4] sm:$0xf]  ;;  %v7021_v55 = vld [vmem:[%s7724_s19 + $0x1e4] sm:$0xf0] }
  0xa4   : > { %v6446_v11 = vor.u32 %v7348_v0, %v6445_v62  ;;  %3094 = vmatpush.bf16.msrb.mxu1 %v6190_v10  ;;  %v7899_v31 = vld [vmem:[#allocation1 + $0x36] sm:$0xff]  ;;  %v6066_v0 = vor.u32 %v7248_v56, %v6063_v57  ;;  %v5142_v63 = vor.u32 %v7021_v55, %v5141_v54 }
  0xa5   : > { %3082 = vmatmul.bf16.vlgmr.msrb.gmra.mxu0 %v7901_v33  ;;  %v5263_v62 = vld [vmem:[%s7724_s19 + $0x2e0] sm:$0xf0] }
  0xa6   : > { %3107 = vmatpush.bf16.msrb.mxu2 %v6446_v11  ;;  %3126 = vmatpush.bf16.msra.mxu0 %v5394_v15  ;;  %v6031_v5 = vld [vmem:[%s7724_s19 + $0x8e0] sm:$0xf0]  ;;  %v5266_v6 = vor.u32 %v7048_v61, %v5263_v62 }
  0xa7   : > { %3095 = vmatmul.bf16.vlgmr.msrb.gmra.mxu1 %v7903_v34  ;;  %v7040_v9 = vld [vmem:[%s7724_s19 + $0x284] sm:$0xf]  ;;  %3168 = vmatpush.bf16.msra.mxu3 %v6066_v0  ;;  %v6034_v12 = vor.u32 %v7240_v4, %v6031_v5  ;;  %v5109_v5 = vld [vmem:[%s7724_s19 + $0x188] sm:$0xf] }
  0xa8   : > { %3139 = vmatpush.bf16.msra.mxu1 %v5650_v16  ;;  %v5231_v10 = vld [vmem:[%s7724_s19 + $0x2a0] sm:$0xf0] }
  0xa9   : > { %3108 = vmatmul.bf16.vlgmr.msrb.gmra.mxu2 %v7899_v31  ;;  %v7104_v11 = vld [vmem:[%s7724_s19 + $0x484] sm:$0xf]  ;;  %v5234_v18 = vor.u32 %v7040_v9, %v5231_v10 }
  0xaa   : > { %3152 = vmatpush.bf16.msra.mxu2 %v5906_v17  ;;  %3127 = vmatpush.bf16.msra.mxu0 %v5362_v32  ;;  %v5487_v13 = vld [vmem:[%s7724_s19 + $0x4a0] sm:$0xf0] }
  0xab   : > { %v7168_v14 = vld [vmem:[%s7724_s19 + $0x684] sm:$0xf]  ;;  %v5490_v19 = vor.u32 %v7104_v11, %v5487_v13  ;;  %3169 = vmatpush.bf16.msra.mxu3 %v6034_v12 }
  0xac   : > { %3140 = vmatpush.bf16.msra.mxu1 %v5618_v35  ;;  %v5743_v15 = vld [vmem:[%s7724_s19 + $0x6a0] sm:$0xf0] }
  0xad   : > { %v7232_v16 = vld [vmem:[%s7724_s19 + $0x884] sm:$0xf]  ;;  %v5746_v20 = vor.u32 %v7168_v14, %v5743_v15 }
  0xae   : > { %3153 = vmatpush.bf16.msra.mxu2 %v5874_v36  ;;  %3128 = vmatpush.bf16.msra.mxu0 %v5330_v46  ;;  %v5999_v17 = vld [vmem:[%s7724_s19 + $0x8a0] sm:$0xf0] }
  0xaf   : > { %v7032_v21 = vld [vmem:[%s7724_s19 + $0x244] sm:$0xf]  ;;  %v6002_v27 = vor.u32 %v7232_v16, %v5999_v17  ;;  %v5077_v17 = vld [vmem:[%s7724_s19 + $0x148] sm:$0xf] }
  0xb0   : > { %3141 = vmatpush.bf16.msra.mxu1 %v5586_v47  ;;  %v5199_v25 = vld [vmem:[%s7724_s19 + $0x260] sm:$0xf0] }
  0xb1   : > { %v7096_v26 = vld [vmem:[%s7724_s19 + $0x444] sm:$0xf]  ;;  %v5202_v37 = vor.u32 %v7032_v21, %v5199_v25  ;;  %3170 = vmatpush.bf16.msra.mxu3 %v6002_v27 }
  0xb2   : > { %3154 = vmatpush.bf16.msra.mxu2 %v5842_v48  ;;  %3129 = vmatpush.bf16.msra.mxu0 %v5298_v58  ;;  %v5455_v29 = vld [vmem:[%s7724_s19 + $0x460] sm:$0xf0]  ;;  %v5397_v58 = vld [vmem:[%s7724_s19 + $0x3c8] sm:$0xf] }
  0xb3   : > { %v7160_v30 = vld [vmem:[%s7724_s19 + $0x644] sm:$0xf]  ;;  %v5458_v40 = vor.u32 %v7096_v26, %v5455_v29 }
  0xb4   : > { %3142 = vmatpush.bf16.msra.mxu1 %v5554_v59  ;;  %v5711_v32 = vld [vmem:[%s7724_s19 + $0x660] sm:$0xf0]  ;;  %v7085_v59 = vld [vmem:[%s7724_s19 + $0x3e4] sm:$0xf0] }
  0xb5   : > { %v7224_v35 = vld [vmem:[%s7724_s19 + $0x844] sm:$0xf]  ;;  %v5714_v41 = vor.u32 %v7160_v30, %v5711_v32  ;;  %v5398_v3 = vor.u32 %v7085_v59, %v5397_v58 }
  0xb6   : > { %3155 = vmatpush.bf16.msra.mxu2 %v5810_v60  ;;  %3130 = vmatpush.bf16.msra.mxu0 %v5266_v6  ;;  %v5967_v36 = vld [vmem:[%s7724_s19 + $0x860] sm:$0xf0]  ;;  %v7013_v6 = vld [vmem:[%s7724_s19 + $0x1a4] sm:$0xf0] }
  0xb7   : > { %v7024_v38 = vld [vmem:[%s7724_s19 + $0x204] sm:$0xf]  ;;  %v5970_v45 = vor.u32 %v7224_v35, %v5967_v36  ;;  %v5110_v11 = vor.u32 %v7013_v6, %v5109_v5  ;;  %v5045_v36 = vld [vmem:[%s7724_s19 + $0x108] sm:$0xf] }
  0xb8   : > { %3143 = vmatpush.bf16.msra.mxu1 %v5522_v7  ;;  %v5167_v39 = vld [vmem:[%s7724_s19 + $0x220] sm:$0xf0]  ;;  %v5365_v7 = vld [vmem:[%s7724_s19 + $0x388] sm:$0xf] }
  0xb9   : > { %v7088_v42 = vld [vmem:[%s7724_s19 + $0x404] sm:$0xf]  ;;  %v5170_v52 = vor.u32 %v7024_v38, %v5167_v39  ;;  %3171 = vmatpush.bf16.msra.mxu3 %v5970_v45  ;;  %v5301_v38 = vld [vmem:[%s7724_s19 + $0x308] sm:$0xf] }
  0xba   : > { %3156 = vmatpush.bf16.msra.mxu2 %v5778_v8  ;;  %3131 = vmatpush.bf16.msra.mxu0 %v5234_v18  ;;  %v5423_v43 = vld [vmem:[%s7724_s19 + $0x420] sm:$0xf0]  ;;  %v7077_v8 = vld [vmem:[%s7724_s19 + $0x3a4] sm:$0xf0] }
  0xbb   : > { %v7152_v44 = vld [vmem:[%s7724_s19 + $0x604] sm:$0xf]  ;;  %v5426_v56 = vor.u32 %v7088_v42, %v5423_v43  ;;  %v5366_v15 = vor.u32 %v7077_v8, %v5365_v7  ;;  %v7005_v18 = vld [vmem:[%s7724_s19 + $0x164] sm:$0xf0] }
  0xbc   : > { %3144 = vmatpush.bf16.msra.mxu1 %v5490_v19  ;;  %v5679_v46 = vld [vmem:[%s7724_s19 + $0x620] sm:$0xf0]  ;;  %v5333_v19 = vld [vmem:[%s7724_s19 + $0x348] sm:$0xf]  ;;  %v5078_v26 = vor.u32 %v7005_v18, %v5077_v17 }
  0xbd   : > { %v7216_v47 = vld [vmem:[%s7724_s19 + $0x804] sm:$0xf]  ;;  %v5682_v57 = vor.u32 %v7152_v44, %v5679_v46  ;;  %v7061_v39 = vld [vmem:[%s7724_s19 + $0x324] sm:$0xf0] }
  0xbe   : > { %3157 = vmatpush.bf16.msra.mxu2 %v5746_v20  ;;  %v5935_v48 = vld [vmem:[%s7724_s19 + $0x820] sm:$0xf0]  ;;  %3132 = vmatpush.bf16.msra.mxu0 %v5202_v37  ;;  %v7069_v20 = vld [vmem:[%s7724_s19 + $0x364] sm:$0xf0]  ;;  %v5302_v46 = vor.u32 %v7061_v39, %v5301_v38 }
  0xbf   : > { %v7336_v49 = vld [vmem:[%s7724_s19 + $0xbc4] sm:$0xf]  ;;  %v5938_v60 = vor.u32 %v7216_v47, %v5935_v48  ;;  %v5334_v32 = vor.u32 %v7069_v20, %v5333_v19  ;;  %v6997_v37 = vld [vmem:[%s7724_s19 + $0x124] sm:$0xf0] }
  0xc0   : > { %v6415_v50 = vld [vmem:[%s7724_s19 + $0xbe0] sm:$0xf0]  ;;  %3145 = vmatpush.bf16.msra.mxu1 %v5458_v40  ;;  %v5046_v42 = vor.u32 %v6997_v37, %v5045_v36  ;;  %v5013_v48 = vld [vmem:[%s7724_s19 + $0xc8] sm:$0xf] }
  0xc1   : > { %v7400_v51 = vld [vmem:[%s7724_s19 + $0xdc4] sm:$0xf]  ;;  %v6418_v61 = vor.u32 %v7336_v49, %v6415_v50  ;;  %3172 = vmatpush.bf16.msra.mxu3 %v5938_v60  ;;  %v6989_v49 = vld [vmem:[%s7724_s19 + $0xe4] sm:$0xf0] }
  0xc2   : > { %v6671_v53 = vld [vmem:[%s7724_s19 + $0xde0] sm:$0xf0]  ;;  %3158 = vmatpush.bf16.msra.mxu2 %v5714_v41  ;;  %3133 = vmatpush.bf16.msra.mxu0 %v5170_v52  ;;  %v5269_v50 = vld [vmem:[%s7724_s19 + $0x2c8] sm:$0xf]  ;;  %v5014_v54 = vor.u32 %v6989_v49, %v5013_v48 }
  0xc3   : > { %v6674_v62 = vor.u32 %v7400_v51, %v6671_v53  ;;  %v7328_v0 = vld [vmem:[%s7724_s19 + $0xb84] sm:$0xf]  ;;  %v7053_v51 = vld [vmem:[%s7724_s19 + $0x2e4] sm:$0xf0] }
  0xc4   : > { %v6383_v1 = vld [vmem:[%s7724_s19 + $0xba0] sm:$0xf0]  ;;  %3146 = vmatpush.bf16.msra.mxu1 %v5426_v56  ;;  %3173 = vmatmul.bf16.vlgmr.msra.gmra.mxu3 %v7901_v33  ;;  %v5270_v58 = vor.u32 %v7053_v51, %v5269_v50  ;;  %v4981_v60 = vld [vmem:[%s7724_s19 + $0x88] sm:$0xf] }
  0xc5   : > { %v7392_v2 = vld [vmem:[%s7724_s19 + $0xd84] sm:$0xf]  ;;  %v6386_v9 = vor.u32 %v7328_v0, %v6383_v1  ;;  %3217 = vmatpush.bf16.msrb.mxu3 %v5398_v3  ;;  %3134 = vmatmul.bf16.vlgmr.msra.gmra.mxu0 %v7847_v24  ;;  %v4949_v8 = vld [vmem:[%s7724_s19 + $0x48] sm:$0xf] }
  0xc6   : > { %v6639_v4 = vld [vmem:[%s7724_s19 + $0xda0] sm:$0xf0]  ;;  %3159 = vmatpush.bf16.msra.mxu2 %v5682_v57  ;;  %3178 = vmatpush.bf16.msrb.mxu0 %v6418_v61  ;;  %v6981_v61 = vld [vmem:[%s7724_s19 + $0xa4] sm:$0xf0] }
  0xc7   : > { %v6642_v10 = vor.u32 %v7392_v2, %v6639_v4  ;;  %v7320_v12 = vld [vmem:[%s7724_s19 + $0xb44] sm:$0xf]  ;;  %3147 = vmatmul.bf16.vlgmr.msra.gmra.mxu1 %v7843_v22  ;;  %v4982_v2 = vor.u32 %v6981_v61, %v4981_v60  ;;  %v4917_v19 = vld [vmem:[%s7724_s19 + $0x8] sm:$0xf] }
  0xc8   : > { %3191 = vmatpush.bf16.msrb.mxu1 %v6674_v62  ;;  %v6351_v13 = vld [vmem:[%s7724_s19 + $0xb60] sm:$0xf0]  ;;  %v5237_v62 = vld [vmem:[%s7724_s19 + $0x288] sm:$0xf] }
  0xc9   : > { %v7384_v14 = vld [vmem:[%s7724_s19 + $0xd44] sm:$0xf]  ;;  %3160 = vmatmul.bf16.vlgmr.msra.gmra.mxu2 %v7852_v28  ;;  %v6354_v21 = vor.u32 %v7320_v12, %v6351_v13  ;;  %3218 = vmatpush.bf16.msrb.mxu3 %v5366_v15  ;;  %v6165_v36 = vld [vmem:[%s7724_s19 + $0x9c8] sm:$0xf] }
  0xca   : > { %3204 = vmatpush.bf16.msrb.mxu2 %v5142_v63  ;;  %v6607_v16 = vld [vmem:[%s7724_s19 + $0xd60] sm:$0xf0]  ;;  %3179 = vmatpush.bf16.msrb.mxu0 %v6386_v9  ;;  %v7045_v63 = vld [vmem:[%s7724_s19 + $0x2a4] sm:$0xf0] }
  0xcb   : > { %v6610_v25 = vor.u32 %v7384_v14, %v6607_v16  ;;  %v7312_v27 = vld [vmem:[%s7724_s19 + $0xb04] sm:$0xf]  ;;  %v5238_v6 = vor.u32 %v7045_v63, %v5237_v62  ;;  %v6973_v9 = vld [vmem:[%s7724_s19 + $0x64] sm:$0xf0] }
  0xcc   : > { %3192 = vmatpush.bf16.msrb.mxu1 %v6642_v10  ;;  %v6319_v29 = vld [vmem:[%s7724_s19 + $0xb20] sm:$0xf0]  ;;  %v5205_v10 = vld [vmem:[%s7724_s19 + $0x248] sm:$0xf]  ;;  %v4950_v16 = vor.u32 %v6973_v9, %v4949_v8 }
  0xcd   : > { %v7376_v30 = vld [vmem:[%s7724_s19 + $0xd04] sm:$0xf]  ;;  %v6322_v40 = vor.u32 %v7312_v27, %v6319_v29  ;;  %3219 = vmatpush.bf16.msrb.mxu3 %v5334_v32  ;;  %v5653_v27 = vld [vmem:[%s7724_s19 + $0x5c8] sm:$0xf] }
  0xce   : > { %3205 = vmatpush.bf16.msrb.mxu2 %v5110_v11  ;;  %v6575_v35 = vld [vmem:[%s7724_s19 + $0xd20] sm:$0xf0]  ;;  %3180 = vmatpush.bf16.msrb.mxu0 %v6354_v21  ;;  %v7037_v11 = vld [vmem:[%s7724_s19 + $0x264] sm:$0xf0] }
  0xcf   : > { %v6578_v41 = vor.u32 %v7376_v30, %v6575_v35  ;;  %v7304_v43 = vld [vmem:[%s7724_s19 + $0xac4] sm:$0xf]  ;;  %v5206_v20 = vor.u32 %v7037_v11, %v5205_v10  ;;  %v6965_v21 = vld [vmem:[%s7724_s19 + $0x24] sm:$0xf0] }
  0xd0   : > { %3193 = vmatpush.bf16.msrb.mxu1 %v6610_v25  ;;  %v6287_v44 = vld [vmem:[%s7724_s19 + $0xae0] sm:$0xf0]  ;;  %v5173_v25 = vld [vmem:[%s7724_s19 + $0x208] sm:$0xf]  ;;  %v4918_v39 = vor.u32 %v6965_v21, %v4917_v19 }
  0xd1   : > { %v7368_v45 = vld [vmem:[%s7724_s19 + $0xcc4] sm:$0xf]  ;;  %v6290_v52 = vor.u32 %v7304_v43, %v6287_v44  ;;  %3220 = vmatpush.bf16.msrb.mxu3 %v5302_v46  ;;  %v7149_v29 = vld [vmem:[%s7724_s19 + $0x5e4] sm:$0xf0] }
  0xd2   : > { %3206 = vmatpush.bf16.msrb.mxu2 %v5078_v26  ;;  %v6543_v47 = vld [vmem:[%s7724_s19 + $0xce0] sm:$0xf0]  ;;  %3181 = vmatpush.bf16.msrb.mxu0 %v6322_v40  ;;  %v7029_v26 = vld [vmem:[%s7724_s19 + $0x224] sm:$0xf0]  ;;  %v5654_v43 = vor.u32 %v7149_v29, %v5653_v27 }
  0xd3   : > { %v6546_v53 = vor.u32 %v7368_v45, %v6543_v47  ;;  %v7296_v55 = vld [vmem:[%s7724_s19 + $0xa84] sm:$0xf]  ;;  %v5909_v30 = vld [vmem:[%s7724_s19 + $0x7c8] sm:$0xf] }
  0xd4   : > { %3194 = vmatpush.bf16.msrb.mxu1 %v6578_v41  ;;  %v6255_v56 = vld [vmem:[%s7724_s19 + $0xaa0] sm:$0xf0]  ;;  %v7213_v35 = vld [vmem:[%s7724_s19 + $0x7e4] sm:$0xf0] }
  0xd5   : > { %v7360_v57 = vld [vmem:[%s7724_s19 + $0xc84] sm:$0xf]  ;;  %v6258_v0 = vor.u32 %v7296_v55, %v6255_v56  ;;  %3221 = vmatpush.bf16.msrb.mxu3 %v5270_v58  ;;  %v7277_v37 = vld [vmem:[%s7724_s19 + $0x9e4] sm:$0xf0]  ;;  %v5910_v44 = vor.u32 %v7213_v35, %v5909_v30 }
  0xd6   : > { %3207 = vmatpush.bf16.msrb.mxu2 %v5046_v42  ;;  %v6511_v59 = vld [vmem:[%s7724_s19 + $0xca0] sm:$0xf0]  ;;  %3182 = vmatpush.bf16.msrb.mxu0 %v6290_v52  ;;  %v6421_v40 = vld [vmem:[%s7724_s19 + $0xbc8] sm:$0xf]  ;;  %v5174_v42 = vor.u32 %v7029_v26, %v5173_v25  ;;  %v6166_v45 = vor.u32 %v7277_v37, %v6165_v36 }
  0xd7   : > { %v6514_v1 = vor.u32 %v7360_v57, %v6511_v59  ;;  %v7288_v3 = vld [vmem:[%s7724_s19 + $0xa44] sm:$0xf]  ;;  %v7341_v41 = vld [vmem:[%s7724_s19 + $0xbe4] sm:$0xf0] }
  0xd8   : > { %3195 = vmatpush.bf16.msrb.mxu1 %v6546_v53  ;;  %v6223_v4 = vld [vmem:[%s7724_s19 + $0xa60] sm:$0xf0]  ;;  %v5621_v46 = vld [vmem:[%s7724_s19 + $0x588] sm:$0xf]  ;;  %v6422_v49 = vor.u32 %v7341_v41, %v6421_v40 }
  0xd9   : > { %v7352_v5 = vld [vmem:[%s7724_s19 + $0xc44] sm:$0xf]  ;;  %v6226_v12 = vor.u32 %v7288_v3, %v6223_v4  ;;  %3222 = vmatpush.bf16.msrb.mxu3 %v5238_v6  ;;  %v7141_v47 = vld [vmem:[%s7724_s19 + $0x5a4] sm:$0xf0] }
  0xda   : > { %3208 = vmatpush.bf16.msrb.mxu2 %v5014_v54  ;;  %v6479_v7 = vld [vmem:[%s7724_s19 + $0xc60] sm:$0xf0]  ;;  %3183 = vmatpush.bf16.msrb.mxu0 %v6258_v0  ;;  %v5877_v48 = vld [vmem:[%s7724_s19 + $0x788] sm:$0xf]  ;;  %v5622_v55 = vor.u32 %v7141_v47, %v5621_v46 }
  0xdb   : > { %v7280_v13 = vld [vmem:[%s7724_s19 + $0xa04] sm:$0xf]  ;;  %v6482_v15 = vor.u32 %v7352_v5, %v6479_v7  ;;  %v7205_v50 = vld [vmem:[%s7724_s19 + $0x7a4] sm:$0xf0] }
  0xdc   : > { %v6191_v14 = vld [vmem:[%s7724_s19 + $0xa20] sm:$0xf0]  ;;  %3196 = vmatpush.bf16.msrb.mxu1 %v6514_v1  ;;  %v6133_v51 = vld [vmem:[%s7724_s19 + $0x988] sm:$0xf]  ;;  %v5878_v56 = vor.u32 %v7205_v50, %v5877_v48 }
  0xdd   : > { %v7344_v17 = vld [vmem:[%s7724_s19 + $0xc04] sm:$0xf]  ;;  %v6194_v32 = vor.u32 %v7280_v13, %v6191_v14  ;;  %3223 = vmatpush.bf16.msrb.mxu3 %v5206_v20  ;;  %v7269_v52 = vld [vmem:[%s7724_s19 + $0x9a4] sm:$0xf0] }
  0xde   : > { %3209 = vmatpush.bf16.msrb.mxu2 %v4982_v2  ;;  %v6447_v18 = vld [vmem:[%s7724_s19 + $0xc20] sm:$0xf0]  ;;  %3184 = vmatpush.bf16.msrb.mxu0 %v6226_v12  ;;  %v6389_v53 = vld [vmem:[%s7724_s19 + $0xb88] sm:$0xf]  ;;  %v6134_v57 = vor.u32 %v7269_v52, %v6133_v51 }
  0xdf   : > { %v6450_v38 = vor.u32 %v7344_v17, %v6447_v18  ;;  %v7333_v54 = vld [vmem:[%s7724_s19 + $0xba4] sm:$0xf0] }
  0xe0   : > { %3197 = vmatpush.bf16.msrb.mxu1 %v6482_v15  ;;  %v5589_v58 = vld [vmem:[%s7724_s19 + $0x548] sm:$0xf]  ;;  %v6390_v61 = vor.u32 %v7333_v54, %v6389_v53 }
  0xe1   : > { %3224 = vmatpush.bf16.msrb.mxu3 %v5174_v42  ;;  %v7133_v59 = vld [vmem:[%s7724_s19 + $0x564] sm:$0xf0] }
  0xe2   : > { %3210 = vmatpush.bf16.msrb.mxu2 %v4950_v16  ;;  %3185 = vmatpush.bf16.msrb.mxu0 %v6194_v32  ;;  %v5845_v60 = vld [vmem:[%s7724_s19 + $0x748] sm:$0xf]  ;;  %v5590_v3 = vor.u32 %v7133_v59, %v5589_v58 }
  0xe3   : > { %v7197_v62 = vld [vmem:[%s7724_s19 + $0x764] sm:$0xf0] }
  0xe4   : > { %3198 = vmatpush.bf16.msrb.mxu1 %v6450_v38  ;;  %v6101_v63 = vld [vmem:[%s7724_s19 + $0x948] sm:$0xf]  ;;  %3225 = vmatmul.bf16.vlgmr.msrb.gmra.mxu3 %v7847_v24  ;;  %v5846_v4 = vor.u32 %v7197_v62, %v5845_v60 }
  0xe5   : > { %3269 = vmatpush.bf16.msra.mxu3 %v6422_v49  ;;  %3186 = vmatmul.bf16.vlgmr.msrb.gmra.mxu0 %v7903_v34  ;;  %v7261_v0 = vld [vmem:[%s7724_s19 + $0x964] sm:$0xf0] }
  0xe6   : > { %3211 = vmatpush.bf16.msrb.mxu2 %v4918_v39  ;;  %3230 = vmatpush.bf16.msra.mxu0 %v5654_v43  ;;  %v6357_v1 = vld [vmem:[%s7724_s19 + $0xb48] sm:$0xf]  ;;  %v6102_v5 = vor.u32 %v7261_v0, %v6101_v63 }
  0xe7   : > { %3199 = vmatmul.bf16.vlgmr.msrb.gmra.mxu1 %v7899_v31  ;;  %v7325_v2 = vld [vmem:[%s7724_s19 + $0xb64] sm:$0xf0] }
  0xe8   : > { %3243 = vmatpush.bf16.msra.mxu1 %v5910_v44  ;;  %v5557_v6 = vld [vmem:[%s7724_s19 + $0x508] sm:$0xf]  ;;  %v6358_v8 = vor.u32 %v7325_v2, %v6357_v1 }
  0xe9   : > { %3212 = vmatmul.bf16.vlgmr.msrb.gmra.mxu2 %v7845_v23  ;;  %v7125_v31 = vld [vmem:[%s7724_s19 + $0x524] sm:$0xf0]  ;;  %3270 = vmatpush.bf16.msra.mxu3 %v6390_v61 }
  0xea   : > { %3256 = vmatpush.bf16.msra.mxu2 %v6166_v45  ;;  %3231 = vmatpush.bf16.msra.mxu0 %v5622_v55  ;;  %v5813_v7 = vld [vmem:[%s7724_s19 + $0x708] sm:$0xf]  ;;  %v5558_v12 = vor.u32 %v7125_v31, %v5557_v6  ;;  %v5143_v31 = vld [vmem:[%s7724_s19 + $0x1e8] sm:$0xf0] }
  0xeb   : > { %v7189_v9 = vld [vmem:[%s7724_s19 + $0x724] sm:$0xf0] }
  0xec   : > { %3244 = vmatpush.bf16.msra.mxu1 %v5878_v56  ;;  %v6069_v23 = vld [vmem:[%s7724_s19 + $0x908] sm:$0xf]  ;;  %v5814_v13 = vor.u32 %v7189_v9, %v5813_v7  ;;  %v7081_v7 = vld [vmem:[%s7724_s19 + $0x3cc] sm:$0xf] }
  0xed   : > { %v7253_v10 = vld [vmem:[%s7724_s19 + $0x924] sm:$0xf0]  ;;  %3271 = vmatpush.bf16.msra.mxu3 %v6358_v8  ;;  %v5399_v8 = vld [vmem:[%s7724_s19 + $0x3e8] sm:$0xf0] }
  0xee   : > { %3257 = vmatpush.bf16.msra.mxu2 %v6134_v57  ;;  %v6325_v11 = vld [vmem:[%s7724_s19 + $0xb08] sm:$0xf]  ;;  %3232 = vmatpush.bf16.msra.mxu0 %v5590_v3  ;;  %v6070_v14 = vor.u32 %v7253_v10, %v6069_v23  ;;  %v7145_v10 = vld [vmem:[%s7724_s19 + $0x5cc] sm:$0xf] }
  0xef   : > { %v7317_v24 = vld [vmem:[%s7724_s19 + $0xb24] sm:$0xf0] }
  0xf0   : > { %3245 = vmatpush.bf16.msra.mxu1 %v5846_v4  ;;  %v5525_v15 = vld [vmem:[%s7724_s19 + $0x4c8] sm:$0xf]  ;;  %v6326_v18 = vor.u32 %v7317_v24, %v6325_v11  ;;  %v5655_v11 = vld [vmem:[%s7724_s19 + $0x5e8] sm:$0xf0] }
  0xf1   : > { %v7117_v16 = vld [vmem:[%s7724_s19 + $0x4e4] sm:$0xf0] }
  0xf2   : > { %3258 = vmatpush.bf16.msra.mxu2 %v6102_v5  ;;  %v5781_v17 = vld [vmem:[%s7724_s19 + $0x6c8] sm:$0xf]  ;;  %3233 = vmatpush.bf16.msra.mxu0 %v5558_v12  ;;  %v5526_v27 = vor.u32 %v7117_v16, %v5525_v15  ;;  %v7017_v5 = vld [vmem:[%s7724_s19 + $0x1cc] sm:$0xf] }
  0xf3   : > { %v7181_v19 = vld [vmem:[%s7724_s19 + $0x6e4] sm:$0xf0]  ;;  %3272 = vmatpush.bf16.msra.mxu3 %v6326_v18  ;;  %v5658_v18 = vor.u32 %v7145_v10, %v5655_v11  ;;  %v3031_v10 = vpop.f32.mrf.mxu0  ;;  %v3044_v11 = vpop.f32.mrf.mxu1 }
  0xf4   : > { %v6037_v20 = vld [vmem:[%s7724_s19 + $0x8c8] sm:$0xf]  ;;  %3246 = vmatpush.bf16.msra.mxu1 %v5814_v13  ;;  %v5782_v29 = vor.u32 %v7181_v19, %v5781_v17  ;;  %v5146_v13 = vor.u32 %v7017_v5, %v5143_v31  ;;  %v7009_v17 = vld [vmem:[%s7724_s19 + $0x18c] sm:$0xf] }
  0xf5   : > { %v7245_v21 = vld [vmem:[%s7724_s19 + $0x8e4] sm:$0xf0]  ;;  %v5111_v19 = vld [vmem:[%s7724_s19 + $0x1a8] sm:$0xf0] }
  0xf6   : > { %v6293_v25 = vld [vmem:[%s7724_s19 + $0xac8] sm:$0xf]  ;;  %3259 = vmatpush.bf16.msra.mxu2 %v6070_v14  ;;  %v6038_v30 = vor.u32 %v7245_v21, %v6037_v20  ;;  %3234 = vmatpush.bf16.msra.mxu0 %v5526_v27  ;;  %v5402_v14 = vor.u32 %v7081_v7, %v5399_v8  ;;  %v7073_v20 = vld [vmem:[%s7724_s19 + $0x38c] sm:$0xf] }
  0xf7   : > { %v7309_v26 = vld [vmem:[%s7724_s19 + $0xae4] sm:$0xf0]  ;;  %v5367_v21 = vld [vmem:[%s7724_s19 + $0x3a8] sm:$0xf0] }
  0xf8   : > { %v5493_v32 = vld [vmem:[%s7724_s19 + $0x488] sm:$0xf]  ;;  %v6294_v37 = vor.u32 %v7309_v26, %v6293_v25  ;;  %3247 = vmatpush.bf16.msra.mxu1 %v5782_v29  ;;  %v7137_v25 = vld [vmem:[%s7724_s19 + $0x58c] sm:$0xf]  ;;  %v5114_v29 = vor.u32 %v7009_v17, %v5111_v19 }
  0xf9   : > { %v7109_v35 = vld [vmem:[%s7724_s19 + $0x4a4] sm:$0xf0]  ;;  %v5623_v26 = vld [vmem:[%s7724_s19 + $0x5a8] sm:$0xf0] }
  0xfa   : > { %v5749_v36 = vld [vmem:[%s7724_s19 + $0x688] sm:$0xf]  ;;  %v5494_v43 = vor.u32 %v7109_v35, %v5493_v32  ;;  %3260 = vmatpush.bf16.msra.mxu2 %v6038_v30  ;;  %3273 = vmatpush.bf16.msra.mxu3 %v6294_v37  ;;  %v5370_v30 = vor.u32 %v7073_v20, %v5367_v21  ;;  %v5626_v37 = vor.u32 %v7137_v25, %v5623_v26  ;;  %v7041_v31 = vld [vmem:[%s7724_s19 + $0x28c] sm:$0xf] }
  0xfb   : > { %v7173_v38 = vld [vmem:[%s7724_s19 + $0x6a4] sm:$0xf0]  ;;  %v5239_v7 = vld [vmem:[%s7724_s19 + $0x2a8] sm:$0xf0] }
  0xfc   : > { %v6005_v39 = vld [vmem:[%s7724_s19 + $0x888] sm:$0xf]  ;;  %v5750_v44 = vor.u32 %v7173_v38, %v5749_v36  ;;  %3235 = vmatpush.bf16.msra.mxu0 %v5494_v43  ;;  %v7001_v36 = vld [vmem:[%s7724_s19 + $0x14c] sm:$0xf] }
  0xfd   : > { %v7237_v40 = vld [vmem:[%s7724_s19 + $0x8a4] sm:$0xf0]  ;;  %v5079_v38 = vld [vmem:[%s7724_s19 + $0x168] sm:$0xf0] }
  0xfe   : > { %v6261_v41 = vld [vmem:[%s7724_s19 + $0xa88] sm:$0xf]  ;;  %v6006_v45 = vor.u32 %v7237_v40, %v6005_v39  ;;  %3248 = vmatpush.bf16.msra.mxu1 %v5750_v44  ;;  %v7065_v39 = vld [vmem:[%s7724_s19 + $0x34c] sm:$0xf] }
  0xff   : > { %v7301_v42 = vld [vmem:[%s7724_s19 + $0xaa4] sm:$0xf0]  ;;  %v5335_v40 = vld [vmem:[%s7724_s19 + $0x368] sm:$0xf0] }
 0x100   : > { %v5461_v46 = vld [vmem:[%s7724_s19 + $0x448] sm:$0xf]  ;;  %v6262_v49 = vor.u32 %v7301_v42, %v6261_v41  ;;  %3261 = vmatpush.bf16.msra.mxu2 %v6006_v45  ;;  %v7129_v41 = vld [vmem:[%s7724_s19 + $0x54c] sm:$0xf]  ;;  %v5338_v44 = vor.u32 %v7065_v39, %v5335_v40 }
 0x101   : > { %v7101_v47 = vld [vmem:[%s7724_s19 + $0x464] sm:$0xf0]  ;;  %v5591_v42 = vld [vmem:[%s7724_s19 + $0x568] sm:$0xf0] }
 0x102   : > { %v5717_v48 = vld [vmem:[%s7724_s19 + $0x648] sm:$0xf]  ;;  %v5462_v55 = vor.u32 %v7101_v47, %v5461_v46  ;;  %3274 = vmatpush.bf16.msra.mxu3 %v6262_v49  ;;  %v6993_v46 = vld [vmem:[%s7724_s19 + $0x10c] sm:$0xf] }
 0x103   : > { %v7165_v50 = vld [vmem:[%s7724_s19 + $0x664] sm:$0xf0]  ;;  %v5047_v47 = vld [vmem:[%s7724_s19 + $0x128] sm:$0xf0] }
 0x104   : > { %v5973_v51 = vld [vmem:[%s7724_s19 + $0x848] sm:$0xf]  ;;  %v5718_v58 = vor.u32 %v7165_v50, %v5717_v48  ;;  %3236 = vmatpush.bf16.msra.mxu0 %v5462_v55  ;;  %v7057_v48 = vld [vmem:[%s7724_s19 + $0x30c] sm:$0xf] }
 0x105   : > { %v7229_v52 = vld [vmem:[%s7724_s19 + $0x864] sm:$0xf0]  ;;  %v5303_v49 = vld [vmem:[%s7724_s19 + $0x328] sm:$0xf0] }
 0x106   : > { %v6229_v53 = vld [vmem:[%s7724_s19 + $0xa48] sm:$0xf]  ;;  %v5974_v59 = vor.u32 %v7229_v52, %v5973_v51  ;;  %3249 = vmatpush.bf16.msra.mxu1 %v5718_v58  ;;  %v7121_v50 = vld [vmem:[%s7724_s19 + $0x50c] sm:$0xf]  ;;  %v5050_v52 = vor.u32 %v6993_v46, %v5047_v47 }
 0x107   : > { %v7293_v54 = vld [vmem:[%s7724_s19 + $0xa64] sm:$0xf0]  ;;  %v5015_v58 = vld [vmem:[%s7724_s19 + $0xe8] sm:$0xf0] }
 0x108   : > { %v5429_v56 = vld [vmem:[%s7724_s19 + $0x408] sm:$0xf]  ;;  %v6230_v63 = vor.u32 %v7293_v54, %v6229_v53  ;;  %3262 = vmatpush.bf16.msra.mxu2 %v5974_v59  ;;  %v5306_v53 = vor.u32 %v7057_v48, %v5303_v49  ;;  %v7049_v59 = vld [vmem:[%s7724_s19 + $0x2cc] sm:$0xf]  ;;  %v3033_v49 = vpop.f32.mrf.mxu0 }
 0x109   : > { %v7093_v57 = vld [vmem:[%s7724_s19 + $0x424] sm:$0xf0]  ;;  %v7105_v8 = vld [vmem:[%s7724_s19 + $0x48c] sm:$0xf] }
 0x10a   : > { %v5685_v60 = vld [vmem:[%s7724_s19 + $0x608] sm:$0xf]  ;;  %v5430_v6 = vor.u32 %v7093_v57, %v5429_v56  ;;  %3275 = vmatpush.bf16.msra.mxu3 %v6230_v63  ;;  %v6985_v56 = vld [vmem:[%s7724_s19 + $0xcc] sm:$0xf] }
 0x10b   : > { %v7157_v61 = vld [vmem:[%s7724_s19 + $0x624] sm:$0xf0]  ;;  %v7033_v19 = vld [vmem:[%s7724_s19 + $0x24c] sm:$0xf] }
 0x10c   : > { %v5941_v62 = vld [vmem:[%s7724_s19 + $0x808] sm:$0xf]  ;;  %v5686_v9 = vor.u32 %v7157_v61, %v5685_v60  ;;  %3237 = vmatpush.bf16.msra.mxu0 %v5430_v6  ;;  %v5271_v60 = vld [vmem:[%s7724_s19 + $0x2e8] sm:$0xf0] }
 0x10d   : > { %v7221_v0 = vld [vmem:[%s7724_s19 + $0x824] sm:$0xf0]  ;;  %v7113_v61 = vld [vmem:[%s7724_s19 + $0x4cc] sm:$0xf] }
 0x10e   : > { %v6197_v1 = vld [vmem:[%s7724_s19 + $0xa08] sm:$0xf]  ;;  %v5942_v23 = vor.u32 %v7221_v0, %v5941_v62  ;;  %3250 = vmatpush.bf16.msra.mxu1 %v5686_v9  ;;  %v5527_v62 = vld [vmem:[%s7724_s19 + $0x4e8] sm:$0xf0]  ;;  %v5018_v0 = vor.u32 %v6985_v56, %v5015_v58 }
 0x10f   : > { %v7285_v2 = vld [vmem:[%s7724_s19 + $0xa24] sm:$0xf0]  ;;  %3238 = vmatmul.bf16.vlgmr.msra.gmra.mxu0 %v7843_v22  ;;  %v5530_v5 = vor.u32 %v7113_v61, %v5527_v62  ;;  %v4983_v6 = vld [vmem:[%s7724_s19 + $0xa8] sm:$0xf0] }
 0x110   : > { %v6677_v3 = vld [vmem:[%s7724_s19 + $0xdc8] sm:$0xf]  ;;  %v6198_v24 = vor.u32 %v7285_v2, %v6197_v1  ;;  %3263 = vmatpush.bf16.msra.mxu2 %v5942_v23  ;;  %v5274_v1 = vor.u32 %v7049_v59, %v5271_v60  ;;  %v5495_v9 = vld [vmem:[%s7724_s19 + $0x4a8] sm:$0xf0] }
 0x111   : > { %v7405_v4 = vld [vmem:[%s7724_s19 + $0xde4] sm:$0xf0]  ;;  %3251 = vmatmul.bf16.vlgmr.msra.gmra.mxu1 %v7852_v28  ;;  %v5559_v28 = vld [vmem:[%s7724_s19 + $0x528] sm:$0xf0]  ;;  %v5498_v17 = vor.u32 %v7105_v8, %v5495_v9 }
 0x112   : > { %v6678_v12 = vor.u32 %v7405_v4, %v6677_v3  ;;  %v6645_v15 = vld [vmem:[%s7724_s19 + $0xd88] sm:$0xf]  ;;  %3276 = vmatpush.bf16.msra.mxu3 %v6198_v24  ;;  %3295 = vmatpush.bf16.msrb.mxu1 %v5146_v13  ;;  %v5562_v57 = vor.u32 %v7121_v50, %v5559_v28  ;;  %v6977_v4 = vld [vmem:[%s7724_s19 + $0x8c] sm:$0xf]  ;;  %v3046_v28 = vpop.f32.mrf.mxu1 }
 0x113   : > { %v7397_v16 = vld [vmem:[%s7724_s19 + $0xda4] sm:$0xf0]  ;;  %3264 = vmatmul.bf16.vlgmr.msra.gmra.mxu2 %v7901_v33  ;;  %v5082_v33 = vor.u32 %v7001_v36, %v5079_v38  ;;  %v4986_v24 = vor.u32 %v6977_v4, %v4983_v6  ;;  %v5207_v20 = vld [vmem:[%s7724_s19 + $0x268] sm:$0xf0]  ;;  %v3057_v38 = vpop.f32.mrf.mxu2 }
 0x114   : > { %3282 = vmatpush.bf16.msrb.mxu0 %v6678_v12  ;;  %v6646_v27 = vor.u32 %v7397_v16, %v6645_v15  ;;  %3308 = vmatpush.bf16.msrb.mxu2 %v5402_v14  ;;  %v6613_v32 = vld [vmem:[%s7724_s19 + $0xd48] sm:$0xf]  ;;  %v5242_v12 = vor.u32 %v7041_v31, %v5239_v7  ;;  %v6969_v15 = vld [vmem:[%s7724_s19 + $0x4c] sm:$0xf]  ;;  %v3045_v16 = vadd.f32 %v3044_v11, %v3031_v10  ;;  %v8182_v10 = vld [vmem:[#allocation1 + $0x36] sm:$0xff] }
 0x115   : > { %v7389_v35 = vld [vmem:[%s7724_s19 + $0xd64] sm:$0xf0]  ;;  %3277 = vmatmul.bf16.vlgmr.msra.gmra.mxu3 %v7903_v34  ;;  %v5594_v34 = vor.u32 %v7129_v41, %v5591_v42  ;;  %v7097_v21 = vld [vmem:[%s7724_s19 + $0x44c] sm:$0xf] }
 0x116   : > { %3321 = vmatpush.bf16.msrb.mxu3 %v5658_v18  ;;  %v6614_v43 = vor.u32 %v7389_v35, %v6613_v32  ;;  %3296 = vmatpush.bf16.msrb.mxu1 %v5114_v29  ;;  %v6581_v45 = vld [vmem:[%s7724_s19 + $0xd08] sm:$0xf]  ;;  %v4951_v18 = vld [vmem:[%s7724_s19 + $0x68] sm:$0xf0]  ;;  %v5210_v32 = vor.u32 %v7033_v19, %v5207_v20 }
 0x117   : > { %v7381_v22 = vld [vmem:[%s7724_s19 + $0xd24] sm:$0xf0]  ;;  %v5463_v25 = vld [vmem:[%s7724_s19 + $0x468] sm:$0xf0] }
 0x118   : > { %3283 = vmatpush.bf16.msrb.mxu0 %v6646_v27  ;;  %3309 = vmatpush.bf16.msrb.mxu2 %v5370_v30  ;;  %v6582_v51 = vor.u32 %v7381_v22, %v6581_v45  ;;  %v6549_v54 = vld [vmem:[%s7724_s19 + $0xcc8] sm:$0xf]  ;;  %v4954_v30 = vor.u32 %v6969_v15, %v4951_v18  ;;  %v6961_v35 = vld [vmem:[%s7724_s19 + $0xc] sm:$0xf]  ;;  %v5466_v39 = vor.u32 %v7097_v21, %v5463_v25  ;;  %v3070_v22 = vpop.f32.mrf.mxu3 }
 0x119   : > { %v7373_v55 = vld [vmem:[%s7724_s19 + $0xce4] sm:$0xf0]  ;;  %v4919_v36 = vld [vmem:[%s7724_s19 + $0x28] sm:$0xf0] }
 0x11a   : > { %3322 = vmatpush.bf16.msrb.mxu3 %v5626_v37  ;;  %3297 = vmatpush.bf16.msrb.mxu1 %v5082_v33  ;;  %v6550_v63 = vor.u32 %v7373_v55, %v6549_v54  ;;  %v6517_v2 = vld [vmem:[%s7724_s19 + $0xc88] sm:$0xf]  ;;  %v7025_v37 = vld [vmem:[%s7724_s19 + $0x20c] sm:$0xf] }
 0x11b   : > { %v7365_v3 = vld [vmem:[%s7724_s19 + $0xca4] sm:$0xf0]  ;;  %v5175_v40 = vld [vmem:[%s7724_s19 + $0x228] sm:$0xf0]  ;;  %v3059_v4 = vpop.f32.mrf.mxu2 }
 0x11c   : > { %3284 = vmatpush.bf16.msrb.mxu0 %v6614_v43  ;;  %3310 = vmatpush.bf16.msrb.mxu2 %v5338_v44  ;;  %v6518_v23 = vor.u32 %v7365_v3, %v6517_v2  ;;  %v6485_v13 = vld [vmem:[%s7724_s19 + $0xc48] sm:$0xf]  ;;  %v7089_v41 = vld [vmem:[%s7724_s19 + $0x40c] sm:$0xf]  ;;  %v3058_v43 = vadd.f32 %v3057_v38, %v3045_v16  ;;  %v8190_v16 = vld [vmem:[#allocation1 + $0x9] sm:$0xff] }
 0x11d   : > { %v7357_v14 = vld [vmem:[%s7724_s19 + $0xc64] sm:$0xf0]  ;;  %v5431_v42 = vld [vmem:[%s7724_s19 + $0x428] sm:$0xf0] }
 0x11e   : > { %3323 = vmatpush.bf16.msrb.mxu3 %v5594_v34  ;;  %3298 = vmatpush.bf16.msrb.mxu1 %v5050_v52  ;;  %v6486_v26 = vor.u32 %v7357_v14, %v6485_v13  ;;  %v6453_v27 = vld [vmem:[%s7724_s19 + $0xc08] sm:$0xf]  ;;  %v7209_v33 = vld [vmem:[%s7724_s19 + $0x7cc] sm:$0xf]  ;;  %v8167_v50 = vadd.f32 %v3070_v22, %v3058_v43  ;;  %v5178_v52 = vor.u32 %v7025_v37, %v5175_v40 }
 0x11f   : > { %v7349_v29 = vld [vmem:[%s7724_s19 + $0xc24] sm:$0xf0]  ;;  %v5911_v44 = vld [vmem:[%s7724_s19 + $0x7e8] sm:$0xf0]  ;;  %v5434_v55 = vor.u32 %v7089_v41, %v5431_v42 }
 0x120   : > { %3285 = vmatpush.bf16.msrb.mxu0 %v6582_v51  ;;  %3311 = vmatpush.bf16.msrb.mxu2 %v5306_v53  ;;  %v7273_v45 = vld [vmem:[%s7724_s19 + $0x9cc] sm:$0xf]  ;;  %v6454_v46 = vor.u32 %v7349_v29, %v6453_v27  ;;  %v4922_v51 = vor.u32 %v6961_v35, %v4919_v36  ;;  %v5914_v56 = vor.u32 %v7209_v33, %v5911_v44 }
 0x121   : > { %v6167_v34 = vld [vmem:[%s7724_s19 + $0x9e8] sm:$0xf0] }
 0x122   : > { %3324 = vmatpush.bf16.msrb.mxu3 %v5562_v57  ;;  %3299 = vmatpush.bf16.msrb.mxu1 %v5018_v0  ;;  %v7337_v47 = vld [vmem:[%s7724_s19 + $0xbcc] sm:$0xf]  ;;  %v6170_v57 = vor.u32 %v7273_v45, %v6167_v34 }
 0x123   : > { %v6423_v48 = vld [vmem:[%s7724_s19 + $0xbe8] sm:$0xf0] }
 0x124   : > { %3286 = vmatpush.bf16.msrb.mxu0 %v6550_v63  ;;  %3312 = vmatpush.bf16.msrb.mxu2 %v5274_v1  ;;  %v7401_v53 = vld [vmem:[%s7724_s19 + $0xdcc] sm:$0xf]  ;;  %v6426_v58 = vor.u32 %v7337_v47, %v6423_v48  ;;  %v3096_v40 = vpop.f32.mrf.mxu1 }
 0x125   : > { %v6679_v54 = vld [vmem:[%s7724_s19 + $0xde8] sm:$0xf0] }
 0x126   : > { %3325 = vmatpush.bf16.msrb.mxu3 %v5530_v5  ;;  %3300 = vmatpush.bf16.msrb.mxu1 %v4986_v24  ;;  %v7201_v59 = vld [vmem:[%s7724_s19 + $0x78c] sm:$0xf]  ;;  %v6682_v62 = vor.u32 %v7401_v53, %v6679_v54 }
 0x127   : > { %v5879_v60 = vld [vmem:[%s7724_s19 + $0x7a8] sm:$0xf0] }
 0x128   : > { %3287 = vmatpush.bf16.msrb.mxu0 %v6518_v23  ;;  %3313 = vmatpush.bf16.msrb.mxu2 %v5242_v12  ;;  %v7265_v61 = vld [vmem:[%s7724_s19 + $0x98c] sm:$0xf]  ;;  %v5882_v5 = vor.u32 %v7201_v59, %v5879_v60  ;;  %v3072_v23 = vpop.f32.mrf.mxu3 }
 0x129   : > { %v6135_v63 = vld [vmem:[%s7724_s19 + $0x9a8] sm:$0xf0] }
 0x12a   : > { %3326 = vmatpush.bf16.msrb.mxu3 %v5498_v17  ;;  %3301 = vmatpush.bf16.msrb.mxu1 %v4954_v30  ;;  %v7329_v0 = vld [vmem:[%s7724_s19 + $0xb8c] sm:$0xf]  ;;  %v6138_v6 = vor.u32 %v7265_v61, %v6135_v63  ;;  %v8193_v17 = vld [vmem:[#allocation1 + $0x12] sm:$0xff] }
 0x12b   : > { %v6391_v1 = vld [vmem:[%s7724_s19 + $0xba8] sm:$0xf0] }
 0x12c   : > { %3288 = vmatpush.bf16.msrb.mxu0 %v6486_v26  ;;  %3314 = vmatpush.bf16.msrb.mxu2 %v5210_v32  ;;  %v7393_v2 = vld [vmem:[%s7724_s19 + $0xd8c] sm:$0xf]  ;;  %v6394_v31 = vor.u32 %v7329_v0, %v6391_v1 }
 0x12d   : > { %v6647_v3 = vld [vmem:[%s7724_s19 + $0xda8] sm:$0xf0] }
 0x12e   : > { %3327 = vmatpush.bf16.msrb.mxu3 %v5466_v39  ;;  %3302 = vmatpush.bf16.msrb.mxu1 %v4922_v51  ;;  %v7193_v7 = vld [vmem:[%s7724_s19 + $0x74c] sm:$0xf]  ;;  %v6650_v11 = vor.u32 %v7393_v2, %v6647_v3  ;;  %v3083_v39 = vpop.f32.mrf.mxu0  ;;  %v3098_v3 = vpop.f32.mrf.mxu1 }
 0x12f   : > { %v5847_v8 = vld [vmem:[%s7724_s19 + $0x768] sm:$0xf0]  ;;  %v3084_v45 = vadd.f32 %v3083_v39, %v8167_v50  ;;  %v7070_v3 = vld [vmem:[%s7724_s19 + $0x36c] sm:$0xf0] }
 0x130   : > { %3289 = vmatpush.bf16.msrb.mxu0 %v6454_v46  ;;  %3315 = vmatpush.bf16.msrb.mxu2 %v5178_v52  ;;  %v7257_v9 = vld [vmem:[%s7724_s19 + $0x94c] sm:$0xf]  ;;  %v5850_v18 = vor.u32 %v7193_v7, %v5847_v8  ;;  %v8226_v0 = vpop.f32.mrf.mxu3 }
 0x131   : > { %v6103_v24 = vld [vmem:[%s7724_s19 + $0x968] sm:$0xf0]  ;;  %v3097_v28 = vadd.f32 %v3096_v40, %v3084_v45  ;;  %v5917_v45 = vld [vmem:[%s7724_s19 + $0x7d0] sm:$0xf] }
 0x132   : > { %3328 = vmatpush.bf16.msrb.mxu3 %v5434_v55  ;;  %3347 = vmatpush.bf16.msra.mxu1 %v6170_v57  ;;  %v7321_v12 = vld [vmem:[%s7724_s19 + $0xb4c] sm:$0xf]  ;;  %v6106_v20 = vor.u32 %v7257_v9, %v6103_v24 }
 0x133   : > { %3290 = vmatmul.bf16.vlgmr.msrb.gmra.mxu0 %v8182_v10  ;;  %v6359_v13 = vld [vmem:[%s7724_s19 + $0xb68] sm:$0xf0]  ;;  %3316 = vmatmul.bf16.vlgmr.msrb.gmra.mxu2 %v8190_v16 }
 0x134   : > { %3334 = vmatpush.bf16.msra.mxu0 %v5914_v56  ;;  %3360 = vmatpush.bf16.msra.mxu2 %v6426_v58  ;;  %v7385_v14 = vld [vmem:[%s7724_s19 + $0xd4c] sm:$0xf]  ;;  %v6362_v21 = vor.u32 %v7321_v12, %v6359_v13  ;;  %v3109_v56 = vpop.f32.mrf.mxu2 }
 0x135   : > { %v6615_v15 = vld [vmem:[%s7724_s19 + $0xd68] sm:$0xf0]  ;;  %3329 = vmatmul.bf16.vlgmr.msrb.gmra.mxu3 %v8193_v17  ;;  %v8222_v61 = vadd.f32 %v3109_v56, %v3097_v28  ;;  %v7014_v28 = vld [vmem:[%s7724_s19 + $0x1ac] sm:$0xf0] }
 0x136   : > { %3373 = vmatpush.bf16.msra.mxu3 %v6682_v62  ;;  %v8196_v19 = vld [vmem:[#allocation1] sm:$0xff]  ;;  %3348 = vmatpush.bf16.msra.mxu1 %v6138_v6  ;;  %v6618_v29 = vor.u32 %v7385_v14, %v6615_v15  ;;  %v3085_v2 = vpop.f32.mrf.mxu0  ;;  %v7206_v56 = vld [vmem:[%s7724_s19 + $0x7ac] sm:$0xf0] }
 0x137   : > { %3303 = vmatmul.bf16.vlgmr.msrb.gmra.mxu1 %v8196_v19  ;;  %v7185_v25 = vld [vmem:[%s7724_s19 + $0x70c] sm:$0xf] }
 0x138   : > { %3335 = vmatpush.bf16.msra.mxu0 %v5882_v5  ;;  %3361 = vmatpush.bf16.msra.mxu2 %v6394_v31  ;;  %v5815_v26 = vld [vmem:[%s7724_s19 + $0x728] sm:$0xf0]  ;;  %v3124_v39 = vpop.f32.mrf.mxu3 }
 0x139   : > { %v7249_v27 = vld [vmem:[%s7724_s19 + $0x90c] sm:$0xf]  ;;  %v5818_v38 = vor.u32 %v7185_v25, %v5815_v26 }
 0x13a   : > { %3374 = vmatpush.bf16.msra.mxu3 %v6650_v11  ;;  %v6071_v30 = vld [vmem:[%s7724_s19 + $0x928] sm:$0xf0]  ;;  %3349 = vmatpush.bf16.msra.mxu1 %v6106_v20 }
 0x13b   : > { %v7313_v32 = vld [vmem:[%s7724_s19 + $0xb0c] sm:$0xf]  ;;  %v6074_v41 = vor.u32 %v7249_v27, %v6071_v30 }
 0x13c   : > { %v6327_v35 = vld [vmem:[%s7724_s19 + $0xb28] sm:$0xf0]  ;;  %3336 = vmatpush.bf16.msra.mxu0 %v5850_v18  ;;  %3362 = vmatpush.bf16.msra.mxu2 %v6362_v21  ;;  %v3111_v27 = vpop.f32.mrf.mxu2 }
 0x13d   : > { %v7377_v36 = vld [vmem:[%s7724_s19 + $0xd0c] sm:$0xf]  ;;  %v6330_v42 = vor.u32 %v7313_v32, %v6327_v35 }
 0x13e   : > { %v6583_v37 = vld [vmem:[%s7724_s19 + $0xd28] sm:$0xf0]  ;;  %3375 = vmatpush.bf16.msra.mxu3 %v6618_v29  ;;  %3350 = vmatpush.bf16.msra.mxu1 %v6074_v41  ;;  %v7086_v41 = vld [vmem:[%s7724_s19 + $0x3ec] sm:$0xf0] }
 0x13f   : > { %v7177_v43 = vld [vmem:[%s7724_s19 + $0x6cc] sm:$0xf]  ;;  %v6586_v22 = vor.u32 %v7377_v36, %v6583_v37  ;;  %v5149_v36 = vld [vmem:[%s7724_s19 + $0x1d0] sm:$0xf] }
 0x140   : > { %v5783_v33 = vld [vmem:[%s7724_s19 + $0x6e8] sm:$0xf0]  ;;  %3337 = vmatpush.bf16.msra.mxu0 %v5818_v38  ;;  %3363 = vmatpush.bf16.msra.mxu2 %v6330_v42  ;;  %v7022_v37 = vld [vmem:[%s7724_s19 + $0x1ec] sm:$0xf0] }
 0x141   : > { %v7241_v44 = vld [vmem:[%s7724_s19 + $0x8cc] sm:$0xf]  ;;  %v5786_v51 = vor.u32 %v7177_v43, %v5783_v33  ;;  %v5405_v38 = vld [vmem:[%s7724_s19 + $0x3d0] sm:$0xf] }
 0x142   : > { %v6039_v46 = vld [vmem:[%s7724_s19 + $0x8e8] sm:$0xf0]  ;;  %3376 = vmatpush.bf16.msra.mxu3 %v6586_v22  ;;  %v5661_v42 = vld [vmem:[%s7724_s19 + $0x5d0] sm:$0xf]  ;;  %v3135_v27 = vpop.f32.mrf.mxu0 }
 0x143   : > { %v7305_v34 = vld [vmem:[%s7724_s19 + $0xacc] sm:$0xf]  ;;  %v6042_v50 = vor.u32 %v7241_v44, %v6039_v46  ;;  %v7150_v43 = vld [vmem:[%s7724_s19 + $0x5ec] sm:$0xf0] }
 0x144   : > { %v6295_v47 = vld [vmem:[%s7724_s19 + $0xae8] sm:$0xf0]  ;;  %3338 = vmatpush.bf16.msra.mxu0 %v5786_v51  ;;  %v7214_v22 = vld [vmem:[%s7724_s19 + $0x7ec] sm:$0xf0] }
 0x145   : > { %v7369_v48 = vld [vmem:[%s7724_s19 + $0xccc] sm:$0xf]  ;;  %v6298_v52 = vor.u32 %v7305_v34, %v6295_v47  ;;  %3351 = vmatpush.bf16.msra.mxu1 %v6042_v50  ;;  %v5150_v34 = vor.u32 %v7022_v37, %v5149_v36  ;;  %v5406_v47 = vor.u32 %v7086_v41, %v5405_v38  ;;  %v5373_v51 = vld [vmem:[%s7724_s19 + $0x390] sm:$0xf]  ;;  %v5918_v50 = vor.u32 %v7214_v22, %v5917_v45  ;;  %v3148_v38 = vpop.f32.mrf.mxu1 }
 0x146   : > { %v6551_v49 = vld [vmem:[%s7724_s19 + $0xce8] sm:$0xf0]  ;;  %v5277_v36 = vld [vmem:[%s7724_s19 + $0x2d0] sm:$0xf]  ;;  %v3136_v37 = vadd.f32 %v3135_v27, %v8226_v0 }
 0x147   : > { %v7169_v53 = vld [vmem:[%s7724_s19 + $0x68c] sm:$0xf]  ;;  %v6554_v57 = vor.u32 %v7369_v48, %v6551_v49  ;;  %3364 = vmatpush.bf16.msra.mxu2 %v6298_v52  ;;  %v5662_v48 = vor.u32 %v7150_v43, %v5661_v42  ;;  %v5117_v49 = vld [vmem:[%s7724_s19 + $0x190] sm:$0xf] }
 0x148   : > { %v5751_v54 = vld [vmem:[%s7724_s19 + $0x6a8] sm:$0xf0]  ;;  %v7078_v52 = vld [vmem:[%s7724_s19 + $0x3ac] sm:$0xf0] }
 0x149   : > { %v7233_v55 = vld [vmem:[%s7724_s19 + $0x88c] sm:$0xf]  ;;  %v5754_v1 = vor.u32 %v7169_v53, %v5751_v54  ;;  %3377 = vmatpush.bf16.msra.mxu3 %v6554_v57  ;;  %v5629_v53 = vld [vmem:[%s7724_s19 + $0x590] sm:$0xf]  ;;  %v5118_v57 = vor.u32 %v7014_v28, %v5117_v49 }
 0x14a   : > { %v6007_v58 = vld [vmem:[%s7724_s19 + $0x8a8] sm:$0xf0]  ;;  %v7142_v54 = vld [vmem:[%s7724_s19 + $0x5ac] sm:$0xf0] }
 0x14b   : > { %v7297_v59 = vld [vmem:[%s7724_s19 + $0xa8c] sm:$0xf]  ;;  %v6010_v4 = vor.u32 %v7233_v55, %v6007_v58  ;;  %3339 = vmatpush.bf16.msra.mxu0 %v5754_v1  ;;  %v5885_v55 = vld [vmem:[%s7724_s19 + $0x790] sm:$0xf]  ;;  %v5374_v58 = vor.u32 %v7078_v52, %v5373_v51  ;;  %v8263_v1 = vld [vmem:[#allocation1 + $0x2d] sm:$0xff] }
 0x14c   : > { %v6263_v60 = vld [vmem:[%s7724_s19 + $0xaa8] sm:$0xf0]  ;;  %v5886_v2 = vor.u32 %v7206_v56, %v5885_v55  ;;  %v5533_v41 = vld [vmem:[%s7724_s19 + $0x4d0] sm:$0xf] }
 0x14d   : > { %v7361_v62 = vld [vmem:[%s7724_s19 + $0xc8c] sm:$0xf]  ;;  %v6266_v5 = vor.u32 %v7297_v59, %v6263_v60  ;;  %3352 = vmatpush.bf16.msra.mxu1 %v6010_v4  ;;  %v5630_v59 = vor.u32 %v7142_v54, %v5629_v53  ;;  %v5085_v60 = vld [vmem:[%s7724_s19 + $0x150] sm:$0xf]  ;;  %v3174_v53 = vpop.f32.mrf.mxu3 }
 0x14e   : > { %v6519_v63 = vld [vmem:[%s7724_s19 + $0xca8] sm:$0xf0]  ;;  %v5597_v4 = vld [vmem:[%s7724_s19 + $0x550] sm:$0xf] }
 0x14f   : > { %v7161_v6 = vld [vmem:[%s7724_s19 + $0x64c] sm:$0xf]  ;;  %v6522_v8 = vor.u32 %v7361_v62, %v6519_v63  ;;  %3365 = vmatpush.bf16.msra.mxu2 %v6266_v5  ;;  %v7006_v62 = vld [vmem:[%s7724_s19 + $0x16c] sm:$0xf0] }
 0x150   : > { %v5719_v31 = vld [vmem:[%s7724_s19 + $0x668] sm:$0xf0]  ;;  %v5341_v63 = vld [vmem:[%s7724_s19 + $0x350] sm:$0xf] }
 0x151   : > { %v7225_v7 = vld [vmem:[%s7724_s19 + $0x84c] sm:$0xf]  ;;  %v5722_v13 = vor.u32 %v7161_v6, %v5719_v31  ;;  %3378 = vmatpush.bf16.msra.mxu3 %v6522_v8  ;;  %v7134_v5 = vld [vmem:[%s7724_s19 + $0x56c] sm:$0xf0]  ;;  %v8269_v6 = vld [vmem:[#allocation1 + $0x1b] sm:$0xff] }
 0x152   : > { %v5975_v9 = vld [vmem:[%s7724_s19 + $0x868] sm:$0xf0]  ;;  %v5853_v31 = vld [vmem:[%s7724_s19 + $0x750] sm:$0xf] }
 0x153   : > { %v7289_v23 = vld [vmem:[%s7724_s19 + $0xa4c] sm:$0xf]  ;;  %v5978_v18 = vor.u32 %v7225_v7, %v5975_v9  ;;  %3340 = vmatpush.bf16.msra.mxu0 %v5722_v13  ;;  %v7198_v7 = vld [vmem:[%s7724_s19 + $0x76c] sm:$0xf0]  ;;  %v5086_v9 = vor.u32 %v7006_v62, %v5085_v60 }
 0x154   : > { %v6231_v11 = vld [vmem:[%s7724_s19 + $0xa68] sm:$0xf0]  ;;  %v5309_v13 = vld [vmem:[%s7724_s19 + $0x310] sm:$0xf] }
 0x155   : > { %v7353_v24 = vld [vmem:[%s7724_s19 + $0xc4c] sm:$0xf]  ;;  %v6234_v20 = vor.u32 %v7289_v23, %v6231_v11  ;;  %3353 = vmatpush.bf16.msra.mxu1 %v5978_v18  ;;  %v5342_v23 = vor.u32 %v7070_v3, %v5341_v63  ;;  %v5598_v11 = vor.u32 %v7134_v5, %v5597_v4  ;;  %v5565_v18 = vld [vmem:[%s7724_s19 + $0x510] sm:$0xf]  ;;  %v3150_v3 = vpop.f32.mrf.mxu1 }
 0x156   : > { %v6487_v12 = vld [vmem:[%s7724_s19 + $0xc68] sm:$0xf0]  ;;  %v7118_v42 = vld [vmem:[%s7724_s19 + $0x4ec] sm:$0xf0]  ;;  %v7002_v3 = vld [vmem:[%s7724_s19 + $0x154] sm:$0xf] }
 0x157   : > { %v7153_v14 = vld [vmem:[%s7724_s19 + $0x60c] sm:$0xf]  ;;  %v6490_v29 = vor.u32 %v7353_v24, %v6487_v12  ;;  %3366 = vmatpush.bf16.msra.mxu2 %v6234_v20  ;;  %v5053_v24 = vld [vmem:[%s7724_s19 + $0x110] sm:$0xf]  ;;  %v5534_v22 = vor.u32 %v7118_v42, %v5533_v41 }
 0x158   : > { %v5687_v15 = vld [vmem:[%s7724_s19 + $0x628] sm:$0xf0]  ;;  %v6998_v12 = vld [vmem:[%s7724_s19 + $0x12c] sm:$0xf0] }
 0x159   : > { %v7217_v21 = vld [vmem:[%s7724_s19 + $0x80c] sm:$0xf]  ;;  %v5690_v40 = vor.u32 %v7153_v14, %v5687_v15  ;;  %3379 = vmatpush.bf16.msra.mxu3 %v6490_v29  ;;  %v5854_v14 = vor.u32 %v7198_v7, %v5853_v31  ;;  %v7062_v15 = vld [vmem:[%s7724_s19 + $0x32c] sm:$0xf0] }
 0x15a   : > { %v5943_v25 = vld [vmem:[%s7724_s19 + $0x828] sm:$0xf0]  ;;  %v7126_v20 = vld [vmem:[%s7724_s19 + $0x52c] sm:$0xf0]  ;;  %v5310_v29 = vor.u32 %v7062_v15, %v5309_v13 }
 0x15b   : > { %v7281_v26 = vld [vmem:[%s7724_s19 + $0xa0c] sm:$0xf]  ;;  %v5946_v33 = vor.u32 %v7217_v21, %v5943_v25  ;;  %3341 = vmatpush.bf16.msra.mxu0 %v5690_v40  ;;  %v5821_v21 = vld [vmem:[%s7724_s19 + $0x710] sm:$0xf] }
 0x15c   : > { %v6199_v30 = vld [vmem:[%s7724_s19 + $0xa28] sm:$0xf0]  ;;  %v7190_v25 = vld [vmem:[%s7724_s19 + $0x72c] sm:$0xf0] }
 0x15d   : > { %v7345_v32 = vld [vmem:[%s7724_s19 + $0xc0c] sm:$0xf]  ;;  %v6202_v44 = vor.u32 %v7281_v26, %v6199_v30  ;;  %3354 = vmatpush.bf16.msra.mxu1 %v5946_v33  ;;  %v5054_v26 = vor.u32 %v6998_v12, %v5053_v24  ;;  %v5566_v30 = vor.u32 %v7126_v20, %v5565_v18  ;;  %v5822_v39 = vor.u32 %v7190_v25, %v5821_v21  ;;  %v7054_v40 = vld [vmem:[%s7724_s19 + $0x2ec] sm:$0xf0] }
 0x15e   : > { %v6455_v35 = vld [vmem:[%s7724_s19 + $0xc28] sm:$0xf0]  ;;  %3342 = vmatmul.bf16.vlgmr.msra.gmra.mxu0 %v8269_v6  ;;  %v5789_v43 = vld [vmem:[%s7724_s19 + $0x6d0] sm:$0xf]  ;;  %v5278_v0 = vor.u32 %v7054_v40, %v5277_v36 }
 0x15f   : > { %v6458_v46 = vor.u32 %v7345_v32, %v6455_v35  ;;  %3367 = vmatpush.bf16.msra.mxu2 %v6202_v44  ;;  %3386 = vmatpush.bf16.msrb.mxu0 %v5150_v34  ;;  %v8275_v8 = vld [vmem:[#allocation1 + $0x24] sm:$0xff]  ;;  %v3149_v44 = vadd.f32 %v3148_v38, %v3136_v37 }
 0x160   : > { %3355 = vmatmul.bf16.vlgmr.msra.gmra.mxu1 %v8275_v8  ;;  %v5021_v32 = vld [vmem:[%s7724_s19 + $0xd0] sm:$0xf] }
 0x161   : > { %3380 = vmatpush.bf16.msra.mxu3 %v6458_v46  ;;  %3399 = vmatpush.bf16.msrb.mxu1 %v5406_v47  ;;  %v6990_v35 = vld [vmem:[%s7724_s19 + $0xec] sm:$0xf0] }
 0x162   : > { %3368 = vmatmul.bf16.vlgmr.msra.gmra.mxu2 %v8263_v1  ;;  %v7182_v33 = vld [vmem:[%s7724_s19 + $0x6ec] sm:$0xf0]  ;;  %v5022_v45 = vor.u32 %v6990_v35, %v5021_v32 }
 0x163   : > { %3412 = vmatpush.bf16.msrb.mxu2 %v5662_v48  ;;  %3387 = vmatpush.bf16.msrb.mxu0 %v5118_v57  ;;  %v4989_v46 = vld [vmem:[%s7724_s19 + $0x90] sm:$0xf]  ;;  %v3161_v48 = vpop.f32.mrf.mxu2  ;;  %v5790_v49 = vor.u32 %v7182_v33, %v5789_v43  ;;  %v7018_v43 = vld [vmem:[%s7724_s19 + $0x1d4] sm:$0xf] }
 0x164   : > { %3381 = vmatmul.bf16.vlgmr.msra.gmra.mxu3 %v8182_v10  ;;  %v6982_v34 = vld [vmem:[%s7724_s19 + $0xac] sm:$0xf0]  ;;  %v3162_v52 = vadd.f32 %v3161_v48, %v3149_v44  ;;  %v5151_v33 = vld [vmem:[%s7724_s19 + $0x1f0] sm:$0xf0] }
 0x165   : > { %3425 = vmatpush.bf16.msrb.mxu3 %v5918_v50  ;;  %3400 = vmatpush.bf16.msrb.mxu1 %v5374_v58  ;;  %v5245_v47 = vld [vmem:[%s7724_s19 + $0x290] sm:$0xf]  ;;  %v4990_v56 = vor.u32 %v6982_v34, %v4989_v46  ;;  %v3137_v58 = vpop.f32.mrf.mxu0  ;;  %v5154_v48 = vor.u32 %v7018_v43, %v5151_v33 }
 0x166   : > { %v7046_v28 = vld [vmem:[%s7724_s19 + $0x2ac] sm:$0xf0]  ;;  %v8303_v57 = vadd.f32 %v3174_v53, %v3162_v52  ;;  %v5119_v52 = vld [vmem:[%s7724_s19 + $0x1b0] sm:$0xf0] }
 0x167   : > { %3413 = vmatpush.bf16.msrb.mxu2 %v5630_v59  ;;  %3388 = vmatpush.bf16.msrb.mxu0 %v5086_v9  ;;  %v5501_v51 = vld [vmem:[%s7724_s19 + $0x490] sm:$0xf]  ;;  %v5246_v59 = vor.u32 %v7046_v28, %v5245_v47 }
 0x168   : > { %v7110_v50 = vld [vmem:[%s7724_s19 + $0x4ac] sm:$0xf0] }
 0x169   : > { %3426 = vmatpush.bf16.msrb.mxu3 %v5886_v2  ;;  %3401 = vmatpush.bf16.msrb.mxu1 %v5342_v23  ;;  %v5757_v54 = vld [vmem:[%s7724_s19 + $0x690] sm:$0xf]  ;;  %v5502_v60 = vor.u32 %v7110_v50, %v5501_v51  ;;  %v7010_v50 = vld [vmem:[%s7724_s19 + $0x194] sm:$0xf] }
 0x16a   : > { %v7174_v55 = vld [vmem:[%s7724_s19 + $0x6ac] sm:$0xf0] }
 0x16b   : > { %3414 = vmatpush.bf16.msrb.mxu2 %v5598_v11  ;;  %3389 = vmatpush.bf16.msrb.mxu0 %v5054_v26  ;;  %v4957_v62 = vld [vmem:[%s7724_s19 + $0x50] sm:$0xf]  ;;  %v5758_v4 = vor.u32 %v7174_v55, %v5757_v54  ;;  %v3163_v21 = vpop.f32.mrf.mxu2 }
 0x16c   : > { %v6974_v63 = vld [vmem:[%s7724_s19 + $0x6c] sm:$0xf0]  ;;  %v3200_v21 = vpop.f32.mrf.mxu1 }
 0x16d   : > { %3427 = vmatpush.bf16.msrb.mxu3 %v5854_v14  ;;  %3402 = vmatpush.bf16.msrb.mxu1 %v5310_v29  ;;  %v5213_v2 = vld [vmem:[%s7724_s19 + $0x250] sm:$0xf]  ;;  %v4958_v11 = vor.u32 %v6974_v63, %v4957_v62 }
 0x16e   : > { %v7038_v5 = vld [vmem:[%s7724_s19 + $0x26c] sm:$0xf0] }
 0x16f   : > { %3415 = vmatpush.bf16.msrb.mxu2 %v5566_v30  ;;  %3390 = vmatpush.bf16.msrb.mxu0 %v5022_v45  ;;  %v5469_v31 = vld [vmem:[%s7724_s19 + $0x450] sm:$0xf]  ;;  %v5214_v13 = vor.u32 %v7038_v5, %v5213_v2  ;;  %v3176_v30 = vpop.f32.mrf.mxu3 }
 0x170   : > { %v7102_v7 = vld [vmem:[%s7724_s19 + $0x46c] sm:$0xf0] }
 0x171   : > { %3428 = vmatpush.bf16.msrb.mxu3 %v5822_v39  ;;  %3403 = vmatpush.bf16.msrb.mxu1 %v5278_v0  ;;  %v5725_v9 = vld [vmem:[%s7724_s19 + $0x650] sm:$0xf]  ;;  %v5470_v14 = vor.u32 %v7102_v7, %v5469_v31 }
 0x172   : > { %v7166_v23 = vld [vmem:[%s7724_s19 + $0x66c] sm:$0xf0] }
 0x173   : > { %3416 = vmatpush.bf16.msrb.mxu2 %v5534_v22  ;;  %3391 = vmatpush.bf16.msrb.mxu0 %v4990_v56  ;;  %v4925_v24 = vld [vmem:[%s7724_s19 + $0x10] sm:$0xf]  ;;  %v5726_v25 = vor.u32 %v7166_v23, %v5725_v9 }
 0x174   : > { %v6966_v12 = vld [vmem:[%s7724_s19 + $0x2c] sm:$0xf0] }
 0x175   : > { %3429 = vmatpush.bf16.msrb.mxu3 %v5790_v49  ;;  %3404 = vmatpush.bf16.msrb.mxu1 %v5246_v59  ;;  %v5181_v15 = vld [vmem:[%s7724_s19 + $0x210] sm:$0xf]  ;;  %v4926_v37 = vor.u32 %v6966_v12, %v4925_v24 }
 0x176   : > { %v7030_v18 = vld [vmem:[%s7724_s19 + $0x22c] sm:$0xf0] }
 0x177   : > { %3417 = vmatpush.bf16.msrb.mxu2 %v5502_v60  ;;  %v5437_v20 = vld [vmem:[%s7724_s19 + $0x410] sm:$0xf]  ;;  %3392 = vmatpush.bf16.msrb.mxu0 %v4958_v11  ;;  %v5182_v41 = vor.u32 %v7030_v18, %v5181_v15  ;;  %v5122_v60 = vor.u32 %v7010_v50, %v5119_v52  ;;  %v5055_v15 = vld [vmem:[%s7724_s19 + $0x130] sm:$0xf0] }
 0x178   : > { %v7094_v26 = vld [vmem:[%s7724_s19 + $0x42c] sm:$0xf0] }
 0x179   : > { %3430 = vmatpush.bf16.msrb.mxu3 %v5758_v4  ;;  %v5693_v27 = vld [vmem:[%s7724_s19 + $0x610] sm:$0xf]  ;;  %3405 = vmatpush.bf16.msrb.mxu1 %v5214_v13  ;;  %v5438_v42 = vor.u32 %v7094_v26, %v5437_v20  ;;  %v5087_v4 = vld [vmem:[%s7724_s19 + $0x170] sm:$0xf0]  ;;  %v3187_v13 = vpop.f32.mrf.mxu0 }
 0x17a   : > { %v7158_v29 = vld [vmem:[%s7724_s19 + $0x62c] sm:$0xf0]  ;;  %v5090_v11 = vor.u32 %v7002_v3, %v5087_v4  ;;  %v3188_v18 = vadd.f32 %v3187_v13, %v8303_v57  ;;  %v6970_v3 = vld [vmem:[%s7724_s19 + $0x54] sm:$0xf] }
 0x17b   : > { %v6173_v32 = vld [vmem:[%s7724_s19 + $0x9d0] sm:$0xf]  ;;  %3418 = vmatpush.bf16.msrb.mxu2 %v5470_v14  ;;  %v5694_v44 = vor.u32 %v7158_v29, %v5693_v27  ;;  %3393 = vmatpush.bf16.msrb.mxu0 %v4926_v37  ;;  %v6994_v14 = vld [vmem:[%s7724_s19 + $0x114] sm:$0xf] }
 0x17c   : > { %v7278_v35 = vld [vmem:[%s7724_s19 + $0x9ec] sm:$0xf0]  ;;  %v4959_v4 = vld [vmem:[%s7724_s19 + $0x70] sm:$0xf0] }
 0x17d   : > { %v6429_v36 = vld [vmem:[%s7724_s19 + $0xbd0] sm:$0xf]  ;;  %3431 = vmatpush.bf16.msrb.mxu3 %v5726_v25  ;;  %v6174_v45 = vor.u32 %v7278_v35, %v6173_v32  ;;  %3406 = vmatpush.bf16.msrb.mxu1 %v5182_v41  ;;  %v5058_v32 = vor.u32 %v6994_v14, %v5055_v15  ;;  %v3201_v35 = vadd.f32 %v3200_v21, %v3188_v18  ;;  %v6962_v13 = vld [vmem:[%s7724_s19 + $0x14] sm:$0xf] }
 0x17e   : > { %v7342_v38 = vld [vmem:[%s7724_s19 + $0xbec] sm:$0xf0]  ;;  %3394 = vmatmul.bf16.vlgmr.msrb.gmra.mxu0 %v8196_v19  ;;  %v4927_v14 = vld [vmem:[%s7724_s19 + $0x30] sm:$0xf0] }
 0x17f   : > { %v6685_v39 = vld [vmem:[%s7724_s19 + $0xdd0] sm:$0xf]  ;;  %v6430_v0 = vor.u32 %v7342_v38, %v6429_v36  ;;  %3419 = vmatpush.bf16.msrb.mxu2 %v5438_v42  ;;  %3438 = vmatpush.bf16.msra.mxu0 %v6174_v45  ;;  %v6986_v38 = vld [vmem:[%s7724_s19 + $0xd4] sm:$0xf] }
 0x180   : > { %v7406_v40 = vld [vmem:[%s7724_s19 + $0xdec] sm:$0xf0]  ;;  %3407 = vmatmul.bf16.vlgmr.msrb.gmra.mxu1 %v8190_v16  ;;  %v7082_v18 = vld [vmem:[%s7724_s19 + $0x3d4] sm:$0xf] }
 0x181   : > { %v6686_v22 = vor.u32 %v7406_v40, %v6685_v39  ;;  %v6141_v46 = vld [vmem:[%s7724_s19 + $0x990] sm:$0xf]  ;;  %3432 = vmatpush.bf16.msrb.mxu3 %v5694_v44  ;;  %3451 = vmatpush.bf16.msra.mxu1 %v6430_v0  ;;  %v5023_v39 = vld [vmem:[%s7724_s19 + $0xf0] sm:$0xf0]  ;;  %v3758_v40 = vrot.slane %v3201_v35, 6  ;;  %v3189_v50 = vpop.f32.mrf.mxu0 }
 0x182   : > { %v7270_v34 = vld [vmem:[%s7724_s19 + $0x9ac] sm:$0xf0]  ;;  %3420 = vmatmul.bf16.vlgmr.msrb.gmra.mxu2 %v8193_v17  ;;  %v7146_v21 = vld [vmem:[%s7724_s19 + $0x5d4] sm:$0xf] }
 0x183   : > { %v6397_v47 = vld [vmem:[%s7724_s19 + $0xb90] sm:$0xf]  ;;  %v6142_v53 = vor.u32 %v7270_v34, %v6141_v46  ;;  %3464 = vmatpush.bf16.msra.mxu2 %v6686_v22  ;;  %v8371_v0 = vsel %vm3764_vm0, %v8222_v61, %v3758_v40  ;;  %v5026_v22 = vor.u32 %v6986_v38, %v5023_v39  ;;  %v7130_v50 = vld [vmem:[%s7724_s19 + $0x554] sm:$0xf] }
 0x184   : > { %v7334_v49 = vld [vmem:[%s7724_s19 + $0xbac] sm:$0xf0]  ;;  %3433 = vmatmul.bf16.vlgmr.msrb.gmra.mxu3 %v8269_v6 }
 0x185   : > { %v6653_v28 = vld [vmem:[%s7724_s19 + $0xd90] sm:$0xf]  ;;  %v6398_v54 = vor.u32 %v7334_v49, %v6397_v47  ;;  %3477 = vmatpush.bf16.msra.mxu3 %v5154_v48  ;;  %3439 = vmatpush.bf16.msra.mxu0 %v6142_v53  ;;  %v3213_v48 = vpop.f32.mrf.mxu2  ;;  %v6978_v49 = vld [vmem:[%s7724_s19 + $0x94] sm:$0xf]  ;;  %v3202_v53 = vpop.f32.mrf.mxu1 }
 0x186   : > { %v7398_v51 = vld [vmem:[%s7724_s19 + $0xdac] sm:$0xf0]  ;;  %v5599_v53 = vld [vmem:[%s7724_s19 + $0x570] sm:$0xf0] }
 0x187   : > { %v6654_v55 = vor.u32 %v7398_v51, %v6653_v28  ;;  %v6109_v56 = vld [vmem:[%s7724_s19 + $0x950] sm:$0xf]  ;;  %3452 = vmatpush.bf16.msra.mxu1 %v6398_v54  ;;  %v4991_v28 = vld [vmem:[%s7724_s19 + $0xb0] sm:$0xf0]  ;;  %v3226_v51 = vpop.f32.mrf.mxu3 }
 0x188   : > { %v7262_v58 = vld [vmem:[%s7724_s19 + $0x96c] sm:$0xf0]  ;;  %v8378_v61 = vadd.f32 %v3226_v51, %v3213_v48  ;;  %v5343_v51 = vld [vmem:[%s7724_s19 + $0x370] sm:$0xf0] }
 0x189   : > { %v6365_v59 = vld [vmem:[%s7724_s19 + $0xb50] sm:$0xf]  ;;  %v6110_v5 = vor.u32 %v7262_v58, %v6109_v56  ;;  %3465 = vmatpush.bf16.msra.mxu2 %v6654_v55  ;;  %3478 = vmatpush.bf16.msra.mxu3 %v5122_v60  ;;  %v4994_v60 = vor.u32 %v6978_v49, %v4991_v28  ;;  %v7066_v28 = vld [vmem:[%s7724_s19 + $0x354] sm:$0xf] }
 0x18a   : > { %v7326_v62 = vld [vmem:[%s7724_s19 + $0xb6c] sm:$0xf0] }
 0x18b   : > { %v6621_v63 = vld [vmem:[%s7724_s19 + $0xd50] sm:$0xf]  ;;  %v6366_v31 = vor.u32 %v7326_v62, %v6365_v59  ;;  %3440 = vmatpush.bf16.msra.mxu0 %v6110_v5 }
 0x18c   : > { %v7390_v2 = vld [vmem:[%s7724_s19 + $0xd6c] sm:$0xf0] }
 0x18d   : > { %v6622_v7 = vor.u32 %v7390_v2, %v6621_v63  ;;  %v6077_v17 = vld [vmem:[%s7724_s19 + $0x910] sm:$0xf]  ;;  %3453 = vmatpush.bf16.msra.mxu1 %v6366_v31  ;;  %3479 = vmatpush.bf16.msra.mxu3 %v5090_v11  ;;  %v3215_v15 = vpop.f32.mrf.mxu2 }
 0x18e   : > { %v7254_v9 = vld [vmem:[%s7724_s19 + $0x92c] sm:$0xf0]  ;;  %v7178_v15 = vld [vmem:[%s7724_s19 + $0x6d4] sm:$0xf] }
 0x18f   : > { %v6333_v23 = vld [vmem:[%s7724_s19 + $0xb10] sm:$0xf]  ;;  %v6078_v20 = vor.u32 %v7254_v9, %v6077_v17  ;;  %3466 = vmatpush.bf16.msra.mxu2 %v6622_v7 }
 0x190   : > { %v7318_v24 = vld [vmem:[%s7724_s19 + $0xb2c] sm:$0xf0] }
 0x191   : > { %v6589_v16 = vld [vmem:[%s7724_s19 + $0xd10] sm:$0xf]  ;;  %v6334_v25 = vor.u32 %v7318_v24, %v6333_v23  ;;  %3441 = vmatpush.bf16.msra.mxu0 %v6078_v20  ;;  %3480 = vmatpush.bf16.msra.mxu3 %v5058_v32  ;;  %v5407_v20 = vld [vmem:[%s7724_s19 + $0x3f0] sm:$0xf0] }
 0x192   : > { %v7382_v12 = vld [vmem:[%s7724_s19 + $0xd2c] sm:$0xf0]  ;;  %v5410_v38 = vor.u32 %v7082_v18, %v5407_v20  ;;  %v5791_v18 = vld [vmem:[%s7724_s19 + $0x6f0] sm:$0xf0] }
 0x193   : > { %v6590_v26 = vor.u32 %v7382_v12, %v6589_v16  ;;  %v6045_v27 = vld [vmem:[%s7724_s19 + $0x8d0] sm:$0xf]  ;;  %3454 = vmatpush.bf16.msra.mxu1 %v6334_v25  ;;  %v4962_v16 = vor.u32 %v6970_v3, %v4959_v4  ;;  %v3228_v25 = vpop.f32.mrf.mxu3  ;;  %v5567_v4 = vld [vmem:[%s7724_s19 + $0x530] sm:$0xf0] }
 0x194   : > { %v7246_v29 = vld [vmem:[%s7724_s19 + $0x8ec] sm:$0xf0]  ;;  %v7242_v20 = vld [vmem:[%s7724_s19 + $0x8d4] sm:$0xf] }
 0x195   : > { %v6301_v30 = vld [vmem:[%s7724_s19 + $0xad0] sm:$0xf]  ;;  %v6046_v41 = vor.u32 %v7246_v29, %v6045_v27  ;;  %3467 = vmatpush.bf16.msra.mxu2 %v6590_v26  ;;  %3481 = vmatpush.bf16.msra.mxu3 %v5026_v22  ;;  %v5663_v27 = vld [vmem:[%s7724_s19 + $0x5f0] sm:$0xf0] }
 0x196   : > { %v7310_v36 = vld [vmem:[%s7724_s19 + $0xaec] sm:$0xf0]  ;;  %v7210_v29 = vld [vmem:[%s7724_s19 + $0x7d4] sm:$0xf]  ;;  %v5666_v39 = vor.u32 %v7146_v21, %v5663_v27  ;;  %v5794_v27 = vor.u32 %v7178_v15, %v5791_v18 }
 0x197   : > { %v6557_v37 = vld [vmem:[%s7724_s19 + $0xcd0] sm:$0xf]  ;;  %v6302_v42 = vor.u32 %v7310_v36, %v6301_v30  ;;  %3442 = vmatpush.bf16.msra.mxu0 %v6046_v41  ;;  %v5919_v30 = vld [vmem:[%s7724_s19 + $0x7f0] sm:$0xf0] }
 0x198   : > { %v7374_v57 = vld [vmem:[%s7724_s19 + $0xcec] sm:$0xf0]  ;;  %v7274_v36 = vld [vmem:[%s7724_s19 + $0x9d4] sm:$0xf]  ;;  %v5922_v40 = vor.u32 %v7210_v29, %v5919_v30 }
 0x199   : > { %v6558_v43 = vor.u32 %v7374_v57, %v6557_v37  ;;  %v6013_v33 = vld [vmem:[%s7724_s19 + $0x890] sm:$0xf]  ;;  %3455 = vmatpush.bf16.msra.mxu1 %v6302_v42  ;;  %3482 = vmatpush.bf16.msra.mxu3 %v4994_v60  ;;  %v6175_v37 = vld [vmem:[%s7724_s19 + $0x9f0] sm:$0xf0]  ;;  %v4930_v57 = vor.u32 %v6962_v13, %v4927_v14 }
 0x19a   : > { %v7238_v44 = vld [vmem:[%s7724_s19 + $0x8ac] sm:$0xf0]  ;;  %v7074_v41 = vld [vmem:[%s7724_s19 + $0x394] sm:$0xf] }
 0x19b   : > { %v6269_v45 = vld [vmem:[%s7724_s19 + $0xa90] sm:$0xf]  ;;  %v6014_v52 = vor.u32 %v7238_v44, %v6013_v33  ;;  %3468 = vmatpush.bf16.msra.mxu2 %v6558_v43  ;;  %v5375_v42 = vld [vmem:[%s7724_s19 + $0x3b0] sm:$0xf0]  ;;  %v6178_v33 = vor.u32 %v7274_v36, %v6175_v37 }
 0x19c   : > { %v7302_v46 = vld [vmem:[%s7724_s19 + $0xaac] sm:$0xf0]  ;;  %v7138_v43 = vld [vmem:[%s7724_s19 + $0x594] sm:$0xf] }
 0x19d   : > { %v6525_v34 = vld [vmem:[%s7724_s19 + $0xc90] sm:$0xf]  ;;  %v6270_v54 = vor.u32 %v7302_v46, %v6269_v45  ;;  %3443 = vmatpush.bf16.msra.mxu0 %v6014_v52  ;;  %3483 = vmatpush.bf16.msra.mxu3 %v4962_v16  ;;  %v5631_v44 = vld [vmem:[%s7724_s19 + $0x5b0] sm:$0xf0] }
 0x19e   : > { %v7366_v47 = vld [vmem:[%s7724_s19 + $0xcac] sm:$0xf0]  ;;  %v7202_v45 = vld [vmem:[%s7724_s19 + $0x794] sm:$0xf]  ;;  %v5634_v48 = vor.u32 %v7138_v43, %v5631_v44 }
 0x19f   : > { %v6526_v55 = vor.u32 %v7366_v47, %v6525_v34  ;;  %v5981_v56 = vld [vmem:[%s7724_s19 + $0x850] sm:$0xf]  ;;  %3456 = vmatpush.bf16.msra.mxu1 %v6270_v54  ;;  %v5887_v22 = vld [vmem:[%s7724_s19 + $0x7b0] sm:$0xf0]  ;;  %v5378_v47 = vor.u32 %v7074_v41, %v5375_v42 }
 0x1a0   : > { %v7230_v58 = vld [vmem:[%s7724_s19 + $0x86c] sm:$0xf0]  ;;  %v7266_v46 = vld [vmem:[%s7724_s19 + $0x994] sm:$0xf]  ;;  %v5890_v49 = vor.u32 %v7202_v45, %v5887_v22 }
 0x1a1   : > { %v6237_v59 = vld [vmem:[%s7724_s19 + $0xa50] sm:$0xf]  ;;  %v5982_v5 = vor.u32 %v7230_v58, %v5981_v56  ;;  %3469 = vmatpush.bf16.msra.mxu2 %v6526_v55  ;;  %v6143_v34 = vld [vmem:[%s7724_s19 + $0x9b0] sm:$0xf0]  ;;  %3484 = vmatpush.bf16.msra.mxu3 %v4930_v57 }
 0x1a2   : > { %v7294_v62 = vld [vmem:[%s7724_s19 + $0xa6c] sm:$0xf0]  ;;  %v6146_v52 = vor.u32 %v7266_v46, %v6143_v34  ;;  %v7194_v54 = vld [vmem:[%s7724_s19 + $0x754] sm:$0xf] }
 0x1a3   : > { %v6493_v63 = vld [vmem:[%s7724_s19 + $0xc50] sm:$0xf]  ;;  %v6238_v17 = vor.u32 %v7294_v62, %v6237_v59  ;;  %3444 = vmatpush.bf16.msra.mxu0 %v5982_v5  ;;  %v5855_v55 = vld [vmem:[%s7724_s19 + $0x770] sm:$0xf0]  ;;  %v5346_v59 = vor.u32 %v7066_v28, %v5343_v51 }
 0x1a4   : > { %v7358_v2 = vld [vmem:[%s7724_s19 + $0xc6c] sm:$0xf0]  ;;  %v7258_v56 = vld [vmem:[%s7724_s19 + $0x954] sm:$0xf]  ;;  %3485 = vmatmul.bf16.vlgmr.msra.gmra.mxu3 %v8196_v19  ;;  %v5858_v60 = vor.u32 %v7194_v54, %v5855_v55 }
 0x1a5   : > { %v5949_v31 = vld [vmem:[%s7724_s19 + $0x810] sm:$0xf]  ;;  %v6494_v9 = vor.u32 %v7358_v2, %v6493_v63  ;;  %3457 = vmatpush.bf16.msra.mxu1 %v6238_v17  ;;  %3529 = vmatpush.bf16.msrb.mxu3 %v6178_v33  ;;  %v6111_v58 = vld [vmem:[%s7724_s19 + $0x970] sm:$0xf0]  ;;  %v8432_v17 = vpop.f32.mrf.mxu0 }
 0x1a6   : > { %v7222_v7 = vld [vmem:[%s7724_s19 + $0x82c] sm:$0xf0]  ;;  %v7058_v62 = vld [vmem:[%s7724_s19 + $0x314] sm:$0xf]  ;;  %v6114_v3 = vor.u32 %v7258_v56, %v6111_v58 }
 0x1a7   : > { %v6205_v23 = vld [vmem:[%s7724_s19 + $0xa10] sm:$0xf]  ;;  %v5950_v26 = vor.u32 %v7222_v7, %v5949_v31  ;;  %3470 = vmatpush.bf16.msra.mxu2 %v6494_v9  ;;  %v5311_v63 = vld [vmem:[%s7724_s19 + $0x330] sm:$0xf0] }
 0x1a8   : > { %v7286_v11 = vld [vmem:[%s7724_s19 + $0xa2c] sm:$0xf0]  ;;  %v7122_v2 = vld [vmem:[%s7724_s19 + $0x514] sm:$0xf]  ;;  %v5314_v19 = vor.u32 %v7058_v62, %v5311_v63 }
 0x1a9   : > { %v6461_v24 = vld [vmem:[%s7724_s19 + $0xc10] sm:$0xf]  ;;  %v6206_v32 = vor.u32 %v7286_v11, %v6205_v23  ;;  %3445 = vmatpush.bf16.msra.mxu0 %v5950_v26  ;;  %3530 = vmatpush.bf16.msrb.mxu3 %v6146_v52  ;;  %v5823_v5 = vld [vmem:[%s7724_s19 + $0x730] sm:$0xf0]  ;;  %v5570_v9 = vor.u32 %v7122_v2, %v5567_v4 }
 0x1aa   : > { %v7350_v12 = vld [vmem:[%s7724_s19 + $0xc2c] sm:$0xf0]  ;;  %v7250_v31 = vld [vmem:[%s7724_s19 + $0x914] sm:$0xf] }
 0x1ab   : > { %v6462_v35 = vor.u32 %v7350_v12, %v6461_v24  ;;  %3458 = vmatpush.bf16.msra.mxu1 %v6206_v32  ;;  %v6079_v7 = vld [vmem:[%s7724_s19 + $0x930] sm:$0xf0]  ;;  %v8437_v12 = vpop.f32.mrf.mxu1 }
 0x1ac   : > { %3446 = vmatmul.bf16.vlgmr.msra.gmra.mxu0 %v8275_v8  ;;  %v7050_v11 = vld [vmem:[%s7724_s19 + $0x2d4] sm:$0xf]  ;;  %v6082_v13 = vor.u32 %v7250_v31, %v6079_v7 }
 0x1ad   : > { %3471 = vmatpush.bf16.msra.mxu2 %v6462_v35  ;;  %3490 = vmatpush.bf16.msrb.mxu0 %v5410_v38  ;;  %v5279_v24 = vld [vmem:[%s7724_s19 + $0x2f0] sm:$0xf0]  ;;  %v8447_v35 = vpop.f32.mrf.mxu2  ;;  %v3241_v43 = vpop.f32.mrf.mxu0 }
 0x1ae   : > { %3459 = vmatmul.bf16.vlgmr.msra.gmra.mxu1 %v8263_v1  ;;  %v7186_v1 = vld [vmem:[%s7724_s19 + $0x714] sm:$0xf]  ;;  %3531 = vmatpush.bf16.msrb.mxu3 %v6114_v3  ;;  %v5282_v25 = vor.u32 %v7050_v11, %v5279_v24 }
 0x1af   : > { %3503 = vmatpush.bf16.msrb.mxu1 %v5666_v39  ;;  %v5826_v23 = vor.u32 %v7186_v1, %v5823_v5  ;;  %v7114_v16 = vld [vmem:[%s7724_s19 + $0x4d4] sm:$0xf]  ;;  %v8452_v39 = vpop.f32.mrf.mxu3 }
 0x1b0   : > { %3472 = vmatmul.bf16.vlgmr.msra.gmra.mxu2 %v8182_v10  ;;  %v5602_v10 = vor.u32 %v7130_v50, %v5599_v53  ;;  %v5535_v14 = vld [vmem:[%s7724_s19 + $0x4f0] sm:$0xf0] }
 0x1b1   : > { %3516 = vmatpush.bf16.msrb.mxu2 %v5922_v40  ;;  %3491 = vmatpush.bf16.msrb.mxu0 %v5378_v47  ;;  %v6047_v21 = vld [vmem:[%s7724_s19 + $0x8f0] sm:$0xf0]  ;;  %v5538_v26 = vor.u32 %v7114_v16, %v5535_v14  ;;  %v5413_v16 = vld [vmem:[%s7724_s19 + $0x3d8] sm:$0xf] }
 0x1b2   : > { %v7042_v29 = vld [vmem:[%s7724_s19 + $0x294] sm:$0xf]  ;;  %3532 = vmatpush.bf16.msrb.mxu3 %v6082_v13  ;;  %v6050_v36 = vor.u32 %v7242_v20, %v6047_v21  ;;  %v7087_v13 = vld [vmem:[%s7724_s19 + $0x3f4] sm:$0xf0] }
 0x1b3   : > { %3504 = vmatpush.bf16.msrb.mxu1 %v5634_v48  ;;  %v5247_v30 = vld [vmem:[%s7724_s19 + $0x2b0] sm:$0xf0]  ;;  %v3254_v34 = vpop.f32.mrf.mxu1 }
 0x1b4   : > { %v7106_v32 = vld [vmem:[%s7724_s19 + $0x494] sm:$0xf]  ;;  %v5250_v42 = vor.u32 %v7042_v29, %v5247_v30  ;;  %v5125_v30 = vld [vmem:[%s7724_s19 + $0x198] sm:$0xf] }
 0x1b5   : > { %3517 = vmatpush.bf16.msrb.mxu2 %v5890_v49  ;;  %3492 = vmatpush.bf16.msrb.mxu0 %v5346_v59  ;;  %v5503_v37 = vld [vmem:[%s7724_s19 + $0x4b0] sm:$0xf0]  ;;  %v5349_v34 = vld [vmem:[%s7724_s19 + $0x358] sm:$0xf] }
 0x1b6   : > { %v7170_v57 = vld [vmem:[%s7724_s19 + $0x694] sm:$0xf]  ;;  %v5506_v33 = vor.u32 %v7106_v32, %v5503_v37  ;;  %3533 = vmatpush.bf16.msrb.mxu3 %v6050_v36  ;;  %v7015_v32 = vld [vmem:[%s7724_s19 + $0x1b4] sm:$0xf0] }
 0x1b7   : > { %3505 = vmatpush.bf16.msrb.mxu1 %v5602_v10  ;;  %v5759_v38 = vld [vmem:[%s7724_s19 + $0x6b0] sm:$0xf0]  ;;  %v3280_v4 = vpop.f32.mrf.mxu3  ;;  %v5381_v36 = vld [vmem:[%s7724_s19 + $0x398] sm:$0xf] }
 0x1b8   : > { %v7234_v40 = vld [vmem:[%s7724_s19 + $0x894] sm:$0xf]  ;;  %v5762_v44 = vor.u32 %v7170_v57, %v5759_v38  ;;  %v7079_v37 = vld [vmem:[%s7724_s19 + $0x3b4] sm:$0xf0] }
 0x1b9   : > { %3518 = vmatpush.bf16.msrb.mxu2 %v5858_v60  ;;  %3493 = vmatpush.bf16.msrb.mxu0 %v5314_v19  ;;  %v6015_v41 = vld [vmem:[%s7724_s19 + $0x8b0] sm:$0xf0]  ;;  %v3267_v60 = vpop.f32.mrf.mxu2 }
 0x1ba   : > { %v7034_v45 = vld [vmem:[%s7724_s19 + $0x254] sm:$0xf]  ;;  %v6018_v47 = vor.u32 %v7234_v40, %v6015_v41  ;;  %v5126_v40 = vor.u32 %v7015_v32, %v5125_v30 }
 0x1bb   : > { %3506 = vmatpush.bf16.msrb.mxu1 %v5570_v9  ;;  %v5215_v22 = vld [vmem:[%s7724_s19 + $0x270] sm:$0xf0]  ;;  %v5157_v9 = vld [vmem:[%s7724_s19 + $0x1d8] sm:$0xf]  ;;  %v8517_v4 = vpop.f32.mrf.mxu1 }
 0x1bc   : > { %v7098_v46 = vld [vmem:[%s7724_s19 + $0x454] sm:$0xf]  ;;  %v5218_v52 = vor.u32 %v7034_v45, %v5215_v22  ;;  %3534 = vmatpush.bf16.msrb.mxu3 %v6018_v47  ;;  %v5093_v45 = vld [vmem:[%s7724_s19 + $0x158] sm:$0xf] }
 0x1bd   : > { %3519 = vmatpush.bf16.msrb.mxu2 %v5826_v23  ;;  %3494 = vmatpush.bf16.msrb.mxu0 %v5282_v25  ;;  %v5471_v48 = vld [vmem:[%s7724_s19 + $0x470] sm:$0xf0]  ;;  %v7023_v23 = vld [vmem:[%s7724_s19 + $0x1f4] sm:$0xf0] }
 0x1be   : > { %v7162_v49 = vld [vmem:[%s7724_s19 + $0x654] sm:$0xf]  ;;  %v5474_v55 = vor.u32 %v7098_v46, %v5471_v48  ;;  %v5158_v20 = vor.u32 %v7023_v23, %v5157_v9  ;;  %v7007_v22 = vld [vmem:[%s7724_s19 + $0x174] sm:$0xf0] }
 0x1bf   : > { %3507 = vmatpush.bf16.msrb.mxu1 %v5538_v26  ;;  %v5727_v28 = vld [vmem:[%s7724_s19 + $0x670] sm:$0xf0]  ;;  %v7071_v47 = vld [vmem:[%s7724_s19 + $0x374] sm:$0xf0] }
 0x1c0   : > { %v7226_v51 = vld [vmem:[%s7724_s19 + $0x854] sm:$0xf]  ;;  %v5730_v56 = vor.u32 %v7162_v49, %v5727_v28  ;;  %v5094_v28 = vor.u32 %v7007_v22, %v5093_v45  ;;  %v7055_v9 = vld [vmem:[%s7724_s19 + $0x2f4] sm:$0xf0] }
 0x1c1   : > { %3520 = vmatpush.bf16.msrb.mxu2 %v5794_v27  ;;  %v5983_v50 = vld [vmem:[%s7724_s19 + $0x870] sm:$0xf0]  ;;  %3495 = vmatpush.bf16.msrb.mxu0 %v5250_v42  ;;  %v5414_v27 = vor.u32 %v7087_v13, %v5413_v16  ;;  %v5221_v45 = vld [vmem:[%s7724_s19 + $0x258] sm:$0xf] }
 0x1c2   : > { %v7026_v53 = vld [vmem:[%s7724_s19 + $0x214] sm:$0xf]  ;;  %v5986_v62 = vor.u32 %v7226_v51, %v5983_v50  ;;  %v7039_v22 = vld [vmem:[%s7724_s19 + $0x274] sm:$0xf0] }
 0x1c3   : > { %v5183_v54 = vld [vmem:[%s7724_s19 + $0x230] sm:$0xf0]  ;;  %3508 = vmatpush.bf16.msrb.mxu1 %v5506_v33  ;;  %v5382_v33 = vor.u32 %v7079_v37, %v5381_v36 }
 0x1c4   : > { %v7090_v58 = vld [vmem:[%s7724_s19 + $0x414] sm:$0xf]  ;;  %v5186_v7 = vor.u32 %v7026_v53, %v5183_v54  ;;  %3535 = vmatpush.bf16.msrb.mxu3 %v5986_v62  ;;  %v5061_v54 = vld [vmem:[%s7724_s19 + $0x118] sm:$0xf] }
 0x1c5   : > { %3521 = vmatpush.bf16.msrb.mxu2 %v5762_v44  ;;  %v5439_v59 = vld [vmem:[%s7724_s19 + $0x430] sm:$0xf0]  ;;  %3496 = vmatpush.bf16.msrb.mxu0 %v5218_v52  ;;  %v5350_v52 = vor.u32 %v7071_v47, %v5349_v34 }
 0x1c6   : > { %v7154_v10 = vld [vmem:[%s7724_s19 + $0x614] sm:$0xf]  ;;  %v5442_v11 = vor.u32 %v7090_v58, %v5439_v59  ;;  %v5317_v58 = vld [vmem:[%s7724_s19 + $0x318] sm:$0xf] }
 0x1c7   : > { %v5695_v63 = vld [vmem:[%s7724_s19 + $0x630] sm:$0xf0]  ;;  %3509 = vmatpush.bf16.msrb.mxu1 %v5474_v55  ;;  %v6999_v55 = vld [vmem:[%s7724_s19 + $0x134] sm:$0xf0] }
 0x1c8   : > { %v7218_v2 = vld [vmem:[%s7724_s19 + $0x814] sm:$0xf]  ;;  %v5698_v24 = vor.u32 %v7154_v10, %v5695_v63  ;;  %v7063_v59 = vld [vmem:[%s7724_s19 + $0x334] sm:$0xf0]  ;;  %v5062_v62 = vor.u32 %v6999_v55, %v5061_v54 }
 0x1c9   : > { %v5951_v3 = vld [vmem:[%s7724_s19 + $0x830] sm:$0xf0]  ;;  %3522 = vmatpush.bf16.msrb.mxu2 %v5730_v56  ;;  %3497 = vmatpush.bf16.msrb.mxu0 %v5186_v7  ;;  %v8510_v56 = vpop.f32.mrf.mxu0  ;;  %v6991_v7 = vld [vmem:[%s7724_s19 + $0xf4] sm:$0xf0] }
 0x1ca   : > { %v7338_v1 = vld [vmem:[%s7724_s19 + $0xbd4] sm:$0xf]  ;;  %v5954_v14 = vor.u32 %v7218_v2, %v5951_v3  ;;  %v5189_v54 = vld [vmem:[%s7724_s19 + $0x218] sm:$0xf] }
 0x1cb   : > { %v6431_v5 = vld [vmem:[%s7724_s19 + $0xbf0] sm:$0xf0]  ;;  %3510 = vmatpush.bf16.msrb.mxu1 %v5442_v11  ;;  %v7031_v55 = vld [vmem:[%s7724_s19 + $0x234] sm:$0xf0] }
 0x1cc   : > { %v7402_v31 = vld [vmem:[%s7724_s19 + $0xdd4] sm:$0xf]  ;;  %v6434_v15 = vor.u32 %v7338_v1, %v6431_v5  ;;  %3536 = vmatpush.bf16.msrb.mxu3 %v5954_v14  ;;  %v5318_v1 = vor.u32 %v7063_v59, %v5317_v58 }
 0x1cd   : > { %v6687_v19 = vld [vmem:[%s7724_s19 + $0xdf0] sm:$0xf0]  ;;  %3523 = vmatpush.bf16.msrb.mxu2 %v5698_v24 }
 0x1ce   : > { %v6690_v18 = vor.u32 %v7402_v31, %v6687_v19  ;;  %v7330_v21 = vld [vmem:[%s7724_s19 + $0xb94] sm:$0xf]  ;;  %3542 = vmatpush.bf16.msra.mxu0 %v6434_v15  ;;  %v5029_v31 = vld [vmem:[%s7724_s19 + $0xd8] sm:$0xf] }
 0x1cf   : > { %v6399_v25 = vld [vmem:[%s7724_s19 + $0xbb0] sm:$0xf0]  ;;  %3537 = vmatmul.bf16.vlgmr.msrb.gmra.mxu3 %v8275_v8  ;;  %v5285_v19 = vld [vmem:[%s7724_s19 + $0x2d8] sm:$0xf]  ;;  %v5030_v24 = vor.u32 %v6991_v7, %v5029_v31 }
 0x1d0   : > { %v7394_v26 = vld [vmem:[%s7724_s19 + $0xd94] sm:$0xf]  ;;  %v6402_v57 = vor.u32 %v7330_v21, %v6399_v25  ;;  %3555 = vmatpush.bf16.msra.mxu1 %v6690_v18  ;;  %3581 = vmatpush.bf16.msra.mxu3 %v5414_v27  ;;  %v5286_v15 = vor.u32 %v7055_v9, %v5285_v19  ;;  %v6983_v21 = vld [vmem:[%s7724_s19 + $0xb4] sm:$0xf0]  ;;  %v8530_v25 = vpop.f32.mrf.mxu2  ;;  %v5190_v9 = vor.u32 %v7031_v55, %v5189_v54 }
 0x1d1   : > { %v6655_v29 = vld [vmem:[%s7724_s19 + $0xdb0] sm:$0xf0]  ;;  %3568 = vmatpush.bf16.msra.mxu2 %v5158_v20  ;;  %v4997_v20 = vld [vmem:[%s7724_s19 + $0x98] sm:$0xf]  ;;  %v3293_v30 = vpop.f32.mrf.mxu0 }
 0x1d2   : > { %v6658_v38 = vor.u32 %v7394_v26, %v6655_v29  ;;  %v7322_v41 = vld [vmem:[%s7724_s19 + $0xb54] sm:$0xf]  ;;  %3524 = vmatmul.bf16.vlgmr.msrb.gmra.mxu2 %v8269_v6  ;;  %3543 = vmatpush.bf16.msra.mxu0 %v6402_v57  ;;  %v8501_v6 = vld [vmem:[#allocation1 + $0x12] sm:$0xff]  ;;  %v8532_v26 = vpop.f32.mrf.mxu3  ;;  %v4998_v37 = vor.u32 %v6983_v21, %v4997_v20 }
 0x1d3   : > { %v6367_v42 = vld [vmem:[%s7724_s19 + $0xb70] sm:$0xf0]  ;;  %3511 = vmatmul.bf16.vlgmr.msrb.gmra.mxu1 %v8501_v6  ;;  %v5253_v27 = vld [vmem:[%s7724_s19 + $0x298] sm:$0xf] }
 0x1d4   : > { %v7386_v43 = vld [vmem:[%s7724_s19 + $0xd54] sm:$0xf]  ;;  %v6370_v48 = vor.u32 %v7322_v41, %v6367_v42  ;;  %3556 = vmatpush.bf16.msra.mxu1 %v6658_v38  ;;  %3582 = vmatpush.bf16.msra.mxu3 %v5382_v33  ;;  %v7047_v29 = vld [vmem:[%s7724_s19 + $0x2b4] sm:$0xf0]  ;;  %v3306_v41 = vpop.f32.mrf.mxu1 }
 0x1d5   : > { %v6623_v44 = vld [vmem:[%s7724_s19 + $0xd70] sm:$0xf0]  ;;  %3569 = vmatpush.bf16.msra.mxu2 %v5126_v40  ;;  %v5254_v42 = vor.u32 %v7047_v29, %v5253_v27  ;;  %v4965_v33 = vld [vmem:[%s7724_s19 + $0x58] sm:$0xf] }
 0x1d6   : > { %v8495_v46 = vld [vmem:[#allocation1 + $0x9] sm:$0xff]  ;;  %v6626_v49 = vor.u32 %v7386_v43, %v6623_v44  ;;  %3544 = vmatpush.bf16.msra.mxu0 %v6370_v48  ;;  %v6975_v44 = vld [vmem:[%s7724_s19 + $0x74] sm:$0xf0] }
 0x1d7   : > { %3498 = vmatmul.bf16.vlgmr.msrb.gmra.mxu0 %v8495_v46  ;;  %v7314_v51 = vld [vmem:[%s7724_s19 + $0xb14] sm:$0xf]  ;;  %v6437_v7 = vld [vmem:[%s7724_s19 + $0xbd8] sm:$0xf] }
 0x1d8   : > { %v6335_v50 = vld [vmem:[%s7724_s19 + $0xb30] sm:$0xf0]  ;;  %3557 = vmatpush.bf16.msra.mxu1 %v6626_v49  ;;  %3583 = vmatpush.bf16.msra.mxu3 %v5350_v52  ;;  %v5222_v52 = vor.u32 %v7039_v22, %v5221_v45  ;;  %v3319_v58 = vpop.f32.mrf.mxu2  ;;  %v7343_v19 = vld [vmem:[%s7724_s19 + $0xbf4] sm:$0xf0]  ;;  %v8587_v22 = vld [vmem:[#allocation1] sm:$0xff] }
 0x1d9   : > { %v7378_v8 = vld [vmem:[%s7724_s19 + $0xd14] sm:$0xf]  ;;  %v6338_v10 = vor.u32 %v7314_v51, %v6335_v50  ;;  %3570 = vmatpush.bf16.msra.mxu2 %v5094_v28  ;;  %v4966_v28 = vor.u32 %v6975_v44, %v4965_v33  ;;  %v7207_v20 = vld [vmem:[%s7724_s19 + $0x7b4] sm:$0xf0] }
 0x1da   : > { %v6591_v53 = vld [vmem:[%s7724_s19 + $0xd30] sm:$0xf0]  ;;  %v3332_v59 = vpop.f32.mrf.mxu3  ;;  %v6149_v21 = vld [vmem:[%s7724_s19 + $0x998] sm:$0xf] }
 0x1db   : > { %v6594_v60 = vor.u32 %v7378_v8, %v6591_v53  ;;  %v7306_v63 = vld [vmem:[%s7724_s19 + $0xad4] sm:$0xf]  ;;  %3545 = vmatpush.bf16.msra.mxu0 %v6338_v10  ;;  %v4933_v8 = vld [vmem:[%s7724_s19 + $0x18] sm:$0xf]  ;;  %v3343_v59 = vpop.f32.mrf.mxu0 }
 0x1dc   : > { %v6303_v2 = vld [vmem:[%s7724_s19 + $0xaf0] sm:$0xf0]  ;;  %3584 = vmatpush.bf16.msra.mxu3 %v5318_v1  ;;  %v6967_v53 = vld [vmem:[%s7724_s19 + $0x34] sm:$0xf0] }
 0x1dd   : > { %v7370_v3 = vld [vmem:[%s7724_s19 + $0xcd4] sm:$0xf]  ;;  %v6306_v23 = vor.u32 %v7306_v63, %v6303_v2  ;;  %3558 = vmatpush.bf16.msra.mxu1 %v6594_v60  ;;  %3571 = vmatpush.bf16.msra.mxu2 %v5062_v62  ;;  %v5669_v10 = vld [vmem:[%s7724_s19 + $0x5d8] sm:$0xf]  ;;  %v4934_v31 = vor.u32 %v6967_v53, %v4933_v8 }
 0x1de   : > { %v6559_v5 = vld [vmem:[%s7724_s19 + $0xcf0] sm:$0xf0]  ;;  %v7151_v60 = vld [vmem:[%s7724_s19 + $0x5f4] sm:$0xf0] }
 0x1df   : > { %v6562_v11 = vor.u32 %v7370_v3, %v6559_v5  ;;  %v7298_v16 = vld [vmem:[%s7724_s19 + $0xa94] sm:$0xf]  ;;  %3546 = vmatpush.bf16.msra.mxu0 %v6306_v23  ;;  %v5925_v62 = vld [vmem:[%s7724_s19 + $0x7d8] sm:$0xf]  ;;  %v5670_v23 = vor.u32 %v7151_v60, %v5669_v10 }
 0x1e0   : > { %v6271_v13 = vld [vmem:[%s7724_s19 + $0xab0] sm:$0xf0]  ;;  %3585 = vmatpush.bf16.msra.mxu3 %v5286_v15  ;;  %v7215_v2 = vld [vmem:[%s7724_s19 + $0x7f4] sm:$0xf0]  ;;  %v3240_v15 = vadd.f32 %v8432_v17, %v8378_v61  ;;  %v3318_v61 = vadd.f32 %v8530_v25, %v8517_v4  ;;  %v8582_v4 = vld [vmem:[#allocation1 + $0x36] sm:$0xff] }
 0x1e1   : > { %v7362_v14 = vld [vmem:[%s7724_s19 + $0xc94] sm:$0xf]  ;;  %v6274_v32 = vor.u32 %v7298_v16, %v6271_v13  ;;  %3559 = vmatpush.bf16.msra.mxu1 %v6562_v11  ;;  %3572 = vmatpush.bf16.msra.mxu2 %v5030_v24  ;;  %v6181_v3 = vld [vmem:[%s7724_s19 + $0x9d8] sm:$0xf]  ;;  %v5926_v11 = vor.u32 %v7215_v2, %v5925_v62  ;;  %v3356_v62 = vpop.f32.mrf.mxu1 }
 0x1e2   : > { %v6527_v18 = vld [vmem:[%s7724_s19 + $0xcb0] sm:$0xf0]  ;;  %v7279_v1 = vld [vmem:[%s7724_s19 + $0x9f4] sm:$0xf0] }
 0x1e3   : > { %v6530_v36 = vor.u32 %v7362_v14, %v6527_v18  ;;  %v7290_v57 = vld [vmem:[%s7724_s19 + $0xa54] sm:$0xf]  ;;  %3547 = vmatpush.bf16.msra.mxu0 %v6274_v32  ;;  %v6182_v24 = vor.u32 %v7279_v1, %v6181_v3  ;;  %v5637_v16 = vld [vmem:[%s7724_s19 + $0x598] sm:$0xf]  ;;  %v6438_v18 = vor.u32 %v7343_v19, %v6437_v7 }
 0x1e4   : > { %v6239_v38 = vld [vmem:[%s7724_s19 + $0xa70] sm:$0xf0]  ;;  %3586 = vmatpush.bf16.msra.mxu3 %v5254_v42  ;;  %v7143_v13 = vld [vmem:[%s7724_s19 + $0x5b4] sm:$0xf0] }
 0x1e5   : > { %v7354_v40 = vld [vmem:[%s7724_s19 + $0xc54] sm:$0xf]  ;;  %v6242_v34 = vor.u32 %v7290_v57, %v6239_v38  ;;  %3560 = vmatpush.bf16.msra.mxu1 %v6530_v36  ;;  %3573 = vmatpush.bf16.msra.mxu2 %v4998_v37  ;;  %v5893_v14 = vld [vmem:[%s7724_s19 + $0x798] sm:$0xf]  ;;  %v5638_v32 = vor.u32 %v7143_v13, %v5637_v16 }
 0x1e6   : > { %v6495_v43 = vld [vmem:[%s7724_s19 + $0xc70] sm:$0xf0]  ;;  %v7271_v27 = vld [vmem:[%s7724_s19 + $0x9b4] sm:$0xf0]  ;;  %v5894_v17 = vor.u32 %v7207_v20, %v5893_v14  ;;  %v3369_v14 = vpop.f32.mrf.mxu2 }
 0x1e7   : > { %v7282_v47 = vld [vmem:[%s7724_s19 + $0xa14] sm:$0xf]  ;;  %v6498_v49 = vor.u32 %v7354_v40, %v6495_v43  ;;  %3548 = vmatpush.bf16.msra.mxu0 %v6242_v34  ;;  %v6405_v29 = vld [vmem:[%s7724_s19 + $0xb98] sm:$0xf]  ;;  %v6150_v36 = vor.u32 %v7271_v27, %v6149_v21  ;;  %v3253_v40 = vadd.f32 %v8437_v12, %v3240_v15  ;;  %v3331_v34 = vadd.f32 %v8532_v26, %v3318_v61 }
 0x1e8   : > { %v6207_v48 = vld [vmem:[%s7724_s19 + $0xa30] sm:$0xf0]  ;;  %3587 = vmatpush.bf16.msra.mxu3 %v5222_v52  ;;  %v7335_v30 = vld [vmem:[%s7724_s19 + $0xbb4] sm:$0xf0] }
 0x1e9   : > { %v7346_v51 = vld [vmem:[%s7724_s19 + $0xc14] sm:$0xf]  ;;  %v6210_v63 = vor.u32 %v7282_v47, %v6207_v48  ;;  %3561 = vmatpush.bf16.msra.mxu1 %v6498_v49  ;;  %3574 = vmatpush.bf16.msra.mxu2 %v4966_v28  ;;  %v5605_v37 = vld [vmem:[%s7724_s19 + $0x558] sm:$0xf]  ;;  %v6406_v42 = vor.u32 %v7335_v30, %v6405_v29  ;;  %v3344_v60 = vadd.f32 %v3343_v59, %v3331_v34  ;;  %v3382_v29 = vpop.f32.mrf.mxu3 }
 0x1ea   : > { %v6463_v50 = vld [vmem:[%s7724_s19 + $0xc30] sm:$0xf0]  ;;  %v7135_v57 = vld [vmem:[%s7724_s19 + $0x574] sm:$0xf0] }
 0x1eb   : > { %v6466_v5 = vor.u32 %v7346_v51, %v6463_v50  ;;  %3549 = vmatpush.bf16.msra.mxu0 %v6210_v63  ;;  %v5861_v38 = vld [vmem:[%s7724_s19 + $0x758] sm:$0xf]  ;;  %v5606_v12 = vor.u32 %v7135_v57, %v5605_v37  ;;  %v3266_v50 = vadd.f32 %v8447_v35, %v3253_v40  ;;  %v3345_v40 = vpop.f32.mrf.mxu0 }
 0x1ec   : > { %3588 = vmatpush.bf16.msra.mxu3 %v5190_v9  ;;  %v8576_v41 = vld [vmem:[#allocation1 + $0x2d] sm:$0xff]  ;;  %v3357_v9 = vadd.f32 %v3356_v62, %v3344_v60 }
 0x1ed   : > { %3562 = vmatpush.bf16.msra.mxu1 %v6466_v5  ;;  %3575 = vmatpush.bf16.msra.mxu2 %v4934_v31  ;;  %v7199_v43 = vld [vmem:[%s7724_s19 + $0x774] sm:$0xf0]  ;;  %v3279_v1 = vadd.f32 %v8452_v39, %v3266_v50 }
 0x1ee   : > { %3550 = vmatmul.bf16.vlgmr.msra.gmra.mxu0 %v8576_v41  ;;  %v6117_v33 = vld [vmem:[%s7724_s19 + $0x958] sm:$0xf]  ;;  %v5862_v47 = vor.u32 %v7199_v43, %v5861_v38  ;;  %v3370_v27 = vadd.f32 %v3369_v14, %v3357_v9  ;;  %v3371_v60 = vpop.f32.mrf.mxu2  ;;  %v7083_v9 = vld [vmem:[%s7724_s19 + $0x3dc] sm:$0xf] }
 0x1ef   : > { %3594 = vmatpush.bf16.msrb.mxu0 %v5670_v23  ;;  %v7263_v44 = vld [vmem:[%s7724_s19 + $0x974] sm:$0xf0]  ;;  %3589 = vmatmul.bf16.vlgmr.msra.gmra.mxu3 %v8495_v46 }
 0x1f0   : > { %3633 = vmatpush.bf16.msrb.mxu3 %v6438_v18  ;;  %3563 = vmatmul.bf16.vlgmr.msra.gmra.mxu1 %v8582_v4  ;;  %v6373_v25 = vld [vmem:[%s7724_s19 + $0xb58] sm:$0xf]  ;;  %v6118_v48 = vor.u32 %v7263_v44, %v6117_v33  ;;  %v3383_v37 = vadd.f32 %v3382_v29, %v3370_v27  ;;  %v7011_v27 = vld [vmem:[%s7724_s19 + $0x19c] sm:$0xf] }
 0x1f1   : > { %3607 = vmatpush.bf16.msrb.mxu1 %v5926_v11  ;;  %3620 = vmatpush.bf16.msrb.mxu2 %v6182_v24  ;;  %v7327_v45 = vld [vmem:[%s7724_s19 + $0xb74] sm:$0xf0]  ;;  %v3292_v24 = vadd.f32 %v8510_v56, %v3279_v1  ;;  %v3384_v1 = vpop.f32.mrf.mxu3 }
 0x1f2   : > { %3576 = vmatmul.bf16.vlgmr.msra.gmra.mxu2 %v8587_v22  ;;  %v5573_v49 = vld [vmem:[%s7724_s19 + $0x518] sm:$0xf]  ;;  %v6374_v8 = vor.u32 %v7327_v45, %v6373_v25  ;;  %v3358_v45 = vpop.f32.mrf.mxu1 }
 0x1f3   : > { %3595 = vmatpush.bf16.msrb.mxu0 %v5638_v32  ;;  %v7127_v28 = vld [vmem:[%s7724_s19 + $0x534] sm:$0xf0]  ;;  %v5351_v45 = vld [vmem:[%s7724_s19 + $0x378] sm:$0xf0] }
 0x1f4   : > { %v5829_v51 = vld [vmem:[%s7724_s19 + $0x718] sm:$0xf]  ;;  %3634 = vmatpush.bf16.msrb.mxu3 %v6406_v42  ;;  %v5574_v26 = vor.u32 %v7127_v28, %v5573_v49  ;;  %v315_v49 = vld [vmem:[#allocation2] sm:$0xff] }
 0x1f5   : > { %3608 = vmatpush.bf16.msrb.mxu1 %v5894_v17  ;;  %3621 = vmatpush.bf16.msrb.mxu2 %v6150_v36  ;;  %v7191_v52 = vld [vmem:[%s7724_s19 + $0x734] sm:$0xf0]  ;;  %v3759_v36 = vrot.slane %v3292_v24, 4 }
 0x1f6   : > { %v6085_v53 = vld [vmem:[%s7724_s19 + $0x918] sm:$0xf]  ;;  %v5830_v35 = vor.u32 %v7191_v52, %v5829_v51 }
 0x1f7   : > { %v7255_v54 = vld [vmem:[%s7724_s19 + $0x934] sm:$0xf0]  ;;  %3596 = vmatpush.bf16.msrb.mxu0 %v5606_v12  ;;  %v3760_v12 = vrot.slane %v3383_v37, 2 }
 0x1f8   : > { %v6341_v55 = vld [vmem:[%s7724_s19 + $0xb18] sm:$0xf]  ;;  %v6086_v10 = vor.u32 %v7255_v54, %v6085_v53  ;;  %3635 = vmatpush.bf16.msrb.mxu3 %v6374_v8 }
 0x1f9   : > { %v7319_v58 = vld [vmem:[%s7724_s19 + $0xb34] sm:$0xf0]  ;;  %3609 = vmatpush.bf16.msrb.mxu1 %v5862_v47  ;;  %3622 = vmatpush.bf16.msrb.mxu2 %v6118_v48  ;;  %v3767_v50 = vsel %vm3766_vm1, %v3759_v36, %v3760_v12  ;;  %v7131_v12 = vld [vmem:[%s7724_s19 + $0x55c] sm:$0xf] }
 0x1fa   : > { %v5541_v63 = vld [vmem:[%s7724_s19 + $0x4d8] sm:$0xf]  ;;  %v6342_v5 = vor.u32 %v7319_v58, %v6341_v55  ;;  %v3769_v55 = vsel %vm3768_vm2, %v8371_v0, %v3767_v50 }
 0x1fb   : > { %v7119_v2 = vld [vmem:[%s7724_s19 + $0x4f4] sm:$0xf0]  ;;  %3597 = vmatpush.bf16.msrb.mxu0 %v5574_v26  ;;  %v3775_v62 = vadd.f32 %v3769_v55, %v315_v49  ;;  %v5319_v55 = vld [vmem:[%s7724_s19 + $0x338] sm:$0xf0] }
 0x1fc   : > { %v5797_v3 = vld [vmem:[%s7724_s19 + $0x6d8] sm:$0xf]  ;;  %v5542_v16 = vor.u32 %v7119_v2, %v5541_v63  ;;  %3636 = vmatpush.bf16.msrb.mxu3 %v6342_v5 }
 0x1fd   : > { %v7183_v31 = vld [vmem:[%s7724_s19 + $0x6f4] sm:$0xf0]  ;;  %3610 = vmatpush.bf16.msrb.mxu1 %v5830_v35  ;;  %3623 = vmatpush.bf16.msrb.mxu2 %v6086_v10  ;;  %3777 = vst [vmem:[#allocation2] sm:$0xff] %v3775_v62 }
 0x1fe   : > { %v6053_v7 = vld [vmem:[%s7724_s19 + $0x8d8] sm:$0xf]  ;;  %v5798_v39 = vor.u32 %v7183_v31, %v5797_v3  ;;  %v7019_v31 = vld [vmem:[%s7724_s19 + $0x1dc] sm:$0xf] }
 0x1ff   : > { %v7247_v19 = vld [vmem:[%s7724_s19 + $0x8f4] sm:$0xf0]  ;;  %3598 = vmatpush.bf16.msrb.mxu0 %v5542_v16  ;;  %v7147_v16 = vld [vmem:[%s7724_s19 + $0x5dc] sm:$0xf] }
 0x200   : > { %v6309_v23 = vld [vmem:[%s7724_s19 + $0xad8] sm:$0xf]  ;;  %v6054_v13 = vor.u32 %v7247_v19, %v6053_v7  ;;  %v5159_v7 = vld [vmem:[%s7724_s19 + $0x1f8] sm:$0xf0] }
 0x201   : > { %v7311_v11 = vld [vmem:[%s7724_s19 + $0xaf4] sm:$0xf0]  ;;  %3611 = vmatpush.bf16.msrb.mxu1 %v5798_v39  ;;  %v5671_v39 = vld [vmem:[%s7724_s19 + $0x5f8] sm:$0xf0] }
 0x202   : > { %v5509_v15 = vld [vmem:[%s7724_s19 + $0x498] sm:$0xf]  ;;  %v6310_v21 = vor.u32 %v7311_v11, %v6309_v23  ;;  %3624 = vmatpush.bf16.msrb.mxu2 %v6054_v13  ;;  %v5415_v23 = vld [vmem:[%s7724_s19 + $0x3f8] sm:$0xf0]  ;;  %v5674_v29 = vor.u32 %v7147_v16, %v5671_v39 }
 0x203   : > { %v7111_v18 = vld [vmem:[%s7724_s19 + $0x4b4] sm:$0xf0] }
 0x204   : > { %v5765_v20 = vld [vmem:[%s7724_s19 + $0x698] sm:$0xf]  ;;  %v5510_v57 = vor.u32 %v7111_v18, %v5509_v15  ;;  %3637 = vmatpush.bf16.msrb.mxu3 %v6310_v21  ;;  %v5162_v15 = vor.u32 %v7019_v31, %v5159_v7  ;;  %v5418_v18 = vor.u32 %v7083_v9, %v5415_v23  ;;  %v7051_v31 = vld [vmem:[%s7724_s19 + $0x2dc] sm:$0xf] }
 0x205   : > { %v7175_v56 = vld [vmem:[%s7724_s19 + $0x6b4] sm:$0xf0]  ;;  %v5287_v7 = vld [vmem:[%s7724_s19 + $0x2f8] sm:$0xf0] }
 0x206   : > { %v6021_v30 = vld [vmem:[%s7724_s19 + $0x898] sm:$0xf]  ;;  %v5766_v42 = vor.u32 %v7175_v56, %v5765_v20  ;;  %3599 = vmatpush.bf16.msrb.mxu0 %v5510_v57  ;;  %v5127_v56 = vld [vmem:[%s7724_s19 + $0x1b8] sm:$0xf0] }
 0x207   : > { %v7239_v32 = vld [vmem:[%s7724_s19 + $0x8b4] sm:$0xf0]  ;;  %v5130_v37 = vor.u32 %v7011_v27, %v5127_v56  ;;  %v5543_v9 = vld [vmem:[%s7724_s19 + $0x4f8] sm:$0xf0] }
 0x208   : > { %v6277_v61 = vld [vmem:[%s7724_s19 + $0xa98] sm:$0xf]  ;;  %v6022_v43 = vor.u32 %v7239_v32, %v6021_v30  ;;  %3612 = vmatpush.bf16.msrb.mxu1 %v5766_v42  ;;  %v7075_v30 = vld [vmem:[%s7724_s19 + $0x39c] sm:$0xf] }
 0x209   : > { %v7303_v17 = vld [vmem:[%s7724_s19 + $0xab4] sm:$0xf0]  ;;  %v5383_v32 = vld [vmem:[%s7724_s19 + $0x3b8] sm:$0xf0] }
 0x20a   : > { %v5477_v38 = vld [vmem:[%s7724_s19 + $0x458] sm:$0xf]  ;;  %v6278_v34 = vor.u32 %v7303_v17, %v6277_v61  ;;  %3625 = vmatpush.bf16.msrb.mxu2 %v6022_v43  ;;  %v7139_v61 = vld [vmem:[%s7724_s19 + $0x59c] sm:$0xf]  ;;  %v5386_v57 = vor.u32 %v7075_v30, %v5383_v32  ;;  %v3434_v30 = vpop.f32.mrf.mxu3 }
 0x20b   : > { %v7103_v33 = vld [vmem:[%s7724_s19 + $0x474] sm:$0xf0]  ;;  %v5639_v17 = vld [vmem:[%s7724_s19 + $0x5b8] sm:$0xf0] }
 0x20c   : > { %v5733_v44 = vld [vmem:[%s7724_s19 + $0x658] sm:$0xf]  ;;  %v5478_v8 = vor.u32 %v7103_v33, %v5477_v38  ;;  %3638 = vmatpush.bf16.msrb.mxu3 %v6278_v34  ;;  %v7003_v42 = vld [vmem:[%s7724_s19 + $0x15c] sm:$0xf]  ;;  %v5642_v43 = vor.u32 %v7139_v61, %v5639_v17  ;;  %v8657_v33 = vld [vmem:[#allocation1 + $0x24] sm:$0xff] }
 0x20d   : > { %v7167_v25 = vld [vmem:[%s7724_s19 + $0x674] sm:$0xf0]  ;;  %v5607_v34 = vld [vmem:[%s7724_s19 + $0x578] sm:$0xf0] }
 0x20e   : > { %v5989_v47 = vld [vmem:[%s7724_s19 + $0x858] sm:$0xf]  ;;  %v5734_v58 = vor.u32 %v7167_v25, %v5733_v44  ;;  %3600 = vmatpush.bf16.msrb.mxu0 %v5478_v8  ;;  %v5095_v44 = vld [vmem:[%s7724_s19 + $0x178] sm:$0xf0] }
 0x20f   : > { %v7231_v48 = vld [vmem:[%s7724_s19 + $0x874] sm:$0xf0]  ;;  %v7067_v25 = vld [vmem:[%s7724_s19 + $0x35c] sm:$0xf]  ;;  %v5098_v49 = vor.u32 %v7003_v42, %v5095_v44 }
 0x210   : > { %v6245_v28 = vld [vmem:[%s7724_s19 + $0xa58] sm:$0xf]  ;;  %v5990_v26 = vor.u32 %v7231_v48, %v5989_v47  ;;  %3613 = vmatpush.bf16.msrb.mxu1 %v5734_v58  ;;  %v8667_v48 = vld [vmem:[#allocation1 + $0x1b] sm:$0xff]  ;;  %v6995_v8 = vld [vmem:[%s7724_s19 + $0x11c] sm:$0xf] }
 0x211   : > { %v7295_v51 = vld [vmem:[%s7724_s19 + $0xa74] sm:$0xf0]  ;;  %v7123_v58 = vld [vmem:[%s7724_s19 + $0x51c] sm:$0xf] }
 0x212   : > { %v5445_v52 = vld [vmem:[%s7724_s19 + $0x418] sm:$0xf]  ;;  %v6246_v63 = vor.u32 %v7295_v51, %v6245_v28  ;;  %3626 = vmatpush.bf16.msrb.mxu2 %v5990_v26  ;;  %v5354_v28 = vor.u32 %v7067_v25, %v5351_v45  ;;  %v5575_v26 = vld [vmem:[%s7724_s19 + $0x538] sm:$0xf0] }
 0x213   : > { %v7095_v53 = vld [vmem:[%s7724_s19 + $0x434] sm:$0xf0]  ;;  %v5578_v1 = vor.u32 %v7123_v58, %v5575_v26  ;;  %v5511_v56 = vld [vmem:[%s7724_s19 + $0x4b8] sm:$0xf0] }
 0x214   : > { %v5701_v54 = vld [vmem:[%s7724_s19 + $0x618] sm:$0xf]  ;;  %v5446_v19 = vor.u32 %v7095_v53, %v5445_v52  ;;  %3639 = vmatpush.bf16.msrb.mxu3 %v6246_v63  ;;  %v5610_v52 = vor.u32 %v7131_v12, %v5607_v34  ;;  %v5063_v53 = vld [vmem:[%s7724_s19 + $0x138] sm:$0xf0] }
 0x215   : > { %v7159_v59 = vld [vmem:[%s7724_s19 + $0x634] sm:$0xf0]  ;;  %v5066_v60 = vor.u32 %v6995_v8, %v5063_v53  ;;  %v6971_v42 = vld [vmem:[%s7724_s19 + $0x5c] sm:$0xf] }
 0x216   : > { %v5957_v35 = vld [vmem:[%s7724_s19 + $0x818] sm:$0xf]  ;;  %v5702_v11 = vor.u32 %v7159_v59, %v5701_v54  ;;  %3601 = vmatpush.bf16.msrb.mxu0 %v5446_v19  ;;  %v7059_v54 = vld [vmem:[%s7724_s19 + $0x31c] sm:$0xf] }
 0x217   : > { %v7223_v10 = vld [vmem:[%s7724_s19 + $0x834] sm:$0xf0]  ;;  %v5322_v62 = vor.u32 %v7059_v54, %v5319_v55  ;;  %v7115_v19 = vld [vmem:[%s7724_s19 + $0x4dc] sm:$0xf] }
 0x218   : > { %v6213_v2 = vld [vmem:[%s7724_s19 + $0xa18] sm:$0xf]  ;;  %v5958_v24 = vor.u32 %v7223_v10, %v5957_v35  ;;  %3614 = vmatpush.bf16.msrb.mxu1 %v5702_v11  ;;  %v3395_v35 = vpop.f32.mrf.mxu0  ;;  %v3408_v10 = vpop.f32.mrf.mxu1  ;;  %v4967_v44 = vld [vmem:[%s7724_s19 + $0x78] sm:$0xf0] }
 0x219   : > { %v7287_v3 = vld [vmem:[%s7724_s19 + $0xa34] sm:$0xf0]  ;;  %3602 = vmatmul.bf16.vlgmr.msrb.gmra.mxu0 %v8501_v6  ;;  %v7035_v25 = vld [vmem:[%s7724_s19 + $0x25c] sm:$0xf] }
 0x21a   : > { %v6693_v0 = vld [vmem:[%s7724_s19 + $0xdd8] sm:$0xf]  ;;  %v6214_v13 = vor.u32 %v7287_v3, %v6213_v2  ;;  %3627 = vmatpush.bf16.msrb.mxu2 %v5958_v24  ;;  %v6987_v3 = vld [vmem:[%s7724_s19 + $0xdc] sm:$0xf]  ;;  %v5290_v24 = vor.u32 %v7051_v31, %v5287_v7 }
 0x21b   : > { %v7407_v5 = vld [vmem:[%s7724_s19 + $0xdf4] sm:$0xf0]  ;;  %3615 = vmatmul.bf16.vlgmr.msrb.gmra.mxu1 %v8667_v48  ;;  %v5223_v45 = vld [vmem:[%s7724_s19 + $0x278] sm:$0xf0] }
 0x21c   : > { %v6694_v14 = vor.u32 %v7407_v5, %v6693_v0  ;;  %v6661_v20 = vld [vmem:[%s7724_s19 + $0xd98] sm:$0xf]  ;;  %3640 = vmatpush.bf16.msrb.mxu3 %v6214_v13  ;;  %3659 = vmatpush.bf16.msra.mxu1 %v5162_v15  ;;  %v3409_v0 = vadd.f32 %v3408_v10, %v3395_v35  ;;  %v5031_v5 = vld [vmem:[%s7724_s19 + $0xf8] sm:$0xf0]  ;;  %v5546_v15 = vor.u32 %v7115_v19, %v5543_v9 }
 0x21d   : > { %v7399_v21 = vld [vmem:[%s7724_s19 + $0xdb4] sm:$0xf0]  ;;  %3628 = vmatmul.bf16.vlgmr.msrb.gmra.mxu2 %v8657_v33  ;;  %v5034_v11 = vor.u32 %v6987_v3, %v5031_v5  ;;  %v6979_v13 = vld [vmem:[%s7724_s19 + $0x9c] sm:$0xf] }
 0x21e   : > { %3646 = vmatpush.bf16.msra.mxu0 %v6694_v14  ;;  %v6662_v36 = vor.u32 %v7399_v21, %v6661_v20  ;;  %3672 = vmatpush.bf16.msra.mxu2 %v5418_v18  ;;  %v6629_v38 = vld [vmem:[%s7724_s19 + $0xd58] sm:$0xf]  ;;  %v3421_v14 = vpop.f32.mrf.mxu2  ;;  %v4999_v18 = vld [vmem:[%s7724_s19 + $0xb8] sm:$0xf0] }
 0x21f   : > { %v7391_v40 = vld [vmem:[%s7724_s19 + $0xd74] sm:$0xf0]  ;;  %3641 = vmatmul.bf16.vlgmr.msrb.gmra.mxu3 %v8576_v41  ;;  %v7043_v20 = vld [vmem:[%s7724_s19 + $0x29c] sm:$0xf]  ;;  %v3422_v27 = vadd.f32 %v3421_v14, %v3409_v0 }
 0x220   : > { %3685 = vmatpush.bf16.msra.mxu3 %v5674_v29  ;;  %v6630_v47 = vor.u32 %v7391_v40, %v6629_v38  ;;  %3660 = vmatpush.bf16.msra.mxu1 %v5130_v37  ;;  %v6597_v51 = vld [vmem:[%s7724_s19 + $0xd18] sm:$0xf]  ;;  %v5255_v21 = vld [vmem:[%s7724_s19 + $0x2b8] sm:$0xf0]  ;;  %v3397_v61 = vpop.f32.mrf.mxu0  ;;  %v5002_v37 = vor.u32 %v6979_v13, %v4999_v18 }
 0x221   : > { %v7383_v50 = vld [vmem:[%s7724_s19 + $0xd34] sm:$0xf0]  ;;  %v7107_v29 = vld [vmem:[%s7724_s19 + $0x49c] sm:$0xf]  ;;  %v8694_v17 = vadd.f32 %v3434_v30, %v3422_v27 }
 0x222   : > { %3647 = vmatpush.bf16.msra.mxu0 %v6662_v36  ;;  %3673 = vmatpush.bf16.msra.mxu2 %v5386_v57  ;;  %v6598_v59 = vor.u32 %v7383_v50, %v6597_v51  ;;  %v6565_v63 = vld [vmem:[%s7724_s19 + $0xcd8] sm:$0xf]  ;;  %v3410_v36 = vpop.f32.mrf.mxu1  ;;  %v5258_v57 = vor.u32 %v7043_v20, %v5255_v21  ;;  %v7099_v12 = vld [vmem:[%s7724_s19 + $0x45c] sm:$0xf]  ;;  %v4970_v51 = vor.u32 %v6971_v42, %v4967_v44 }
 0x223   : > { %v7375_v2 = vld [vmem:[%s7724_s19 + $0xcf4] sm:$0xf0]  ;;  %v5479_v34 = vld [vmem:[%s7724_s19 + $0x478] sm:$0xf0]  ;;  %v5226_v50 = vor.u32 %v7035_v25, %v5223_v45 }
 0x224   : > { %3686 = vmatpush.bf16.msra.mxu3 %v5642_v43  ;;  %3661 = vmatpush.bf16.msra.mxu1 %v5098_v49  ;;  %v6566_v23 = vor.u32 %v7375_v2, %v6565_v63  ;;  %v6533_v16 = vld [vmem:[%s7724_s19 + $0xc98] sm:$0xf]  ;;  %v5514_v43 = vor.u32 %v7107_v29, %v5511_v56  ;;  %v6963_v8 = vld [vmem:[%s7724_s19 + $0x1c] sm:$0xf]  ;;  %v5482_v55 = vor.u32 %v7099_v12, %v5479_v34 }
 0x225   : > { %v7367_v39 = vld [vmem:[%s7724_s19 + $0xcb4] sm:$0xf0]  ;;  %v7027_v53 = vld [vmem:[%s7724_s19 + $0x21c] sm:$0xf] }
 0x226   : > { %3648 = vmatpush.bf16.msra.mxu0 %v6630_v47  ;;  %3674 = vmatpush.bf16.msra.mxu2 %v5354_v28  ;;  %v6534_v32 = vor.u32 %v7367_v39, %v6533_v16  ;;  %v6501_v38 = vld [vmem:[%s7724_s19 + $0xc58] sm:$0xf]  ;;  %v3423_v54 = vpop.f32.mrf.mxu2  ;;  %v5191_v58 = vld [vmem:[%s7724_s19 + $0x238] sm:$0xf0] }
 0x227   : > { %v7359_v40 = vld [vmem:[%s7724_s19 + $0xc74] sm:$0xf0]  ;;  %v7091_v26 = vld [vmem:[%s7724_s19 + $0x41c] sm:$0xf]  ;;  %v5194_v5 = vor.u32 %v7027_v53, %v5191_v58 }
 0x228   : > { %3687 = vmatpush.bf16.msra.mxu3 %v5610_v52  ;;  %3662 = vmatpush.bf16.msra.mxu1 %v5066_v60  ;;  %v6502_v47 = vor.u32 %v7359_v40, %v6501_v38  ;;  %v6469_v49 = vld [vmem:[%s7724_s19 + $0xc18] sm:$0xf]  ;;  %v4935_v52 = vld [vmem:[%s7724_s19 + $0x38] sm:$0xf0] }
 0x229   : > { %v7351_v28 = vld [vmem:[%s7724_s19 + $0xc34] sm:$0xf0]  ;;  %v7211_v35 = vld [vmem:[%s7724_s19 + $0x7dc] sm:$0xf] }
 0x22a   : > { %3649 = vmatpush.bf16.msra.mxu0 %v6598_v59  ;;  %3675 = vmatpush.bf16.msra.mxu2 %v5322_v62  ;;  %v5447_v59 = vld [vmem:[%s7724_s19 + $0x438] sm:$0xf0]  ;;  %v3436_v62 = vpop.f32.mrf.mxu3  ;;  %v6470_v63 = vor.u32 %v7351_v28, %v6469_v49 }
 0x22b   : > { %v5927_v10 = vld [vmem:[%s7724_s19 + $0x7f8] sm:$0xf0]  ;;  %v5450_v19 = vor.u32 %v7091_v26, %v5447_v59 }
 0x22c   : > { %3688 = vmatpush.bf16.msra.mxu3 %v5578_v1  ;;  %3663 = vmatpush.bf16.msra.mxu1 %v5034_v11  ;;  %v7275_v60 = vld [vmem:[%s7724_s19 + $0x9dc] sm:$0xf]  ;;  %v4938_v1 = vor.u32 %v6963_v8, %v4935_v52  ;;  %v5930_v9 = vor.u32 %v7211_v35, %v5927_v10  ;;  %v3460_v8 = vpop.f32.mrf.mxu1 }
 0x22d   : > { %v6183_v2 = vld [vmem:[%s7724_s19 + $0x9f8] sm:$0xf0] }
 0x22e   : > { %3650 = vmatpush.bf16.msra.mxu0 %v6566_v23  ;;  %3676 = vmatpush.bf16.msra.mxu2 %v5290_v24  ;;  %v7339_v3 = vld [vmem:[%s7724_s19 + $0xbdc] sm:$0xf]  ;;  %v6186_v23 = vor.u32 %v7275_v60, %v6183_v2 }
 0x22f   : > { %v6439_v0 = vld [vmem:[%s7724_s19 + $0xbf8] sm:$0xf0] }
 0x230   : > { %3689 = vmatpush.bf16.msra.mxu3 %v5546_v15  ;;  %3664 = vmatpush.bf16.msra.mxu1 %v5002_v37  ;;  %v7403_v31 = vld [vmem:[%s7724_s19 + $0xddc] sm:$0xf]  ;;  %v6442_v11 = vor.u32 %v7339_v3, %v6439_v0 }
 0x231   : > { %v6695_v7 = vld [vmem:[%s7724_s19 + $0xdf8] sm:$0xf0] }
 0x232   : > { %3651 = vmatpush.bf16.msra.mxu0 %v6534_v32  ;;  %3677 = vmatpush.bf16.msra.mxu2 %v5258_v57  ;;  %v7203_v24 = vld [vmem:[%s7724_s19 + $0x79c] sm:$0xf]  ;;  %v6698_v13 = vor.u32 %v7403_v31, %v6695_v7 }
 0x233   : > { %v5895_v16 = vld [vmem:[%s7724_s19 + $0x7b8] sm:$0xf0]  ;;  %v3473_v7 = vpop.f32.mrf.mxu2 }
 0x234   : > { %3690 = vmatpush.bf16.msra.mxu3 %v5514_v43  ;;  %3665 = vmatpush.bf16.msra.mxu1 %v4970_v51  ;;  %v7267_v39 = vld [vmem:[%s7724_s19 + $0x99c] sm:$0xf]  ;;  %v5898_v27 = vor.u32 %v7203_v24, %v5895_v16 }
 0x235   : > { %v6151_v14 = vld [vmem:[%s7724_s19 + $0x9b8] sm:$0xf0] }
 0x236   : > { %3652 = vmatpush.bf16.msra.mxu0 %v6502_v47  ;;  %3678 = vmatpush.bf16.msra.mxu2 %v5226_v50  ;;  %v7331_v15 = vld [vmem:[%s7724_s19 + $0xb9c] sm:$0xf]  ;;  %v6154_v29 = vor.u32 %v7267_v39, %v6151_v14  ;;  %v3447_v50 = vpop.f32.mrf.mxu0 }
 0x237   : > { %v6407_v18 = vld [vmem:[%s7724_s19 + $0xbb8] sm:$0xf0]  ;;  %v3448_v26 = vadd.f32 %v3447_v50, %v8694_v17 }
 0x238   : > { %3691 = vmatpush.bf16.msra.mxu3 %v5482_v55  ;;  %3666 = vmatpush.bf16.msra.mxu1 %v4938_v1  ;;  %v7395_v20 = vld [vmem:[%s7724_s19 + $0xd9c] sm:$0xf]  ;;  %v6410_v56 = vor.u32 %v7331_v15, %v6407_v18  ;;  %v3462_v18 = vpop.f32.mrf.mxu1 }
 0x239   : > { %v6663_v21 = vld [vmem:[%s7724_s19 + $0xdb8] sm:$0xf0]  ;;  %v3461_v2 = vadd.f32 %v3460_v8, %v3448_v26 }
 0x23a   : > { %3653 = vmatpush.bf16.msra.mxu0 %v6470_v63  ;;  %3679 = vmatpush.bf16.msra.mxu2 %v5194_v5  ;;  %v7195_v30 = vld [vmem:[%s7724_s19 + $0x75c] sm:$0xf]  ;;  %v6666_v36 = vor.u32 %v7395_v20, %v6663_v21 }
 0x23b   : > { %v5863_v32 = vld [vmem:[%s7724_s19 + $0x778] sm:$0xf0]  ;;  %3667 = vmatmul.bf16.vlgmr.msra.gmra.mxu1 %v8587_v22  ;;  %v8763_v24 = vadd.f32 %v3473_v7, %v3461_v2 }
 0x23c   : > { %3692 = vmatpush.bf16.msra.mxu3 %v5450_v19  ;;  %3711 = vmatpush.bf16.msrb.mxu1 %v6186_v23  ;;  %v7259_v61 = vld [vmem:[%s7724_s19 + $0x95c] sm:$0xf]  ;;  %v5866_v43 = vor.u32 %v7195_v30, %v5863_v32 }
 0x23d   : > { %3654 = vmatmul.bf16.vlgmr.msra.gmra.mxu0 %v8582_v4  ;;  %v6119_v37 = vld [vmem:[%s7724_s19 + $0x978] sm:$0xf0]  ;;  %3680 = vmatmul.bf16.vlgmr.msra.gmra.mxu2 %v8495_v46 }
 0x23e   : > { %3698 = vmatpush.bf16.msrb.mxu0 %v5930_v9  ;;  %3724 = vmatpush.bf16.msrb.mxu2 %v6442_v11  ;;  %v7323_v57 = vld [vmem:[%s7724_s19 + $0xb5c] sm:$0xf]  ;;  %v6122_v44 = vor.u32 %v7259_v61, %v6119_v37  ;;  %v3449_v15 = vpop.f32.mrf.mxu0 }
 0x23f   : > { %v6375_v38 = vld [vmem:[%s7724_s19 + $0xb78] sm:$0xf0]  ;;  %3693 = vmatmul.bf16.vlgmr.msra.gmra.mxu3 %v8501_v6 }
 0x240   : > { %3737 = vmatpush.bf16.msrb.mxu3 %v6698_v13  ;;  %v7387_v40 = vld [vmem:[%s7724_s19 + $0xd5c] sm:$0xf]  ;;  %3712 = vmatpush.bf16.msrb.mxu1 %v6154_v29  ;;  %v6378_v25 = vor.u32 %v7323_v57, %v6375_v38  ;;  %v3486_v13 = vpop.f32.mrf.mxu3 }
 0x241   : > { %v6631_v42 = vld [vmem:[%s7724_s19 + $0xd78] sm:$0xf0] }
 0x242   : > { %3699 = vmatpush.bf16.msrb.mxu0 %v5898_v27  ;;  %3725 = vmatpush.bf16.msrb.mxu2 %v6410_v56  ;;  %v7187_v45 = vld [vmem:[%s7724_s19 + $0x71c] sm:$0xf]  ;;  %v6634_v34 = vor.u32 %v7387_v40, %v6631_v42 }
 0x243   : > { %v5831_v12 = vld [vmem:[%s7724_s19 + $0x738] sm:$0xf0] }
 0x244   : > { %v7251_v46 = vld [vmem:[%s7724_s19 + $0x91c] sm:$0xf]  ;;  %3738 = vmatpush.bf16.msrb.mxu3 %v6666_v36  ;;  %v5834_v22 = vor.u32 %v7187_v45, %v5831_v12  ;;  %3713 = vmatpush.bf16.msrb.mxu1 %v6122_v44  ;;  %v3475_v45 = vpop.f32.mrf.mxu2 }
 0x245   : > { %v6087_v47 = vld [vmem:[%s7724_s19 + $0x938] sm:$0xf0] }
 0x246   : > { %v7315_v6 = vld [vmem:[%s7724_s19 + $0xb1c] sm:$0xf]  ;;  %3700 = vmatpush.bf16.msrb.mxu0 %v5866_v43  ;;  %3726 = vmatpush.bf16.msrb.mxu2 %v6378_v25  ;;  %v6090_v52 = vor.u32 %v7251_v46, %v6087_v47 }
 0x247   : > { %v6343_v49 = vld [vmem:[%s7724_s19 + $0xb38] sm:$0xf0] }
 0x248   : > { %v7379_v28 = vld [vmem:[%s7724_s19 + $0xd1c] sm:$0xf]  ;;  %v6346_v53 = vor.u32 %v7315_v6, %v6343_v49  ;;  %3739 = vmatpush.bf16.msrb.mxu3 %v6634_v34  ;;  %3714 = vmatpush.bf16.msrb.mxu1 %v6090_v52 }
 0x249   : > { %v6599_v51 = vld [vmem:[%s7724_s19 + $0xd38] sm:$0xf0] }
 0x24a   : > { %v7179_v54 = vld [vmem:[%s7724_s19 + $0x6dc] sm:$0xf]  ;;  %v6602_v59 = vor.u32 %v7379_v28, %v6599_v51  ;;  %3701 = vmatpush.bf16.msrb.mxu0 %v5834_v22  ;;  %3727 = vmatpush.bf16.msrb.mxu2 %v6346_v53  ;;  %v3488_v28 = vpop.f32.mrf.mxu3 }
 0x24b   : > { %v5799_v55 = vld [vmem:[%s7724_s19 + $0x6f8] sm:$0xf0] }
 0x24c   : > { %v7243_v58 = vld [vmem:[%s7724_s19 + $0x8dc] sm:$0xf]  ;;  %v5802_v3 = vor.u32 %v7179_v54, %v5799_v55  ;;  %3740 = vmatpush.bf16.msrb.mxu3 %v6602_v59 }
 0x24d   : > { %v6055_v35 = vld [vmem:[%s7724_s19 + $0x8f8] sm:$0xf0] }
 0x24e   : > { %v7307_v10 = vld [vmem:[%s7724_s19 + $0xadc] sm:$0xf]  ;;  %v6058_v17 = vor.u32 %v7243_v58, %v6055_v35  ;;  %3702 = vmatpush.bf16.msrb.mxu0 %v5802_v3 }
 0x24f   : > { %v6311_v60 = vld [vmem:[%s7724_s19 + $0xaf8] sm:$0xf0] }
 0x250   : > { %v7371_v62 = vld [vmem:[%s7724_s19 + $0xcdc] sm:$0xf]  ;;  %v6314_v0 = vor.u32 %v7307_v10, %v6311_v60  ;;  %3715 = vmatpush.bf16.msrb.mxu1 %v6058_v17  ;;  %v3512_v54 = vpop.f32.mrf.mxu1 }
 0x251   : > { %v6567_v63 = vld [vmem:[%s7724_s19 + $0xcf8] sm:$0xf0] }
 0x252   : > { %v7171_v1 = vld [vmem:[%s7724_s19 + $0x69c] sm:$0xf]  ;;  %v6570_v19 = vor.u32 %v7371_v62, %v6567_v63  ;;  %3728 = vmatpush.bf16.msrb.mxu2 %v6314_v0  ;;  %v3538_v59 = vpop.f32.mrf.mxu3 }
 0x253   : > { %v5767_v5 = vld [vmem:[%s7724_s19 + $0x6b8] sm:$0xf0] }
 0x254   : > { %v7235_v31 = vld [vmem:[%s7724_s19 + $0x89c] sm:$0xf]  ;;  %v5770_v14 = vor.u32 %v7171_v1, %v5767_v5  ;;  %3741 = vmatpush.bf16.msrb.mxu3 %v6570_v19  ;;  %v3499_v52 = vpop.f32.mrf.mxu0 }
 0x255   : > { %v6023_v9 = vld [vmem:[%s7724_s19 + $0x8b8] sm:$0xf0]  ;;  %v3500_v53 = vadd.f32 %v3499_v52, %v3486_v13  ;;  %v3525_v58 = vpop.f32.mrf.mxu2 }
 0x256   : > { %v7299_v23 = vld [vmem:[%s7724_s19 + $0xa9c] sm:$0xf]  ;;  %v6026_v20 = vor.u32 %v7235_v31, %v6023_v9  ;;  %3703 = vmatpush.bf16.msrb.mxu0 %v5770_v14 }
 0x257   : > { %v6279_v11 = vld [vmem:[%s7724_s19 + $0xab8] sm:$0xf0]  ;;  %v3513_v55 = vadd.f32 %v3512_v54, %v3500_v53 }
 0x258   : > { %v7363_v16 = vld [vmem:[%s7724_s19 + $0xc9c] sm:$0xf]  ;;  %v6282_v21 = vor.u32 %v7299_v23, %v6279_v11  ;;  %3716 = vmatpush.bf16.msrb.mxu1 %v6026_v20  ;;  %v3514_v60 = vpop.f32.mrf.mxu1 }
 0x259   : > { %v6535_v39 = vld [vmem:[%s7724_s19 + $0xcb8] sm:$0xf0]  ;;  %v3526_v26 = vadd.f32 %v3525_v58, %v3513_v55 }
 0x25a   : > { %v7163_v27 = vld [vmem:[%s7724_s19 + $0x65c] sm:$0xf]  ;;  %v6538_v30 = vor.u32 %v7363_v16, %v6535_v39  ;;  %3729 = vmatpush.bf16.msrb.mxu2 %v6282_v21  ;;  %v3540_v63 = vpop.f32.mrf.mxu3 }
 0x25b   : > { %v5735_v29 = vld [vmem:[%s7724_s19 + $0x678] sm:$0xf0]  ;;  %v3539_v35 = vadd.f32 %v3538_v59, %v3526_v26 }
 0x25c   : > { %v7227_v56 = vld [vmem:[%s7724_s19 + $0x85c] sm:$0xf]  ;;  %v5738_v38 = vor.u32 %v7163_v27, %v5735_v29  ;;  %3742 = vmatpush.bf16.msrb.mxu3 %v6538_v30  ;;  %v3501_v10 = vpop.f32.mrf.mxu0 }
 0x25d   : > { %v5991_v32 = vld [vmem:[%s7724_s19 + $0x878] sm:$0xf0]  ;;  %v3527_v62 = vpop.f32.mrf.mxu2 }
 0x25e   : > { %v7291_v61 = vld [vmem:[%s7724_s19 + $0xa5c] sm:$0xf]  ;;  %v5994_v40 = vor.u32 %v7227_v56, %v5991_v32  ;;  %3704 = vmatpush.bf16.msrb.mxu0 %v5738_v38 }
 0x25f   : > { %v6247_v36 = vld [vmem:[%s7724_s19 + $0xa78] sm:$0xf0] }
 0x260   : > { %v7355_v37 = vld [vmem:[%s7724_s19 + $0xc5c] sm:$0xf]  ;;  %v6250_v42 = vor.u32 %v7291_v61, %v6247_v36  ;;  %3717 = vmatpush.bf16.msrb.mxu1 %v5994_v40 }
 0x261   : > { %v6503_v57 = vld [vmem:[%s7724_s19 + $0xc78] sm:$0xf0] }
 0x262   : > { %v7155_v43 = vld [vmem:[%s7724_s19 + $0x61c] sm:$0xf]  ;;  %v6506_v12 = vor.u32 %v7355_v37, %v6503_v57  ;;  %3730 = vmatpush.bf16.msrb.mxu2 %v6250_v42 }
 0x263   : > { %v5703_v44 = vld [vmem:[%s7724_s19 + $0x638] sm:$0xf0] }
 0x264   : > { %v7219_v25 = vld [vmem:[%s7724_s19 + $0x81c] sm:$0xf]  ;;  %v5706_v51 = vor.u32 %v7155_v43, %v5703_v44  ;;  %3743 = vmatpush.bf16.msrb.mxu3 %v6506_v12 }
 0x265   : > { %v5959_v46 = vld [vmem:[%s7724_s19 + $0x838] sm:$0xf0] }
 0x266   : > { %v7283_v34 = vld [vmem:[%s7724_s19 + $0xa1c] sm:$0xf]  ;;  %v5962_v22 = vor.u32 %v7219_v25, %v5959_v46  ;;  %3705 = vmatpush.bf16.msrb.mxu0 %v5706_v51 }
 0x267   : > { %v6215_v47 = vld [vmem:[%s7724_s19 + $0xa38] sm:$0xf0] }
 0x268   : > { %v7347_v6 = vld [vmem:[%s7724_s19 + $0xc1c] sm:$0xf]  ;;  %v6218_v50 = vor.u32 %v7283_v34, %v6215_v47  ;;  %3718 = vmatpush.bf16.msrb.mxu1 %v5962_v22 }
 0x269   : > { %v6471_v49 = vld [vmem:[%s7724_s19 + $0xc38] sm:$0xf0]  ;;  %3706 = vmatmul.bf16.vlgmr.msrb.gmra.mxu0 %v8667_v48 }
 0x26a   : > { %v6474_v8 = vor.u32 %v7347_v6, %v6471_v49  ;;  %3731 = vmatpush.bf16.msrb.mxu2 %v6218_v50  ;;  %v316_v51 = vld [vmem:[#allocation2 + $0x8] sm:$0xff] }
 0x26b   : > { %3719 = vmatmul.bf16.vlgmr.msrb.gmra.mxu1 %v8657_v33  ;;  %v3551_v2 = vpop.f32.mrf.mxu0 }
 0x26c   : > { %3744 = vmatpush.bf16.msrb.mxu3 %v6474_v8  ;;  %v3552_v48 = vadd.f32 %v3551_v2, %v3539_v35 }
 0x26d   : > { %3732 = vmatmul.bf16.vlgmr.msrb.gmra.mxu2 %v8576_v41  ;;  %v3564_v3 = vpop.f32.mrf.mxu1 }
 0x26e   : > { %v3565_v33 = vadd.f32 %v3564_v3, %v3552_v48 }
 0x26f   : > { %3745 = vmatmul.bf16.vlgmr.msrb.gmra.mxu3 %v8582_v4 }
 0x270   : > { %v3761_v17 = vrot.slane %v3565_v33, 6 }
 0x272   : > { %v3770_v41 = vsel %vm3764_vm0, %v8763_v24, %v3761_v17  ;;  %v3590_v0 = vpop.f32.mrf.mxu3 }
 0x273   : > { %v3553_v1 = vpop.f32.mrf.mxu0 }
 0x275   : > { %v3577_v4 = vpop.f32.mrf.mxu2  ;;  %v3566_v31 = vpop.f32.mrf.mxu1 }
 0x276   : > { %v3591_v5 = vadd.f32 %v3590_v0, %v3577_v4 }
 0x27a   : > { %v3592_v19 = vpop.f32.mrf.mxu3 }
 0x27d   : > { %v3579_v7 = vpop.f32.mrf.mxu2 }
 0x296   : > { %v3603_v9 = vpop.f32.mrf.mxu0 }
 0x297   : > { %v3604_v32 = vadd.f32 %v3603_v9, %v3591_v5 }
 0x298   : > { %v3616_v23 = vpop.f32.mrf.mxu1 }
 0x299   : > { %v3617_v36 = vadd.f32 %v3616_v23, %v3604_v32 }
 0x29e   : > { %v3605_v39 = vpop.f32.mrf.mxu0 }
 0x2a0   : > { %v3629_v11 = vpop.f32.mrf.mxu2  ;;  %v3618_v13 = vpop.f32.mrf.mxu1 }
 0x2a1   : > { %v3630_v40 = vadd.f32 %v3629_v11, %v3617_v36 }
 0x2a2   : > { %v3642_v16 = vpop.f32.mrf.mxu3 }
 0x2a3   : > { %v3643_v43 = vadd.f32 %v3642_v16, %v3630_v40 }
 0x2a8   : > { %v3631_v14 = vpop.f32.mrf.mxu2 }
 0x2aa   : > { %v3644_v15 = vpop.f32.mrf.mxu3 }
 0x2b8   : > { %v3668_v20 = vpop.f32.mrf.mxu1 }
 0x2ba   : > { %v3655_v18 = vpop.f32.mrf.mxu0 }
 0x2bb   : > { %v3656_v45 = vadd.f32 %v3655_v18, %v3643_v43 }
 0x2bd   : > { %v3762_v49 = vrot.slane %v3656_v45, 4 }
 0x2c0   : > { %v3681_v21 = vpop.f32.mrf.mxu2  ;;  %v3670_v29 = vpop.f32.mrf.mxu1 }
 0x2c1   : > { %v3682_v61 = vadd.f32 %v3681_v21, %v3668_v20 }
 0x2c2   : > { %v3694_v27 = vpop.f32.mrf.mxu3  ;;  %v3657_v24 = vpop.f32.mrf.mxu0 }
 0x2c3   : > { %v3695_v37 = vadd.f32 %v3694_v27, %v3682_v61 }
 0x2c8   : > { %v3683_v56 = vpop.f32.mrf.mxu2 }
 0x2ca   : > { %v3696_v30 = vpop.f32.mrf.mxu3 }
 0x2e6   : > { %v3707_v57 = vpop.f32.mrf.mxu0 }
 0x2e7   : > { %v3708_v42 = vadd.f32 %v3707_v57, %v3695_v37 }
 0x2e8   : > { %v3720_v38 = vpop.f32.mrf.mxu1 }
 0x2e9   : > { %v3721_v44 = vadd.f32 %v3720_v38, %v3708_v42 }
 0x2ee   : > { %v3709_v34 = vpop.f32.mrf.mxu0 }
 0x2f0   : > { %v3733_v25 = vpop.f32.mrf.mxu2  ;;  %v3722_v47 = vpop.f32.mrf.mxu1 }
 0x2f1   : > { %v3734_v12 = vadd.f32 %v3733_v25, %v3721_v44 }
 0x2f2   : > { %v3746_v46 = vpop.f32.mrf.mxu3 }
 0x2f3   : > { %v3747_v6 = vadd.f32 %v3746_v46, %v3734_v12 }
 0x2f5   : > { %v3763_v28 = vrot.slane %v3747_v6, 2 }
 0x2f7   : > { %v3771_v22 = vsel %vm3766_vm1, %v3762_v49, %v3763_v28  ;;  %3782 = sbr.rel (%p6699_p7) target bundleno = 1039 (0x40f), region = 60 }
 0x2f8   : > { %v3772_v50 = vsel %vm3768_vm2, %v3770_v41, %v3771_v22  ;;  %v3735_v8 = vpop.f32.mrf.mxu2 }
 0x2f9   : > { %v3776_v52 = vadd.f32 %v3772_v50, %v316_v51 }
 0x2fa   : > { %v3748_v53 = vpop.f32.mrf.mxu3 }
 0x2fb   : > { %3778 = vst [vmem:[#allocation2 + $0x8] sm:$0xff] %v3776_v52 }
 0x2fc   : > { %v7415_v54 = vld [vmem:[%s9286_s5 + $0x38] sm:$0xff]  ;;  %v7414_v59 = vld [vmem:[%s9286_s5 + $0x30] sm:$0xff]  ;;  %v7413_v62 = vld [vmem:[%s9286_s5 + $0x28] sm:$0xff] }
 0x2fd   : > { %v7423_v55 = vld [vmem:[%s9286_s5 + $0x78] sm:$0xff]  ;;  %4746 = vmatpush.bf16.msra.mxu0 %v7415_v54  ;;  %v7422_v35 = vld [vmem:[%s9286_s5 + $0x70] sm:$0xff]  ;;  %v7421_v63 = vld [vmem:[%s9286_s5 + $0x68] sm:$0xff] }
 0x2fe   : > { %v7431_v58 = vld [vmem:[%s9286_s5 + $0xb8] sm:$0xff]  ;;  %4759 = vmatpush.bf16.msra.mxu1 %v7423_v55  ;;  %v7430_v10 = vld [vmem:[%s9286_s5 + $0xb0] sm:$0xff]  ;;  %v7429_v2 = vld [vmem:[%s9286_s5 + $0xa8] sm:$0xff] }
 0x2ff   : > { %v7439_v26 = vld [vmem:[%s9286_s5 + $0xf8] sm:$0xff]  ;;  %4772 = vmatpush.bf16.msra.mxu2 %v7431_v58  ;;  %v7438_v60 = vld [vmem:[%s9286_s5 + $0xf0] sm:$0xff]  ;;  %v7437_v48 = vld [vmem:[%s9286_s5 + $0xe8] sm:$0xff] }
 0x300   : > { %4785 = vmatpush.bf16.msra.mxu3 %v7439_v26  ;;  %v7412_v3 = vld [vmem:[%s9286_s5 + $0x20] sm:$0xff]  ;;  %v7411_v4 = vld [vmem:[%s9286_s5 + $0x18] sm:$0xff]  ;;  %v7410_v11 = vld [vmem:[%s9286_s5 + $0x10] sm:$0xff] }
 0x301   : > { %4747 = vmatpush.bf16.msra.mxu0 %v7414_v59  ;;  %v7420_v33 = vld [vmem:[%s9286_s5 + $0x60] sm:$0xff]  ;;  %v7419_v0 = vld [vmem:[%s9286_s5 + $0x58] sm:$0xff]  ;;  %v7418_v16 = vld [vmem:[%s9286_s5 + $0x50] sm:$0xff] }
 0x302   : > { %4760 = vmatpush.bf16.msra.mxu1 %v7422_v35  ;;  %v7428_v17 = vld [vmem:[%s9286_s5 + $0xa0] sm:$0xff]  ;;  %v7427_v1 = vld [vmem:[%s9286_s5 + $0x98] sm:$0xff]  ;;  %v7426_v18 = vld [vmem:[%s9286_s5 + $0x90] sm:$0xff] }
 0x303   : > { %4773 = vmatpush.bf16.msra.mxu2 %v7430_v10  ;;  %v7436_v41 = vld [vmem:[%s9286_s5 + $0xe0] sm:$0xff]  ;;  %v7435_v5 = vld [vmem:[%s9286_s5 + $0xd8] sm:$0xff]  ;;  %v7434_v20 = vld [vmem:[%s9286_s5 + $0xd0] sm:$0xff] }
 0x304   : > { %4786 = vmatpush.bf16.msra.mxu3 %v7438_v60  ;;  %v3785_v31 = vld [vmem:[%s9283_s2] sm:$0xff]  ;;  %v3783_v29 = vld [vmem:[#allocation2] sm:$0xff]  ;;  %v3784_v37 = vld [vmem:[#allocation2 + $0x8] sm:$0xff] }
 0x305   : > { %4748 = vmatpush.bf16.msra.mxu0 %v7413_v62  ;;  %v3787_v7 = vperm.slane %v3785_v31, 0  ;;  %v3788_v19 = vperm.slane %v3785_v31, 1  ;;  %v3789_v9 = vperm.slane %v3785_v31, 2  ;;  %v3790_v23 = vperm.slane %v3785_v31, 3  ;;  %v7409_v57 = vld [vmem:[%s9286_s5 + $0x8] sm:$0xff]  ;;  %v7408_v34 = vld [vmem:[%s9286_s5] sm:$0xff] }
 0x306   : > { %4761 = vmatpush.bf16.msra.mxu1 %v7421_v63  ;;  %v3791_v39 = vperm.slane %v3785_v31, 4  ;;  %v3792_v13 = vperm.slane %v3785_v31, 5  ;;  %v3793_v14 = vperm.slane %v3785_v31, 6  ;;  %v3794_v15 = vperm.slane %v3785_v31, 7  ;;  %v7417_v38 = vld [vmem:[%s9286_s5 + $0x48] sm:$0xff]  ;;  %v7416_v47 = vld [vmem:[%s9286_s5 + $0x40] sm:$0xff] }
 0x307   : > { %4774 = vmatpush.bf16.msra.mxu2 %v7429_v2  ;;  %v3795_v21 = vrot.slane %v3788_v19, 6  ;;  %v3796_v27 = vrot.slane %v3789_v9, 4  ;;  %v3797_v24 = vrot.slane %v3790_v23, 2  ;;  %v7425_v44 = vld [vmem:[%s9286_s5 + $0x88] sm:$0xff]  ;;  %v7424_v6 = vld [vmem:[%s9286_s5 + $0x80] sm:$0xff]  ;;  %v7447_v28 = vld [vmem:[%s9286_s5 + $0x138] sm:$0xff] }
 0x308   : > { %4787 = vmatpush.bf16.msra.mxu3 %v7437_v48  ;;  %v3798_v56 = vrot.slane %v3792_v13, 6  ;;  %v3799_v30 = vrot.slane %v3793_v14, 4  ;;  %v3800_v32 = vrot.slane %v3794_v15, 2  ;;  %v7433_v25 = vld [vmem:[%s9286_s5 + $0xc8] sm:$0xff]  ;;  %v7432_v49 = vld [vmem:[%s9286_s5 + $0xc0] sm:$0xff]  ;;  %v7455_v51 = vld [vmem:[%s9286_s5 + $0x178] sm:$0xff] }
 0x309   : > { %4749 = vmatpush.bf16.msra.mxu0 %v7412_v3  ;;  %v3801_v61 = vsel %vm3764_vm0, %v3787_v7, %v3795_v21  ;;  %v3802_v36 = vsel %vm3766_vm1, %v3796_v27, %v3797_v24  ;;  %v7463_v22 = vld [vmem:[%s9286_s5 + $0x1b8] sm:$0xff]  ;;  %v7446_v8 = vld [vmem:[%s9286_s5 + $0x130] sm:$0xff]  ;;  %v7445_v60 = vld [vmem:[%s9286_s5 + $0x128] sm:$0xff] }
 0x30a   : > { %4762 = vmatpush.bf16.msra.mxu1 %v7420_v33  ;;  %v3803_v40 = vsel %vm3768_vm2, %v3801_v61, %v3802_v36  ;;  %v3804_v42 = vsel %vm3764_vm0, %v3791_v39, %v3798_v56  ;;  %v3805_v43 = vsel %vm3766_vm1, %v3799_v30, %v3800_v32  ;;  %v7471_v50 = vld [vmem:[%s9286_s5 + $0x1f8] sm:$0xff]  ;;  %v7454_v53 = vld [vmem:[%s9286_s5 + $0x170] sm:$0xff]  ;;  %v7453_v62 = vld [vmem:[%s9286_s5 + $0x168] sm:$0xff] }
 0x30b   : > { %4775 = vmatpush.bf16.msra.mxu2 %v7428_v17  ;;  %v8884_v45 = vadd.f32 %v3803_v40, %v3783_v29  ;;  %v3806_v12 = vsel %vm3768_vm2, %v3804_v42, %v3805_v43  ;;  %v7462_v54 = vld [vmem:[%s9286_s5 + $0x1b0] sm:$0xff]  ;;  %v7461_v33 = vld [vmem:[%s9286_s5 + $0x1a8] sm:$0xff]  ;;  %v7444_v14 = vld [vmem:[%s9286_s5 + $0x120] sm:$0xff] }
 0x30c   : > { %4788 = vmatpush.bf16.msra.mxu3 %v7436_v41  ;;  %v8887_v46 = vadd.f32 %v3806_v12, %v3784_v37  ;;  %v7470_v55 = vld [vmem:[%s9286_s5 + $0x1f0] sm:$0xff]  ;;  %v7469_v17 = vld [vmem:[%s9286_s5 + $0x1e8] sm:$0xff]  ;;  %v7452_v15 = vld [vmem:[%s9286_s5 + $0x160] sm:$0xff] }
 0x30d   : > { %4750 = vmatpush.bf16.msra.mxu0 %v7411_v4  ;;  %3813 = vst [vmem:[#allocation1] ss:$4 sm:$0xff] %v8884_v45  ;;  %v3888_v52 = vmul.f32 %v8884_v45, %v8884_v45  ;;  %v7460_v27 = vld [vmem:[%s9286_s5 + $0x1a0] sm:$0xff] }
 0x30e   : > { %4763 = vmatpush.bf16.msra.mxu1 %v7419_v0  ;;  %3815 = vst [vmem:[#allocation1 + $0x20] ss:$4 sm:$0xff] %v8887_v46  ;;  %v3889_v10 = vmul.f32 %v8887_v46, %v8887_v46  ;;  %v7468_v24 = vld [vmem:[%s9286_s5 + $0x1e0] sm:$0xff] }
 0x30f   : > { %4776 = vmatpush.bf16.msra.mxu2 %v7427_v1 }
 0x310   : > { %4789 = vmatpush.bf16.msra.mxu3 %v7435_v5 }
 0x311   : > { %4751 = vmatpush.bf16.msra.mxu0 %v7410_v11 }
 0x312   : > { %4764 = vmatpush.bf16.msra.mxu1 %v7418_v16 }
 0x313   : > { %4777 = vmatpush.bf16.msra.mxu2 %v7426_v18 }
 0x314   : > { %4790 = vmatpush.bf16.msra.mxu3 %v7434_v20  ;;  %v3816_v58 = vld.sshfl [vmem:[#allocation1] sm:$0xff pattern:$0x73625140]  ;;  %v3817_v26 = vld.sshfl [vmem:[#allocation1 + $0x8] sm:$0xff pattern:$0x73625140] }
 0x315   : > { %4752 = vmatpush.bf16.msra.mxu0 %v7409_v57  ;;  %v3818_v59 = vld.sshfl [vmem:[#allocation1 + $0x10] sm:$0xff pattern:$0x73625140]  ;;  %v3819_v35 = vld.sshfl [vmem:[#allocation1 + $0x18] sm:$0xff pattern:$0x73625140] }
 0x316   : > { %4765 = vmatpush.bf16.msra.mxu1 %v7417_v38  ;;  %v3832_v63 = vsel %vm3764_vm0, %v3816_v58, 0.0  ;;  %v3839_v2 = vsel %vm3764_vm0, %v3817_v26, 0.0  ;;  %v3846_v48 = vsel %vm3764_vm0, %v3818_v59, 0.0  ;;  %v3853_v3 = vsel %vm3764_vm0, %v3819_v35, 0.0  ;;  %3892 = vst [vmem:[#allocation1] ss:$4 sm:$0xff] %v3888_v52 }
 0x317   : > { %4778 = vmatpush.bf16.msra.mxu2 %v7425_v44  ;;  %v3833_v41 = vrot.slane %v3832_v63, 4  ;;  %v3840_v4 = vrot.slane %v3839_v2, 4  ;;  %v3847_v0 = vrot.slane %v3846_v48, 4  ;;  %v3854_v1 = vrot.slane %v3853_v3, 4 }
 0x318   : > { %4791 = vmatpush.bf16.msra.mxu3 %v7433_v25  ;;  %v3820_v5 = vld.sshfl [vmem:[#allocation1 + $0x20] sm:$0xff pattern:$0x73625140]  ;;  %v3821_v31 = vld.sshfl [vmem:[#allocation1 + $0x28] sm:$0xff pattern:$0x73625140] }
 0x319   : > { %4753 = vmatpush.bf16.msra.mxu0 %v7408_v34  ;;  %v3834_v7 = vadd.f32 %v3833_v41, %v3832_v63  ;;  %v3841_v19 = vadd.f32 %v3840_v4, %v3839_v2  ;;  %v3848_v9 = vadd.f32 %v3847_v0, %v3846_v48  ;;  %v3822_v23 = vld.sshfl [vmem:[#allocation1 + $0x30] sm:$0xff pattern:$0x73625140]  ;;  %v8947_v11 = vld.sshfl [vmem:[#allocation1 + $0x38] sm:$0xff pattern:$0x73625140]  ;;  %v3855_v16 = vadd.f32 %v3854_v1, %v3853_v3 }
 0x31a   : > { %4766 = vmatpush.bf16.msra.mxu1 %v7416_v47  ;;  %v3860_v39 = vsel %vm3764_vm0, %v3820_v5, 0.0  ;;  %v3867_v13 = vsel %vm3764_vm0, %v3821_v31, 0.0  ;;  %3894 = vst [vmem:[#allocation1 + $0x20] ss:$4 sm:$0xff] %v3889_v10  ;;  %v8964_v32 = vsel %vm3764_vm0, %v3822_v23, 0.0 }
 0x31b   : > { %4779 = vmatpush.bf16.msra.mxu2 %v7424_v6  ;;  %v3835_v18 = vrot.slane %v3834_v7, 2  ;;  %v3842_v20 = vrot.slane %v3841_v19, 2  ;;  %v3849_v21 = vrot.slane %v3848_v9, 2  ;;  %v3856_v29 = vrot.slane %v3855_v16, 2 }
 0x31c   : > { %4792 = vmatpush.bf16.msra.mxu3 %v7432_v49  ;;  %v3861_v56 = vrot.slane %v3860_v39, 4  ;;  %v3868_v30 = vrot.slane %v3867_v13, 4  ;;  %v3875_v35 = vrot.slane %v8964_v32, 4 }
 0x31d   : > { %4798 = vmatpush.bf16.msrb.mxu0 %v7447_v28  ;;  %v3836_v61 = vadd.f32 %v3835_v18, %v3834_v7  ;;  %v3843_v36 = vadd.f32 %v3842_v20, %v3841_v19  ;;  %v3850_v37 = vadd.f32 %v3849_v21, %v3848_v9  ;;  %v3895_v57 = vld.sshfl [vmem:[#allocation1] sm:$0xff pattern:$0x73625140]  ;;  %v3896_v38 = vld.sshfl [vmem:[#allocation1 + $0x8] sm:$0xff pattern:$0x73625140]  ;;  %v3857_v40 = vadd.f32 %v3856_v29, %v3855_v16 }
 0x31e   : > { %4811 = vmatpush.bf16.msrb.mxu1 %v7455_v51  ;;  %v3897_v42 = vld.sshfl [vmem:[#allocation1 + $0x10] sm:$0xff pattern:$0x73625140]  ;;  %v3898_v43 = vld.sshfl [vmem:[#allocation1 + $0x18] sm:$0xff pattern:$0x73625140]  ;;  %v3862_v63 = vadd.f32 %v3861_v56, %v3860_v39 }
 0x31f   : > { %4824 = vmatpush.bf16.msrb.mxu2 %v7463_v22  ;;  %v3837_v44 = vrot.slane %v3836_v61, 1  ;;  %v3844_v25 = vrot.slane %v3843_v36, 1  ;;  %v3851_v12 = vrot.slane %v3850_v37, 1  ;;  %v3911_v34 = vsel %vm3764_vm0, %v3895_v57, 0.0  ;;  %v8976_v39 = vld [vmem:[%s9284_s3] sm:$0xff] }
 0x320   : > { %4837 = vmatpush.bf16.msrb.mxu3 %v7471_v50  ;;  %v3858_v47 = vrot.slane %v3857_v40, 1  ;;  %v3912_v6 = vrot.slane %v3911_v34, 4  ;;  %v3918_v49 = vsel %vm3764_vm0, %v3896_v38, 0.0  ;;  %v3925_v28 = vsel %vm3764_vm0, %v3897_v42, 0.0 }
 0x321   : > { %4799 = vmatpush.bf16.msrb.mxu0 %v7446_v8  ;;  %v3838_v51 = vadd.f32 %v3837_v44, %v3836_v61  ;;  %v3845_v22 = vadd.f32 %v3844_v25, %v3843_v36  ;;  %v3852_v50 = vadd.f32 %v3851_v12, %v3850_v37  ;;  %v3919_v8 = vrot.slane %v3918_v49, 4 }
 0x322   : > { %4812 = vmatpush.bf16.msrb.mxu1 %v7454_v53  ;;  %v3859_v52 = vadd.f32 %v3858_v47, %v3857_v40  ;;  %v3913_v53 = vadd.f32 %v3912_v6, %v3911_v34  ;;  %v4146_v18 = vperm.slane %v8976_v39, 1  ;;  %v4145_v57 = vperm.slane %v8976_v39, 0  ;;  %v8987_v40 = vld [vmem:[%s9285_s4] sm:$0xff] }
 0x323   : > { %4825 = vmatpush.bf16.msrb.mxu2 %v7462_v54  ;;  %v3926_v54 = vrot.slane %v3925_v28, 4  ;;  %v3920_v58 = vadd.f32 %v3919_v8, %v3918_v49  ;;  %v3967_v59 = vmul.f32 0.5, %v3838_v51  ;;  %v3969_v3 = vmul.f32 0.5, %v3852_v50 }
 0x324   : > { %4838 = vmatpush.bf16.msrb.mxu3 %v7470_v55  ;;  %v3932_v55 = vsel %vm3764_vm0, %v3898_v43, 0.0  ;;  %v3914_v10 = vrot.slane %v3913_v53, 2  ;;  %v3970_v4 = vmul.f32 0.5, %v3859_v52  ;;  %v4148_v38 = vperm.slane %v8976_v39, 3 }
 0x325   : > { %4800 = vmatpush.bf16.msrb.mxu0 %v7445_v60  ;;  %v3933_v26 = vrot.slane %v3932_v55, 4  ;;  %v3927_v60 = vadd.f32 %v3926_v54, %v3925_v28  ;;  %v3921_v2 = vrot.slane %v3920_v58, 2  ;;  %v3983_v0 = vmul.f32 %v3967_v59, %v3967_v59 }
 0x326   : > { %4813 = vmatpush.bf16.msrb.mxu1 %v7453_v62  ;;  %v3968_v62 = vmul.f32 0.5, %v3845_v22  ;;  %v4016_v7 = vrot.slane %v3969_v3, 4  ;;  %v4017_v16 = vrot.slane %v3970_v4, 2  ;;  %v4153_v44 = vrot.slane %v4146_v18, 6 }
 0x327   : > { %4826 = vmatpush.bf16.msrb.mxu2 %v7461_v33  ;;  %v3934_v48 = vadd.f32 %v3933_v26, %v3932_v55  ;;  %v8971_v33 = vadd.f32 %v3868_v30, %v3867_v13  ;;  %v3928_v41 = vrot.slane %v3927_v60, 2  ;;  %v3922_v1 = vadd.f32 %v3921_v2, %v3920_v58 }
 0x328   : > { %4839 = vmatpush.bf16.msrb.mxu3 %v7469_v17  ;;  %v3915_v17 = vadd.f32 %v3914_v10, %v3913_v53  ;;  %v4015_v31 = vrot.slane %v3968_v62, 6  ;;  %v3984_v23 = vmul.f32 %v3968_v62, %v3968_v62  ;;  %v4022_v61 = vsel %vm3766_vm1, %v4016_v7, %v4017_v16  ;;  %v3902_v16 = vld.sshfl [vmem:[#allocation1 + $0x38] sm:$0xff pattern:$0x73625140] }
 0x329   : > { %4801 = vmatpush.bf16.msrb.mxu0 %v7444_v14  ;;  %v3935_v5 = vrot.slane %v3934_v48, 2  ;;  %v3929_v9 = vadd.f32 %v3928_v41, %v3927_v60  ;;  %v3923_v14 = vrot.slane %v3922_v1, 1  ;;  %v4155_v47 = vrot.slane %v4148_v38, 2  ;;  %v3899_v41 = vld.sshfl [vmem:[#allocation1 + $0x20] sm:$0xff pattern:$0x73625140] }
 0x32a   : > { %4814 = vmatpush.bf16.msrb.mxu1 %v7452_v15  ;;  %v3916_v19 = vrot.slane %v3915_v17, 1  ;;  %v3985_v15 = vmul.f32 %v3969_v3, %v3969_v3  ;;  %v4021_v30 = vsel %vm3764_vm0, %v3967_v59, %v4015_v31  ;;  %v3876_v6 = vadd.f32 %v3875_v35, %v8964_v32 }
 0x32b   : > { %4827 = vmatpush.bf16.msrb.mxu2 %v7460_v27  ;;  %v3936_v13 = vadd.f32 %v3935_v5, %v3934_v48  ;;  %v3930_v21 = vrot.slane %v3929_v9, 1  ;;  %v3986_v27 = vmul.f32 %v3970_v4, %v3970_v4  ;;  %v3924_v29 = vadd.f32 %v3923_v14, %v3922_v1  ;;  %v3900_v5 = vld.sshfl [vmem:[#allocation1 + $0x28] sm:$0xff pattern:$0x73625140] }
 0x32c   : > { %4840 = vmatpush.bf16.msrb.mxu3 %v7468_v24  ;;  %v3917_v20 = vadd.f32 %v3916_v19, %v3915_v17  ;;  %v4147_v24 = vperm.slane %v8976_v39, 2  ;;  %v4172_v51 = vperm.slane %v8987_v40, 1  ;;  %v3863_v22 = vrot.slane %v3862_v63, 2 }
 0x32d   : > { %v3937_v56 = vrot.slane %v3936_v13, 1  ;;  %v3931_v36 = vadd.f32 %v3930_v21, %v3929_v9  ;;  %v3976_v43 = vmul.f32 0.5, %v3924_v29  ;;  %v8992_v52 = vsel %vm3768_vm2, %v4021_v30, %v4022_v61 }
 0x32e   : > { %v3975_v37 = vmul.f32 0.5, %v3917_v20  ;;  %v4154_v25 = vrot.slane %v4147_v24, 4  ;;  %v4171_v53 = vperm.slane %v8987_v40, 0  ;;  %v4159_v58 = vsel %vm3764_vm0, %v4145_v57, %v4153_v44 }
 0x32f   : > { %v3938_v42 = vadd.f32 %v3937_v56, %v3936_v13  ;;  %v3977_v12 = vmul.f32 0.5, %v3931_v36  ;;  %v3992_v28 = vsub.f32 %v3976_v43, %v3984_v23  ;;  %v4173_v35 = vperm.slane %v8987_v40, 2 }
 0x330   : > { %v3991_v34 = vsub.f32 %v3975_v37, %v3983_v0  ;;  %v4160_v26 = vsel %vm3766_vm1, %v4154_v25, %v4155_v47  ;;  %v4174_v10 = vperm.slane %v8987_v40, 3  ;;  %v4179_v2 = vrot.slane %v4172_v51, 6 }
 0x331   : > { %v3978_v49 = vmul.f32 0.5, %v3938_v42  ;;  %v3993_v50 = vsub.f32 %v3977_v12, %v3985_v15  ;;  %v4000_v55 = vmax.f32 %v3992_v28, 0.0  ;;  %v3864_v48 = vadd.f32 %v3863_v22, %v3862_v63 }
 0x332   : > { %v3999_v8 = vmax.f32 %v3991_v34, 0.0  ;;  %v3881_v17 = vsel %vm3764_vm0, %v8947_v11, 0.0  ;;  %v4029_v4 = vsub.f32 %v8884_v45, %v8992_v52  ;;  %v9014_v1 = vsel %vm3768_vm2, %v4159_v58, %v4160_v26  ;;  %v3901_v11 = vld.sshfl [vmem:[#allocation1 + $0x30] sm:$0xff pattern:$0x73625140]  ;;  %v7443_v58 = vld [vmem:[%s9286_s5 + $0x118] sm:$0xff] }
 0x333   : > { %v3994_v54 = vsub.f32 %v3978_v49, %v3986_v27  ;;  %v4001_v59 = vmax.f32 %v3993_v50, 0.0  ;;  %v9001_v62 = vadd.f32 1e-05, %v4000_v55  ;;  %v9017_v63 = vrot.slane %v4173_v35, 4  ;;  %v7451_v26 = vld [vmem:[%s9286_s5 + $0x158] sm:$0xff]  ;;  %4802 = vmatpush.bf16.msrb.mxu0 %v7443_v58 }
 0x334   : > { %v8997_v32 = vadd.f32 1e-05, %v3999_v8  ;;  %v9019_v31 = vrot.slane %v4174_v10, 2  ;;  %v3865_v7 = vrot.slane %v3864_v48, 1  ;;  %v9024_v19 = vsel %vm3764_vm0, %v4171_v53, %v4179_v2  ;;  %4815 = vmatpush.bf16.msrb.mxu1 %v7451_v26 }
 0x335   : > { %v4002_v60 = vmax.f32 %v3994_v54, 0.0  ;;  %v9003_v3 = vadd.f32 1e-05, %v4001_v59  ;;  %v3870_v9 = vrot.slane %v8971_v33, 2  ;;  %v3877_v23 = vrot.slane %v3876_v6, 2  ;;  %v7459_v59 = vld [vmem:[%s9286_s5 + $0x198] sm:$0xff] }
 0x336   : > { %7532 = vrsqrt.f32 %v8997_v32  ;;  %vm4045_vm3 = vweird.f32 %v8997_v32  ;;  %vm4055_vm4 = vweird.f32 %v9001_v62  ;;  %v3866_v14 = vadd.f32 %v3865_v7, %v3864_v48  ;;  %v7467_v48 = vld [vmem:[%s9286_s5 + $0x1d8] sm:$0xff]  ;;  %4828 = vmatpush.bf16.msrb.mxu2 %v7459_v59 }
 0x337   : > { %v9010_v0 = vadd.f32 1e-05, %v4002_v60  ;;  %7534 = vrsqrt.f32 %v9001_v62  ;;  %v3882_v13 = vrot.slane %v3881_v17, 4  ;;  %v3939_v15 = vsel %vm3764_vm0, %v3899_v41, 0.0  ;;  %4841 = vmatpush.bf16.msrb.mxu3 %v7467_v48 }
 0x338   : > { %7536 = vrsqrt.f32 %v9003_v3  ;;  %v3946_v18 = vsel %vm3764_vm0, %v3900_v5, 0.0  ;;  %vm4065_vm5 = vweird.f32 %v9003_v3  ;;  %v3871_v20 = vadd.f32 %v3870_v9, %v8971_v33  ;;  %v7442_v9 = vld [vmem:[%s9286_s5 + $0x110] sm:$0xff] }
 0x339   : > { %7538 = vrsqrt.f32 %v9010_v0  ;;  %v3878_v21 = vadd.f32 %v3877_v23, %v3876_v6  ;;  %v3940_v27 = vrot.slane %v3939_v15, 4  ;;  %v3947_v24 = vrot.slane %v3946_v18, 4  ;;  %v7450_v23 = vld [vmem:[%s9286_s5 + $0x150] sm:$0xff]  ;;  %4803 = vmatpush.bf16.msrb.mxu0 %v7442_v9 }
 0x33a   : > { %vm4075_vm6 = vweird.f32 %v9010_v0  ;;  %v3883_v56 = vadd.f32 %v3882_v13, %v3881_v17  ;;  %v3953_v30 = vsel %vm3764_vm0, %v3901_v11, 0.0  ;;  %v9037_v61 = vsel %vm3764_vm0, %v3902_v16, 0.0  ;;  %4816 = vmatpush.bf16.msrb.mxu1 %v7450_v23 }
 0x33b   : > { %v9039_v36 = vmul.f32 0.5, %v3866_v14  ;;  %v3872_v57 = vrot.slane %v3871_v20, 1  ;;  %v3879_v38 = vrot.slane %v3878_v21, 1  ;;  %v3941_v25 = vadd.f32 %v3940_v27, %v3939_v15 }
 0x33c   : > { %v9032_v29 = vpop.eup %7532  ;;  %v3884_v44 = vrot.slane %v3883_v56, 2  ;;  %v3948_v35 = vadd.f32 %v3947_v24, %v3946_v18  ;;  %v3954_v10 = vrot.slane %v3953_v30, 4  ;;  %v7458_v18 = vld [vmem:[%s9286_s5 + $0x190] sm:$0xff] }
 0x33d   : > { %v9041_v37 = vpop.eup %7534  ;;  %v4040_v33 = vmul.f32 %v9032_v29, %v8997_v32  ;;  %vm4046_vm7 = vweird.f32 %v9032_v29  ;;  %v9057_v6 = vadd.f32 %v3872_v57, %v3871_v20  ;;  %v9063_v51 = vadd.f32 %v3879_v38, %v3878_v21  ;;  %v7466_v20 = vld [vmem:[%s9286_s5 + $0x1d0] sm:$0xff]  ;;  %4829 = vmatpush.bf16.msrb.mxu2 %v7458_v18 }
 0x33e   : > { %v9046_v42 = vpop.eup %7536  ;;  %v4050_v43 = vmul.f32 %v9041_v37, %v9001_v62  ;;  %vm4056_vm8 = vweird.f32 %v9041_v37  ;;  %v3885_v8 = vadd.f32 %v3884_v44, %v3883_v56  ;;  %v3942_v53 = vrot.slane %v3941_v25, 2  ;;  %vm9083_vm11 = vmor %vm4045_vm3, %vm4046_vm7  ;;  %4842 = vmatpush.bf16.msrb.mxu3 %v7466_v20 }
 0x33f   : > { %v9051_v12 = vpop.eup %7538  ;;  %v4041_v34 = vmul.f32 %v9032_v29, %v4040_v33  ;;  %v4060_v47 = vmul.f32 %v9046_v42, %v9003_v3  ;;  %vm4066_vm9 = vweird.f32 %v9046_v42  ;;  %v3949_v16 = vrot.slane %v3948_v35, 2  ;;  %vm9098_vm12 = vmor %vm4055_vm4, %vm4056_vm8 }
 0x340   : > { %v4051_v49 = vmul.f32 %v9041_v37, %v4050_v43  ;;  %v4070_v28 = vmul.f32 %v9051_v12, %v9010_v0  ;;  %vm4076_vm10 = vweird.f32 %v9051_v12  ;;  %v3886_v17 = vrot.slane %v3885_v8, 1  ;;  %vm9113_vm13 = vmor %vm4065_vm5, %vm4066_vm9  ;;  %v7449_v0 = vld [vmem:[%s9286_s5 + $0x148] sm:$0xff] }
 0x341   : > { %v4042_v22 = vmul.f32 0.5, %v4041_v34  ;;  %v4061_v50 = vmul.f32 %v9046_v42, %v4060_v47  ;;  %v3943_v41 = vadd.f32 %v3942_v53, %v3941_v25  ;;  %v3955_v14 = vadd.f32 %v3954_v10, %v3953_v30  ;;  %vm9125_vm14 = vmor %vm4075_vm6, %vm4076_vm10  ;;  %4817 = vmatpush.bf16.msrb.mxu1 %v7449_v0 }
 0x342   : > { %v4052_v54 = vmul.f32 0.5, %v4051_v49  ;;  %v4071_v55 = vmul.f32 %v9051_v12, %v4070_v28  ;;  %v3887_v21 = vadd.f32 %v3886_v17, %v3885_v8  ;;  %v3950_v30 = vadd.f32 %v3949_v16, %v3948_v35 }
 0x343   : > { %v4043_v60 = vsub.f32 1.5, %v4042_v22  ;;  %v4062_v2 = vmul.f32 0.5, %v4061_v50  ;;  %v3944_v27 = vrot.slane %v3943_v41, 1  ;;  %v3956_v33 = vrot.slane %v3955_v14, 2  ;;  %v7465_v50 = vld [vmem:[%s9286_s5 + $0x1c8] sm:$0xff] }
 0x344   : > { %v4053_v7 = vsub.f32 1.5, %v4052_v54  ;;  %v4072_v11 = vmul.f32 0.5, %v4071_v55  ;;  %v3961_v44 = vrot.slane %v9037_v61, 4  ;;  %v3951_v47 = vrot.slane %v3950_v30, 1  ;;  %4843 = vmatpush.bf16.msrb.mxu3 %v7465_v50 }
 0x345   : > { %v4044_v32 = vmul.f32 %v9032_v29, %v4043_v60  ;;  %v4063_v15 = vsub.f32 1.5, %v4062_v2  ;;  %v3945_v3 = vadd.f32 %v3944_v27, %v3943_v41  ;;  %v3957_v49 = vadd.f32 %v3956_v33, %v3955_v14 }
 0x346   : > { %v4054_v24 = vmul.f32 %v9041_v37, %v4053_v7  ;;  %v4073_v56 = vsub.f32 1.5, %v4072_v11  ;;  %v3962_v8 = vadd.f32 %v3961_v44, %v9037_v61  ;;  %v9151_v53 = vmul.f32 0.5, %v9057_v6  ;;  %v7448_v6 = vld [vmem:[%s9286_s5 + $0x140] sm:$0xff] }
 0x347   : > { %v4048_v57 = vsel %vm9083_vm11, %v9032_v29, %v4044_v32  ;;  %v4064_v38 = vmul.f32 %v9046_v42, %v4063_v15  ;;  %v7441_v29 = vld [vmem:[%s9286_s5 + $0x108] sm:$0xff]  ;;  %v3952_v55 = vadd.f32 %v3951_v47, %v3950_v30  ;;  %v3958_v58 = vrot.slane %v3957_v49, 1  ;;  %4818 = vmatpush.bf16.msrb.mxu1 %v7448_v6 }
 0x348   : > { %v4058_v25 = vsel %vm9098_vm12, %v9041_v37, %v4054_v24  ;;  %v4074_v34 = vmul.f32 %v9051_v12, %v4073_v56  ;;  %v7457_v37 = vld [vmem:[%s9286_s5 + $0x188] sm:$0xff]  ;;  %v3963_v35 = vrot.slane %v3962_v8, 2  ;;  %v9158_v10 = vmul.f32 0.5, %v9063_v51  ;;  %4804 = vmatpush.bf16.msrb.mxu0 %v7441_v29 }
 0x349   : > { %v4068_v28 = vsel %vm9113_vm13, %v9046_v42, %v4064_v38  ;;  %v4127_v22 = vrot.slane %v4058_v25, 6  ;;  %v4186_v61 = vsel %vm3766_vm1, %v9017_v63, %v9019_v31  ;;  %v3959_v60 = vadd.f32 %v3958_v58, %v3957_v49  ;;  %4830 = vmatpush.bf16.msrb.mxu2 %v7457_v37  ;;  %v7456_v63 = vld [vmem:[%s9286_s5 + $0x180] sm:$0xff] }
 0x34a   : > { %v4078_v42 = vsel %vm9125_vm14, %v9051_v12, %v4074_v34  ;;  %v4128_v54 = vrot.slane %v4068_v28, 4  ;;  %v7440_v12 = vld [vmem:[%s9286_s5 + $0x100] sm:$0xff]  ;;  %v3979_v2 = vmul.f32 0.5, %v3945_v3  ;;  %v3980_v48 = vmul.f32 0.5, %v3952_v55 }
 0x34b   : > { %v4129_v26 = vrot.slane %v4078_v42, 2  ;;  %v4133_v59 = vsel %vm3764_vm0, %v4048_v57, %v4127_v22  ;;  %v7464_v31 = vld [vmem:[%s9286_s5 + $0x1c0] sm:$0xff]  ;;  %v3964_v17 = vadd.f32 %v3963_v35, %v3962_v8  ;;  %v9176_v41 = vmul.f32 0.5, %v3887_v21 }
 0x34c   : > { %v3987_v5 = vmul.f32 %v9039_v36, %v9039_v36  ;;  %v3981_v11 = vmul.f32 0.5, %v3959_v60  ;;  %v3988_v9 = vmul.f32 %v9151_v53, %v9151_v53  ;;  %v3989_v23 = vmul.f32 %v9158_v10, %v9158_v10  ;;  %4805 = vmatpush.bf16.msrb.mxu0 %v7440_v12  ;;  %4844 = vmatpush.bf16.msrb.mxu3 %v7464_v31 }
 0x34d   : > { %v4134_v51 = vsel %vm3766_vm1, %v4128_v54, %v4129_v26  ;;  %v3965_v14 = vrot.slane %v3964_v17, 1  ;;  %v4187_v13 = vsel %vm3768_vm2, %v9024_v19, %v4186_v61  ;;  %4831 = vmatpush.bf16.msrb.mxu2 %v7456_v63  ;;  %v3990_v27 = vmul.f32 %v9176_v41, %v9176_v41 }
 0x34e   : > { %v4135_v7 = vsel %vm3768_vm2, %v4133_v59, %v4134_v51  ;;  %v3995_v32 = vsub.f32 %v3979_v2, %v3987_v5  ;;  %v3996_v15 = vsub.f32 %v3980_v48, %v3988_v9  ;;  %v3997_v18 = vsub.f32 %v3981_v11, %v3989_v23 }
 0x34f   : > { %v4141_v16 = vmul.f32 %v4135_v7, %v4029_v4  ;;  %v3966_v21 = vadd.f32 %v3965_v14, %v3964_v17  ;;  %v4018_v44 = vrot.slane %v9151_v53, 6  ;;  %v4019_v47 = vrot.slane %v9158_v10, 4 }
 0x350   : > { %v4003_v24 = vmax.f32 %v3995_v32, 0.0  ;;  %v4004_v45 = vmax.f32 %v3996_v15, 0.0  ;;  %v4005_v52 = vmax.f32 %v3997_v18, 0.0  ;;  %v4020_v49 = vrot.slane %v9176_v41, 2 }
 0x351   : > { %v4167_v20 = vmul.f32 %v9014_v1, %v4141_v16  ;;  %v3982_v62 = vmul.f32 0.5, %v3966_v21  ;;  %v4024_v8 = vsel %vm3764_vm0, %v9039_v36, %v4018_v44  ;;  %v4150_v51 = vperm.slane %v8976_v39, 5 }
 0x352   : > { %v9193_v56 = vadd.f32 1e-05, %v4003_v24  ;;  %v4036_v19 = vadd.f32 1e-05, %v4004_v45  ;;  %v4037_v30 = vadd.f32 1e-05, %v4005_v52  ;;  %v4025_v60 = vsel %vm3766_vm1, %v4019_v47, %v4020_v49 }
 0x353   : > { %v4193_v4 = vadd.f32 %v4187_v13, %v4167_v20  ;;  %v3998_v57 = vsub.f32 %v3982_v62, %v3990_v27  ;;  %v4151_v7 = vperm.slane %v8976_v39, 6  ;;  %v4152_v11 = vperm.slane %v8976_v39, 7 }
 0x354   : > { %7540 = vrsqrt.f32 %v9193_v56  ;;  %vm4095_vm3 = vweird.f32 %v4036_v19  ;;  %vm4105_vm5 = vweird.f32 %v4037_v30  ;;  %vm4085_vm7 = vweird.f32 %v9193_v56 }
 0x355   : > { %vm4195_vm15 = vcmp.gt.f32.partialorder %v4193_v4, 0.0  ;;  %v4197_v33 = vmul.f32 0.2, %v4193_v4  ;;  %7542 = vrsqrt.f32 %v4036_v19  ;;  %v4006_v38 = vmax.f32 %v3998_v57, 0.0 }
 0x356   : > { %7544 = vrsqrt.f32 %v4037_v30  ;;  %v4176_v13 = vperm.slane %v8987_v40, 5  ;;  %v4177_v15 = vperm.slane %v8987_v40, 6  ;;  %v4178_v18 = vperm.slane %v8987_v40, 7 }
 0x357   : > { %v4199_v1 = vsel %vm4195_vm15, %v4193_v4, %v4197_v33  ;;  %v9196_v43 = vadd.f32 1e-05, %v4006_v38  ;;  %v4026_v20 = vsel %vm3768_vm2, %v4024_v8, %v4025_v60  ;;  %v4149_v24 = vperm.slane %v8976_v39, 4 }
 0x358   : > { %4203 = vst [vmem:[#allocation1] ss:$4 sm:$0xff] %v4199_v1  ;;  %v4156_v52 = vrot.slane %v4150_v51, 6  ;;  %v4157_v4 = vrot.slane %v4151_v7, 4  ;;  %v4158_v62 = vrot.slane %v4152_v11, 2  ;;  %v4182_v57 = vrot.slane %v4176_v13, 6 }
 0x359   : > { %7546 = vrsqrt.f32 %v9196_v43  ;;  %vm4115_vm11 = vweird.f32 %v9196_v43  ;;  %v4183_v1 = vrot.slane %v4177_v15, 4  ;;  %v4184_v38 = vrot.slane %v4178_v18, 2  ;;  %v7531_v51 = vld [vmem:[#allocation3] ss:$0 sm:$0xff] }
 0x35a   : > { %v9198_v3 = vpop.eup %7540  ;;  %v4030_v39 = vsub.f32 %v8887_v46, %v4026_v20 }
 0x35b   : > { %v7543_v25 = vpop.eup %7542  ;;  %v4080_v34 = vmul.f32 %v9198_v3, %v9193_v56  ;;  %vm4086_vm8 = vweird.f32 %v9198_v3 }
 0x35c   : > { %v9204_v29 = vpop.eup %7544  ;;  %v4090_v0 = vmul.f32 %v7543_v25, %v4036_v19  ;;  %vm4096_vm4 = vweird.f32 %v7543_v25  ;;  %vm9235_vm13 = vmor %vm4085_vm7, %vm4086_vm8 }
 0x35d   : > { %v4081_v28 = vmul.f32 %v9198_v3, %v4080_v34  ;;  %v4100_v22 = vmul.f32 %v9204_v29, %v4037_v30  ;;  %vm4106_vm6 = vweird.f32 %v9204_v29  ;;  %vm9221_vm9 = vmor %vm4095_vm3, %vm4096_vm4  ;;  %v4175_v30 = vperm.slane %v8987_v40, 4 }
 0x35e   : > { %v4091_v53 = vmul.f32 %v7543_v25, %v4090_v0  ;;  %vm9226_vm10 = vmor %vm4105_vm5, %vm4106_vm6  ;;  %v4162_v34 = vsel %vm3764_vm0, %v4149_v24, %v4156_v52  ;;  %v4189_v40 = vsel %vm3766_vm1, %v4183_v1, %v4184_v38 }
 0x35f   : > { %v4206_v37 = vld.sshfl [vmem:[#allocation1] sm:$0xff pattern:$0x73625140]  ;;  %v4207_v50 = vld.sshfl [vmem:[#allocation1 + $0x8] sm:$0xff pattern:$0x73625140]  ;;  %v4101_v26 = vmul.f32 %v9204_v29, %v4100_v22  ;;  %v7547_v59 = vpop.eup %7546 }
 0x360   : > { %v4222_v42 = vpack.c.bf16 %v4206_v37, %v4206_v37  ;;  %v4223_v54 = vpack.c.bf16 %v4207_v50, %v4207_v50  ;;  %v4208_v55 = vld.sshfl [vmem:[#allocation1 + $0x10] sm:$0xff pattern:$0x73625140]  ;;  %v4209_v58 = vld.sshfl [vmem:[#allocation1 + $0x18] sm:$0xff pattern:$0x73625140]  ;;  %v4110_v36 = vmul.f32 %v7547_v59, %v9196_v43  ;;  %vm4116_vm12 = vweird.f32 %v7547_v59 }
 0x361   : > { %v4224_v35 = vpack.c.bf16 %v4208_v55, %v4208_v55  ;;  %v4225_v10 = vpack.c.bf16 %v4209_v58, %v4209_v58  ;;  %v4082_v61 = vmul.f32 0.5, %v4081_v28  ;;  %v4092_v12 = vmul.f32 0.5, %v4091_v53  ;;  %vm4117_vm14 = vmor %vm4115_vm11, %vm4116_vm12 }
 0x362   : > { %4754 = vmatmul.bf16.vlgmr.msra.gmra.mxu0 %v4222_v42  ;;  %4767 = vmatmul.bf16.vlgmr.msra.gmra.mxu1 %v4223_v54  ;;  %v4102_v6 = vmul.f32 0.5, %v4101_v26  ;;  %v4111_v17 = vmul.f32 %v7547_v59, %v4110_v36 }
 0x363   : > { %4780 = vmatmul.bf16.vlgmr.msra.gmra.mxu2 %v4224_v35  ;;  %4793 = vmatmul.bf16.vlgmr.msra.gmra.mxu3 %v4225_v10  ;;  %v4083_v2 = vsub.f32 1.5, %v4082_v61  ;;  %v4093_v48 = vsub.f32 1.5, %v4092_v12 }
 0x364   : > { %v4103_v31 = vsub.f32 1.5, %v4102_v6  ;;  %v4112_v16 = vmul.f32 0.5, %v4111_v17 }
 0x365   : > { %v4094_v41 = vmul.f32 %v7543_v25, %v4093_v48  ;;  %v4084_v9 = vmul.f32 %v9198_v3, %v4083_v2 }
 0x366   : > { %v4104_v23 = vmul.f32 %v9204_v29, %v4103_v31  ;;  %v4113_v27 = vsub.f32 1.5, %v4112_v16 }
 0x367   : > { %v4098_v32 = vsel %vm9221_vm9, %v7543_v25, %v4094_v41  ;;  %v4088_v56 = vsel %vm9235_vm13, %v9198_v3, %v4084_v9  ;;  %v4188_v3 = vsel %vm3764_vm0, %v4175_v30, %v4182_v57 }
 0x368   : > { %v4108_v21 = vsel %vm9226_vm10, %v9204_v29, %v4104_v23  ;;  %v4130_v45 = vrot.slane %v4098_v32, 6  ;;  %v4114_v19 = vmul.f32 %v7547_v59, %v4113_v27  ;;  %v4163_v29 = vsel %vm3766_vm1, %v4157_v4, %v4158_v62 }
 0x369   : > { %v4131_v33 = vrot.slane %v4108_v21, 4  ;;  %v4164_v49 = vsel %vm3768_vm2, %v4162_v34, %v4163_v29  ;;  %v4190_v46 = vsel %vm3768_vm2, %v4188_v3, %v4189_v40 }
 0x36a   : > { %v4118_v44 = vsel %vm4117_vm14, %v7547_v59, %v4114_v19  ;;  %v4136_v25 = vsel %vm3764_vm0, %v4088_v56, %v4130_v45  ;;  %vm4850_vm0 = vcmask 1024  }
 0x36b   : > { %v4132_v43 = vrot.slane %v4118_v44, 2 }
 0x36d   : > { %v4137_v0 = vsel %vm3766_vm1, %v4131_v33, %v4132_v43 }
 0x36e   : > { %v4138_v47 = vsel %vm3768_vm2, %v4136_v25, %v4137_v0 }
 0x36f   : > { %v4142_v28 = vmul.f32 %v4138_v47, %v4030_v39 }
 0x371   : > { %v4168_v22 = vmul.f32 %v4164_v49, %v4142_v28 }
 0x373   : > { %v4194_v37 = vadd.f32 %v4190_v46, %v4168_v22 }
 0x375   : > { %vm4196_vm15 = vcmp.gt.f32.partialorder %v4194_v37, 0.0  ;;  %v4198_v50 = vmul.f32 0.2, %v4194_v37 }
 0x377   : > { %v4200_v8 = vsel %vm4196_vm15, %v4194_v37, %v4198_v50 }
 0x378   : > { %4205 = vst [vmem:[#allocation1 + $0x20] ss:$4 sm:$0xff] %v4200_v8 }
 0x37f   : > { %v4210_v53 = vld.sshfl [vmem:[#allocation1 + $0x20] sm:$0xff pattern:$0x73625140]  ;;  %v4211_v42 = vld.sshfl [vmem:[#allocation1 + $0x28] sm:$0xff pattern:$0x73625140] }
 0x380   : > { %v4226_v54 = vpack.c.bf16 %v4210_v53, %v4210_v53  ;;  %v4227_v55 = vpack.c.bf16 %v4211_v42, %v4211_v42  ;;  %v4212_v58 = vld.sshfl [vmem:[#allocation1 + $0x30] sm:$0xff pattern:$0x73625140]  ;;  %v4213_v26 = vld.sshfl [vmem:[#allocation1 + $0x38] sm:$0xff pattern:$0x73625140] }
 0x381   : > { %v4228_v59 = vpack.c.bf16 %v4212_v58, %v4212_v58  ;;  %v4229_v35 = vpack.c.bf16 %v4213_v26, %v4213_v26 }
 0x382   : > { %4806 = vmatmul.bf16.vlgmr.msrb.gmra.mxu0 %v4226_v54  ;;  %4819 = vmatmul.bf16.vlgmr.msrb.gmra.mxu1 %v4227_v55 }
 0x383   : > { %4832 = vmatmul.bf16.vlgmr.msrb.gmra.mxu2 %v4228_v59  ;;  %4845 = vmatmul.bf16.vlgmr.msrb.gmra.mxu3 %v4229_v35 }
 0x3df   : > { %v4755_v10 = vpop.f32.mrf.mxu0  ;;  %v4768_v61 = vpop.f32.mrf.mxu1 }
 0x3e0   : > { %v4756_v63 = vadd.f32 %v7531_v51, %v4755_v10 }
 0x3e2   : > { %v4769_v31 = vadd.f32 %v4768_v61, %v4756_v63 }
 0x3e6   : > { %v4781_v12 = vpop.f32.mrf.mxu2  ;;  %v4794_v6 = vpop.f32.mrf.mxu3 }
 0x3e7   : > { %v4757_v36 = vpop.f32.mrf.mxu0  ;;  %v4770_v60 = vpop.f32.mrf.mxu1  ;;  %v4782_v17 = vadd.f32 %v4781_v12, %v4769_v31 }
 0x3e9   : > { %v4795_v41 = vadd.f32 %v4794_v6, %v4782_v17 }
 0x3ee   : > { %v4783_v2 = vpop.f32.mrf.mxu2  ;;  %v4796_v48 = vpop.f32.mrf.mxu3 }
 0x3ff   : > { %v4807_v5 = vpop.f32.mrf.mxu0  ;;  %v4820_v7 = vpop.f32.mrf.mxu1 }
 0x400   : > { %v4808_v11 = vadd.f32 %v4807_v5, %v4795_v41 }
 0x402   : > { %v4821_v9 = vadd.f32 %v4820_v7, %v4808_v11 }
 0x406   : > { %v4833_v23 = vpop.f32.mrf.mxu2  ;;  %v4846_v16 = vpop.f32.mrf.mxu3 }
 0x407   : > { %v4834_v14 = vadd.f32 %v4833_v23, %v4821_v9  ;;  %v4809_v32 = vpop.f32.mrf.mxu0  ;;  %v4822_v13 = vpop.f32.mrf.mxu1 }
 0x409   : > { %v4847_v15 = vadd.f32 %v4846_v16, %v4834_v14 }
 0x40b   : > { %4851 = vst.msk [vmem:[%s9288_s7] sm:$0x3] %vm4850_vm0, %v4847_v15 }
 0x40e   : > { %v4835_v18 = vpop.f32.mrf.mxu2  ;;  %v4848_v20 = vpop.f32.mrf.mxu3 }
 0x40f PF: > { %p19_p9 = scmp.ge.s32.totalorder %s7682_s30, 9   ;;  %s9305_s26 = smov %s7604_s27 }
 0x410   : > { %s9306_s27 = smov %s7608_s28  ;;  %s9307_s28 = smov %s7692_s10 }
 0x411   : > { %s9308_s29 = smov %s7682_s30  ;;  %21 = sbr.rel (!%p19_p9) target bundleno = 6 (0x6), region = 98 }
 0x416   :  { %4863 = vsyncpa [#allocation5], 1 }
 0x417   :  { %4865 = vsyncpa [#allocation5 + $0x1], 1 }

</bundles_post_ra>
